<compile_context>
chip_gen: v6e
topology: v6e:2x2x1
jax: 0.10.0
libtpu: 0.0.40
codegen_flags: <defaults>
</compile_context>

<pallas_src>
import jax
import jax.numpy as jnp
from jax.experimental import pallas as pl
from jax.experimental.pallas import tpu as pltpu


# --------------------------------------------------------------------------- #
# Kernel 1: GRU recurrence over a chunk of C steps per grid iteration.        #
# --------------------------------------------------------------------------- #
def _gru_recurrence_kernel(
    x_ref,              # (C, H)   embedding rows for this chunk (pre-gathered)
    hid0_ref,           # (1, H)   initial hidden state
    wih_ref,            # (H, 3H)  fused GRU input weights, columns [r|z|n]
    whh_ref,            # (H, 3H)  fused GRU hidden weights, columns [r|z|n]
    bih_ref,            # (1, 3H)
    bhh_ref,            # (1, 3H)
    hall_ref,           # out (C, H)  h_t for every step in this chunk
    hfin_ref,           # out (1, H)  hidden carry (constant index map -> VMEM-resident)
):
    f32 = jnp.float32
    C, H = x_ref.shape

    @pl.when(pl.program_id(0) == 0)
    def _():
        hfin_ref[...] = hid0_ref[...]

    # Batched, token-only part: relu + (C,H)x(H,3H) matmul once per chunk.
    x = jnp.maximum(x_ref[...], 0.0)                                          # (C, H)
    gi = jnp.dot(x, wih_ref[...], preferred_element_type=f32) + bih_ref[...]  # (C, 3H)

    whh = whh_ref[...]
    bhh = bhh_ref[...]
    h = hfin_ref[...]                                                         # (1, H)

    hs = []
    # Static unroll (C is small); equivalent to lax.fori_loop(0, C, ..., unroll=True)
    # but with static (free) sublane slices of gi.
    for c in range(C):
        gh = jnp.dot(h, whh, preferred_element_type=f32) + bhh                # (1, 3H)
        gic = gi[c:c + 1, :]                                                  # (1, 3H)
        # fused sigmoid over [r|z] (one lane-dense EUP op instead of two)
        rz = jax.nn.sigmoid(gic[:, :2 * H] + gh[:, :2 * H])                   # (1, 2H)
        r, z = rz[:, :H], rz[:, H:]
        n = jnp.tanh(gic[:, 2 * H:] + r * gh[:, 2 * H:])
        h = (1.0 - z) * n + z * h                                             # (1, H)
        hs.append(h)

    hall_ref[...] = jnp.concatenate(hs, axis=0).astype(hall_ref.dtype)        # one (C,H) store
    hfin_ref[...] = h.astype(hfin_ref.dtype)                                  # carry (resident)


# --------------------------------------------------------------------------- #
# Kernel 2: batched output projection + log_softmax epilogue.                 #
# --------------------------------------------------------------------------- #
def _proj_logsoftmax_kernel(h_ref, wo_ref, bo_ref, logp_ref):
    f32 = jnp.float32
    h = h_ref[...].astype(wo_ref.dtype)                                       # bf16 at the MXU
    logits = jnp.dot(h, wo_ref[...], preferred_element_type=f32) + bo_ref[...]  # (R, Vp)
    m = jnp.max(logits, axis=-1, keepdims=True)
    s = logits - m
    logp = s - jnp.log(jnp.sum(jnp.exp(s), axis=-1, keepdims=True))
    logp_ref[...] = logp.astype(logp_ref.dtype)


def decoder_rnn_decode(tokens, hidden0, params, *, chunk=8, proj_rows=8):
    """Run T decoder steps (teacher-forced token sequence) with Pallas TPU kernels.

    tokens:  int32 (T,)   input token per step
    hidden0: (1, 1, H)    initial hidden state
    returns: (log_probs (T, V), final hidden (1, 1, H))
    """
    f32 = jnp.float32
    H = hidden0.shape[-1]
    V = params["out_w"].shape[0]
    T = tokens.shape[0]
    Vp = ((V + 127) // 128) * 128                       # lane-dense output width
    assert T % chunk == 0 and T % proj_rows == 0

    # --- wrapper-side layout plumbing (free): pre-transpose & fuse weights ----
    w_ih_all = params["gru_w_ih"].T.astype(f32)         # (H, 3H), columns [r|z|n]
    w_hh_all = params["gru_w_hh"].T.astype(f32)         # (H, 3H)
    b_ih_all = params["gru_b_ih"].reshape(1, 3 * H).astype(f32)
    b_hh_all = params["gru_b_hh"].reshape(1, 3 * H).astype(f32)
    wo = params["out_w"].T.astype(f32)                  # (H, V)
    bo = params["out_b"].reshape(1, V).astype(f32)
    if Vp != V:
        wo = jnp.pad(wo, ((0, 0), (0, Vp - V)))
        bo = jnp.pad(bo, ((0, 0), (0, Vp - V)), constant_values=-1e30)
    wo_bf16 = wo.astype(jnp.bfloat16)                   # halves DMA bytes / resident VMEM

    # Embedding gather hoisted out of the recurrence (depends only on tokens).
    x_all = jnp.take(params["emb"].astype(f32), tokens.astype(jnp.int32), axis=0)  # (T, H)
    hid2d = hidden0.reshape(1, H).astype(f32)

    # ---------------- pallas_call 1: sequential GRU recurrence ---------------
    rec_grid = pltpu.PrefetchScalarGridSpec(
        num_scalar_prefetch=0,
        grid=(T // chunk,),
        in_specs=[
            pl.BlockSpec((chunk, H), lambda i: (i, 0)),       # chunk of embedding rows
            pl.BlockSpec((1, H), lambda i: (0, 0)),           # initial hidden
            pl.BlockSpec((H, 3 * H), lambda i: (0, 0)),       # W_ih (resident)
            pl.BlockSpec((H, 3 * H), lambda i: (0, 0)),       # W_hh (resident)
            pl.BlockSpec((1, 3 * H), lambda i: (0, 0)),
            pl.BlockSpec((1, 3 * H), lambda i: (0, 0)),
        ],
        out_specs=(
            pl.BlockSpec((chunk, H), lambda i: (i, 0)),       # h_t for every step
            pl.BlockSpec((1, H), lambda i: (0, 0)),           # final hidden (carry)
        ),
    )
    h_all, h_fin = pl.pallas_call(
        _gru_recurrence_kernel,
        out_shape=(jax.ShapeDtypeStruct((T, H), f32),
                   jax.ShapeDtypeStruct((1, H), f32)),
        grid_spec=rec_grid,
        compiler_params=pltpu.CompilerParams(
            dimension_semantics=("arbitrary",)),              # sequential recurrence axis
    )(x_all, hid2d, w_ih_all, w_hh_all, b_ih_all, b_hh_all)

    # --------- pallas_call 2: batched projection + log_softmax epilogue ------
    # TODO(synk): for realistic vocab sizes (e.g. 32k) additionally tile W_out over
    # a "parallel" V axis with a two-pass log-softmax and set vmem_limit_bytes for
    # the v7x 64 MiB VMEM budget.
    proj_grid = pltpu.PrefetchScalarGridSpec(
        num_scalar_prefetch=0,
        grid=(T // proj_rows,),
        in_specs=[
            pl.BlockSpec((proj_rows, H), lambda i: (i, 0)),
            pl.BlockSpec((H, Vp), lambda i: (0, 0)),          # W_out bf16 (resident)
            pl.BlockSpec((1, Vp), lambda i: (0, 0)),
        ],
        out_specs=pl.BlockSpec((proj_rows, Vp), lambda i: (i, 0)),
    )
    logp_pad = pl.pallas_call(
        _proj_logsoftmax_kernel,
        out_shape=jax.ShapeDtypeStruct((T, Vp), f32),
        grid_spec=proj_grid,
        compiler_params=pltpu.CompilerParams(
            dimension_semantics=("parallel",)),               # rows independent (v7x 2 TCs)
    )(h_all, wo_bf16, bo)

    return logp_pad[:, :V], h_fin.reshape(1, 1, H)


# --------------------------------------------------------------------------- #
# Pure-JAX reference: apply DecoderRNN.forward sequentially over tokens.      #
# --------------------------------------------------------------------------- #
def _reference_decode(tokens, hidden0, params):
    H = hidden0.shape[-1]

    def step(h, tok):
        x = jnp.maximum(params["emb"][tok].reshape(1, H), 0.0)
        gi = x @ params["gru_w_ih"].T + params["gru_b_ih"]
        gh = h @ params["gru_w_hh"].T + params["gru_b_hh"]
        r = jax.nn.sigmoid(gi[:, :H] + gh[:, :H])
        z = jax.nn.sigmoid(gi[:, H:2 * H] + gh[:, H:2 * H])
        n = jnp.tanh(gi[:, 2 * H:] + r * gh[:, 2 * H:])
        h_new = (1.0 - z) * n + z * h
        logits = h_new @ params["out_w"].T + params["out_b"]
        logp = jax.nn.log_softmax(logits, axis=1)
        return h_new, logp[0]

    h_fin, logps = jax.lax.scan(step, hidden0.reshape(1, H), tokens)
    return logps, h_fin.reshape(1, 1, H)


if __name__ == "__main__":
    H = 256    # hidden_size (matches the module)
    V = 300    # output_size (vocab); not a multiple of 128 -> exercises lane padding
    T = 16     # decode steps
    C = 8      # steps per grid iteration in the recurrent kernel

    key = jax.random.PRNGKey(0)
    ks = jax.random.split(key, 8)
    scale = 0.1
    params = {
        "emb":      scale * jax.random.normal(ks[0], (V, H), jnp.float32),
        "gru_w_ih": scale * jax.random.normal(ks[1], (3 * H, H), jnp.float32),
        "gru_w_hh": scale * jax.random.normal(ks[2], (3 * H, H), jnp.float32),
        "gru_b_ih": scale * jax.random.normal(ks[3], (3 * H,), jnp.float32),
        "gru_b_hh": scale * jax.random.normal(ks[4], (3 * H,), jnp.float32),
        "out_w":    scale * jax.random.normal(ks[5], (V, H), jnp.float32),
        "out_b":    scale * jax.random.normal(ks[6], (V,), jnp.float32),
    }

    tokens = jax.random.randint(ks[7], (T,), 0, V, dtype=jnp.int32)
    hidden0 = jnp.zeros((1, 1, H), jnp.float32)   # DecoderRNN.initHidden()

    logp, h_fin = decoder_rnn_decode(tokens, hidden0, params, chunk=C, proj_rows=8)
    jax.block_until_ready((logp, h_fin))

    # sanity check against a pure-JAX sequential reference
    r_logp, r_h = _reference_decode(tokens, hidden0, params)
    # hidden path is all-f32 -> tight; log-probs use a bf16 W_out (f32 accumulate).
    assert jnp.allclose(h_fin, r_h, atol=1e-3), "hidden mismatch"
    assert jnp.allclose(logp, r_logp, atol=3e-2), "log-prob mismatch"

    print("KERNEL_OK")
</pallas_src>

<mosaic_0001>
module attributes {stable_mosaic.version = 11 : i64} {
  func.func @_gru_recurrence_kernel(%arg0: i32, %arg1: memref<8x256xf32, #tpu.memory_space<vmem>>, %arg2: memref<1x256xf32, #tpu.memory_space<vmem>>, %arg3: memref<256x768xf32, #tpu.memory_space<vmem>>, %arg4: memref<256x768xf32, #tpu.memory_space<vmem>>, %arg5: memref<1x768xf32, #tpu.memory_space<vmem>>, %arg6: memref<1x768xf32, #tpu.memory_space<vmem>>, %arg7: memref<8x256xf32, #tpu.memory_space<vmem>>, %arg8: memref<1x256xf32, #tpu.memory_space<vmem>>) attributes {dimension_semantics = [#tpu.dimension_semantics<arbitrary>], iteration_bounds = array<i64: 2>, scalar_prefetch = 0 : i64, scratch_operands = 0 : i64, tpu.core_type = #tpu.core_type<tc>, window_params = [{transform_indices = @transform_0, window_bounds = array<i64: 8, 256>}, {pipeline_mode = #tpu.pipeline_mode<synchronous>, transform_indices = @transform_1, window_bounds = array<i64: 1, 256>}, {pipeline_mode = #tpu.pipeline_mode<synchronous>, transform_indices = @transform_2, window_bounds = array<i64: 256, 768>}, {pipeline_mode = #tpu.pipeline_mode<synchronous>, transform_indices = @transform_3, window_bounds = array<i64: 256, 768>}, {pipeline_mode = #tpu.pipeline_mode<synchronous>, transform_indices = @transform_4, window_bounds = array<i64: 1, 768>}, {pipeline_mode = #tpu.pipeline_mode<synchronous>, transform_indices = @transform_5, window_bounds = array<i64: 1, 768>}, {transform_indices = @transform_6, window_bounds = array<i64: 8, 256>}, {pipeline_mode = #tpu.pipeline_mode<synchronous>, transform_indices = @transform_7, window_bounds = array<i64: 1, 256>}]} {
    %c0_i32 = arith.constant 0 : i32
    %0 = arith.cmpi eq, %arg0, %c0_i32 : i32
    %1 = arith.extui %0 : i1 to i32
    %c0_i32_0 = arith.constant 0 : i32
    %2 = arith.cmpi ne, %1, %c0_i32_0 : i32
    scf.if %2 {
      %c0_41 = arith.constant 0 : index
      %c0_42 = arith.constant 0 : index
      %201 = vector.load %arg2[%c0_41, %c0_42] : memref<1x256xf32, #tpu.memory_space<vmem>>, vector<1x256xf32>
      %c0_43 = arith.constant 0 : index
      %c0_44 = arith.constant 0 : index
      %202 = vector.load %arg8[%c0_43, %c0_44] : memref<1x256xf32, #tpu.memory_space<vmem>>, vector<1x256xf32>
      tpu.vector_store %arg8[%c0_43, %c0_44], %201 {strides = array<i32>} : memref<1x256xf32, #tpu.memory_space<vmem>>, vector<1x256xf32>,
    } else {
    }
    %c0 = arith.constant 0 : index
    %c0_1 = arith.constant 0 : index
    %3 = vector.load %arg1[%c0, %c0_1] : memref<8x256xf32, #tpu.memory_space<vmem>>, vector<8x256xf32>
    %cst = arith.constant 0.000000e+00 : f32
    %4 = vector.broadcast %cst : f32 to vector<8x256xf32>
    %5 = arith.maximumf %3, %4 : vector<8x256xf32>
    %c0_2 = arith.constant 0 : index
    %c0_3 = arith.constant 0 : index
    %6 = vector.load %arg3[%c0_2, %c0_3] : memref<256x768xf32, #tpu.memory_space<vmem>>, vector<256x768xf32>
    %cst_4 = arith.constant dense<0.000000e+00> : vector<8x768xf32>
    %7 = tpu.matmul %5, %6, %cst_4 {dimension_numbers = #tpu.dot_dimension_numbers<[1], [0], [0], [1], [0, 0, 1, 1], [], []>} : vector<8x256xf32>, vector<256x768xf32>, vector<8x768xf32> -> vector<8x768xf32>
    %c0_5 = arith.constant 0 : index
    %c0_6 = arith.constant 0 : index
    %8 = vector.load %arg5[%c0_5, %c0_6] : memref<1x768xf32, #tpu.memory_space<vmem>>, vector<1x768xf32>
    %9 = vector.broadcast %8 : vector<1x768xf32> to vector<8x768xf32>
    %10 = arith.addf %7, %9 : vector<8x768xf32>
    %c0_7 = arith.constant 0 : index
    %c0_8 = arith.constant 0 : index
    %11 = vector.load %arg4[%c0_7, %c0_8] : memref<256x768xf32, #tpu.memory_space<vmem>>, vector<256x768xf32>
    %c0_9 = arith.constant 0 : index
    %c0_10 = arith.constant 0 : index
    %12 = vector.load %arg6[%c0_9, %c0_10] : memref<1x768xf32, #tpu.memory_space<vmem>>, vector<1x768xf32>
    %c0_11 = arith.constant 0 : index
    %c0_12 = arith.constant 0 : index
    %13 = vector.load %arg8[%c0_11, %c0_12] : memref<1x256xf32, #tpu.memory_space<vmem>>, vector<1x256xf32>
    %cst_13 = arith.constant dense<0.000000e+00> : vector<1x768xf32>
    %14 = tpu.matmul %13, %11, %cst_13 {dimension_numbers = #tpu.dot_dimension_numbers<[1], [0], [0], [1], [0, 0, 1, 1], [], []>} : vector<1x256xf32>, vector<256x768xf32>, vector<1x768xf32> -> vector<1x768xf32>
    %15 = arith.addf %14, %12 : vector<1x768xf32>
    %16 = vector.extract_strided_slice %10 {offsets = [0, 0], sizes = [1, 768], strides = [1, 1]} : vector<8x768xf32> to vector<1x768xf32>
    %17 = vector.extract_strided_slice %16 {offsets = [0, 0], sizes = [1, 512], strides = [1, 1]} : vector<1x768xf32> to vector<1x512xf32>
    %18 = vector.extract_strided_slice %15 {offsets = [0, 0], sizes = [1, 512], strides = [1, 1]} : vector<1x768xf32> to vector<1x512xf32>
    %19 = arith.addf %17, %18 : vector<1x512xf32>
    %20 = arith.negf %19 : vector<1x512xf32>
    %21 = math.exp %20 : vector<1x512xf32>
    %cst_14 = arith.constant 1.000000e+00 : f32
    %22 = vector.broadcast %cst_14 : f32 to vector<1x512xf32>
    %23 = arith.addf %22, %21 : vector<1x512xf32>
    %24 = arith.divf %22, %23 : vector<1x512xf32>
    %25 = vector.extract_strided_slice %24 {offsets = [0, 0], sizes = [1, 256], strides = [1, 1]} : vector<1x512xf32> to vector<1x256xf32>
    %26 = vector.extract_strided_slice %24 {offsets = [0, 256], sizes = [1, 256], strides = [1, 1]} : vector<1x512xf32> to vector<1x256xf32>
    %27 = vector.extract_strided_slice %16 {offsets = [0, 512], sizes = [1, 256], strides = [1, 1]} : vector<1x768xf32> to vector<1x256xf32>
    %28 = vector.extract_strided_slice %15 {offsets = [0, 512], sizes = [1, 256], strides = [1, 1]} : vector<1x768xf32> to vector<1x256xf32>
    %29 = arith.mulf %25, %28 : vector<1x256xf32>
    %30 = arith.addf %27, %29 : vector<1x256xf32>
    %31 = math.tanh %30 : vector<1x256xf32>
    %cst_15 = arith.constant 1.000000e+00 : f32
    %32 = vector.broadcast %cst_15 : f32 to vector<1x256xf32>
    %33 = arith.subf %32, %26 : vector<1x256xf32>
    %34 = arith.mulf %33, %31 : vector<1x256xf32>
    %35 = arith.mulf %26, %13 : vector<1x256xf32>
    %36 = arith.addf %34, %35 : vector<1x256xf32>
    %cst_16 = arith.constant dense<0.000000e+00> : vector<1x768xf32>
    %37 = tpu.matmul %36, %11, %cst_16 {dimension_numbers = #tpu.dot_dimension_numbers<[1], [0], [0], [1], [0, 0, 1, 1], [], []>} : vector<1x256xf32>, vector<256x768xf32>, vector<1x768xf32> -> vector<1x768xf32>
    %38 = arith.addf %37, %12 : vector<1x768xf32>
    %39 = vector.extract_strided_slice %10 {offsets = [1, 0], sizes = [1, 768], strides = [1, 1]} : vector<8x768xf32> to vector<1x768xf32>
    %40 = vector.extract_strided_slice %39 {offsets = [0, 0], sizes = [1, 512], strides = [1, 1]} : vector<1x768xf32> to vector<1x512xf32>
    %41 = vector.extract_strided_slice %38 {offsets = [0, 0], sizes = [1, 512], strides = [1, 1]} : vector<1x768xf32> to vector<1x512xf32>
    %42 = arith.addf %40, %41 : vector<1x512xf32>
    %43 = arith.negf %42 : vector<1x512xf32>
    %44 = math.exp %43 : vector<1x512xf32>
    %cst_17 = arith.constant 1.000000e+00 : f32
    %45 = vector.broadcast %cst_17 : f32 to vector<1x512xf32>
    %46 = arith.addf %45, %44 : vector<1x512xf32>
    %47 = arith.divf %45, %46 : vector<1x512xf32>
    %48 = vector.extract_strided_slice %47 {offsets = [0, 0], sizes = [1, 256], strides = [1, 1]} : vector<1x512xf32> to vector<1x256xf32>
    %49 = vector.extract_strided_slice %47 {offsets = [0, 256], sizes = [1, 256], strides = [1, 1]} : vector<1x512xf32> to vector<1x256xf32>
    %50 = vector.extract_strided_slice %39 {offsets = [0, 512], sizes = [1, 256], strides = [1, 1]} : vector<1x768xf32> to vector<1x256xf32>
    %51 = vector.extract_strided_slice %38 {offsets = [0, 512], sizes = [1, 256], strides = [1, 1]} : vector<1x768xf32> to vector<1x256xf32>
    %52 = arith.mulf %48, %51 : vector<1x256xf32>
    %53 = arith.addf %50, %52 : vector<1x256xf32>
    %54 = math.tanh %53 : vector<1x256xf32>
    %cst_18 = arith.constant 1.000000e+00 : f32
    %55 = vector.broadcast %cst_18 : f32 to vector<1x256xf32>
    %56 = arith.subf %55, %49 : vector<1x256xf32>
    %57 = arith.mulf %56, %54 : vector<1x256xf32>
    %58 = arith.mulf %49, %36 : vector<1x256xf32>
    %59 = arith.addf %57, %58 : vector<1x256xf32>
    %cst_19 = arith.constant dense<0.000000e+00> : vector<1x768xf32>
    %60 = tpu.matmul %59, %11, %cst_19 {dimension_numbers = #tpu.dot_dimension_numbers<[1], [0], [0], [1], [0, 0, 1, 1], [], []>} : vector<1x256xf32>, vector<256x768xf32>, vector<1x768xf32> -> vector<1x768xf32>
    %61 = arith.addf %60, %12 : vector<1x768xf32>
    %62 = vector.extract_strided_slice %10 {offsets = [2, 0], sizes = [1, 768], strides = [1, 1]} : vector<8x768xf32> to vector<1x768xf32>
    %63 = vector.extract_strided_slice %62 {offsets = [0, 0], sizes = [1, 512], strides = [1, 1]} : vector<1x768xf32> to vector<1x512xf32>
    %64 = vector.extract_strided_slice %61 {offsets = [0, 0], sizes = [1, 512], strides = [1, 1]} : vector<1x768xf32> to vector<1x512xf32>
    %65 = arith.addf %63, %64 : vector<1x512xf32>
    %66 = arith.negf %65 : vector<1x512xf32>
    %67 = math.exp %66 : vector<1x512xf32>
    %cst_20 = arith.constant 1.000000e+00 : f32
    %68 = vector.broadcast %cst_20 : f32 to vector<1x512xf32>
    %69 = arith.addf %68, %67 : vector<1x512xf32>
    %70 = arith.divf %68, %69 : vector<1x512xf32>
    %71 = vector.extract_strided_slice %70 {offsets = [0, 0], sizes = [1, 256], strides = [1, 1]} : vector<1x512xf32> to vector<1x256xf32>
    %72 = vector.extract_strided_slice %70 {offsets = [0, 256], sizes = [1, 256], strides = [1, 1]} : vector<1x512xf32> to vector<1x256xf32>
    %73 = vector.extract_strided_slice %62 {offsets = [0, 512], sizes = [1, 256], strides = [1, 1]} : vector<1x768xf32> to vector<1x256xf32>
    %74 = vector.extract_strided_slice %61 {offsets = [0, 512], sizes = [1, 256], strides = [1, 1]} : vector<1x768xf32> to vector<1x256xf32>
    %75 = arith.mulf %71, %74 : vector<1x256xf32>
    %76 = arith.addf %73, %75 : vector<1x256xf32>
    %77 = math.tanh %76 : vector<1x256xf32>
    %cst_21 = arith.constant 1.000000e+00 : f32
    %78 = vector.broadcast %cst_21 : f32 to vector<1x256xf32>
    %79 = arith.subf %78, %72 : vector<1x256xf32>
    %80 = arith.mulf %79, %77 : vector<1x256xf32>
    %81 = arith.mulf %72, %59 : vector<1x256xf32>
    %82 = arith.addf %80, %81 : vector<1x256xf32>
    %cst_22 = arith.constant dense<0.000000e+00> : vector<1x768xf32>
    %83 = tpu.matmul %82, %11, %cst_22 {dimension_numbers = #tpu.dot_dimension_numbers<[1], [0], [0], [1], [0, 0, 1, 1], [], []>} : vector<1x256xf32>, vector<256x768xf32>, vector<1x768xf32> -> vector<1x768xf32>
    %84 = arith.addf %83, %12 : vector<1x768xf32>
    %85 = vector.extract_strided_slice %10 {offsets = [3, 0], sizes = [1, 768], strides = [1, 1]} : vector<8x768xf32> to vector<1x768xf32>
    %86 = vector.extract_strided_slice %85 {offsets = [0, 0], sizes = [1, 512], strides = [1, 1]} : vector<1x768xf32> to vector<1x512xf32>
    %87 = vector.extract_strided_slice %84 {offsets = [0, 0], sizes = [1, 512], strides = [1, 1]} : vector<1x768xf32> to vector<1x512xf32>
    %88 = arith.addf %86, %87 : vector<1x512xf32>
    %89 = arith.negf %88 : vector<1x512xf32>
    %90 = math.exp %89 : vector<1x512xf32>
    %cst_23 = arith.constant 1.000000e+00 : f32
    %91 = vector.broadcast %cst_23 : f32 to vector<1x512xf32>
    %92 = arith.addf %91, %90 : vector<1x512xf32>
    %93 = arith.divf %91, %92 : vector<1x512xf32>
    %94 = vector.extract_strided_slice %93 {offsets = [0, 0], sizes = [1, 256], strides = [1, 1]} : vector<1x512xf32> to vector<1x256xf32>
    %95 = vector.extract_strided_slice %93 {offsets = [0, 256], sizes = [1, 256], strides = [1, 1]} : vector<1x512xf32> to vector<1x256xf32>
    %96 = vector.extract_strided_slice %85 {offsets = [0, 512], sizes = [1, 256], strides = [1, 1]} : vector<1x768xf32> to vector<1x256xf32>
    %97 = vector.extract_strided_slice %84 {offsets = [0, 512], sizes = [1, 256], strides = [1, 1]} : vector<1x768xf32> to vector<1x256xf32>
    %98 = arith.mulf %94, %97 : vector<1x256xf32>
    %99 = arith.addf %96, %98 : vector<1x256xf32>
    %100 = math.tanh %99 : vector<1x256xf32>
    %cst_24 = arith.constant 1.000000e+00 : f32
    %101 = vector.broadcast %cst_24 : f32 to vector<1x256xf32>
    %102 = arith.subf %101, %95 : vector<1x256xf32>
    %103 = arith.mulf %102, %100 : vector<1x256xf32>
    %104 = arith.mulf %95, %82 : vector<1x256xf32>
    %105 = arith.addf %103, %104 : vector<1x256xf32>
    %cst_25 = arith.constant dense<0.000000e+00> : vector<1x768xf32>
    %106 = tpu.matmul %105, %11, %cst_25 {dimension_numbers = #tpu.dot_dimension_numbers<[1], [0], [0], [1], [0, 0, 1, 1], [], []>} : vector<1x256xf32>, vector<256x768xf32>, vector<1x768xf32> -> vector<1x768xf32>
    %107 = arith.addf %106, %12 : vector<1x768xf32>
    %108 = vector.extract_strided_slice %10 {offsets = [4, 0], sizes = [1, 768], strides = [1, 1]} : vector<8x768xf32> to vector<1x768xf32>
    %109 = vector.extract_strided_slice %108 {offsets = [0, 0], sizes = [1, 512], strides = [1, 1]} : vector<1x768xf32> to vector<1x512xf32>
    %110 = vector.extract_strided_slice %107 {offsets = [0, 0], sizes = [1, 512], strides = [1, 1]} : vector<1x768xf32> to vector<1x512xf32>
    %111 = arith.addf %109, %110 : vector<1x512xf32>
    %112 = arith.negf %111 : vector<1x512xf32>
    %113 = math.exp %112 : vector<1x512xf32>
    %cst_26 = arith.constant 1.000000e+00 : f32
    %114 = vector.broadcast %cst_26 : f32 to vector<1x512xf32>
    %115 = arith.addf %114, %113 : vector<1x512xf32>
    %116 = arith.divf %114, %115 : vector<1x512xf32>
    %117 = vector.extract_strided_slice %116 {offsets = [0, 0], sizes = [1, 256], strides = [1, 1]} : vector<1x512xf32> to vector<1x256xf32>
    %118 = vector.extract_strided_slice %116 {offsets = [0, 256], sizes = [1, 256], strides = [1, 1]} : vector<1x512xf32> to vector<1x256xf32>
    %119 = vector.extract_strided_slice %108 {offsets = [0, 512], sizes = [1, 256], strides = [1, 1]} : vector<1x768xf32> to vector<1x256xf32>
    %120 = vector.extract_strided_slice %107 {offsets = [0, 512], sizes = [1, 256], strides = [1, 1]} : vector<1x768xf32> to vector<1x256xf32>
    %121 = arith.mulf %117, %120 : vector<1x256xf32>
    %122 = arith.addf %119, %121 : vector<1x256xf32>
    %123 = math.tanh %122 : vector<1x256xf32>
    %cst_27 = arith.constant 1.000000e+00 : f32
    %124 = vector.broadcast %cst_27 : f32 to vector<1x256xf32>
    %125 = arith.subf %124, %118 : vector<1x256xf32>
    %126 = arith.mulf %125, %123 : vector<1x256xf32>
    %127 = arith.mulf %118, %105 : vector<1x256xf32>
    %128 = arith.addf %126, %127 : vector<1x256xf32>
    %cst_28 = arith.constant dense<0.000000e+00> : vector<1x768xf32>
    %129 = tpu.matmul %128, %11, %cst_28 {dimension_numbers = #tpu.dot_dimension_numbers<[1], [0], [0], [1], [0, 0, 1, 1], [], []>} : vector<1x256xf32>, vector<256x768xf32>, vector<1x768xf32> -> vector<1x768xf32>
    %130 = arith.addf %129, %12 : vector<1x768xf32>
    %131 = vector.extract_strided_slice %10 {offsets = [5, 0], sizes = [1, 768], strides = [1, 1]} : vector<8x768xf32> to vector<1x768xf32>
    %132 = vector.extract_strided_slice %131 {offsets = [0, 0], sizes = [1, 512], strides = [1, 1]} : vector<1x768xf32> to vector<1x512xf32>
    %133 = vector.extract_strided_slice %130 {offsets = [0, 0], sizes = [1, 512], strides = [1, 1]} : vector<1x768xf32> to vector<1x512xf32>
    %134 = arith.addf %132, %133 : vector<1x512xf32>
    %135 = arith.negf %134 : vector<1x512xf32>
    %136 = math.exp %135 : vector<1x512xf32>
    %cst_29 = arith.constant 1.000000e+00 : f32
    %137 = vector.broadcast %cst_29 : f32 to vector<1x512xf32>
    %138 = arith.addf %137, %136 : vector<1x512xf32>
    %139 = arith.divf %137, %138 : vector<1x512xf32>
    %140 = vector.extract_strided_slice %139 {offsets = [0, 0], sizes = [1, 256], strides = [1, 1]} : vector<1x512xf32> to vector<1x256xf32>
    %141 = vector.extract_strided_slice %139 {offsets = [0, 256], sizes = [1, 256], strides = [1, 1]} : vector<1x512xf32> to vector<1x256xf32>
    %142 = vector.extract_strided_slice %131 {offsets = [0, 512], sizes = [1, 256], strides = [1, 1]} : vector<1x768xf32> to vector<1x256xf32>
    %143 = vector.extract_strided_slice %130 {offsets = [0, 512], sizes = [1, 256], strides = [1, 1]} : vector<1x768xf32> to vector<1x256xf32>
    %144 = arith.mulf %140, %143 : vector<1x256xf32>
    %145 = arith.addf %142, %144 : vector<1x256xf32>
    %146 = math.tanh %145 : vector<1x256xf32>
    %cst_30 = arith.constant 1.000000e+00 : f32
    %147 = vector.broadcast %cst_30 : f32 to vector<1x256xf32>
    %148 = arith.subf %147, %141 : vector<1x256xf32>
    %149 = arith.mulf %148, %146 : vector<1x256xf32>
    %150 = arith.mulf %141, %128 : vector<1x256xf32>
    %151 = arith.addf %149, %150 : vector<1x256xf32>
    %cst_31 = arith.constant dense<0.000000e+00> : vector<1x768xf32>
    %152 = tpu.matmul %151, %11, %cst_31 {dimension_numbers = #tpu.dot_dimension_numbers<[1], [0], [0], [1], [0, 0, 1, 1], [], []>} : vector<1x256xf32>, vector<256x768xf32>, vector<1x768xf32> -> vector<1x768xf32>
    %153 = arith.addf %152, %12 : vector<1x768xf32>
    %154 = vector.extract_strided_slice %10 {offsets = [6, 0], sizes = [1, 768], strides = [1, 1]} : vector<8x768xf32> to vector<1x768xf32>
    %155 = vector.extract_strided_slice %154 {offsets = [0, 0], sizes = [1, 512], strides = [1, 1]} : vector<1x768xf32> to vector<1x512xf32>
    %156 = vector.extract_strided_slice %153 {offsets = [0, 0], sizes = [1, 512], strides = [1, 1]} : vector<1x768xf32> to vector<1x512xf32>
    %157 = arith.addf %155, %156 : vector<1x512xf32>
    %158 = arith.negf %157 : vector<1x512xf32>
    %159 = math.exp %158 : vector<1x512xf32>
    %cst_32 = arith.constant 1.000000e+00 : f32
    %160 = vector.broadcast %cst_32 : f32 to vector<1x512xf32>
    %161 = arith.addf %160, %159 : vector<1x512xf32>
    %162 = arith.divf %160, %161 : vector<1x512xf32>
    %163 = vector.extract_strided_slice %162 {offsets = [0, 0], sizes = [1, 256], strides = [1, 1]} : vector<1x512xf32> to vector<1x256xf32>
    %164 = vector.extract_strided_slice %162 {offsets = [0, 256], sizes = [1, 256], strides = [1, 1]} : vector<1x512xf32> to vector<1x256xf32>
    %165 = vector.extract_strided_slice %154 {offsets = [0, 512], sizes = [1, 256], strides = [1, 1]} : vector<1x768xf32> to vector<1x256xf32>
    %166 = vector.extract_strided_slice %153 {offsets = [0, 512], sizes = [1, 256], strides = [1, 1]} : vector<1x768xf32> to vector<1x256xf32>
    %167 = arith.mulf %163, %166 : vector<1x256xf32>
    %168 = arith.addf %165, %167 : vector<1x256xf32>
    %169 = math.tanh %168 : vector<1x256xf32>
    %cst_33 = arith.constant 1.000000e+00 : f32
    %170 = vector.broadcast %cst_33 : f32 to vector<1x256xf32>
    %171 = arith.subf %170, %164 : vector<1x256xf32>
    %172 = arith.mulf %171, %169 : vector<1x256xf32>
    %173 = arith.mulf %164, %151 : vector<1x256xf32>
    %174 = arith.addf %172, %173 : vector<1x256xf32>
    %cst_34 = arith.constant dense<0.000000e+00> : vector<1x768xf32>
    %175 = tpu.matmul %174, %11, %cst_34 {dimension_numbers = #tpu.dot_dimension_numbers<[1], [0], [0], [1], [0, 0, 1, 1], [], []>} : vector<1x256xf32>, vector<256x768xf32>, vector<1x768xf32> -> vector<1x768xf32>
    %176 = arith.addf %175, %12 : vector<1x768xf32>
    %177 = vector.extract_strided_slice %10 {offsets = [7, 0], sizes = [1, 768], strides = [1, 1]} : vector<8x768xf32> to vector<1x768xf32>
    %178 = vector.extract_strided_slice %177 {offsets = [0, 0], sizes = [1, 512], strides = [1, 1]} : vector<1x768xf32> to vector<1x512xf32>
    %179 = vector.extract_strided_slice %176 {offsets = [0, 0], sizes = [1, 512], strides = [1, 1]} : vector<1x768xf32> to vector<1x512xf32>
    %180 = arith.addf %178, %179 : vector<1x512xf32>
    %181 = arith.negf %180 : vector<1x512xf32>
    %182 = math.exp %181 : vector<1x512xf32>
    %cst_35 = arith.constant 1.000000e+00 : f32
    %183 = vector.broadcast %cst_35 : f32 to vector<1x512xf32>
    %184 = arith.addf %183, %182 : vector<1x512xf32>
    %185 = arith.divf %183, %184 : vector<1x512xf32>
    %186 = vector.extract_strided_slice %185 {offsets = [0, 0], sizes = [1, 256], strides = [1, 1]} : vector<1x512xf32> to vector<1x256xf32>
    %187 = vector.extract_strided_slice %185 {offsets = [0, 256], sizes = [1, 256], strides = [1, 1]} : vector<1x512xf32> to vector<1x256xf32>
    %188 = vector.extract_strided_slice %177 {offsets = [0, 512], sizes = [1, 256], strides = [1, 1]} : vector<1x768xf32> to vector<1x256xf32>
    %189 = vector.extract_strided_slice %176 {offsets = [0, 512], sizes = [1, 256], strides = [1, 1]} : vector<1x768xf32> to vector<1x256xf32>
    %190 = arith.mulf %186, %189 : vector<1x256xf32>
    %191 = arith.addf %188, %190 : vector<1x256xf32>
    %192 = math.tanh %191 : vector<1x256xf32>
    %cst_36 = arith.constant 1.000000e+00 : f32
    %193 = vector.broadcast %cst_36 : f32 to vector<1x256xf32>
    %194 = arith.subf %193, %187 : vector<1x256xf32>
    %195 = arith.mulf %194, %192 : vector<1x256xf32>
    %196 = arith.mulf %187, %174 : vector<1x256xf32>
    %197 = arith.addf %195, %196 : vector<1x256xf32>
    %198 = tpu.concatenate %36, %59, %82, %105, %128, %151, %174, %197 in 0 : vector<1x256xf32>, vector<1x256xf32>, vector<1x256xf32>, vector<1x256xf32>, vector<1x256xf32>, vector<1x256xf32>, vector<1x256xf32>, vector<1x256xf32> -> vector<8x256xf32>
    %c0_37 = arith.constant 0 : index
    %c0_38 = arith.constant 0 : index
    %199 = vector.load %arg7[%c0_37, %c0_38] : memref<8x256xf32, #tpu.memory_space<vmem>>, vector<8x256xf32>
    tpu.vector_store %arg7[%c0_37, %c0_38], %198 {strides = array<i32>} : memref<8x256xf32, #tpu.memory_space<vmem>>, vector<8x256xf32>,
    %c0_39 = arith.constant 0 : index
    %c0_40 = arith.constant 0 : index
    %200 = vector.load %arg8[%c0_39, %c0_40] : memref<1x256xf32, #tpu.memory_space<vmem>>, vector<1x256xf32>
    tpu.vector_store %arg8[%c0_39, %c0_40], %197 {strides = array<i32>} : memref<1x256xf32, #tpu.memory_space<vmem>>, vector<1x256xf32>,
    return
  }
  func.func @transform_0(%arg0: i32) -> (i32, i32) {
    %c0_i32 = arith.constant 0 : i32
    %c0_i32_0 = arith.constant 0 : i32
    return %arg0, %c0_i32 : i32, i32
  }
  func.func @transform_1(%arg0: i32) -> (i32, i32) {
    %c0_i32 = arith.constant 0 : i32
    %c0_i32_0 = arith.constant 0 : i32
    %c0_i32_1 = arith.constant 0 : i32
    return %c0_i32, %c0_i32_0 : i32, i32
  }
  func.func @transform_2(%arg0: i32) -> (i32, i32) {
    %c0_i32 = arith.constant 0 : i32
    %c0_i32_0 = arith.constant 0 : i32
    %c0_i32_1 = arith.constant 0 : i32
    return %c0_i32, %c0_i32_0 : i32, i32
  }
  func.func @transform_3(%arg0: i32) -> (i32, i32) {
    %c0_i32 = arith.constant 0 : i32
    %c0_i32_0 = arith.constant 0 : i32
    %c0_i32_1 = arith.constant 0 : i32
    return %c0_i32, %c0_i32_0 : i32, i32
  }
  func.func @transform_4(%arg0: i32) -> (i32, i32) {
    %c0_i32 = arith.constant 0 : i32
    %c0_i32_0 = arith.constant 0 : i32
    %c0_i32_1 = arith.constant 0 : i32
    return %c0_i32, %c0_i32_0 : i32, i32
  }
  func.func @transform_5(%arg0: i32) -> (i32, i32) {
    %c0_i32 = arith.constant 0 : i32
    %c0_i32_0 = arith.constant 0 : i32
    %c0_i32_1 = arith.constant 0 : i32
    return %c0_i32, %c0_i32_0 : i32, i32
  }
  func.func @transform_6(%arg0: i32) -> (i32, i32) {
    %c0_i32 = arith.constant 0 : i32
    %c0_i32_0 = arith.constant 0 : i32
    return %arg0, %c0_i32 : i32, i32
  }
  func.func @transform_7(%arg0: i32) -> (i32, i32) {
    %c0_i32 = arith.constant 0 : i32
    %c0_i32_0 = arith.constant 0 : i32
    %c0_i32_1 = arith.constant 0 : i32
    return %c0_i32, %c0_i32_0 : i32, i32
  }
}

</mosaic_0001>

<bundles_post_ra>
// kernel: tpu_custom_call.1
= control target key start
LH: loop header
LB: loop body
LE: loop exit
PB: predicated region body
PF: predicated region fallthrough
CT: control target
= control target key end

     0   :  { %s8128_s0 = inlined_call_operand.hbm [shape: f32[16,256], index: 0, kind: input, shape index: {}]   ;;  %s8129_s1 = inlined_call_operand.hbm [shape: f32[1,256], index: 1, kind: input, shape index: {}]   ;;  %s8130_s2 = inlined_call_operand.hbm [shape: f32[256,768], index: 2, kind: input, shape index: {}]   ;;  %s8131_s3 = inlined_call_operand.hbm [shape: f32[256,768], index: 3, kind: input, shape index: {}]   ;;  %s8132_s4 = inlined_call_operand.vmem [shape: f32[1,768], index: 4, kind: input, shape index: {}]   ;;  %s8133_s5 = inlined_call_operand.hbm [shape: f32[1,768], index: 5, kind: input, shape index: {}]   ;;  %s8134_s6 = inlined_call_operand.hbm [shape: f32[16,256], index: 6, kind: output, shape index: {0}]   ;;  %s8135_s7 = inlined_call_operand.hbm [shape: f32[1,256], index: 7, kind: output, shape index: {1}]  }
   0x1   :  { %8669 = sst [smem:[#allocation149_spill]] %s8129_s1 }
   0x2   :  { %8670 = sst [smem:[#allocation150_spill]] %s8130_s2 }
   0x3   :  { %13 = vsyncpa [#allocation3], 0 }
   0x4   :  { %15 = vsyncpa [#allocation3 + $0x1], 0 }
   0x5   :  { %16 = vsyncpa [#allocation6], 0 }
   0x6   :  { %17 = vsyncpa [#allocation9], 0 }
   0x7   :  { %18 = vsyncpa [#allocation4], 0 }
   0x8   :  { %20 = vsyncpa [#allocation4 + $0x1], 0 }
   0x9   :  { %21 = vsyncpa [#allocation13], 0  ;;  %s4636_s24 = smov 0   ;;  %s4638_s25 = smov 0  }
   0xa   :  { %s4640_s26 = smov 0   ;;  %s4642_s27 = smov 0  }
   0xb LB: > { %s4586_s28 = smov [#allocation5]   ;;  %s4657_s30 = sadd.s32 4294967295, %s4584_s27   ;;  %s4584_s27 = sphi %s4642_s27, %s9687_s27   ;;  %s4580_s26 = sphi %s4640_s26, %s9686_s26   ;;  %s4576_s25 = sphi %s4638_s25, %s9685_s25   ;;  %s4572_s24 = sphi %s4636_s24, %s9684_s24  }
   0xc   : > { %s223_s29 = sshll.u32 %s4586_s28, 4  ;;  %p3461_p0 = scmp.ge.s32.totalorder %s4584_s27, 1  ;;  %s224_s29 = int_to_ptr.vmem [resolvable:$true] %s223_s29 }
   0xd   : > { %p8137_p1 = scmp.eq.s32.totalorder %s4657_s30, 0  ;;  %p210_p2 = scmp.lt.s32.totalorder %s4584_s27, 3 }
   0xe   : > { %s4587_s9 = smov [#allocation8]   ;;  %s4588_s12 = smov [#allocation7]  }
   0xf   : > { %p4663_p4 = pnand %p3461_p0, %p210_p2  ;;  %s246_s10 = sshll.u32 %s4587_s9, 4  ;;  %s4676_s10 = int_to_ptr.vmem [resolvable:$true] %s246_s10 }
  0x10   : > { %s233_s13 = sshll.u32 %s4588_s12, 4  ;;  %s4363_s14 = scalar_lea.vmem %s224_s29, 32  ;;  %s4678_s13 = int_to_ptr.vmem [resolvable:$true] %s233_s13 }
  0x11   : > { %s8671_s8 = scalar_select %p4663_p4, 1, 0 }
  0x12   : > { %p3543_p6 = pneg %p4663_p4  ;;  %p4364_p9 = scmp.ne.s32.totalorder %s224_s29, %s4363_s14 }
  0x13   : > { %p4371_p12 = scmp.lt.s32.totalorder %s224_s29, %s224_s29  ;;  %p4372_p13 = scmp.lt.s32.totalorder %s4363_s14, %s4363_s14 }
  0x14   : > { %p4672_p7 = pnand %p3543_p6, %p8137_p1 }
  0x15   : > { %p4373_p0 = por %p4372_p13, %p4371_p12 }
  0x16   : > { %p4354_p8 = pneg %p4672_p7 }
  0x18   : > { %p4366_p10 = pnand %p4364_p9, %p4354_p8 }
  0x1a   : > { %p4367_p11 = pneg %p4366_p10 }
  0x1c   : > { %p4374_p2 = pnand %p4373_p0, %p4367_p11 }
  0x1e   : > { %4377 = shalt.err (!%p4374_p2)
}
  0x1f   : > { %s8673_s1 = sld [smem:[#allocation149_spill]]  ;;  %s4389_s17 = scalar_lea.vmem %s4676_s10, 24576 }
  0x20   : > { %p4390_p6 = scmp.ne.s32.totalorder %s4676_s10, %s4389_s17  ;;  %p4397_p12 = scmp.lt.s32.totalorder %s4676_s10, %s4676_s10 }
  0x21   : > { %p4398_p11 = scmp.lt.s32.totalorder %s4389_s17, %s4389_s17 }
  0x22   : > { %p4392_p9 = pnand %p4390_p6, %p4354_p8 }
  0x23   : > { %p4399_p13 = por %p4398_p11, %p4397_p12 }
  0x24   : > { %p4393_p10 = pneg %p4392_p9 }
  0x25   : > { %3546 = dma.hbm_to_vmem [thread:$0]  (!%p4672_p7), %s8673_s1, 32, %s224_s29, [#allocation6]  }
  0x26   : > { %p4400_p0 = pnand %p4399_p13, %p4393_p10 }
  0x28   : > { %4403 = shalt.err (!%p4400_p0)
}
  0x29   : > { %s4589_s18 = smov 768   ;;  %s4590_s19 = smov 48  }
  0x2a   : > { %3552 = dma.hbm_to_vmem [thread:$0]  (!%p4672_p7), %s8131_s3, 24576, %s4676_s10, [#allocation9], %s4589_s18, %s4589_s18, %s4590_s19  }
  0x2b   : > { %s4415_s22 = scalar_lea.vmem %s4678_s13, 24576  ;;  %p4423_p10 = scmp.lt.s32.totalorder %s4678_s13, %s4678_s13 }
  0x2c   : > { %p4416_p2 = scmp.ne.s32.totalorder %s4678_s13, %s4415_s22  ;;  %p4424_p12 = scmp.lt.s32.totalorder %s4415_s22, %s4415_s22 }
  0x2e   : > { %p4418_p6 = pnand %p4416_p2, %p4354_p8  ;;  %p4425_p11 = por %p4424_p12, %p4423_p10 }
  0x30   : > { %p4419_p9 = pneg %p4418_p6 }
  0x32   : > { %p4426_p13 = pnand %p4425_p11, %p4419_p9 }
  0x34   : > { %4429 = shalt.err (!%p4426_p13)
}
  0x35   : > { %s8674_s2 = sld [smem:[#allocation150_spill]]  ;;  %s4591_s29 = smov [#allocation10]  }
  0x36   : > { %s263_s9 = sshll.u32 %s4591_s29, 4  ;;  %s264_s9 = int_to_ptr.vmem [resolvable:$true] %s263_s9 }
  0x37   : > { %s4441_s10 = scalar_lea.vmem %s264_s9, 96  ;;  %p4449_p10 = scmp.lt.s32.totalorder %s264_s9, %s264_s9 }
  0x38   : > { %p4442_p0 = scmp.ne.s32.totalorder %s264_s9, %s4441_s10  ;;  %p4450_p9 = scmp.lt.s32.totalorder %s4441_s10, %s4441_s10 }
  0x3a   : > { %p4444_p2 = pnand %p4442_p0, %p4354_p8  ;;  %p4451_p12 = por %p4450_p9, %p4449_p10 }
  0x3b   : > { %3549 = dma.hbm_to_vmem [thread:$0]  (!%p4672_p7), %s8674_s2, 24576, %s4678_s13, [#allocation6], %s4589_s18, %s4589_s18, %s4590_s19  }
  0x3c   : > { %p4445_p6 = pneg %p4444_p2 }
  0x3e   : > { %p4452_p11 = pnand %p4451_p12, %p4445_p6 }
  0x40   : > { %4455 = shalt.err (!%p4452_p11)
}
  0x41   : > { %3555 = dma.hbm_to_vmem [thread:$0]  (!%p4672_p7), %s8133_s5, 96, %s264_s9, [#allocation9]  }
  0x42   : > { %s3460_s11 = sadd.s32 4294967294, %s4584_s27   ;;  %s4726_s13 = sadd.s32 1, %s4584_s27  }
  0x43   : > { %s31_s15 = ssub.s32 %s4584_s27, %s4726_s13  ;;  %s34_s16 = sadd.s32 1, %s4580_s26 }
  0x44   : > { %p32_p8 = scmp.eq.s32.totalorder %s31_s15, 0  ;;  %p41_p13 = scmp.ne.s32.totalorder %s4580_s26, %s4576_s25 }
  0x45   : > { %p42_p0 = scmp.eq.s32.totalorder %s4584_s27, 0  ;;  %p47_p2 = scmp.ne.s32.totalorder %s4576_s25, %s4572_s24 }
  0x46   : > { %s4737_s17 = scalar_select %p32_p8, %s4580_s26, %s34_s16  }
  0x47   : > { %p4739_p6 = por %p42_p0, %p41_p13  ;;  %p4745_p7 = por %p8137_p1, %p47_p2 }
  0x48   : > { %p8136_p10 = scmp.eq.s32.totalorder %s4657_s30, 1  ;;  %p182_p9 = scmp.eq.s32.totalorder %s3460_s11, 1 }
  0x49   : > { %s8676_s19 = scalar_select %p4745_p7, 1, 0 }
  0x4a   : > { %p3568_p12 = scmp.lt.s32.totalorder %s4584_s27, 2  ;;  %s274_s20 = sand.u32 1, %s4580_s26  }
  0x4b   : > { %p4754_p11 = por %p8136_p10, %p41_p13  ;;  %p4758_p8 = por %p182_p9, %p47_p2 }
  0x4c   : > { %s3467_s23 = sshll.u32 %s274_s20, 4  ;;  %s3517_s28 = sshll.u32 %s4584_s27, 8 }
  0x4d   : > { %s8677_s21 = scalar_select %p4754_p11, 1, 0 }
  0x4e   : > { %s8678_s22 = scalar_select %p4758_p8, 1, 0 }
  0x4f   : > { %s4766_s10 = scalar_lea.hbm %s8128_s0, %s3517_s28  ;;  %s278_s12 = scalar_lea.vmem [#allocation2], %s3467_s23 }
  0x50   : > { %s286_s14 = sshll.u32 %s278_s12, 4  ;;  %p4770_p13 = pnand %p3568_p12, %p4739_p6  ;;  %s287_s14 = int_to_ptr.vmem [resolvable:$true] %s286_s14 }
  0x51   : > { %s275_s15 = scalar_lea.sflag [#allocation3], %s274_s20  ;;  %s4456_s16 = scalar_lea.hbm %s4766_s10, 256 }
  0x52   : > { %p4457_p0 = scmp.ne.s32.totalorder %s4766_s10, %s4456_s16  ;;  %p4458_p2 = pneg %p4770_p13 }
  0x53   : > { %s4461_s9 = scalar_lea.hbm %s8128_s0, 512  ;;  %p4462_p10 = scmp.lt.s32.totalorder %s4766_s10, %s8128_s0 }
  0x54   : > { %p4459_p9 = pnand %p4458_p2, %p4457_p0  ;;  %p4463_p6 = scmp.lt.s32.totalorder %s4461_s9, %s4456_s16 }
  0x56   : > { %p4460_p5 = pneg %p4459_p9  ;;  %p4464_p12 = por %p4463_p6, %p4462_p10 }
  0x58   : > { %p4465_p3 = pnand %p4464_p12, %p4460_p5 }
  0x5a   : > { %4468 = shalt.err (!%p4465_p3)
}
  0x5b   : > { %s4469_s18 = scalar_lea.vmem %s287_s14, 256  ;;  %s4592_s20 = smov [#allocation2]  }
  0x5c   : > { %p4470_p1 = scmp.ne.s32.totalorder %s287_s14, %s4469_s18  ;;  %s4474_s1 = sshll.u32 %s4592_s20, 4  ;;  %s4475_s1 = int_to_ptr.vmem [resolvable:$false] %s4474_s1 }
  0x5d   : > { %s4476_s2 = scalar_lea.vmem %s4475_s1, 512  ;;  %p4477_p0 = scmp.lt.s32.totalorder %s287_s14, %s4475_s1 }
  0x5e   : > { %p4472_p8 = pnand %p4470_p1, %p4458_p2  ;;  %p4478_p9 = scmp.lt.s32.totalorder %s4476_s2, %s4469_s18 }
  0x60   : > { %p4473_p11 = pneg %p4472_p8  ;;  %p4479_p7 = por %p4478_p9, %p4477_p0 }
  0x62   : > { %p4480_p4 = pnand %p4479_p7, %p4473_p11 }
  0x64   : > { %4483 = shalt.err (!%p4480_p4)
}
  0x65   : > { %3559 = dma.hbm_to_vmem [thread:$0]  (!%p4770_p13), %s4766_s10, 256, %s287_s14, %s275_s15  }
  0x66   : > { %p8680_p5 = scmp.ne.s32.totalorder %s8671_s8, 0 }
  0x68   : > { %295 = sbr.rel (%p8680_p5) target bundleno = 2611 (0xa33), region = 44 }
  0x6d   : > { %s4791_s16 = sand.u32 1, %s4576_s25   ;;  %p8681_p1 = scmp.ne.s32.totalorder %s8676_s19, 0 }
  0x6e   : > { %s3471_s28 = sshll.u32 %s4791_s16, 4  ;;  %s298_s29 = scalar_lea.sflag [#allocation3], %s4791_s16 }
  0x6f   : > { %s4795_s1 = scalar_lea.vmem [#allocation2], %s3471_s28 }
  0x70   : > { %4551 = dma.done.wait (%p8681_p1), %s298_s29, 256  }
  0x71   : > { %4553 = vsyncadd (%p8681_p1), %s298_s29, 4294967040  ;;  %p8682_p3 = scmp.eq.s32.totalorder %s4657_s30, 0 }
  0x73   : > { %4555 = dma.done.wait (%p8682_p3), [#allocation6], 24608   ;;  %p8683_p4 = pmov %p8682_p3 }
  0x74   : > { %p8684_p7 = pmov %p8682_p3 }
  0x75   : > { %4557 = vsyncadd (%p8683_p4), [#allocation6], 4294942688 }
  0x76   : > { %4559 = dma.done.wait (%p8684_p7), [#allocation9], 24672   ;;  %p8685_p10 = pmov %p8682_p3 }
  0x77   : > { %s4809_s2 = scalar_lea.vmem [#allocation11], %s3471_s28  ;;  %p8686_p11 = scmp.ne.s32.totalorder %s4657_s30, 0 }
  0x78   : > { %4561 = vsyncadd (%p8685_p10), [#allocation9], 4294942624 }
  0x79   : > { %351 = sbr.rel (%p8686_p11) target bundleno = 130 (0x82), region = 68 }
  0x7e   : > { %v352_v0 = vld [vmem:[#allocation5] sm:$0x3]  ;;  %v353_v1 = vlaneseq }
  0x80   : > { %vm355_vm0 = vcmp.lt.s32.totalorder %v353_v1, 256 }
  0x81   : > { %357 = vst.msk [vmem:[#allocation12] sm:$0x3] %vm355_vm0, %v352_v0 }
  0x82 PF: > { %v453_v2 = vld [vmem:[#allocation7 + $0x2d8] sm:$0xff]  ;;  %v455_v3 = vld [vmem:[#allocation7 + $0x2e8] sm:$0xff]  ;;  %v452_v4 = vld [vmem:[#allocation7 + $0x2d0] sm:$0xff]  ;;  %vm3267_vm1 = vcmask 1040384   ;;  %vm3270_vm2 = vcmask 1041408   ;;  %vm3273_vm3 = vcmask 1042432  }
  0x83   : > { %586 = vmatprep.subr.mxu0 %v453_v2  ;;  %657 = vmatprep.subr.mxu1 %v455_v3  ;;  %v454_v5 = vld [vmem:[#allocation7 + $0x2e0] sm:$0xff]  ;;  %v447_v6 = vld [vmem:[#allocation7 + $0x2a8] sm:$0xff]  ;;  %v449_v7 = vld [vmem:[#allocation7 + $0x2b8] sm:$0xff]  ;;  %vm3276_vm4 = vcmask 1043456   ;;  %vm3279_vm5 = vcmask 1044480   ;;  %vm3282_vm6 = vcmask 1045504  }
  0x84   : > { %587 = vmatpush1.msra.mxu0 %v452_v4  ;;  %658 = vmatpush1.msra.mxu1 %v454_v5  ;;  %v446_v8 = vld [vmem:[#allocation7 + $0x2a0] sm:$0xff]  ;;  %v448_v9 = vld [vmem:[#allocation7 + $0x2b0] sm:$0xff]  ;;  %v441_v10 = vld [vmem:[#allocation7 + $0x278] sm:$0xff]  ;;  %vm3285_vm7 = vcmask 1046528   ;;  %s3518_s10 = sshll.u32 %s4657_s30, 8  ;;  %s3330_s14 = sshll.u32 %s4809_s2, 4  ;;  %s8073_s14 = int_to_ptr.vmem [resolvable:$true] %s3330_s14 }
  0x85   : > { %588 = vmatprep.subr.mxu0 %v447_v6  ;;  %659 = vmatprep.subr.mxu1 %v449_v7  ;;  %v443_v11 = vld [vmem:[#allocation7 + $0x288] sm:$0xff]  ;;  %v440_v12 = vld [vmem:[#allocation7 + $0x270] sm:$0xff]  ;;  %v442_v13 = vld [vmem:[#allocation7 + $0x280] sm:$0xff]  ;;  %s8071_s9 = scalar_lea.hbm %s8134_s6, %s3518_s10  ;;  %s3316_s23 = scalar_lea.sflag [#allocation4], %s4791_s16 }
  0x86   : > { %589 = vmatpush1.msra.mxu0 %v446_v8  ;;  %660 = vmatpush1.msra.mxu1 %v448_v9  ;;  %v435_v14 = vld [vmem:[#allocation7 + $0x248] sm:$0xff]  ;;  %v437_v15 = vld [vmem:[#allocation7 + $0x258] sm:$0xff]  ;;  %v434_v16 = vld [vmem:[#allocation7 + $0x240] sm:$0xff]  ;;  %s4484_s12 = scalar_lea.vmem %s8073_s14, 256  ;;  %p9676_p13 = scmp.ne.s32.totalorder %s8677_s21, 0 }
  0x87   : > { %590 = vmatprep.subr.mxu0 %v441_v10  ;;  %661 = vmatprep.subr.mxu1 %v443_v11  ;;  %v436_v17 = vld [vmem:[#allocation7 + $0x250] sm:$0xff]  ;;  %v429_v18 = vld [vmem:[#allocation7 + $0x218] sm:$0xff]  ;;  %v431_v19 = vld [vmem:[#allocation7 + $0x228] sm:$0xff]  ;;  %p4485_p8 = scmp.ne.s32.totalorder %s8073_s14, %s4484_s12  ;;  %s4594_s18 = smov [#allocation11]  }
  0x88   : > { %591 = vmatpush1.msra.mxu0 %v440_v12  ;;  %662 = vmatpush1.msra.mxu1 %v442_v13  ;;  %v428_v20 = vld [vmem:[#allocation7 + $0x210] sm:$0xff]  ;;  %v430_v21 = vld [vmem:[#allocation7 + $0x220] sm:$0xff]  ;;  %v423_v22 = vld [vmem:[#allocation7 + $0x1e8] sm:$0xff]  ;;  %s4488_s20 = sshll.u32 %s4594_s18, 4  ;;  %s4489_s20 = int_to_ptr.vmem [resolvable:$false] %s4488_s20 }
  0x89   : > { %592 = vmatprep.subr.mxu0 %v435_v14  ;;  %663 = vmatprep.subr.mxu1 %v437_v15  ;;  %v425_v23 = vld [vmem:[#allocation7 + $0x1f8] sm:$0xff]  ;;  %v422_v24 = vld [vmem:[#allocation7 + $0x1e0] sm:$0xff]  ;;  %v424_v25 = vld [vmem:[#allocation7 + $0x1f0] sm:$0xff]  ;;  %p4486_p2 = pnand %p4485_p8, %p9676_p13  ;;  %s4490_s28 = scalar_lea.vmem %s4489_s20, 512 }
  0x8a   : > { %593 = vmatpush1.msra.mxu0 %v434_v16  ;;  %664 = vmatpush1.msra.mxu1 %v436_v17  ;;  %v417_v26 = vld [vmem:[#allocation7 + $0x1b8] sm:$0xff]  ;;  %v419_v27 = vld [vmem:[#allocation7 + $0x1c8] sm:$0xff]  ;;  %v416_v28 = vld [vmem:[#allocation7 + $0x1b0] sm:$0xff]  ;;  %p4491_p12 = scmp.lt.s32.totalorder %s8073_s14, %s4489_s20  ;;  %p4492_p0 = scmp.lt.s32.totalorder %s4490_s28, %s4484_s12 }
  0x8b   : > { %594 = vmatprep.subr.mxu0 %v429_v18  ;;  %665 = vmatprep.subr.mxu1 %v431_v19  ;;  %v418_v29 = vld [vmem:[#allocation7 + $0x1c0] sm:$0xff]  ;;  %v411_v30 = vld [vmem:[#allocation7 + $0x188] sm:$0xff]  ;;  %v413_v31 = vld [vmem:[#allocation7 + $0x198] sm:$0xff]  ;;  %p4487_p6 = pneg %p4486_p2 }
  0x8c   : > { %595 = vmatpush1.msra.mxu0 %v428_v20  ;;  %666 = vmatpush1.msra.mxu1 %v430_v21  ;;  %v410_v32 = vld [vmem:[#allocation7 + $0x180] sm:$0xff]  ;;  %v412_v33 = vld [vmem:[#allocation7 + $0x190] sm:$0xff]  ;;  %v405_v34 = vld [vmem:[#allocation7 + $0x158] sm:$0xff]  ;;  %p4493_p9 = por %p4492_p0, %p4491_p12 }
  0x8d   : > { %596 = vmatprep.subr.mxu0 %v423_v22  ;;  %667 = vmatprep.subr.mxu1 %v425_v23  ;;  %v407_v35 = vld [vmem:[#allocation7 + $0x168] sm:$0xff]  ;;  %v404_v36 = vld [vmem:[#allocation7 + $0x150] sm:$0xff]  ;;  %v406_v37 = vld [vmem:[#allocation7 + $0x160] sm:$0xff] }
  0x8e   : > { %597 = vmatpush1.msra.mxu0 %v422_v24  ;;  %668 = vmatpush1.msra.mxu1 %v424_v25  ;;  %v399_v38 = vld [vmem:[#allocation7 + $0x128] sm:$0xff]  ;;  %v401_v39 = vld [vmem:[#allocation7 + $0x138] sm:$0xff]  ;;  %v398_v40 = vld [vmem:[#allocation7 + $0x120] sm:$0xff]  ;;  %p4494_p5 = pnand %p4493_p9, %p4487_p6 }
  0x8f   : > { %598 = vmatprep.subr.mxu0 %v417_v26  ;;  %669 = vmatprep.subr.mxu1 %v419_v27  ;;  %v400_v41 = vld [vmem:[#allocation7 + $0x130] sm:$0xff]  ;;  %v393_v42 = vld [vmem:[#allocation7 + $0xf8] sm:$0xff]  ;;  %v395_v43 = vld [vmem:[#allocation7 + $0x108] sm:$0xff] }
  0x90   : > { %599 = vmatpush1.msra.mxu0 %v416_v28  ;;  %670 = vmatpush1.msra.mxu1 %v418_v29  ;;  %v392_v44 = vld [vmem:[#allocation7 + $0xf0] sm:$0xff]  ;;  %v394_v45 = vld [vmem:[#allocation7 + $0x100] sm:$0xff]  ;;  %v387_v46 = vld [vmem:[#allocation7 + $0xc8] sm:$0xff] }
  0x91   : > { %600 = vmatprep.subr.mxu0 %v411_v30  ;;  %671 = vmatprep.subr.mxu1 %v413_v31  ;;  %v389_v47 = vld [vmem:[#allocation7 + $0xd8] sm:$0xff]  ;;  %v386_v48 = vld [vmem:[#allocation7 + $0xc0] sm:$0xff]  ;;  %v388_v49 = vld [vmem:[#allocation7 + $0xd0] sm:$0xff] }
  0x92   : > { %601 = vmatpush1.msra.mxu0 %v410_v32  ;;  %672 = vmatpush1.msra.mxu1 %v412_v33  ;;  %v381_v50 = vld [vmem:[#allocation7 + $0x98] sm:$0xff]  ;;  %v383_v51 = vld [vmem:[#allocation7 + $0xa8] sm:$0xff]  ;;  %v380_v52 = vld [vmem:[#allocation7 + $0x90] sm:$0xff] }
  0x93   : > { %602 = vmatprep.subr.mxu0 %v405_v34  ;;  %673 = vmatprep.subr.mxu1 %v407_v35  ;;  %v382_v53 = vld [vmem:[#allocation7 + $0xa0] sm:$0xff]  ;;  %v375_v54 = vld [vmem:[#allocation7 + $0x68] sm:$0xff]  ;;  %v377_v55 = vld [vmem:[#allocation7 + $0x78] sm:$0xff] }
  0x94   : > { %603 = vmatpush1.msra.mxu0 %v404_v36  ;;  %674 = vmatpush1.msra.mxu1 %v406_v37  ;;  %v374_v56 = vld [vmem:[#allocation7 + $0x60] sm:$0xff]  ;;  %v376_v57 = vld [vmem:[#allocation7 + $0x70] sm:$0xff]  ;;  %v369_v58 = vld [vmem:[#allocation7 + $0x38] sm:$0xff] }
  0x95   : > { %604 = vmatprep.subr.mxu0 %v399_v38  ;;  %675 = vmatprep.subr.mxu1 %v401_v39  ;;  %v371_v59 = vld [vmem:[#allocation7 + $0x48] sm:$0xff]  ;;  %v368_v60 = vld [vmem:[#allocation7 + $0x30] sm:$0xff]  ;;  %v370_v61 = vld [vmem:[#allocation7 + $0x40] sm:$0xff] }
  0x96   : > { %605 = vmatpush1.msra.mxu0 %v398_v40  ;;  %676 = vmatpush1.msra.mxu1 %v400_v41  ;;  %v363_v62 = vld [vmem:[#allocation7 + $0x8] sm:$0xff]  ;;  %v365_v63 = vld [vmem:[#allocation7 + $0x18] sm:$0xff]  ;;  %v362_v0 = vld [vmem:[#allocation7] sm:$0xff] }
  0x97   : > { %606 = vmatprep.subr.mxu0 %v393_v42  ;;  %677 = vmatprep.subr.mxu1 %v395_v43  ;;  %v364_v1 = vld [vmem:[#allocation7 + $0x10] sm:$0xff]  ;;  %v549_v2 = vld [vmem:[#allocation7 + $0x5d8] sm:$0xff]  ;;  %v551_v3 = vld [vmem:[#allocation7 + $0x5e8] sm:$0xff] }
  0x98   : > { %607 = vmatpush1.msra.mxu0 %v392_v44  ;;  %678 = vmatpush1.msra.mxu1 %v394_v45  ;;  %v548_v4 = vld [vmem:[#allocation7 + $0x5d0] sm:$0xff]  ;;  %v550_v5 = vld [vmem:[#allocation7 + $0x5e0] sm:$0xff]  ;;  %v543_v6 = vld [vmem:[#allocation7 + $0x5a8] sm:$0xff] }
  0x99   : > { %608 = vmatprep.subr.mxu0 %v387_v46  ;;  %679 = vmatprep.subr.mxu1 %v389_v47  ;;  %v545_v7 = vld [vmem:[#allocation7 + $0x5b8] sm:$0xff]  ;;  %v542_v8 = vld [vmem:[#allocation7 + $0x5a0] sm:$0xff]  ;;  %v544_v9 = vld [vmem:[#allocation7 + $0x5b0] sm:$0xff] }
  0x9a   : > { %609 = vmatpush1.msra.mxu0 %v386_v48  ;;  %680 = vmatpush1.msra.mxu1 %v388_v49  ;;  %v537_v10 = vld [vmem:[#allocation7 + $0x578] sm:$0xff]  ;;  %v539_v11 = vld [vmem:[#allocation7 + $0x588] sm:$0xff]  ;;  %v536_v12 = vld [vmem:[#allocation7 + $0x570] sm:$0xff] }
  0x9b   : > { %610 = vmatprep.subr.mxu0 %v381_v50  ;;  %681 = vmatprep.subr.mxu1 %v383_v51  ;;  %v538_v13 = vld [vmem:[#allocation7 + $0x580] sm:$0xff]  ;;  %v531_v14 = vld [vmem:[#allocation7 + $0x548] sm:$0xff]  ;;  %v533_v15 = vld [vmem:[#allocation7 + $0x558] sm:$0xff] }
  0x9c   : > { %611 = vmatpush1.msra.mxu0 %v380_v52  ;;  %682 = vmatpush1.msra.mxu1 %v382_v53  ;;  %v530_v16 = vld [vmem:[#allocation7 + $0x540] sm:$0xff]  ;;  %v532_v17 = vld [vmem:[#allocation7 + $0x550] sm:$0xff]  ;;  %v525_v18 = vld [vmem:[#allocation7 + $0x518] sm:$0xff] }
  0x9d   : > { %612 = vmatprep.subr.mxu0 %v375_v54  ;;  %683 = vmatprep.subr.mxu1 %v377_v55  ;;  %v527_v19 = vld [vmem:[#allocation7 + $0x528] sm:$0xff]  ;;  %v524_v20 = vld [vmem:[#allocation7 + $0x510] sm:$0xff]  ;;  %v526_v21 = vld [vmem:[#allocation7 + $0x520] sm:$0xff] }
  0x9e   : > { %613 = vmatpush1.msra.mxu0 %v374_v56  ;;  %684 = vmatpush1.msra.mxu1 %v376_v57  ;;  %v519_v22 = vld [vmem:[#allocation7 + $0x4e8] sm:$0xff]  ;;  %v521_v23 = vld [vmem:[#allocation7 + $0x4f8] sm:$0xff]  ;;  %v518_v24 = vld [vmem:[#allocation7 + $0x4e0] sm:$0xff] }
  0x9f   : > { %614 = vmatprep.subr.mxu0 %v369_v58  ;;  %685 = vmatprep.subr.mxu1 %v371_v59  ;;  %v520_v25 = vld [vmem:[#allocation7 + $0x4f0] sm:$0xff]  ;;  %v513_v26 = vld [vmem:[#allocation7 + $0x4b8] sm:$0xff]  ;;  %v515_v27 = vld [vmem:[#allocation7 + $0x4c8] sm:$0xff] }
  0xa0   : > { %615 = vmatpush1.msra.mxu0 %v368_v60  ;;  %686 = vmatpush1.msra.mxu1 %v370_v61  ;;  %v512_v28 = vld [vmem:[#allocation7 + $0x4b0] sm:$0xff]  ;;  %v514_v29 = vld [vmem:[#allocation7 + $0x4c0] sm:$0xff]  ;;  %v507_v30 = vld [vmem:[#allocation7 + $0x488] sm:$0xff] }
  0xa1   : > { %616 = vmatprep.subr.mxu0 %v363_v62  ;;  %687 = vmatprep.subr.mxu1 %v365_v63  ;;  %v509_v31 = vld [vmem:[#allocation7 + $0x498] sm:$0xff]  ;;  %v506_v32 = vld [vmem:[#allocation7 + $0x480] sm:$0xff]  ;;  %v508_v33 = vld [vmem:[#allocation7 + $0x490] sm:$0xff] }
  0xa2   : > { %617 = vmatpush1.msra.mxu0 %v362_v0  ;;  %688 = vmatpush1.msra.mxu1 %v364_v1  ;;  %v501_v34 = vld [vmem:[#allocation7 + $0x458] sm:$0xff]  ;;  %v503_v35 = vld [vmem:[#allocation7 + $0x468] sm:$0xff]  ;;  %v500_v36 = vld [vmem:[#allocation7 + $0x450] sm:$0xff] }
  0xa3   : > { %618 = vmatprep.subr.mxu0 %v549_v2  ;;  %689 = vmatprep.subr.mxu1 %v551_v3  ;;  %v502_v37 = vld [vmem:[#allocation7 + $0x460] sm:$0xff]  ;;  %v495_v38 = vld [vmem:[#allocation7 + $0x428] sm:$0xff]  ;;  %v497_v39 = vld [vmem:[#allocation7 + $0x438] sm:$0xff] }
  0xa4   : > { %619 = vmatpush2.msra.mxu0 %v548_v4  ;;  %690 = vmatpush2.msra.mxu1 %v550_v5  ;;  %v494_v40 = vld [vmem:[#allocation7 + $0x420] sm:$0xff]  ;;  %v496_v41 = vld [vmem:[#allocation7 + $0x430] sm:$0xff]  ;;  %v489_v42 = vld [vmem:[#allocation7 + $0x3f8] sm:$0xff] }
  0xa5   : > { %620 = vmatprep.subr.mxu0 %v543_v6  ;;  %691 = vmatprep.subr.mxu1 %v545_v7  ;;  %v491_v43 = vld [vmem:[#allocation7 + $0x408] sm:$0xff]  ;;  %v488_v44 = vld [vmem:[#allocation7 + $0x3f0] sm:$0xff]  ;;  %v490_v45 = vld [vmem:[#allocation7 + $0x400] sm:$0xff] }
  0xa6   : > { %621 = vmatpush2.msra.mxu0 %v542_v8  ;;  %692 = vmatpush2.msra.mxu1 %v544_v9  ;;  %v483_v46 = vld [vmem:[#allocation7 + $0x3c8] sm:$0xff]  ;;  %v485_v47 = vld [vmem:[#allocation7 + $0x3d8] sm:$0xff]  ;;  %v482_v48 = vld [vmem:[#allocation7 + $0x3c0] sm:$0xff] }
  0xa7   : > { %622 = vmatprep.subr.mxu0 %v537_v10  ;;  %693 = vmatprep.subr.mxu1 %v539_v11  ;;  %v484_v49 = vld [vmem:[#allocation7 + $0x3d0] sm:$0xff]  ;;  %v477_v50 = vld [vmem:[#allocation7 + $0x398] sm:$0xff]  ;;  %v479_v51 = vld [vmem:[#allocation7 + $0x3a8] sm:$0xff] }
  0xa8   : > { %623 = vmatpush2.msra.mxu0 %v536_v12  ;;  %694 = vmatpush2.msra.mxu1 %v538_v13  ;;  %v476_v52 = vld [vmem:[#allocation7 + $0x390] sm:$0xff]  ;;  %v478_v53 = vld [vmem:[#allocation7 + $0x3a0] sm:$0xff]  ;;  %v471_v54 = vld [vmem:[#allocation7 + $0x368] sm:$0xff] }
  0xa9   : > { %624 = vmatprep.subr.mxu0 %v531_v14  ;;  %695 = vmatprep.subr.mxu1 %v533_v15  ;;  %v473_v55 = vld [vmem:[#allocation7 + $0x378] sm:$0xff]  ;;  %v470_v56 = vld [vmem:[#allocation7 + $0x360] sm:$0xff]  ;;  %v472_v57 = vld [vmem:[#allocation7 + $0x370] sm:$0xff] }
  0xaa   : > { %625 = vmatpush2.msra.mxu0 %v530_v16  ;;  %696 = vmatpush2.msra.mxu1 %v532_v17  ;;  %v359_v58 = vld [vmem:[%s4795_s1 + $0x8] sm:$0xff]  ;;  %v358_v61 = vld [vmem:[%s4795_s1] sm:$0xff] }
  0xab   : > { %626 = vmatprep.subr.mxu0 %v525_v18  ;;  %697 = vmatprep.subr.mxu1 %v527_v19  ;;  %v465_v59 = vld [vmem:[#allocation7 + $0x338] sm:$0xff]  ;;  %v467_v60 = vld [vmem:[#allocation7 + $0x348] sm:$0xff]  ;;  %v464_v62 = vld [vmem:[#allocation7 + $0x330] sm:$0xff]  ;;  %v4815_v2 = vmax.f32 %v359_v58, 0.0  ;;  %v4817_v4 = vmax.f32 %v358_v61, 0.0 }
  0xac   : > { %627 = vmatpush2.msra.mxu0 %v524_v20  ;;  %698 = vmatpush2.msra.mxu1 %v526_v21  ;;  %v466_v63 = vld [vmem:[#allocation7 + $0x340] sm:$0xff]  ;;  %v459_v0 = vld [vmem:[#allocation7 + $0x308] sm:$0xff]  ;;  %v461_v1 = vld [vmem:[#allocation7 + $0x318] sm:$0xff] }
  0xad   : > { %628 = vmatprep.subr.mxu0 %v519_v22  ;;  %699 = vmatprep.subr.mxu1 %v521_v23  ;;  %v458_v3 = vld [vmem:[#allocation7 + $0x300] sm:$0xff]  ;;  %v460_v5 = vld [vmem:[#allocation7 + $0x310] sm:$0xff]  ;;  %v457_v6 = vld [vmem:[#allocation7 + $0x2f8] sm:$0xff] }
  0xae   : > { %629 = vmatpush2.msra.mxu0 %v518_v24  ;;  %700 = vmatpush2.msra.mxu1 %v520_v25  ;;  %v890_v7 = vld [vmem:[#allocation8 + $0x2d8] sm:$0xff]  ;;  %v456_v8 = vld [vmem:[#allocation7 + $0x2f0] sm:$0xff]  ;;  %v451_v10 = vld [vmem:[#allocation7 + $0x2c8] sm:$0xff] }
  0xaf   : > { %630 = vmatprep.subr.mxu0 %v513_v26  ;;  %701 = vmatprep.subr.mxu1 %v515_v27  ;;  %v889_v9 = vld [vmem:[#allocation8 + $0x2d0] sm:$0xff]  ;;  %v884_v11 = vld [vmem:[#allocation8 + $0x2a8] sm:$0xff]  ;;  %v450_v12 = vld [vmem:[#allocation7 + $0x2c0] sm:$0xff] }
  0xb0   : > { %631 = vmatpush2.msra.mxu0 %v512_v28  ;;  %702 = vmatpush2.msra.mxu1 %v514_v29  ;;  %v883_v13 = vld [vmem:[#allocation8 + $0x2a0] sm:$0xff]  ;;  %v445_v14 = vld [vmem:[#allocation7 + $0x298] sm:$0xff]  ;;  %v444_v16 = vld [vmem:[#allocation7 + $0x290] sm:$0xff] }
  0xb1   : > { %632 = vmatprep.subr.mxu0 %v507_v30  ;;  %703 = vmatprep.subr.mxu1 %v509_v31  ;;  %v878_v15 = vld [vmem:[#allocation8 + $0x278] sm:$0xff]  ;;  %v877_v17 = vld [vmem:[#allocation8 + $0x270] sm:$0xff]  ;;  %v439_v18 = vld [vmem:[#allocation7 + $0x268] sm:$0xff] }
  0xb2   : > { %633 = vmatpush2.msra.mxu0 %v506_v32  ;;  %704 = vmatpush2.msra.mxu1 %v508_v33  ;;  %v872_v19 = vld [vmem:[#allocation8 + $0x248] sm:$0xff]  ;;  %v438_v20 = vld [vmem:[#allocation7 + $0x260] sm:$0xff]  ;;  %v433_v22 = vld [vmem:[#allocation7 + $0x238] sm:$0xff] }
  0xb3   : > { %634 = vmatprep.subr.mxu0 %v501_v34  ;;  %705 = vmatprep.subr.mxu1 %v503_v35  ;;  %v871_v21 = vld [vmem:[#allocation8 + $0x240] sm:$0xff]  ;;  %v866_v23 = vld [vmem:[#allocation8 + $0x218] sm:$0xff]  ;;  %v432_v24 = vld [vmem:[#allocation7 + $0x230] sm:$0xff] }
  0xb4   : > { %635 = vmatpush2.msra.mxu0 %v500_v36  ;;  %706 = vmatpush2.msra.mxu1 %v502_v37  ;;  %v865_v25 = vld [vmem:[#allocation8 + $0x210] sm:$0xff]  ;;  %v427_v26 = vld [vmem:[#allocation7 + $0x208] sm:$0xff]  ;;  %v426_v28 = vld [vmem:[#allocation7 + $0x200] sm:$0xff] }
  0xb5   : > { %636 = vmatprep.subr.mxu0 %v495_v38  ;;  %707 = vmatprep.subr.mxu1 %v497_v39  ;;  %v4823_v27 = vld [vmem:[#allocation8 + $0x1e8] sm:$0xff]  ;;  %v4825_v29 = vld [vmem:[#allocation8 + $0x1e0] sm:$0xff]  ;;  %v421_v30 = vld [vmem:[#allocation7 + $0x1d8] sm:$0xff] }
  0xb6   : > { %637 = vmatpush2.msra.mxu0 %v494_v40  ;;  %708 = vmatpush2.msra.mxu1 %v496_v41  ;;  %v4827_v31 = vld [vmem:[#allocation8 + $0x1b8] sm:$0xff]  ;;  %v420_v32 = vld [vmem:[#allocation7 + $0x1d0] sm:$0xff]  ;;  %v415_v34 = vld [vmem:[#allocation7 + $0x1a8] sm:$0xff] }
  0xb7   : > { %638 = vmatprep.subr.mxu0 %v489_v42  ;;  %709 = vmatprep.subr.mxu1 %v491_v43  ;;  %v4830_v33 = vld [vmem:[#allocation8 + $0x1b0] sm:$0xff]  ;;  %v4833_v35 = vld [vmem:[#allocation8 + $0x188] sm:$0xff]  ;;  %v414_v36 = vld [vmem:[#allocation7 + $0x1a0] sm:$0xff] }
  0xb8   : > { %639 = vmatpush2.msra.mxu0 %v488_v44  ;;  %710 = vmatpush2.msra.mxu1 %v490_v45  ;;  %v4836_v37 = vld [vmem:[#allocation8 + $0x180] sm:$0xff]  ;;  %v409_v38 = vld [vmem:[#allocation7 + $0x178] sm:$0xff]  ;;  %v408_v40 = vld [vmem:[#allocation7 + $0x170] sm:$0xff] }
  0xb9   : > { %640 = vmatprep.subr.mxu0 %v483_v46  ;;  %711 = vmatprep.subr.mxu1 %v485_v47  ;;  %v4839_v39 = vld [vmem:[#allocation8 + $0x158] sm:$0xff]  ;;  %v4842_v41 = vld [vmem:[#allocation8 + $0x150] sm:$0xff]  ;;  %v403_v42 = vld [vmem:[#allocation7 + $0x148] sm:$0xff] }
  0xba   : > { %641 = vmatpush2.msra.mxu0 %v482_v48  ;;  %712 = vmatpush2.msra.mxu1 %v484_v49  ;;  %v4845_v43 = vld [vmem:[#allocation8 + $0x128] sm:$0xff]  ;;  %v402_v44 = vld [vmem:[#allocation7 + $0x140] sm:$0xff]  ;;  %v397_v46 = vld [vmem:[#allocation7 + $0x118] sm:$0xff] }
  0xbb   : > { %642 = vmatprep.subr.mxu0 %v477_v50  ;;  %713 = vmatprep.subr.mxu1 %v479_v51  ;;  %v4848_v45 = vld [vmem:[#allocation8 + $0x120] sm:$0xff]  ;;  %v4851_v47 = vld [vmem:[#allocation8 + $0xf8] sm:$0xff]  ;;  %v396_v48 = vld [vmem:[#allocation7 + $0x110] sm:$0xff] }
  0xbc   : > { %643 = vmatpush2.msra.mxu0 %v476_v52  ;;  %714 = vmatpush2.msra.mxu1 %v478_v53  ;;  %v4854_v49 = vld [vmem:[#allocation8 + $0xf0] sm:$0xff]  ;;  %v391_v50 = vld [vmem:[#allocation7 + $0xe8] sm:$0xff]  ;;  %v390_v52 = vld [vmem:[#allocation7 + $0xe0] sm:$0xff] }
  0xbd   : > { %644 = vmatprep.subr.mxu0 %v471_v54  ;;  %715 = vmatprep.subr.mxu1 %v473_v55  ;;  %v4857_v51 = vld [vmem:[#allocation8 + $0xc8] sm:$0xff]  ;;  %v4860_v53 = vld [vmem:[#allocation8 + $0xc0] sm:$0xff]  ;;  %v385_v54 = vld [vmem:[#allocation7 + $0xb8] sm:$0xff] }
  0xbe   : > { %645 = vmatpush2.msra.mxu0 %v470_v56  ;;  %716 = vmatpush2.msra.mxu1 %v472_v57  ;;  %v4863_v55 = vld [vmem:[#allocation8 + $0x98] sm:$0xff]  ;;  %v384_v56 = vld [vmem:[#allocation7 + $0xb0] sm:$0xff]  ;;  %v379_v58 = vld [vmem:[#allocation7 + $0x88] sm:$0xff] }
  0xbf   : > { %646 = vmatprep.subr.mxu0 %v465_v59  ;;  %717 = vmatprep.subr.mxu1 %v467_v60  ;;  %v4866_v57 = vld [vmem:[#allocation8 + $0x90] sm:$0xff]  ;;  %v4869_v59 = vld [vmem:[#allocation8 + $0x68] sm:$0xff]  ;;  %v378_v60 = vld [vmem:[#allocation7 + $0x80] sm:$0xff] }
  0xc0   : > { %647 = vmatpush2.msra.mxu0 %v464_v62  ;;  %718 = vmatpush2.msra.mxu1 %v466_v63  ;;  %v4872_v61 = vld [vmem:[#allocation8 + $0x60] sm:$0xff]  ;;  %v373_v62 = vld [vmem:[#allocation7 + $0x58] sm:$0xff] }
  0xc1   : > { %648 = vmatprep.subr.mxu0 %v459_v0  ;;  %719 = vmatprep.subr.mxu1 %v461_v1  ;;  %v4875_v63 = vld [vmem:[#allocation8 + $0x38] sm:$0xff]  ;;  %v372_v0 = vld [vmem:[#allocation7 + $0x50] sm:$0xff] }
  0xc2   : > { %649 = vmatpush2.msra.mxu0 %v458_v3  ;;  %650 = vmatprep.mubr.f32.mxu0 %v4815_v2  ;;  %v4878_v1 = vld [vmem:[#allocation8 + $0x30] sm:$0xff]  ;;  %v367_v3 = vld [vmem:[#allocation7 + $0x28] sm:$0xff] }
  0xc3   : > { %720 = vmatpush2.msra.mxu1 %v460_v5  ;;  %651 = vmatmul.mubr.f32.vlgmr.msra.gmra.mxu0 %v4817_v4  ;;  %v4881_v5 = vld [vmem:[#allocation8 + $0x8] sm:$0xff] }
  0xc4   : > { %721 = vmatprep.mubr.f32.mxu1 %v4815_v2  ;;  %728 = vmatprep.subr.mxu0 %v457_v6  ;;  %v366_v6 = vld [vmem:[#allocation7 + $0x20] sm:$0xff] }
  0xc5   : > { %1035 = vmatprep.subr.mxu1 %v890_v7  ;;  %722 = vmatmul.mubr.f32.vlgmr.msra.gmra.mxu1 %v4817_v4  ;;  %v4884_v7 = vld [vmem:[#allocation8] sm:$0xff] }
  0xc6   : > { %729 = vmatpush1.msra.mxu0 %v456_v8  ;;  %1036 = vmatpush1.msra.mxu1 %v889_v9  ;;  %8687 = vst [vmem:[#allocation19_spill] sm:$0xff] %v4884_v7  ;;  %v553_v8 = vld [vmem:[#allocation7 + $0x5f8] sm:$0xff] }
  0xc7   : > { %730 = vmatprep.subr.mxu0 %v451_v10  ;;  %1037 = vmatprep.subr.mxu1 %v884_v11  ;;  %v4887_v9 = vld [vmem:[#allocation8 + $0x5d8] sm:$0xff]  ;;  %v552_v10 = vld [vmem:[#allocation7 + $0x5f0] sm:$0xff] }
  0xc8   : > { %731 = vmatpush1.msra.mxu0 %v450_v12  ;;  %1038 = vmatpush1.msra.mxu1 %v883_v13  ;;  %8688 = vst [vmem:[#allocation20_spill] sm:$0xff] %v4887_v9  ;;  %v4890_v11 = vld [vmem:[#allocation8 + $0x5d0] sm:$0xff]  ;;  %v547_v12 = vld [vmem:[#allocation7 + $0x5c8] sm:$0xff] }
  0xc9   : > { %732 = vmatprep.subr.mxu0 %v445_v14  ;;  %1039 = vmatprep.subr.mxu1 %v878_v15  ;;  %8689 = vst [vmem:[#allocation21_spill] sm:$0xff] %v4890_v11  ;;  %v4893_v13 = vld [vmem:[#allocation8 + $0x5a8] sm:$0xff]  ;;  %v546_v14 = vld [vmem:[#allocation7 + $0x5c0] sm:$0xff] }
  0xca   : > { %733 = vmatpush1.msra.mxu0 %v444_v16  ;;  %1040 = vmatpush1.msra.mxu1 %v877_v17  ;;  %8690 = vst [vmem:[#allocation22_spill] sm:$0xff] %v4893_v13  ;;  %v4896_v15 = vld [vmem:[#allocation8 + $0x5a0] sm:$0xff]  ;;  %v541_v16 = vld [vmem:[#allocation7 + $0x598] sm:$0xff] }
  0xcb   : > { %734 = vmatprep.subr.mxu0 %v439_v18  ;;  %1041 = vmatprep.subr.mxu1 %v872_v19  ;;  %8691 = vst [vmem:[#allocation23_spill] sm:$0xff] %v4896_v15  ;;  %v4899_v17 = vld [vmem:[#allocation8 + $0x578] sm:$0xff]  ;;  %v540_v18 = vld [vmem:[#allocation7 + $0x590] sm:$0xff] }
  0xcc   : > { %735 = vmatpush1.msra.mxu0 %v438_v20  ;;  %1042 = vmatpush1.msra.mxu1 %v871_v21  ;;  %8692 = vst [vmem:[#allocation24_spill] sm:$0xff] %v4899_v17  ;;  %v4902_v19 = vld [vmem:[#allocation8 + $0x570] sm:$0xff]  ;;  %v535_v20 = vld [vmem:[#allocation7 + $0x568] sm:$0xff] }
  0xcd   : > { %736 = vmatprep.subr.mxu0 %v433_v22  ;;  %1043 = vmatprep.subr.mxu1 %v866_v23  ;;  %8693 = vst [vmem:[#allocation25_spill] sm:$0xff] %v4902_v19  ;;  %v4905_v21 = vld [vmem:[#allocation8 + $0x548] sm:$0xff]  ;;  %v534_v22 = vld [vmem:[#allocation7 + $0x560] sm:$0xff] }
  0xce   : > { %737 = vmatpush1.msra.mxu0 %v432_v24  ;;  %1044 = vmatpush1.msra.mxu1 %v865_v25  ;;  %8694 = vst [vmem:[#allocation26_spill] sm:$0xff] %v4905_v21  ;;  %v4908_v23 = vld [vmem:[#allocation8 + $0x540] sm:$0xff]  ;;  %v529_v24 = vld [vmem:[#allocation7 + $0x538] sm:$0xff] }
  0xcf   : > { %738 = vmatprep.subr.mxu0 %v427_v26  ;;  %1045 = vmatprep.subr.mxu1 %v4823_v27  ;;  %8695 = vst [vmem:[#allocation27_spill] sm:$0xff] %v4908_v23  ;;  %v4911_v25 = vld [vmem:[#allocation8 + $0x518] sm:$0xff]  ;;  %v528_v26 = vld [vmem:[#allocation7 + $0x530] sm:$0xff] }
  0xd0   : > { %739 = vmatpush1.msra.mxu0 %v426_v28  ;;  %1046 = vmatpush1.msra.mxu1 %v4825_v29  ;;  %8696 = vst [vmem:[#allocation28_spill] sm:$0xff] %v4911_v25  ;;  %v4914_v28 = vld [vmem:[#allocation8 + $0x510] sm:$0xff] }
  0xd1   : > { %740 = vmatprep.subr.mxu0 %v421_v30  ;;  %1047 = vmatprep.subr.mxu1 %v4827_v31  ;;  %8697 = vst [vmem:[#allocation29_spill] sm:$0xff] %v4914_v28  ;;  %v523_v30 = vld [vmem:[#allocation7 + $0x508] sm:$0xff] }
  0xd2   : > { %741 = vmatpush1.msra.mxu0 %v420_v32  ;;  %1048 = vmatpush1.msra.mxu1 %v4830_v33  ;;  %v4917_v32 = vld [vmem:[#allocation8 + $0x4e8] sm:$0xff] }
  0xd3   : > { %742 = vmatprep.subr.mxu0 %v415_v34  ;;  %1049 = vmatprep.subr.mxu1 %v4833_v35  ;;  %8698 = vst [vmem:[#allocation30_spill] sm:$0xff] %v4917_v32  ;;  %v522_v34 = vld [vmem:[#allocation7 + $0x500] sm:$0xff] }
  0xd4   : > { %743 = vmatpush1.msra.mxu0 %v414_v36  ;;  %1050 = vmatpush1.msra.mxu1 %v4836_v37  ;;  %v4920_v36 = vld [vmem:[#allocation8 + $0x4e0] sm:$0xff] }
  0xd5   : > { %744 = vmatprep.subr.mxu0 %v409_v38  ;;  %1051 = vmatprep.subr.mxu1 %v4839_v39  ;;  %8699 = vst [vmem:[#allocation31_spill] sm:$0xff] %v4920_v36  ;;  %v517_v38 = vld [vmem:[#allocation7 + $0x4d8] sm:$0xff] }
  0xd6   : > { %745 = vmatpush1.msra.mxu0 %v408_v40  ;;  %1052 = vmatpush1.msra.mxu1 %v4842_v41  ;;  %v4923_v40 = vld [vmem:[#allocation8 + $0x4b8] sm:$0xff] }
  0xd7   : > { %746 = vmatprep.subr.mxu0 %v403_v42  ;;  %1053 = vmatprep.subr.mxu1 %v4845_v43  ;;  %8700 = vst [vmem:[#allocation32_spill] sm:$0xff] %v4923_v40  ;;  %v516_v42 = vld [vmem:[#allocation7 + $0x4d0] sm:$0xff] }
  0xd8   : > { %747 = vmatpush1.msra.mxu0 %v402_v44  ;;  %1054 = vmatpush1.msra.mxu1 %v4848_v45  ;;  %v4926_v44 = vld [vmem:[#allocation8 + $0x4b0] sm:$0xff] }
  0xd9   : > { %748 = vmatprep.subr.mxu0 %v397_v46  ;;  %1055 = vmatprep.subr.mxu1 %v4851_v47  ;;  %8701 = vst [vmem:[#allocation33_spill] sm:$0xff] %v4926_v44  ;;  %v511_v46 = vld [vmem:[#allocation7 + $0x4a8] sm:$0xff] }
  0xda   : > { %749 = vmatpush1.msra.mxu0 %v396_v48  ;;  %1056 = vmatpush1.msra.mxu1 %v4854_v49  ;;  %v4929_v48 = vld [vmem:[#allocation8 + $0x488] sm:$0xff] }
  0xdb   : > { %750 = vmatprep.subr.mxu0 %v391_v50  ;;  %1057 = vmatprep.subr.mxu1 %v4857_v51  ;;  %8702 = vst [vmem:[#allocation34_spill] sm:$0xff] %v4929_v48  ;;  %v510_v50 = vld [vmem:[#allocation7 + $0x4a0] sm:$0xff] }
  0xdc   : > { %751 = vmatpush1.msra.mxu0 %v390_v52  ;;  %1058 = vmatpush1.msra.mxu1 %v4860_v53  ;;  %v4932_v52 = vld [vmem:[#allocation8 + $0x480] sm:$0xff] }
  0xdd   : > { %752 = vmatprep.subr.mxu0 %v385_v54  ;;  %1059 = vmatprep.subr.mxu1 %v4863_v55  ;;  %8703 = vst [vmem:[#allocation35_spill] sm:$0xff] %v4932_v52  ;;  %v505_v54 = vld [vmem:[#allocation7 + $0x478] sm:$0xff] }
  0xde   : > { %753 = vmatpush1.msra.mxu0 %v384_v56  ;;  %1060 = vmatpush1.msra.mxu1 %v4866_v57  ;;  %v4935_v56 = vld [vmem:[#allocation8 + $0x458] sm:$0xff] }
  0xdf   : > { %754 = vmatprep.subr.mxu0 %v379_v58  ;;  %1061 = vmatprep.subr.mxu1 %v4869_v59  ;;  %8704 = vst [vmem:[#allocation36_spill] sm:$0xff] %v4935_v56  ;;  %v504_v58 = vld [vmem:[#allocation7 + $0x470] sm:$0xff] }
  0xe0   : > { %755 = vmatpush1.msra.mxu0 %v378_v60  ;;  %1062 = vmatpush1.msra.mxu1 %v4872_v61  ;;  %v4938_v60 = vld [vmem:[#allocation8 + $0x450] sm:$0xff] }
  0xe1   : > { %756 = vmatprep.subr.mxu0 %v373_v62  ;;  %1063 = vmatprep.subr.mxu1 %v4875_v63  ;;  %8705 = vst [vmem:[#allocation37_spill] sm:$0xff] %v4938_v60  ;;  %v499_v62 = vld [vmem:[#allocation7 + $0x448] sm:$0xff] }
  0xe2   : > { %757 = vmatpush1.msra.mxu0 %v372_v0  ;;  %1064 = vmatpush1.msra.mxu1 %v4878_v1  ;;  %v4941_v0 = vld [vmem:[#allocation8 + $0x428] sm:$0xff] }
  0xe3   : > { %758 = vmatprep.subr.mxu0 %v367_v3  ;;  %1065 = vmatprep.subr.mxu1 %v4881_v5  ;;  %8706 = vst [vmem:[#allocation38_spill] sm:$0xff] %v4941_v0  ;;  %v498_v3 = vld [vmem:[#allocation7 + $0x440] sm:$0xff] }
  0xe4   : > { %759 = vmatpush1.msra.mxu0 %v366_v6  ;;  %1066 = vmatpush1.msra.mxu1 %v4884_v7  ;;  %v4944_v6 = vld [vmem:[#allocation8 + $0x420] sm:$0xff]  ;;  %v5206_v7 = vld [vmem:[#allocation8 + $0x5c8] sm:$0xff] }
  0xe5   : > { %760 = vmatprep.subr.mxu0 %v553_v8  ;;  %1067 = vmatprep.subr.mxu1 %v4887_v9  ;;  %8707 = vst [vmem:[#allocation39_spill] sm:$0xff] %v4944_v6  ;;  %v8141_v8 = vlaneseq  ;;  %v5200_v9 = vld [vmem:[#allocation8 + $0x5f0] sm:$0xff]  ;;  %8762 = vst [vmem:[#allocation94_spill] sm:$0xff] %v5206_v7 }
  0xe6   : > { %761 = vmatpush2.msra.mxu0 %v552_v10  ;;  %1068 = vmatpush2.msra.mxu1 %v4890_v11  ;;  %v493_v10 = vld [vmem:[#allocation7 + $0x418] sm:$0xff]  ;;  %8760 = vst [vmem:[#allocation92_spill] sm:$0xff] %v5200_v9 }
  0xe7   : > { %762 = vmatprep.subr.mxu0 %v547_v12  ;;  %1069 = vmatprep.subr.mxu1 %v4893_v13  ;;  %v4947_v12 = vld [vmem:[#allocation8 + $0x3f8] sm:$0xff]  ;;  %v5188_v13 = vld [vmem:[#allocation8 + $0x20] sm:$0xff] }
  0xe8   : > { %763 = vmatpush2.msra.mxu0 %v546_v14  ;;  %1070 = vmatpush2.msra.mxu1 %v4896_v15  ;;  %8708 = vst [vmem:[#allocation40_spill] sm:$0xff] %v4947_v12  ;;  %v492_v14 = vld [vmem:[#allocation7 + $0x410] sm:$0xff]  ;;  %v5182_v15 = vld [vmem:[#allocation8 + $0x28] sm:$0xff]  ;;  %8756 = vst [vmem:[#allocation88_spill] sm:$0xff] %v5188_v13 }
  0xe9   : > { %764 = vmatprep.subr.mxu0 %v541_v16  ;;  %1071 = vmatprep.subr.mxu1 %v4899_v17  ;;  %v4950_v16 = vld [vmem:[#allocation8 + $0x3f0] sm:$0xff]  ;;  %8754 = vst [vmem:[#allocation86_spill] sm:$0xff] %v5182_v15  ;;  %v5194_v11 = vld [vmem:[#allocation8 + $0x5f8] sm:$0xff] }
  0xea   : > { %765 = vmatpush2.msra.mxu0 %v540_v18  ;;  %1072 = vmatpush2.msra.mxu1 %v4902_v19  ;;  %8709 = vst [vmem:[#allocation41_spill] sm:$0xff] %v4950_v16  ;;  %v487_v18 = vld [vmem:[#allocation7 + $0x3e8] sm:$0xff]  ;;  %v5170_v19 = vld [vmem:[#allocation8 + $0x58] sm:$0xff]  ;;  %v5176_v17 = vld [vmem:[#allocation8 + $0x50] sm:$0xff] }
  0xeb   : > { %766 = vmatprep.subr.mxu0 %v535_v20  ;;  %1073 = vmatprep.subr.mxu1 %v4905_v21  ;;  %v4953_v20 = vld [vmem:[#allocation8 + $0x3c8] sm:$0xff]  ;;  %v5164_v21 = vld [vmem:[#allocation8 + $0x80] sm:$0xff]  ;;  %8751 = vst [vmem:[#allocation83_spill] sm:$0xff] %v5170_v19  ;;  %8752 = vst [vmem:[#allocation84_spill] sm:$0xff] %v5176_v17 }
  0xec   : > { %767 = vmatpush2.msra.mxu0 %v534_v22  ;;  %1074 = vmatpush2.msra.mxu1 %v4908_v23  ;;  %8710 = vst [vmem:[#allocation42_spill] sm:$0xff] %v4953_v20  ;;  %v486_v22 = vld [vmem:[#allocation7 + $0x3e0] sm:$0xff]  ;;  %v5158_v23 = vld [vmem:[#allocation8 + $0x88] sm:$0xff]  ;;  %8750 = vst [vmem:[#allocation82_spill] sm:$0xff] %v5164_v21 }
  0xed   : > { %768 = vmatprep.subr.mxu0 %v529_v24  ;;  %1075 = vmatprep.subr.mxu1 %v4911_v25  ;;  %v4956_v24 = vld [vmem:[#allocation8 + $0x3c0] sm:$0xff]  ;;  %v5152_v25 = vld [vmem:[#allocation8 + $0xb0] sm:$0xff]  ;;  %8749 = vst [vmem:[#allocation81_spill] sm:$0xff] %v5158_v23  ;;  %8758 = vst [vmem:[#allocation90_spill] sm:$0xff] %v5194_v11 }
  0xee   : > { %769 = vmatpush2.msra.mxu0 %v528_v26  ;;  %1076 = vmatpush2.msra.mxu1 %v4914_v28  ;;  %8711 = vst [vmem:[#allocation43_spill] sm:$0xff] %v4956_v24  ;;  %v4959_v26 = vshrl.u32 %v8141_v8, 7  ;;  %v463_v8 = vld [vmem:[#allocation7 + $0x328] sm:$0xff]  ;;  %v5146_v28 = vld [vmem:[#allocation8 + $0xb8] sm:$0xff]  ;;  %8748 = vst [vmem:[#allocation80_spill] sm:$0xff] %v5152_v25 }
  0xef   : > { %770 = vmatprep.subr.mxu0 %v523_v30  ;;  %1077 = vmatprep.subr.mxu1 %v4917_v32  ;;  %v481_v30 = vld [vmem:[#allocation7 + $0x3b8] sm:$0xff]  ;;  %v5140_v32 = vld [vmem:[#allocation8 + $0xe0] sm:$0xff]  ;;  %8747 = vst [vmem:[#allocation79_spill] sm:$0xff] %v5146_v28 }
  0xf0   : > { %771 = vmatpush2.msra.mxu0 %v522_v34  ;;  %1078 = vmatpush2.msra.mxu1 %v4920_v36  ;;  %8712 = vst [vmem:[#allocation44_spill] sm:$0xff] %v4959_v26  ;;  %v4962_v34 = vld [vmem:[#allocation8 + $0x398] sm:$0xff]  ;;  %v5134_v36 = vld [vmem:[#allocation8 + $0xe8] sm:$0xff]  ;;  %8746 = vst [vmem:[#allocation78_spill] sm:$0xff] %v5140_v32 }
  0xf1   : > { %772 = vmatprep.subr.mxu0 %v517_v38  ;;  %1079 = vmatprep.subr.mxu1 %v4923_v40  ;;  %8713 = vst [vmem:[#allocation45_spill] sm:$0xff] %v4962_v34  ;;  %v480_v38 = vld [vmem:[#allocation7 + $0x3b0] sm:$0xff]  ;;  %8745 = vst [vmem:[#allocation77_spill] sm:$0xff] %v5134_v36 }
  0xf2   : > { %773 = vmatpush2.msra.mxu0 %v516_v42  ;;  %1080 = vmatpush2.msra.mxu1 %v4926_v44  ;;  %v4965_v42 = vld [vmem:[#allocation8 + $0x390] sm:$0xff]  ;;  %v5122_v44 = vld [vmem:[#allocation8 + $0x118] sm:$0xff] }
  0xf3   : > { %774 = vmatprep.subr.mxu0 %v511_v46  ;;  %1081 = vmatprep.subr.mxu1 %v4929_v48  ;;  %8714 = vst [vmem:[#allocation46_spill] sm:$0xff] %v4965_v42  ;;  %v475_v46 = vld [vmem:[#allocation7 + $0x388] sm:$0xff]  ;;  %v5116_v48 = vld [vmem:[#allocation8 + $0x140] sm:$0xff]  ;;  %8743 = vst [vmem:[#allocation75_spill] sm:$0xff] %v5122_v44 }
  0xf4   : > { %775 = vmatpush2.msra.mxu0 %v510_v50  ;;  %1082 = vmatpush2.msra.mxu1 %v4932_v52  ;;  %v4968_v50 = vld [vmem:[#allocation8 + $0x368] sm:$0xff]  ;;  %8742 = vst [vmem:[#allocation74_spill] sm:$0xff] %v5116_v48  ;;  %v5128_v40 = vld [vmem:[#allocation8 + $0x110] sm:$0xff] }
  0xf5   : > { %776 = vmatprep.subr.mxu0 %v505_v54  ;;  %1083 = vmatprep.subr.mxu1 %v4935_v56  ;;  %8715 = vst [vmem:[#allocation47_spill] sm:$0xff] %v4968_v50  ;;  %v474_v54 = vld [vmem:[#allocation7 + $0x380] sm:$0xff]  ;;  %v5104_v56 = vld [vmem:[#allocation8 + $0x170] sm:$0xff]  ;;  %v5110_v52 = vld [vmem:[#allocation8 + $0x148] sm:$0xff] }
  0xf6   : > { %777 = vmatpush2.msra.mxu0 %v504_v58  ;;  %1084 = vmatpush2.msra.mxu1 %v4938_v60  ;;  %v4971_v58 = vld [vmem:[#allocation8 + $0x360] sm:$0xff]  ;;  %v5098_v60 = vld [vmem:[#allocation8 + $0x178] sm:$0xff]  ;;  %8740 = vst [vmem:[#allocation72_spill] sm:$0xff] %v5104_v56  ;;  %8741 = vst [vmem:[#allocation73_spill] sm:$0xff] %v5110_v52 }
  0xf7   : > { %778 = vmatprep.subr.mxu0 %v499_v62  ;;  %1085 = vmatprep.subr.mxu1 %v4941_v0  ;;  %8716 = vst [vmem:[#allocation48_spill] sm:$0xff] %v4971_v58  ;;  %v4974_v62 = vsub.s32 1, %v4959_v26  ;;  %v5092_v0 = vld [vmem:[#allocation8 + $0x1a0] sm:$0xff]  ;;  %8739 = vst [vmem:[#allocation71_spill] sm:$0xff] %v5098_v60 }
  0xf8   : > { %779 = vmatpush2.msra.mxu0 %v498_v3  ;;  %1086 = vmatpush2.msra.mxu1 %v4944_v6  ;;  %v469_v3 = vld [vmem:[#allocation7 + $0x358] sm:$0xff]  ;;  %v5086_v6 = vld [vmem:[#allocation8 + $0x1a8] sm:$0xff]  ;;  %8738 = vst [vmem:[#allocation70_spill] sm:$0xff] %v5092_v0  ;;  %8744 = vst [vmem:[#allocation76_spill] sm:$0xff] %v5128_v40 }
  0xf9   : > { %780 = vmatprep.subr.mxu0 %v493_v10  ;;  %1087 = vmatprep.subr.mxu1 %v4947_v12  ;;  %8717 = vst [vmem:[#allocation49_spill] sm:$0xff] %v4974_v62  ;;  %v4977_v10 = vld [vmem:[#allocation8 + $0x338] sm:$0xff]  ;;  %v5080_v12 = vld [vmem:[#allocation8 + $0x1d0] sm:$0xff]  ;;  %8737 = vst [vmem:[#allocation69_spill] sm:$0xff] %v5086_v6 }
  0xfa   : > { %781 = vmatpush2.msra.mxu0 %v492_v14  ;;  %1088 = vmatpush2.msra.mxu1 %v4950_v16  ;;  %8718 = vst [vmem:[#allocation50_spill] sm:$0xff] %v4977_v10  ;;  %v992_v14 = vld [vmem:[#allocation12] sm:$0x3]  ;;  %v5074_v16 = vld [vmem:[#allocation8 + $0x1d8] sm:$0xff]  ;;  %8736 = vst [vmem:[#allocation68_spill] sm:$0xff] %v5080_v12 }
  0xfb   : > { %782 = vmatprep.subr.mxu0 %v487_v18  ;;  %1089 = vmatprep.subr.mxu1 %v4953_v20  ;;  %v4980_v18 = vsub.s32 0, %v4959_v26  ;;  %v5068_v20 = vld [vmem:[#allocation8 + $0x200] sm:$0xff]  ;;  %8735 = vst [vmem:[#allocation67_spill] sm:$0xff] %v5074_v16 }
  0xfc   : > { %783 = vmatpush2.msra.mxu0 %v486_v22  ;;  %1090 = vmatpush2.msra.mxu1 %v4956_v24  ;;  %v468_v22 = vld [vmem:[#allocation7 + $0x350] sm:$0xff]  ;;  %v5062_v24 = vld [vmem:[#allocation8 + $0x208] sm:$0xff]  ;;  %8734 = vst [vmem:[#allocation66_spill] sm:$0xff] %v5068_v20 }
  0xfd   : > { %784 = vmatprep.subr.mxu0 %v481_v30  ;;  %1091 = vmatprep.subr.mxu1 %v4962_v34  ;;  %8719 = vst [vmem:[#allocation51_spill] sm:$0xff] %v4980_v18  ;;  %v4983_v30 = vld [vmem:[#allocation8 + $0x330] sm:$0xff]  ;;  %v4990_v34 = vrot.slane %v992_v14, %v4974_v62  ;;  %v4996_v26 = vrot.slane %v992_v14, %v4980_v18  ;;  %v5020_v14 = vld [vmem:[#allocation8 + $0x2c0] sm:$0xff]  ;;  %v5024_v18 = vld [vmem:[#allocation8 + $0x288] sm:$0xff] }
  0xfe   : > { %785 = vmatpush2.msra.mxu0 %v480_v38  ;;  %1092 = vmatpush2.msra.mxu1 %v4965_v42  ;;  %8720 = vst [vmem:[#allocation52_spill] sm:$0xff] %v4983_v30  ;;  %v4986_v38 = vld [vmem:[#allocation8 + $0x308] sm:$0xff]  ;;  %v462_v42 = vld [vmem:[#allocation7 + $0x320] sm:$0xff]  ;;  %v5008_v62 = vld [vmem:[#allocation8 + $0x2f0] sm:$0xff] }
  0xff   : > { %786 = vmatprep.subr.mxu0 %v475_v46  ;;  %1093 = vmatprep.subr.mxu1 %v4968_v50  ;;  %8721 = vst [vmem:[#allocation53_spill] sm:$0xff] %v4986_v38  ;;  %v4993_v46 = vld [vmem:[#allocation8 + $0x300] sm:$0xff]  ;;  %8724 = vst [vmem:[#allocation56_spill] sm:$0xff] %v5008_v62  ;;  %v5056_v50 = vld [vmem:[#allocation8 + $0x230] sm:$0xff] }
 0x100   : > { %787 = vmatpush2.msra.mxu0 %v474_v54  ;;  %1094 = vmatpush2.msra.mxu1 %v4971_v58  ;;  %8722 = vst [vmem:[#allocation54_spill] sm:$0xff] %v4993_v46  ;;  %v5000_v54 = vld [vmem:[#allocation8 + $0x2e8] sm:$0xff]  ;;  %8726 = vst [vmem:[#allocation58_spill] sm:$0xff] %v5020_v14  ;;  %v5050_v58 = vld [vmem:[#allocation8 + $0x238] sm:$0xff] }
 0x101   : > { %788 = vmatprep.subr.mxu0 %v469_v3  ;;  %1095 = vmatprep.subr.mxu1 %v4977_v10  ;;  %v5002_v3 = vld [vmem:[#allocation8 + $0x2f8] sm:$0xff]  ;;  %v5044_v10 = vld [vmem:[#allocation8 + $0x260] sm:$0xff]  ;;  %8731 = vst [vmem:[#allocation63_spill] sm:$0xff] %v5050_v58  ;;  %8732 = vst [vmem:[#allocation64_spill] sm:$0xff] %v5056_v50 }
 0x102   : > { %789 = vmatpush2.msra.mxu0 %v468_v22  ;;  %1096 = vmatpush2.msra.mxu1 %v4983_v30  ;;  %8723 = vst [vmem:[#allocation55_spill] sm:$0xff] %v5002_v3  ;;  %v5006_v22 = vld [vmem:[#allocation8 + $0x2e0] sm:$0xff]  ;;  %v5038_v30 = vld [vmem:[#allocation8 + $0x268] sm:$0xff]  ;;  %8730 = vst [vmem:[#allocation62_spill] sm:$0xff] %v5044_v10 }
 0x103   : > { %790 = vmatprep.subr.mxu0 %v463_v8  ;;  %1097 = vmatprep.subr.mxu1 %v4986_v38  ;;  %v5012_v8 = vld [vmem:[#allocation8 + $0x2b8] sm:$0xff]  ;;  %v5032_v38 = vld [vmem:[#allocation8 + $0x290] sm:$0xff]  ;;  %8729 = vst [vmem:[#allocation61_spill] sm:$0xff] %v5038_v30  ;;  %8733 = vst [vmem:[#allocation65_spill] sm:$0xff] %v5062_v24 }
 0x104   : > { %791 = vmatpush2.msra.mxu0 %v462_v42  ;;  %792 = vmatprep.mubr.f32.mxu0 %v4815_v2  ;;  %v5014_v42 = vld [vmem:[#allocation8 + $0x2c8] sm:$0xff]  ;;  %v5018_v2 = vld [vmem:[#allocation8 + $0x2b0] sm:$0xff]  ;;  %8728 = vst [vmem:[#allocation60_spill] sm:$0xff] %v5032_v38 }
 0x105   : > { %1098 = vmatpush2.msra.mxu1 %v4993_v46  ;;  %1099 = vmatprep.mubr.f32.mxu1 %v4990_v34  ;;  %8725 = vst [vmem:[#allocation57_spill] sm:$0xff] %v5014_v42  ;;  %v5030_v46 = vld [vmem:[#allocation8 + $0x280] sm:$0xff] }
 0x106   : > { %793 = vmatmul.mubr.f32.vlgmr.msra.gmra.mxu0 %v4817_v4  ;;  %1100 = vmatmul.mubr.f32.vlgmr.msra.gmra.mxu1 %v4996_v26  ;;  %v5026_v4 = vld [vmem:[#allocation8 + $0x298] sm:$0xff] }
 0x107   : > { %1106 = vmatprep.subr.mxu0 %v5000_v54  ;;  %1177 = vmatprep.subr.mxu1 %v5002_v3  ;;  %8727 = vst [vmem:[#allocation59_spill] sm:$0xff] %v5026_v4  ;;  %v5036_v3 = vld [vmem:[#allocation8 + $0x258] sm:$0xff] }
 0x108   : > { %1107 = vmatpush1.msra.mxu0 %v5006_v22  ;;  %1178 = vmatpush1.msra.mxu1 %v5008_v62  ;;  %v5042_v62 = vld [vmem:[#allocation8 + $0x250] sm:$0xff] }
 0x109   : > { %1108 = vmatprep.subr.mxu0 %v5012_v8  ;;  %1179 = vmatprep.subr.mxu1 %v5014_v42  ;;  %v5048_v42 = vld [vmem:[#allocation8 + $0x228] sm:$0xff] }
 0x10a   : > { %1109 = vmatpush1.msra.mxu0 %v5018_v2  ;;  %1180 = vmatpush1.msra.mxu1 %v5020_v14  ;;  %v5054_v14 = vld [vmem:[#allocation8 + $0x220] sm:$0xff] }
 0x10b   : > { %1110 = vmatprep.subr.mxu0 %v5024_v18  ;;  %1181 = vmatprep.subr.mxu1 %v5026_v4  ;;  %v5060_v4 = vld [vmem:[#allocation8 + $0x1f8] sm:$0xff] }
 0x10c   : > { %1111 = vmatpush1.msra.mxu0 %v5030_v46  ;;  %1182 = vmatpush1.msra.mxu1 %v5032_v38  ;;  %v5066_v38 = vld [vmem:[#allocation8 + $0x1f0] sm:$0xff] }
 0x10d   : > { %1112 = vmatprep.subr.mxu0 %v5036_v3  ;;  %1183 = vmatprep.subr.mxu1 %v5038_v30  ;;  %v5072_v30 = vld [vmem:[#allocation8 + $0x1c8] sm:$0xff] }
 0x10e   : > { %1113 = vmatpush1.msra.mxu0 %v5042_v62  ;;  %1184 = vmatpush1.msra.mxu1 %v5044_v10  ;;  %v5078_v10 = vld [vmem:[#allocation8 + $0x1c0] sm:$0xff] }
 0x10f   : > { %1114 = vmatprep.subr.mxu0 %v5048_v42  ;;  %1185 = vmatprep.subr.mxu1 %v5050_v58  ;;  %v5084_v58 = vld [vmem:[#allocation8 + $0x198] sm:$0xff] }
 0x110   : > { %1115 = vmatpush1.msra.mxu0 %v5054_v14  ;;  %1186 = vmatpush1.msra.mxu1 %v5056_v50  ;;  %v5090_v50 = vld [vmem:[#allocation8 + $0x190] sm:$0xff] }
 0x111   : > { %1116 = vmatprep.subr.mxu0 %v5060_v4  ;;  %1187 = vmatprep.subr.mxu1 %v5062_v24  ;;  %v5096_v24 = vld [vmem:[#allocation8 + $0x168] sm:$0xff] }
 0x112   : > { %1117 = vmatpush1.msra.mxu0 %v5066_v38  ;;  %1188 = vmatpush1.msra.mxu1 %v5068_v20  ;;  %v5102_v20 = vld [vmem:[#allocation8 + $0x160] sm:$0xff] }
 0x113   : > { %1118 = vmatprep.subr.mxu0 %v5072_v30  ;;  %1189 = vmatprep.subr.mxu1 %v5074_v16  ;;  %v5108_v16 = vld [vmem:[#allocation8 + $0x138] sm:$0xff] }
 0x114   : > { %1119 = vmatpush1.msra.mxu0 %v5078_v10  ;;  %1190 = vmatpush1.msra.mxu1 %v5080_v12  ;;  %v5114_v12 = vld [vmem:[#allocation8 + $0x130] sm:$0xff] }
 0x115   : > { %1120 = vmatprep.subr.mxu0 %v5084_v58  ;;  %1191 = vmatprep.subr.mxu1 %v5086_v6  ;;  %v5120_v6 = vld [vmem:[#allocation8 + $0x108] sm:$0xff] }
 0x116   : > { %1121 = vmatpush1.msra.mxu0 %v5090_v50  ;;  %1192 = vmatpush1.msra.mxu1 %v5092_v0  ;;  %v5126_v0 = vld [vmem:[#allocation8 + $0x100] sm:$0xff] }
 0x117   : > { %1122 = vmatprep.subr.mxu0 %v5096_v24  ;;  %1193 = vmatprep.subr.mxu1 %v5098_v60  ;;  %v5132_v60 = vld [vmem:[#allocation8 + $0xd8] sm:$0xff] }
 0x118   : > { %1123 = vmatpush1.msra.mxu0 %v5102_v20  ;;  %1194 = vmatpush1.msra.mxu1 %v5104_v56  ;;  %v5138_v56 = vld [vmem:[#allocation8 + $0xd0] sm:$0xff] }
 0x119   : > { %1124 = vmatprep.subr.mxu0 %v5108_v16  ;;  %1195 = vmatprep.subr.mxu1 %v5110_v52  ;;  %v5144_v52 = vld [vmem:[#allocation8 + $0xa8] sm:$0xff] }
 0x11a   : > { %1125 = vmatpush1.msra.mxu0 %v5114_v12  ;;  %1196 = vmatpush1.msra.mxu1 %v5116_v48  ;;  %v5150_v48 = vld [vmem:[#allocation8 + $0xa0] sm:$0xff] }
 0x11b   : > { %1126 = vmatprep.subr.mxu0 %v5120_v6  ;;  %1197 = vmatprep.subr.mxu1 %v5122_v44  ;;  %v5156_v44 = vld [vmem:[#allocation8 + $0x78] sm:$0xff] }
 0x11c   : > { %1127 = vmatpush1.msra.mxu0 %v5126_v0  ;;  %1198 = vmatpush1.msra.mxu1 %v5128_v40  ;;  %v5162_v40 = vld [vmem:[#allocation8 + $0x70] sm:$0xff] }
 0x11d   : > { %1128 = vmatprep.subr.mxu0 %v5132_v60  ;;  %1199 = vmatprep.subr.mxu1 %v5134_v36  ;;  %v5168_v36 = vld [vmem:[#allocation8 + $0x48] sm:$0xff] }
 0x11e   : > { %1129 = vmatpush1.msra.mxu0 %v5138_v56  ;;  %1200 = vmatpush1.msra.mxu1 %v5140_v32  ;;  %v5174_v32 = vld [vmem:[#allocation8 + $0x40] sm:$0xff] }
 0x11f   : > { %1130 = vmatprep.subr.mxu0 %v5144_v52  ;;  %1201 = vmatprep.subr.mxu1 %v5146_v28  ;;  %v5180_v28 = vld [vmem:[#allocation8 + $0x18] sm:$0xff] }
 0x120   : > { %1131 = vmatpush1.msra.mxu0 %v5150_v48  ;;  %1202 = vmatpush1.msra.mxu1 %v5152_v25  ;;  %8753 = vst [vmem:[#allocation85_spill] sm:$0xff] %v5180_v28  ;;  %v5186_v25 = vld [vmem:[#allocation8 + $0x10] sm:$0xff] }
 0x121   : > { %1132 = vmatprep.subr.mxu0 %v5156_v44  ;;  %1203 = vmatprep.subr.mxu1 %v5158_v23  ;;  %8755 = vst [vmem:[#allocation87_spill] sm:$0xff] %v5186_v25  ;;  %v5192_v23 = vld [vmem:[#allocation8 + $0x5e8] sm:$0xff] }
 0x122   : > { %1133 = vmatpush1.msra.mxu0 %v5162_v40  ;;  %1204 = vmatpush1.msra.mxu1 %v5164_v21  ;;  %8757 = vst [vmem:[#allocation89_spill] sm:$0xff] %v5192_v23  ;;  %v5198_v21 = vld [vmem:[#allocation8 + $0x5e0] sm:$0xff] }
 0x123   : > { %1134 = vmatprep.subr.mxu0 %v5168_v36  ;;  %1205 = vmatprep.subr.mxu1 %v5170_v19  ;;  %8759 = vst [vmem:[#allocation91_spill] sm:$0xff] %v5198_v21  ;;  %v5204_v19 = vld [vmem:[#allocation8 + $0x5b8] sm:$0xff] }
 0x124   : > { %1135 = vmatpush1.msra.mxu0 %v5174_v32  ;;  %1206 = vmatpush1.msra.mxu1 %v5176_v17  ;;  %8761 = vst [vmem:[#allocation93_spill] sm:$0xff] %v5204_v19  ;;  %v5210_v17 = vld [vmem:[#allocation8 + $0x5b0] sm:$0xff] }
 0x125   : > { %1136 = vmatprep.subr.mxu0 %v5180_v28  ;;  %1207 = vmatprep.subr.mxu1 %v5182_v15  ;;  %8763 = vst [vmem:[#allocation95_spill] sm:$0xff] %v5210_v17  ;;  %v5212_v28 = vld [vmem:[#allocation8 + $0x5c0] sm:$0xff]  ;;  %v5216_v15 = vld [vmem:[#allocation8 + $0x588] sm:$0xff] }
 0x126   : > { %1137 = vmatpush1.msra.mxu0 %v5186_v25  ;;  %1208 = vmatpush1.msra.mxu1 %v5188_v13  ;;  %8764 = vst [vmem:[#allocation96_spill] sm:$0xff] %v5212_v28  ;;  %8765 = vst [vmem:[#allocation97_spill] sm:$0xff] %v5216_v15  ;;  %v5218_v25 = vld [vmem:[#allocation8 + $0x598] sm:$0xff]  ;;  %v5222_v13 = vld [vmem:[#allocation8 + $0x580] sm:$0xff] }
 0x127   : > { %1138 = vmatprep.subr.mxu0 %v5192_v23  ;;  %1209 = vmatprep.subr.mxu1 %v5194_v11  ;;  %8766 = vst [vmem:[#allocation98_spill] sm:$0xff] %v5218_v25  ;;  %8767 = vst [vmem:[#allocation99_spill] sm:$0xff] %v5222_v13  ;;  %v5224_v23 = vld [vmem:[#allocation8 + $0x590] sm:$0xff]  ;;  %v5228_v11 = vld [vmem:[#allocation8 + $0x558] sm:$0xff] }
 0x128   : > { %1139 = vmatpush2.msra.mxu0 %v5198_v21  ;;  %1210 = vmatpush2.msra.mxu1 %v5200_v9  ;;  %8768 = vst [vmem:[#allocation100_spill] sm:$0xff] %v5224_v23  ;;  %8769 = vst [vmem:[#allocation101_spill] sm:$0xff] %v5228_v11  ;;  %v5230_v21 = vld [vmem:[#allocation8 + $0x568] sm:$0xff]  ;;  %v5234_v9 = vld [vmem:[#allocation8 + $0x550] sm:$0xff] }
 0x129   : > { %1140 = vmatprep.subr.mxu0 %v5204_v19  ;;  %1211 = vmatprep.subr.mxu1 %v5206_v7  ;;  %8770 = vst [vmem:[#allocation102_spill] sm:$0xff] %v5230_v21  ;;  %8771 = vst [vmem:[#allocation103_spill] sm:$0xff] %v5234_v9  ;;  %v5236_v19 = vld [vmem:[#allocation8 + $0x560] sm:$0xff]  ;;  %v5240_v7 = vld [vmem:[#allocation8 + $0x528] sm:$0xff] }
 0x12a   : > { %1141 = vmatpush2.msra.mxu0 %v5210_v17  ;;  %1212 = vmatpush2.msra.mxu1 %v5212_v28  ;;  %8772 = vst [vmem:[#allocation104_spill] sm:$0xff] %v5236_v19  ;;  %8773 = vst [vmem:[#allocation105_spill] sm:$0xff] %v5240_v7  ;;  %v5242_v17 = vld [vmem:[#allocation8 + $0x538] sm:$0xff]  ;;  %v5246_v28 = vld [vmem:[#allocation8 + $0x520] sm:$0xff] }
 0x12b   : > { %1142 = vmatprep.subr.mxu0 %v5216_v15  ;;  %1213 = vmatprep.subr.mxu1 %v5218_v25  ;;  %8774 = vst [vmem:[#allocation106_spill] sm:$0xff] %v5242_v17  ;;  %8775 = vst [vmem:[#allocation107_spill] sm:$0xff] %v5246_v28  ;;  %v5248_v15 = vld [vmem:[#allocation8 + $0x530] sm:$0xff]  ;;  %v5252_v25 = vld [vmem:[#allocation8 + $0x4f8] sm:$0xff] }
 0x12c   : > { %1143 = vmatpush2.msra.mxu0 %v5222_v13  ;;  %1214 = vmatpush2.msra.mxu1 %v5224_v23  ;;  %8776 = vst [vmem:[#allocation108_spill] sm:$0xff] %v5248_v15  ;;  %8777 = vst [vmem:[#allocation109_spill] sm:$0xff] %v5252_v25  ;;  %v5254_v13 = vld [vmem:[#allocation8 + $0x508] sm:$0xff]  ;;  %v5258_v23 = vld [vmem:[#allocation8 + $0x4f0] sm:$0xff] }
 0x12d   : > { %1144 = vmatprep.subr.mxu0 %v5228_v11  ;;  %1215 = vmatprep.subr.mxu1 %v5230_v21  ;;  %8778 = vst [vmem:[#allocation110_spill] sm:$0xff] %v5254_v13  ;;  %8779 = vst [vmem:[#allocation111_spill] sm:$0xff] %v5258_v23  ;;  %v5260_v11 = vld [vmem:[#allocation8 + $0x500] sm:$0xff]  ;;  %v5264_v21 = vld [vmem:[#allocation8 + $0x4c8] sm:$0xff] }
 0x12e   : > { %1145 = vmatpush2.msra.mxu0 %v5234_v9  ;;  %1216 = vmatpush2.msra.mxu1 %v5236_v19  ;;  %8780 = vst [vmem:[#allocation112_spill] sm:$0xff] %v5260_v11  ;;  %8781 = vst [vmem:[#allocation113_spill] sm:$0xff] %v5264_v21  ;;  %v5266_v9 = vld [vmem:[#allocation8 + $0x4d8] sm:$0xff]  ;;  %v5270_v19 = vld [vmem:[#allocation8 + $0x4c0] sm:$0xff] }
 0x12f   : > { %1146 = vmatprep.subr.mxu0 %v5240_v7  ;;  %1217 = vmatprep.subr.mxu1 %v5242_v17  ;;  %8782 = vst [vmem:[#allocation114_spill] sm:$0xff] %v5266_v9  ;;  %8783 = vst [vmem:[#allocation115_spill] sm:$0xff] %v5270_v19  ;;  %v5272_v7 = vld [vmem:[#allocation8 + $0x4d0] sm:$0xff]  ;;  %v5276_v17 = vld [vmem:[#allocation8 + $0x498] sm:$0xff] }
 0x130   : > { %1147 = vmatpush2.msra.mxu0 %v5246_v28  ;;  %1218 = vmatpush2.msra.mxu1 %v5248_v15  ;;  %8784 = vst [vmem:[#allocation116_spill] sm:$0xff] %v5272_v7  ;;  %8785 = vst [vmem:[#allocation117_spill] sm:$0xff] %v5276_v17  ;;  %v5278_v28 = vld [vmem:[#allocation8 + $0x4a8] sm:$0xff]  ;;  %v5282_v15 = vld [vmem:[#allocation8 + $0x490] sm:$0xff] }
 0x131   : > { %1148 = vmatprep.subr.mxu0 %v5252_v25  ;;  %1219 = vmatprep.subr.mxu1 %v5254_v13  ;;  %8786 = vst [vmem:[#allocation118_spill] sm:$0xff] %v5278_v28  ;;  %8787 = vst [vmem:[#allocation119_spill] sm:$0xff] %v5282_v15  ;;  %v5284_v25 = vld [vmem:[#allocation8 + $0x4a0] sm:$0xff]  ;;  %v5288_v13 = vld [vmem:[#allocation8 + $0x468] sm:$0xff] }
 0x132   : > { %1149 = vmatpush2.msra.mxu0 %v5258_v23  ;;  %1220 = vmatpush2.msra.mxu1 %v5260_v11  ;;  %8788 = vst [vmem:[#allocation120_spill] sm:$0xff] %v5284_v25  ;;  %8789 = vst [vmem:[#allocation121_spill] sm:$0xff] %v5288_v13  ;;  %v5290_v23 = vld [vmem:[#allocation8 + $0x478] sm:$0xff]  ;;  %v5294_v11 = vld [vmem:[#allocation8 + $0x460] sm:$0xff] }
 0x133   : > { %1150 = vmatprep.subr.mxu0 %v5264_v21  ;;  %1221 = vmatprep.subr.mxu1 %v5266_v9  ;;  %8790 = vst [vmem:[#allocation122_spill] sm:$0xff] %v5290_v23  ;;  %8791 = vst [vmem:[#allocation123_spill] sm:$0xff] %v5294_v11  ;;  %v5296_v21 = vld [vmem:[#allocation8 + $0x470] sm:$0xff]  ;;  %v5300_v9 = vld [vmem:[#allocation8 + $0x438] sm:$0xff] }
 0x134   : > { %1151 = vmatpush2.msra.mxu0 %v5270_v19  ;;  %1222 = vmatpush2.msra.mxu1 %v5272_v7  ;;  %8792 = vst [vmem:[#allocation124_spill] sm:$0xff] %v5296_v21  ;;  %8793 = vst [vmem:[#allocation125_spill] sm:$0xff] %v5300_v9  ;;  %v5302_v19 = vld [vmem:[#allocation8 + $0x448] sm:$0xff]  ;;  %v5306_v7 = vld [vmem:[#allocation8 + $0x430] sm:$0xff] }
 0x135   : > { %1152 = vmatprep.subr.mxu0 %v5276_v17  ;;  %1223 = vmatprep.subr.mxu1 %v5278_v28  ;;  %8794 = vst [vmem:[#allocation126_spill] sm:$0xff] %v5302_v19  ;;  %8795 = vst [vmem:[#allocation127_spill] sm:$0xff] %v5306_v7  ;;  %v5308_v17 = vld [vmem:[#allocation8 + $0x440] sm:$0xff]  ;;  %v5312_v28 = vld [vmem:[#allocation8 + $0x408] sm:$0xff] }
 0x136   : > { %1153 = vmatpush2.msra.mxu0 %v5282_v15  ;;  %1224 = vmatpush2.msra.mxu1 %v5284_v25  ;;  %8796 = vst [vmem:[#allocation128_spill] sm:$0xff] %v5308_v17  ;;  %8797 = vst [vmem:[#allocation129_spill] sm:$0xff] %v5312_v28  ;;  %v5314_v15 = vld [vmem:[#allocation8 + $0x418] sm:$0xff]  ;;  %v5318_v25 = vld [vmem:[#allocation8 + $0x400] sm:$0xff] }
 0x137   : > { %1154 = vmatprep.subr.mxu0 %v5288_v13  ;;  %1225 = vmatprep.subr.mxu1 %v5290_v23  ;;  %8798 = vst [vmem:[#allocation130_spill] sm:$0xff] %v5314_v15  ;;  %8799 = vst [vmem:[#allocation131_spill] sm:$0xff] %v5318_v25  ;;  %v5320_v13 = vld [vmem:[#allocation8 + $0x410] sm:$0xff]  ;;  %v5324_v23 = vld [vmem:[#allocation8 + $0x3d8] sm:$0xff] }
 0x138   : > { %1155 = vmatpush2.msra.mxu0 %v5294_v11  ;;  %1226 = vmatpush2.msra.mxu1 %v5296_v21  ;;  %8800 = vst [vmem:[#allocation132_spill] sm:$0xff] %v5320_v13  ;;  %8801 = vst [vmem:[#allocation133_spill] sm:$0xff] %v5324_v23  ;;  %v5326_v11 = vld [vmem:[#allocation8 + $0x3e8] sm:$0xff]  ;;  %v5330_v21 = vld [vmem:[#allocation8 + $0x3d0] sm:$0xff] }
 0x139   : > { %1156 = vmatprep.subr.mxu0 %v5300_v9  ;;  %1227 = vmatprep.subr.mxu1 %v5302_v19  ;;  %8802 = vst [vmem:[#allocation134_spill] sm:$0xff] %v5326_v11  ;;  %8803 = vst [vmem:[#allocation135_spill] sm:$0xff] %v5330_v21  ;;  %v5332_v9 = vld [vmem:[#allocation8 + $0x3e0] sm:$0xff]  ;;  %v5336_v19 = vld [vmem:[#allocation8 + $0x3a8] sm:$0xff] }
 0x13a   : > { %1157 = vmatpush2.msra.mxu0 %v5306_v7  ;;  %1228 = vmatpush2.msra.mxu1 %v5308_v17  ;;  %8804 = vst [vmem:[#allocation136_spill] sm:$0xff] %v5332_v9  ;;  %8805 = vst [vmem:[#allocation137_spill] sm:$0xff] %v5336_v19  ;;  %v5338_v7 = vld [vmem:[#allocation8 + $0x3b8] sm:$0xff]  ;;  %v5342_v17 = vld [vmem:[#allocation8 + $0x3a0] sm:$0xff] }
 0x13b   : > { %1158 = vmatprep.subr.mxu0 %v5312_v28  ;;  %1229 = vmatprep.subr.mxu1 %v5314_v15  ;;  %8806 = vst [vmem:[#allocation138_spill] sm:$0xff] %v5338_v7  ;;  %8807 = vst [vmem:[#allocation139_spill] sm:$0xff] %v5342_v17  ;;  %v5344_v28 = vld [vmem:[#allocation8 + $0x3b0] sm:$0xff]  ;;  %v5348_v15 = vld [vmem:[#allocation8 + $0x378] sm:$0xff] }
 0x13c   : > { %1159 = vmatpush2.msra.mxu0 %v5318_v25  ;;  %1230 = vmatpush2.msra.mxu1 %v5320_v13  ;;  %8808 = vst [vmem:[#allocation140_spill] sm:$0xff] %v5344_v28  ;;  %v5350_v25 = vld [vmem:[#allocation8 + $0x388] sm:$0xff]  ;;  %v5354_v13 = vld [vmem:[#allocation8 + $0x370] sm:$0xff] }
 0x13d   : > { %1160 = vmatprep.subr.mxu0 %v5324_v23  ;;  %1231 = vmatprep.subr.mxu1 %v5326_v11  ;;  %8809 = vst [vmem:[#allocation141_spill] sm:$0xff] %v5350_v25  ;;  %v5356_v23 = vld [vmem:[#allocation8 + $0x380] sm:$0xff]  ;;  %v5360_v11 = vld [vmem:[#allocation8 + $0x348] sm:$0xff] }
 0x13e   : > { %1161 = vmatpush2.msra.mxu0 %v5330_v21  ;;  %1232 = vmatpush2.msra.mxu1 %v5332_v9  ;;  %8810 = vst [vmem:[#allocation142_spill] sm:$0xff] %v5356_v23  ;;  %v5362_v21 = vld [vmem:[#allocation8 + $0x358] sm:$0xff]  ;;  %v5366_v9 = vld [vmem:[#allocation8 + $0x340] sm:$0xff] }
 0x13f   : > { %1162 = vmatprep.subr.mxu0 %v5336_v19  ;;  %1233 = vmatprep.subr.mxu1 %v5338_v7  ;;  %8811 = vst [vmem:[#allocation143_spill] sm:$0xff] %v5362_v21  ;;  %v5368_v19 = vld [vmem:[#allocation8 + $0x350] sm:$0xff]  ;;  %v5372_v7 = vld [vmem:[#allocation8 + $0x318] sm:$0xff] }
 0x140   : > { %1163 = vmatpush2.msra.mxu0 %v5342_v17  ;;  %1234 = vmatpush2.msra.mxu1 %v5344_v28  ;;  %8812 = vst [vmem:[#allocation144_spill] sm:$0xff] %v5368_v19  ;;  %v5374_v17 = vld [vmem:[#allocation8 + $0x328] sm:$0xff]  ;;  %v5378_v28 = vld [vmem:[#allocation8 + $0x310] sm:$0xff] }
 0x141   : > { %1164 = vmatprep.subr.mxu0 %v5348_v15  ;;  %1235 = vmatprep.subr.mxu1 %v5350_v25  ;;  %8813 = vst [vmem:[#allocation145_spill] sm:$0xff] %v5374_v17  ;;  %8814 = vst [vmem:[#allocation146_spill] sm:$0xff] %v5378_v28  ;;  %v5382_v25 = vld [vmem:[#allocation8 + $0x320] sm:$0xff] }
 0x142   : > { %1165 = vmatpush2.msra.mxu0 %v5354_v13  ;;  %1236 = vmatpush2.msra.mxu1 %v5356_v23  ;;  %8815 = vst [vmem:[#allocation147_spill] sm:$0xff] %v5382_v25  ;;  %v5408_v23 = vld [vmem:[#allocation8 + $0x278] sm:$0xff] }
 0x143   : > { %1166 = vmatprep.subr.mxu0 %v5360_v11  ;;  %1237 = vmatprep.subr.mxu1 %v5362_v21  ;;  %v5392_v21 = vld [vmem:[#allocation8 + $0x2d8] sm:$0xff] }
 0x144   : > { %1167 = vmatpush2.msra.mxu0 %v5366_v9  ;;  %1238 = vmatpush2.msra.mxu1 %v5368_v19  ;;  %8816 = vst [vmem:[#allocation148_spill] sm:$0xff] %v5392_v21  ;;  %v5396_v19 = vld [vmem:[#allocation8 + $0x2d0] sm:$0xff] }
 0x145   : > { %1168 = vmatprep.subr.mxu0 %v5372_v7  ;;  %1239 = vmatprep.subr.mxu1 %v5374_v17  ;;  %v5400_v17 = vld [vmem:[#allocation8 + $0x2a8] sm:$0xff] }
 0x146   : > { %1169 = vmatpush2.msra.mxu0 %v5378_v28  ;;  %1170 = vmatprep.mubr.f32.mxu0 %v4990_v34 }
 0x147   : > { %1240 = vmatpush2.msra.mxu1 %v5382_v25  ;;  %1241 = vmatprep.mubr.f32.mxu1 %v4990_v34  ;;  %v5404_v25 = vld [vmem:[#allocation8 + $0x2a0] sm:$0xff] }
 0x148   : > { %1171 = vmatmul.mubr.f32.vlgmr.msra.gmra.mxu0 %v4996_v26  ;;  %1242 = vmatmul.mubr.f32.vlgmr.msra.gmra.mxu1 %v4996_v26 }
 0x149   : > { %1290 = vmatprep.subr.mxu0 %v5392_v21  ;;  %1361 = vmatprep.subr.mxu1 %v5000_v54  ;;  %v5412_v54 = vld [vmem:[#allocation8 + $0x270] sm:$0xff] }
 0x14a   : > { %1291 = vmatpush1.msra.mxu0 %v5396_v19  ;;  %1362 = vmatpush1.msra.mxu1 %v5006_v22  ;;  %v5416_v22 = vld [vmem:[#allocation8 + $0x248] sm:$0xff] }
 0x14b   : > { %1292 = vmatprep.subr.mxu0 %v5400_v17  ;;  %1363 = vmatprep.subr.mxu1 %v5012_v8  ;;  %v5420_v8 = vld [vmem:[#allocation8 + $0x240] sm:$0xff] }
 0x14c   : > { %1293 = vmatpush1.msra.mxu0 %v5404_v25  ;;  %1364 = vmatpush1.msra.mxu1 %v5018_v2  ;;  %v5424_v2 = vld [vmem:[#allocation8 + $0x218] sm:$0xff] }
 0x14d   : > { %1294 = vmatprep.subr.mxu0 %v5408_v23  ;;  %1365 = vmatprep.subr.mxu1 %v5024_v18  ;;  %v5428_v18 = vld [vmem:[#allocation8 + $0x210] sm:$0xff] }
 0x14e   : > { %1295 = vmatpush1.msra.mxu0 %v5412_v54  ;;  %1366 = vmatpush1.msra.mxu1 %v5030_v46  ;;  %v8858_v46 = vld [vmem:[#allocation39_spill] sm:$0xff] }
 0x14f   : > { %1296 = vmatprep.subr.mxu0 %v5416_v22  ;;  %1367 = vmatprep.subr.mxu1 %v5036_v3  ;;  %v8859_v3 = vld [vmem:[#allocation127_spill] sm:$0xff] }
 0x150   : > { %1297 = vmatpush1.msra.mxu0 %v5420_v8  ;;  %1368 = vmatpush1.msra.mxu1 %v5042_v62  ;;  %v8854_v62 = vld [vmem:[#allocation37_spill] sm:$0xff] }
 0x151   : > { %1298 = vmatprep.subr.mxu0 %v5424_v2  ;;  %1369 = vmatprep.subr.mxu1 %v5048_v42  ;;  %v8860_v42 = vld [vmem:[#allocation40_spill] sm:$0xff] }
 0x152   : > { %1299 = vmatpush1.msra.mxu0 %v5428_v18  ;;  %1370 = vmatpush1.msra.mxu1 %v5054_v14  ;;  %v8861_v14 = vld [vmem:[#allocation129_spill] sm:$0xff] }
 0x153   : > { %1300 = vmatprep.subr.mxu0 %v4823_v27  ;;  %1371 = vmatprep.subr.mxu1 %v5060_v4  ;;  %v8817_v27 = vld [vmem:[#allocation85_spill] sm:$0xff] }
 0x154   : > { %1301 = vmatpush1.msra.mxu0 %v4825_v29  ;;  %1372 = vmatpush1.msra.mxu1 %v5066_v38  ;;  %v8818_v29 = vld [vmem:[#allocation19_spill] sm:$0xff]  ;;  %v8857_v38 = vld [vmem:[#allocation125_spill] sm:$0xff] }
 0x155   : > { %1302 = vmatprep.subr.mxu0 %v4827_v31  ;;  %1373 = vmatprep.subr.mxu1 %v5072_v30  ;;  %v8819_v31 = vld [vmem:[#allocation87_spill] sm:$0xff]  ;;  %v8856_v30 = vld [vmem:[#allocation38_spill] sm:$0xff]  ;;  %v8862_v4 = vld [vmem:[#allocation41_spill] sm:$0xff] }
 0x156   : > { %1303 = vmatpush1.msra.mxu0 %v4830_v33  ;;  %1374 = vmatpush1.msra.mxu1 %v5078_v10  ;;  %v8820_v33 = vld [vmem:[#allocation20_spill] sm:$0xff]  ;;  %v8855_v10 = vld [vmem:[#allocation123_spill] sm:$0xff] }
 0x157   : > { %1304 = vmatprep.subr.mxu0 %v4833_v35  ;;  %1375 = vmatprep.subr.mxu1 %v5084_v58  ;;  %v8821_v35 = vld [vmem:[#allocation89_spill] sm:$0xff] }
 0x158   : > { %1305 = vmatpush1.msra.mxu0 %v4836_v37  ;;  %1376 = vmatpush1.msra.mxu1 %v5090_v50  ;;  %v8822_v37 = vld [vmem:[#allocation21_spill] sm:$0xff]  ;;  %v8852_v50 = vld [vmem:[#allocation36_spill] sm:$0xff] }
 0x159   : > { %1306 = vmatprep.subr.mxu0 %v4839_v39  ;;  %1377 = vmatprep.subr.mxu1 %v5096_v24  ;;  %v8823_v39 = vld [vmem:[#allocation91_spill] sm:$0xff]  ;;  %v8853_v58 = vld [vmem:[#allocation121_spill] sm:$0xff] }
 0x15a   : > { %1307 = vmatpush1.msra.mxu0 %v4842_v41  ;;  %1378 = vmatpush1.msra.mxu1 %v5102_v20  ;;  %v8824_v41 = vld [vmem:[#allocation22_spill] sm:$0xff]  ;;  %v8850_v20 = vld [vmem:[#allocation35_spill] sm:$0xff] }
 0x15b   : > { %1308 = vmatprep.subr.mxu0 %v4845_v43  ;;  %1379 = vmatprep.subr.mxu1 %v5108_v16  ;;  %v8825_v43 = vld [vmem:[#allocation93_spill] sm:$0xff]  ;;  %v8851_v24 = vld [vmem:[#allocation119_spill] sm:$0xff] }
 0x15c   : > { %1309 = vmatpush1.msra.mxu0 %v4848_v45  ;;  %1380 = vmatpush1.msra.mxu1 %v5114_v12  ;;  %v8826_v45 = vld [vmem:[#allocation23_spill] sm:$0xff]  ;;  %v8848_v12 = vld [vmem:[#allocation34_spill] sm:$0xff]  ;;  %v8849_v16 = vld [vmem:[#allocation117_spill] sm:$0xff] }
 0x15d   : > { %1310 = vmatprep.subr.mxu0 %v4851_v47  ;;  %1381 = vmatprep.subr.mxu1 %v5120_v6  ;;  %v8827_v47 = vld [vmem:[#allocation95_spill] sm:$0xff] }
 0x15e   : > { %1311 = vmatpush1.msra.mxu0 %v4854_v49  ;;  %1382 = vmatpush1.msra.mxu1 %v5126_v0  ;;  %v8828_v49 = vld [vmem:[#allocation24_spill] sm:$0xff]  ;;  %v8846_v0 = vld [vmem:[#allocation33_spill] sm:$0xff]  ;;  %v8847_v6 = vld [vmem:[#allocation115_spill] sm:$0xff] }
 0x15f   : > { %1312 = vmatprep.subr.mxu0 %v4857_v51  ;;  %1383 = vmatprep.subr.mxu1 %v5132_v60  ;;  %v8829_v51 = vld [vmem:[#allocation97_spill] sm:$0xff] }
 0x160   : > { %1313 = vmatpush1.msra.mxu0 %v4860_v53  ;;  %1384 = vmatpush1.msra.mxu1 %v5138_v56  ;;  %v8830_v53 = vld [vmem:[#allocation25_spill] sm:$0xff]  ;;  %v8844_v56 = vld [vmem:[#allocation32_spill] sm:$0xff] }
 0x161   : > { %1314 = vmatprep.subr.mxu0 %v4863_v55  ;;  %1385 = vmatprep.subr.mxu1 %v5144_v52  ;;  %v8831_v55 = vld [vmem:[#allocation99_spill] sm:$0xff]  ;;  %v8845_v60 = vld [vmem:[#allocation113_spill] sm:$0xff] }
 0x162   : > { %1315 = vmatpush1.msra.mxu0 %v4866_v57  ;;  %1386 = vmatpush1.msra.mxu1 %v5150_v48  ;;  %v8832_v57 = vld [vmem:[#allocation26_spill] sm:$0xff]  ;;  %v8842_v48 = vld [vmem:[#allocation31_spill] sm:$0xff] }
 0x163   : > { %1316 = vmatprep.subr.mxu0 %v4869_v59  ;;  %1387 = vmatprep.subr.mxu1 %v5156_v44  ;;  %v8833_v59 = vld [vmem:[#allocation101_spill] sm:$0xff]  ;;  %v8843_v52 = vld [vmem:[#allocation111_spill] sm:$0xff] }
 0x164   : > { %1317 = vmatpush1.msra.mxu0 %v4872_v61  ;;  %1388 = vmatpush1.msra.mxu1 %v5162_v40  ;;  %v8834_v61 = vld [vmem:[#allocation27_spill] sm:$0xff]  ;;  %v8840_v40 = vld [vmem:[#allocation30_spill] sm:$0xff]  ;;  %v8841_v44 = vld [vmem:[#allocation109_spill] sm:$0xff] }
 0x165   : > { %1318 = vmatprep.subr.mxu0 %v4875_v63  ;;  %1389 = vmatprep.subr.mxu1 %v5168_v36  ;;  %v8835_v63 = vld [vmem:[#allocation103_spill] sm:$0xff] }
 0x166   : > { %1319 = vmatpush1.msra.mxu0 %v4878_v1  ;;  %1390 = vmatpush1.msra.mxu1 %v5174_v32  ;;  %v8836_v1 = vld [vmem:[#allocation28_spill] sm:$0xff]  ;;  %v8838_v32 = vld [vmem:[#allocation29_spill] sm:$0xff]  ;;  %v8839_v36 = vld [vmem:[#allocation107_spill] sm:$0xff] }
 0x167   : > { %1320 = vmatprep.subr.mxu0 %v4881_v5  ;;  %1391 = vmatprep.subr.mxu1 %v8817_v27  ;;  %v8837_v5 = vld [vmem:[#allocation105_spill] sm:$0xff]  ;;  %v8863_v27 = vld [vmem:[#allocation131_spill] sm:$0xff] }
 0x168   : > { %1321 = vmatpush1.msra.mxu0 %v8818_v29  ;;  %1392 = vmatpush1.msra.mxu1 %v8819_v31  ;;  %v8864_v29 = vld [vmem:[#allocation42_spill] sm:$0xff]  ;;  %v8865_v31 = vld [vmem:[#allocation133_spill] sm:$0xff] }
 0x169   : > { %1322 = vmatprep.subr.mxu0 %v8820_v33  ;;  %1393 = vmatprep.subr.mxu1 %v8821_v35  ;;  %v8866_v33 = vld [vmem:[#allocation43_spill] sm:$0xff] }
 0x16a   : > { %1323 = vmatpush2.msra.mxu0 %v8822_v37  ;;  %1394 = vmatpush2.msra.mxu1 %v8823_v39  ;;  %v8867_v35 = vld [vmem:[#allocation135_spill] sm:$0xff]  ;;  %v8868_v37 = vld [vmem:[#allocation45_spill] sm:$0xff] }
 0x16b   : > { %1324 = vmatprep.subr.mxu0 %v8824_v41  ;;  %1395 = vmatprep.subr.mxu1 %v8825_v43  ;;  %v8869_v39 = vld [vmem:[#allocation137_spill] sm:$0xff]  ;;  %v8870_v41 = vld [vmem:[#allocation46_spill] sm:$0xff] }
 0x16c   : > { %1325 = vmatpush2.msra.mxu0 %v8826_v45  ;;  %1396 = vmatpush2.msra.mxu1 %v8827_v47  ;;  %v8871_v45 = vld [vmem:[#allocation139_spill] sm:$0xff] }
 0x16d   : > { %1326 = vmatprep.subr.mxu0 %v8828_v49  ;;  %1397 = vmatprep.subr.mxu1 %v8829_v51  ;;  %v8872_v49 = vld [vmem:[#allocation47_spill] sm:$0xff] }
 0x16e   : > { %1327 = vmatpush2.msra.mxu0 %v8830_v53  ;;  %1398 = vmatpush2.msra.mxu1 %v8831_v55  ;;  %v8873_v53 = vld [vmem:[#allocation48_spill] sm:$0xff] }
 0x16f   : > { %1328 = vmatprep.subr.mxu0 %v8832_v57  ;;  %1399 = vmatprep.subr.mxu1 %v8833_v59  ;;  %v8874_v57 = vld [vmem:[#allocation50_spill] sm:$0xff] }
 0x170   : > { %1329 = vmatpush2.msra.mxu0 %v8834_v61  ;;  %1400 = vmatpush2.msra.mxu1 %v8835_v63  ;;  %v8875_v61 = vld [vmem:[#allocation52_spill] sm:$0xff] }
 0x171   : > { %1330 = vmatprep.subr.mxu0 %v8836_v1  ;;  %1401 = vmatprep.subr.mxu1 %v8837_v5  ;;  %v8876_v1 = vld [vmem:[#allocation53_spill] sm:$0xff] }
 0x172   : > { %1331 = vmatpush2.msra.mxu0 %v8838_v32  ;;  %1402 = vmatpush2.msra.mxu1 %v8839_v36  ;;  %v8877_v32 = vld [vmem:[#allocation54_spill] sm:$0xff] }
 0x173   : > { %1332 = vmatprep.subr.mxu0 %v8840_v40  ;;  %1403 = vmatprep.subr.mxu1 %v8841_v44  ;;  %v8878_v40 = vld [vmem:[#allocation55_spill] sm:$0xff] }
 0x174   : > { %1333 = vmatpush2.msra.mxu0 %v8842_v48  ;;  %1404 = vmatpush2.msra.mxu1 %v8843_v52 }
 0x175   : > { %1334 = vmatprep.subr.mxu0 %v8844_v56  ;;  %1405 = vmatprep.subr.mxu1 %v8845_v60 }
 0x176   : > { %1335 = vmatpush2.msra.mxu0 %v8846_v0  ;;  %1406 = vmatpush2.msra.mxu1 %v8847_v6  ;;  %v991_v0 = vld [vmem:[#allocation10] sm:$0x3f] }
 0x177   : > { %1336 = vmatprep.subr.mxu0 %v8848_v12  ;;  %1407 = vmatprep.subr.mxu1 %v8849_v16 }
 0x178   : > { %1337 = vmatpush2.msra.mxu0 %v8850_v20  ;;  %1408 = vmatpush2.msra.mxu1 %v8851_v24  ;;  %v554_v20 = vld [vmem:[%s8132_s4] sm:$0x3f] }
 0x179   : > { %1338 = vmatprep.subr.mxu0 %v8852_v50  ;;  %1409 = vmatprep.subr.mxu1 %v8853_v58 }
 0x17a   : > { %1339 = vmatpush2.msra.mxu0 %v8854_v62  ;;  %1410 = vmatpush2.msra.mxu1 %v8855_v10  ;;  %v8879_v62 = vld [vmem:[#allocation51_spill] sm:$0xff] }
 0x17b   : > { %1340 = vmatprep.subr.mxu0 %v8856_v30  ;;  %1411 = vmatprep.subr.mxu1 %v8857_v38  ;;  %v5546_v30 = vrot.slane %v991_v0, %v8879_v62 }
 0x17c   : > { %1341 = vmatpush2.msra.mxu0 %v8858_v46  ;;  %1412 = vmatpush2.msra.mxu1 %v8859_v3  ;;  %v8881_v46 = vld [vmem:[#allocation49_spill] sm:$0xff] }
 0x17d   : > { %1342 = vmatprep.subr.mxu0 %v8860_v42  ;;  %1413 = vmatprep.subr.mxu1 %v8861_v14  ;;  %8880 = vst [vmem:[#allocation85_spill] sm:$0xff] %v5546_v30  ;;  %v5549_v42 = vrot.slane %v991_v0, %v8881_v46 }
 0x17e   : > { %1343 = vmatpush2.msra.mxu0 %v8862_v4  ;;  %1414 = vmatpush2.msra.mxu1 %v8863_v27  ;;  %v559_v4 = vrot.slane %v554_v20, %v8879_v62  ;;  %v8885_v62 = vld [vmem:[#allocation44_spill] sm:$0xff] }
 0x17f   : > { %1344 = vmatprep.subr.mxu0 %v8864_v29  ;;  %1415 = vmatprep.subr.mxu1 %v8865_v31  ;;  %8882 = vst [vmem:[#allocation19_spill] sm:$0xff] %v5549_v42 }
 0x180   : > { %1345 = vmatpush2.msra.mxu0 %v8866_v33  ;;  %1416 = vmatpush2.msra.mxu1 %v8867_v35  ;;  %v563_v33 = vrot.slane %v554_v20, %v8881_v46 }
 0x181   : > { %1346 = vmatprep.subr.mxu0 %v8868_v37  ;;  %1417 = vmatprep.subr.mxu1 %v8869_v39 }
 0x182   : > { %1347 = vmatpush2.msra.mxu0 %v8870_v41  ;;  %1418 = vmatpush2.msra.mxu1 %v8871_v45 }
 0x183   : > { %1348 = vmatprep.subr.mxu0 %v8872_v49  ;;  %1419 = vmatprep.subr.mxu1 %v5348_v15  ;;  %v652_v50 = vpop.f32.mrf.mxu0 }
 0x184   : > { %1349 = vmatpush2.msra.mxu0 %v8873_v53  ;;  %1420 = vmatpush2.msra.mxu1 %v5354_v13  ;;  %v5555_v53 = vadd.f32 %v652_v50, %v559_v4 }
 0x185   : > { %1350 = vmatprep.subr.mxu0 %v8874_v57  ;;  %1421 = vmatprep.subr.mxu1 %v5360_v11  ;;  %v723_v48 = vpop.f32.mrf.mxu1  ;;  %v654_v37 = vpop.f32.mrf.mxu0 }
 0x186   : > { %1351 = vmatpush2.msra.mxu0 %v8875_v61  ;;  %1422 = vmatpush2.msra.mxu1 %v5366_v9  ;;  %8883 = vst [vmem:[#allocation87_spill] sm:$0xff] %v5555_v53  ;;  %v5557_v57 = vadd.f32 %v654_v37, %v563_v33 }
 0x187   : > { %1352 = vmatprep.subr.mxu0 %v8876_v1  ;;  %1423 = vmatprep.subr.mxu1 %v5372_v7  ;;  %v725_v56 = vpop.f32.mrf.mxu1 }
 0x188   : > { %1353 = vmatpush2.msra.mxu0 %v8877_v32  ;;  %1424 = vmatpush2.msra.mxu1 %v5378_v28  ;;  %8884 = vst [vmem:[#allocation20_spill] sm:$0xff] %v5557_v57  ;;  %v570_v28 = vsub.s32 3, %v8885_v62 }
 0x189   : > { %1432 = vmatprep.subr.mxu0 %v8878_v40  ;;  %1575 = vmatprep.subr.mxu1 %v5392_v21  ;;  %v566_v21 = vsub.s32 2, %v8885_v62 }
 0x18a   : > { %v571_v33 = vrot.slane %v554_v20, %v570_v28  ;;  %v5565_v37 = vrot.slane %v991_v0, %v570_v28 }
 0x18c   : > { %8887 = vst [vmem:[#allocation21_spill] sm:$0xff] %v5565_v37 }
 0x1c6   : > { %v1101_v12 = vpop.f32.mrf.mxu1  ;;  %v794_v46 = vpop.f32.mrf.mxu0 }
 0x1c7   : > { %v1102_v41 = vadd.f32 %v1101_v12, %v5546_v30  ;;  %v567_v30 = vrot.slane %v554_v20, %v566_v21 }
 0x1c8   : > { %v1103_v29 = vpop.f32.mrf.mxu1  ;;  %v796_v4 = vpop.f32.mrf.mxu0 }
 0x1c9   : > { %v1104_v49 = vadd.f32 %v1103_v29, %v5549_v42  ;;  %v1248_v61 = vadd.f32 %v1102_v41, %v5555_v53  ;;  %v5563_v29 = vrot.slane %v991_v0, %v566_v21 }
 0x1cb   : > { %v1249_v1 = vadd.f32 %v1104_v49, %v5557_v57  ;;  %v3478_v32 = vmul.f32 -1.442695, %v1248_v61  ;;  %8886 = vst [vmem:[#allocation89_spill] sm:$0xff] %v5563_v29  ;;  %v5567_v61 = vadd.f32 %v723_v48, %v567_v30  ;;  %v5570_v57 = vadd.f32 %v725_v56, %v571_v33 }
 0x1cc   : > { %v574_v48 = vsub.s32 4, %v8885_v62 }
 0x1cd   : > { %v3479_v40 = vmul.f32 -1.442695, %v1249_v1  ;;  %3616 = vpow2.f32 %v3478_v32  ;;  %8888 = vst [vmem:[#allocation91_spill] sm:$0xff] %v5567_v61  ;;  %8889 = vst [vmem:[#allocation22_spill] sm:$0xff] %v5570_v57 }
 0x1cf   : > { %3618 = vpow2.f32 %v3479_v40 }
 0x1da   : > { %v3617_v12 = vpop.eup %3616 }
 0x1db   : > { %v1264_v41 = vadd.f32 1.0, %v3617_v12 }
 0x1dc   : > { %v3619_v50 = vpop.eup %3618 }
 0x1dd   : > { %v1265_v1 = vadd.f32 1.0, %v3619_v50  ;;  %3620 = vrcp.f32 %v1264_v41  ;;  %v578_v50 = vsub.s32 5, %v8885_v62 }
 0x1df   : > { %3622 = vrcp.f32 %v1265_v1  ;;  %v5579_v56 = vrot.slane %v991_v0, %v578_v50 }
 0x1ea   : > { %v3621_v1 = vpop.eup %3620 }
 0x208   : > { %v1172_v49 = vpop.f32.mrf.mxu0  ;;  %v1243_v30 = vpop.f32.mrf.mxu1 }
 0x209   : > { %v1173_v32 = vadd.f32 %v1172_v49, %v5563_v29  ;;  %v5577_v49 = vrot.slane %v991_v0, %v574_v48 }
 0x20a   : > { %v1174_v40 = vpop.f32.mrf.mxu0  ;;  %v1245_v33 = vpop.f32.mrf.mxu1 }
 0x20b   : > { %v1250_v53 = vadd.f32 %v1173_v32, %v5567_v61  ;;  %v1175_v21 = vadd.f32 %v1174_v40, %v5565_v37  ;;  %v1244_v32 = vadd.f32 %v1243_v30, %v5577_v49  ;;  %v1246_v41 = vadd.f32 %v1245_v33, %v5579_v56 }
 0x20c   : > { %v579_v40 = vrot.slane %v554_v20, %v578_v50 }
 0x20d   : > { %v3480_v42 = vmul.f32 -1.442695, %v1250_v53  ;;  %v1251_v28 = vadd.f32 %v1175_v21, %v5570_v57  ;;  %v575_v53 = vrot.slane %v554_v20, %v574_v48  ;;  %v1276_v21 = vmul.f32 %v3621_v1, %v1244_v32 }
 0x20e   : > { %v5585_v62 = vadd.f32 %v796_v4, %v579_v40  ;;  %v8891_v40 = vld [vmem:[#allocation57_spill] sm:$0xff] }
 0x20f   : > { %3624 = vpow2.f32 %v3480_v42  ;;  %v3481_v12 = vmul.f32 -1.442695, %v1251_v28  ;;  %v3623_v42 = vpop.eup %3622  ;;  %v5583_v61 = vadd.f32 %v794_v46, %v575_v53 }
 0x210   : > { %v1277_v28 = vmul.f32 %v3623_v42, %v1246_v41  ;;  %v8894_v42 = vld [vmem:[#allocation60_spill] sm:$0xff] }
 0x211   : > { %3626 = vpow2.f32 %v3481_v12  ;;  %v1278_v0 = vadd.f32 %v1276_v21, %v5583_v61  ;;  %v8895_v21 = vld [vmem:[#allocation61_spill] sm:$0xff] }
 0x212   : > { %v1279_v30 = vadd.f32 %v1277_v28, %v5585_v62  ;;  %v8896_v28 = vld [vmem:[#allocation62_spill] sm:$0xff] }
 0x21c   : > { %v3625_v57 = vpop.eup %3624 }
 0x21d   : > { %v1266_v12 = vadd.f32 1.0, %v3625_v57 }
 0x21e   : > { %v3627_v37 = vpop.eup %3626 }
 0x21f   : > { %3628 = vrcp.f32 %v1266_v12  ;;  %v1267_v29 = vadd.f32 1.0, %v3627_v37  ;;  %v8897_v12 = vld [vmem:[#allocation63_spill] sm:$0xff] }
 0x221   : > { %3630 = vrcp.f32 %v1267_v29  ;;  %v8890_v29 = vld [vmem:[#allocation56_spill] sm:$0xff] }
 0x222   : > { %3632 = vtanh.f32 %v1278_v0  ;;  %v8898_v0 = vld [vmem:[#allocation64_spill] sm:$0xff] }
 0x223   : > { %3634 = vtanh.f32 %v1279_v30  ;;  %v8899_v30 = vld [vmem:[#allocation65_spill] sm:$0xff] }
 0x22c   : > { %v3629_v20 = vpop.eup %3628 }
 0x22d   : > { %v1282_v48 = vsub.f32 1.0, %v3629_v20  ;;  %v1286_v53 = vmul.f32 %v3629_v20, %v4996_v26  ;;  %v8892_v26 = vld [vmem:[#allocation58_spill] sm:$0xff] }
 0x22e   : > { %v3631_v50 = vpop.eup %3630  ;;  %v8900_v20 = vld [vmem:[#allocation66_spill] sm:$0xff] }
 0x22f   : > { %v3633_v33 = vpop.eup %3632  ;;  %v1283_v32 = vsub.f32 1.0, %v3631_v50  ;;  %v1287_v57 = vmul.f32 %v3631_v50, %v4990_v34  ;;  %v8893_v34 = vld [vmem:[#allocation59_spill] sm:$0xff] }
 0x230   : > { %v3635_v46 = vpop.eup %3634  ;;  %v1284_v41 = vmul.f32 %v3633_v33, %v1282_v48  ;;  %v5620_v48 = vld [vmem:[#allocation8 + $0x1e8] sm:$0xff]  ;;  %v5624_v33 = vld [vmem:[#allocation8 + $0x1e0] sm:$0xff] }
 0x231   : > { %v1285_v4 = vmul.f32 %v3635_v46, %v1283_v32  ;;  %v8901_v50 = vld [vmem:[#allocation67_spill] sm:$0xff]  ;;  %v8902_v32 = vld [vmem:[#allocation68_spill] sm:$0xff]  ;;  %v5628_v46 = vld [vmem:[#allocation8 + $0x1b8] sm:$0xff] }
 0x232   : > { %v5593_v37 = vadd.f32 %v1286_v53, %v1284_v41  ;;  %v8903_v41 = vld [vmem:[#allocation69_spill] sm:$0xff]  ;;  %v5636_v53 = vld [vmem:[#allocation8 + $0x188] sm:$0xff] }
 0x233   : > { %v5591_v1 = vadd.f32 %v1287_v57, %v1285_v4  ;;  %v5632_v4 = vld [vmem:[#allocation8 + $0x1b0] sm:$0xff]  ;;  %v8904_v57 = vld [vmem:[#allocation70_spill] sm:$0xff] }
 0x235   : > { %1354 = vmatprep.mubr.f32.mxu0 %v5591_v1  ;;  %1425 = vmatprep.mubr.f32.mxu1 %v5591_v1 }
 0x236   : > { %1355 = vmatmul.mubr.f32.vlgmr.msra.gmra.mxu0 %v5593_v37  ;;  %1426 = vmatmul.mubr.f32.vlgmr.msra.gmra.mxu1 %v5593_v37 }
 0x237   : > { %1433 = vmatpush1.msra.mxu0 %v8890_v29  ;;  %1496 = vmatprep.mubr.f32.mxu0 %v5591_v1  ;;  %v8905_v29 = vld [vmem:[#allocation71_spill] sm:$0xff] }
 0x238   : > { %1434 = vmatprep.subr.mxu0 %v8891_v40  ;;  %1576 = vmatpush1.msra.mxu1 %v5396_v19  ;;  %v5640_v40 = vld [vmem:[#allocation8 + $0x180] sm:$0xff] }
 0x239   : > { %1435 = vmatpush1.msra.mxu0 %v8892_v26  ;;  %1577 = vmatprep.subr.mxu1 %v5400_v17  ;;  %v8906_v26 = vld [vmem:[#allocation72_spill] sm:$0xff] }
 0x23a   : > { %1436 = vmatprep.subr.mxu0 %v8893_v34  ;;  %1578 = vmatpush1.msra.mxu1 %v5404_v25  ;;  %v5644_v34 = vld [vmem:[#allocation8 + $0x158] sm:$0xff] }
 0x23b   : > { %1437 = vmatpush1.msra.mxu0 %v8894_v42  ;;  %1579 = vmatprep.subr.mxu1 %v5408_v23  ;;  %v8907_v42 = vld [vmem:[#allocation73_spill] sm:$0xff] }
 0x23c   : > { %1438 = vmatprep.subr.mxu0 %v8895_v21  ;;  %1580 = vmatpush1.msra.mxu1 %v5412_v54  ;;  %v5648_v21 = vld [vmem:[#allocation8 + $0x150] sm:$0xff] }
 0x23d   : > { %1439 = vmatpush1.msra.mxu0 %v8896_v28  ;;  %1581 = vmatprep.subr.mxu1 %v5416_v22  ;;  %v8908_v28 = vld [vmem:[#allocation74_spill] sm:$0xff] }
 0x23e   : > { %1440 = vmatprep.subr.mxu0 %v8897_v12  ;;  %1582 = vmatpush1.msra.mxu1 %v5420_v8  ;;  %v5652_v12 = vld [vmem:[#allocation8 + $0x128] sm:$0xff] }
 0x23f   : > { %1441 = vmatpush1.msra.mxu0 %v8898_v0  ;;  %1583 = vmatprep.subr.mxu1 %v5424_v2  ;;  %v8909_v0 = vld [vmem:[#allocation75_spill] sm:$0xff] }
 0x240   : > { %1442 = vmatprep.subr.mxu0 %v8899_v30  ;;  %1584 = vmatpush1.msra.mxu1 %v5428_v18  ;;  %v5656_v30 = vld [vmem:[#allocation8 + $0x120] sm:$0xff] }
 0x241   : > { %1443 = vmatpush1.msra.mxu0 %v8900_v20  ;;  %1585 = vmatprep.subr.mxu1 %v5620_v48  ;;  %v8910_v20 = vld [vmem:[#allocation76_spill] sm:$0xff] }
 0x242   : > { %1444 = vmatprep.subr.mxu0 %v8901_v50  ;;  %1586 = vmatpush1.msra.mxu1 %v5624_v33  ;;  %v5660_v50 = vld [vmem:[#allocation8 + $0xf8] sm:$0xff] }
 0x243   : > { %1445 = vmatpush1.msra.mxu0 %v8902_v32  ;;  %1587 = vmatprep.subr.mxu1 %v5628_v46  ;;  %v8911_v32 = vld [vmem:[#allocation77_spill] sm:$0xff] }
 0x244   : > { %1446 = vmatprep.subr.mxu0 %v8903_v41  ;;  %1588 = vmatpush1.msra.mxu1 %v5632_v4  ;;  %v5664_v41 = vld [vmem:[#allocation8 + $0xf0] sm:$0xff] }
 0x245   : > { %1447 = vmatpush1.msra.mxu0 %v8904_v57  ;;  %1589 = vmatprep.subr.mxu1 %v5636_v53  ;;  %v8912_v57 = vld [vmem:[#allocation78_spill] sm:$0xff] }
 0x246   : > { %1448 = vmatprep.subr.mxu0 %v8905_v29  ;;  %1590 = vmatpush1.msra.mxu1 %v5640_v40  ;;  %v5668_v29 = vld [vmem:[#allocation8 + $0xc8] sm:$0xff] }
 0x247   : > { %1449 = vmatpush1.msra.mxu0 %v8906_v26  ;;  %1591 = vmatprep.subr.mxu1 %v5644_v34  ;;  %8913 = vst [vmem:[#allocation93_spill] sm:$0xff] %v5668_v29  ;;  %v8914_v26 = vld [vmem:[#allocation79_spill] sm:$0xff] }
 0x248   : > { %1450 = vmatprep.subr.mxu0 %v8907_v42  ;;  %1592 = vmatpush1.msra.mxu1 %v5648_v21  ;;  %v5672_v42 = vld [vmem:[#allocation8 + $0xc0] sm:$0xff] }
 0x249   : > { %1451 = vmatpush1.msra.mxu0 %v8908_v28  ;;  %1593 = vmatprep.subr.mxu1 %v5652_v12  ;;  %8915 = vst [vmem:[#allocation23_spill] sm:$0xff] %v5672_v42  ;;  %v8916_v28 = vld [vmem:[#allocation80_spill] sm:$0xff] }
 0x24a   : > { %1452 = vmatprep.subr.mxu0 %v8909_v0  ;;  %1594 = vmatpush1.msra.mxu1 %v5656_v30  ;;  %v5676_v0 = vld [vmem:[#allocation8 + $0x98] sm:$0xff] }
 0x24b   : > { %1453 = vmatpush1.msra.mxu0 %v8910_v20  ;;  %1595 = vmatprep.subr.mxu1 %v5660_v50  ;;  %8917 = vst [vmem:[#allocation95_spill] sm:$0xff] %v5676_v0  ;;  %v8918_v20 = vld [vmem:[#allocation81_spill] sm:$0xff] }
 0x24c   : > { %1454 = vmatprep.subr.mxu0 %v8911_v32  ;;  %1596 = vmatpush1.msra.mxu1 %v5664_v41  ;;  %v5680_v32 = vld [vmem:[#allocation8 + $0x90] sm:$0xff] }
 0x24d   : > { %1455 = vmatpush1.msra.mxu0 %v8912_v57  ;;  %1597 = vmatprep.subr.mxu1 %v5668_v29  ;;  %8919 = vst [vmem:[#allocation24_spill] sm:$0xff] %v5680_v32  ;;  %v8920_v57 = vld [vmem:[#allocation82_spill] sm:$0xff]  ;;  %v5684_v29 = vld [vmem:[#allocation8 + $0x68] sm:$0xff] }
 0x24e   : > { %1456 = vmatprep.subr.mxu0 %v8914_v26  ;;  %1598 = vmatpush1.msra.mxu1 %v5672_v42  ;;  %8921 = vst [vmem:[#allocation97_spill] sm:$0xff] %v5684_v29  ;;  %v8922_v26 = vld [vmem:[#allocation83_spill] sm:$0xff]  ;;  %v5688_v42 = vld [vmem:[#allocation8 + $0x60] sm:$0xff] }
 0x24f   : > { %1457 = vmatpush1.msra.mxu0 %v8916_v28  ;;  %1599 = vmatprep.subr.mxu1 %v5676_v0  ;;  %8923 = vst [vmem:[#allocation25_spill] sm:$0xff] %v5688_v42  ;;  %v8924_v28 = vld [vmem:[#allocation84_spill] sm:$0xff]  ;;  %v5692_v0 = vld [vmem:[#allocation8 + $0x38] sm:$0xff] }
 0x250   : > { %1458 = vmatprep.subr.mxu0 %v8918_v20  ;;  %1600 = vmatpush1.msra.mxu1 %v5680_v32  ;;  %8925 = vst [vmem:[#allocation99_spill] sm:$0xff] %v5692_v0  ;;  %v8926_v20 = vld [vmem:[#allocation86_spill] sm:$0xff]  ;;  %v5696_v32 = vld [vmem:[#allocation8 + $0x30] sm:$0xff] }
 0x251   : > { %1459 = vmatpush1.msra.mxu0 %v8920_v57  ;;  %1601 = vmatprep.subr.mxu1 %v5684_v29  ;;  %8927 = vst [vmem:[#allocation26_spill] sm:$0xff] %v5696_v32  ;;  %v8928_v57 = vld [vmem:[#allocation88_spill] sm:$0xff]  ;;  %v5700_v29 = vld [vmem:[#allocation8 + $0x8] sm:$0xff] }
 0x252   : > { %1460 = vmatprep.subr.mxu0 %v8922_v26  ;;  %1602 = vmatpush1.msra.mxu1 %v5688_v42  ;;  %8929 = vst [vmem:[#allocation101_spill] sm:$0xff] %v5700_v29  ;;  %v8930_v26 = vld [vmem:[#allocation90_spill] sm:$0xff] }
 0x253   : > { %1461 = vmatpush1.msra.mxu0 %v8924_v28  ;;  %1603 = vmatprep.subr.mxu1 %v5692_v0  ;;  %v5704_v42 = vld [vmem:[#allocation8] sm:$0xff]  ;;  %v8932_v28 = vld [vmem:[#allocation92_spill] sm:$0xff]  ;;  %v5708_v0 = vld [vmem:[#allocation8 + $0x5d8] sm:$0xff] }
 0x254   : > { %1462 = vmatprep.subr.mxu0 %v8926_v20  ;;  %1604 = vmatpush1.msra.mxu1 %v5696_v32  ;;  %8931 = vst [vmem:[#allocation27_spill] sm:$0xff] %v5704_v42  ;;  %8933 = vst [vmem:[#allocation103_spill] sm:$0xff] %v5708_v0  ;;  %v8934_v20 = vld [vmem:[#allocation94_spill] sm:$0xff]  ;;  %v5712_v32 = vld [vmem:[#allocation8 + $0x5d0] sm:$0xff] }
 0x255   : > { %1463 = vmatpush1.msra.mxu0 %v8928_v57  ;;  %1605 = vmatprep.subr.mxu1 %v5700_v29  ;;  %8935 = vst [vmem:[#allocation28_spill] sm:$0xff] %v5712_v32  ;;  %v8936_v57 = vld [vmem:[#allocation96_spill] sm:$0xff]  ;;  %v5716_v29 = vld [vmem:[#allocation8 + $0x5a8] sm:$0xff] }
 0x256   : > { %1464 = vmatprep.subr.mxu0 %v8930_v26  ;;  %1606 = vmatpush1.msra.mxu1 %v5704_v42  ;;  %8937 = vst [vmem:[#allocation105_spill] sm:$0xff] %v5716_v29  ;;  %v8938_v26 = vld [vmem:[#allocation98_spill] sm:$0xff] }
 0x257   : > { %1465 = vmatpush2.msra.mxu0 %v8932_v28  ;;  %1607 = vmatprep.subr.mxu1 %v5708_v0  ;;  %v5720_v42 = vld [vmem:[#allocation8 + $0x5a0] sm:$0xff]  ;;  %v8940_v28 = vld [vmem:[#allocation100_spill] sm:$0xff]  ;;  %v5724_v0 = vld [vmem:[#allocation8 + $0x578] sm:$0xff] }
 0x258   : > { %1466 = vmatprep.subr.mxu0 %v8934_v20  ;;  %1608 = vmatpush2.msra.mxu1 %v5712_v32  ;;  %8939 = vst [vmem:[#allocation29_spill] sm:$0xff] %v5720_v42  ;;  %8941 = vst [vmem:[#allocation107_spill] sm:$0xff] %v5724_v0  ;;  %v8942_v20 = vld [vmem:[#allocation102_spill] sm:$0xff]  ;;  %v5728_v32 = vld [vmem:[#allocation8 + $0x570] sm:$0xff] }
 0x259   : > { %1467 = vmatpush2.msra.mxu0 %v8936_v57  ;;  %1609 = vmatprep.subr.mxu1 %v5716_v29  ;;  %8943 = vst [vmem:[#allocation30_spill] sm:$0xff] %v5728_v32  ;;  %v8944_v57 = vld [vmem:[#allocation104_spill] sm:$0xff]  ;;  %v5732_v29 = vld [vmem:[#allocation8 + $0x548] sm:$0xff] }
 0x25a   : > { %1468 = vmatprep.subr.mxu0 %v8938_v26  ;;  %1610 = vmatpush2.msra.mxu1 %v5720_v42  ;;  %8945 = vst [vmem:[#allocation109_spill] sm:$0xff] %v5732_v29  ;;  %v8946_v26 = vld [vmem:[#allocation106_spill] sm:$0xff] }
 0x25b   : > { %1469 = vmatpush2.msra.mxu0 %v8940_v28  ;;  %1611 = vmatprep.subr.mxu1 %v5724_v0  ;;  %v5736_v42 = vld [vmem:[#allocation8 + $0x540] sm:$0xff]  ;;  %v8948_v28 = vld [vmem:[#allocation108_spill] sm:$0xff]  ;;  %v5740_v0 = vld [vmem:[#allocation8 + $0x518] sm:$0xff] }
 0x25c   : > { %1470 = vmatprep.subr.mxu0 %v8942_v20  ;;  %1612 = vmatpush2.msra.mxu1 %v5728_v32  ;;  %8947 = vst [vmem:[#allocation31_spill] sm:$0xff] %v5736_v42  ;;  %8949 = vst [vmem:[#allocation111_spill] sm:$0xff] %v5740_v0  ;;  %v8950_v20 = vld [vmem:[#allocation110_spill] sm:$0xff]  ;;  %v5744_v32 = vld [vmem:[#allocation8 + $0x510] sm:$0xff] }
 0x25d   : > { %1471 = vmatpush2.msra.mxu0 %v8944_v57  ;;  %1613 = vmatprep.subr.mxu1 %v5732_v29  ;;  %8951 = vst [vmem:[#allocation32_spill] sm:$0xff] %v5744_v32  ;;  %v8952_v57 = vld [vmem:[#allocation112_spill] sm:$0xff]  ;;  %v5748_v29 = vld [vmem:[#allocation8 + $0x4e8] sm:$0xff] }
 0x25e   : > { %1472 = vmatprep.subr.mxu0 %v8946_v26  ;;  %1614 = vmatpush2.msra.mxu1 %v5736_v42  ;;  %8953 = vst [vmem:[#allocation113_spill] sm:$0xff] %v5748_v29  ;;  %v8954_v26 = vld [vmem:[#allocation114_spill] sm:$0xff] }
 0x25f   : > { %1473 = vmatpush2.msra.mxu0 %v8948_v28  ;;  %1615 = vmatprep.subr.mxu1 %v5740_v0  ;;  %v5752_v42 = vld [vmem:[#allocation8 + $0x4e0] sm:$0xff]  ;;  %v8956_v28 = vld [vmem:[#allocation116_spill] sm:$0xff]  ;;  %v5756_v0 = vld [vmem:[#allocation8 + $0x4b8] sm:$0xff] }
 0x260   : > { %1474 = vmatprep.subr.mxu0 %v8950_v20  ;;  %1616 = vmatpush2.msra.mxu1 %v5744_v32  ;;  %8955 = vst [vmem:[#allocation33_spill] sm:$0xff] %v5752_v42  ;;  %8957 = vst [vmem:[#allocation115_spill] sm:$0xff] %v5756_v0  ;;  %v8958_v20 = vld [vmem:[#allocation118_spill] sm:$0xff]  ;;  %v5760_v32 = vld [vmem:[#allocation8 + $0x4b0] sm:$0xff] }
 0x261   : > { %1475 = vmatpush2.msra.mxu0 %v8952_v57  ;;  %1617 = vmatprep.subr.mxu1 %v5748_v29  ;;  %8959 = vst [vmem:[#allocation34_spill] sm:$0xff] %v5760_v32  ;;  %v8960_v57 = vld [vmem:[#allocation120_spill] sm:$0xff]  ;;  %v5764_v29 = vld [vmem:[#allocation8 + $0x488] sm:$0xff] }
 0x262   : > { %1476 = vmatprep.subr.mxu0 %v8954_v26  ;;  %1618 = vmatpush2.msra.mxu1 %v5752_v42  ;;  %8961 = vst [vmem:[#allocation117_spill] sm:$0xff] %v5764_v29  ;;  %v8962_v26 = vld [vmem:[#allocation122_spill] sm:$0xff] }
 0x263   : > { %1477 = vmatpush2.msra.mxu0 %v8956_v28  ;;  %1619 = vmatprep.subr.mxu1 %v5756_v0  ;;  %v5768_v42 = vld [vmem:[#allocation8 + $0x480] sm:$0xff]  ;;  %v8964_v28 = vld [vmem:[#allocation124_spill] sm:$0xff]  ;;  %v5772_v0 = vld [vmem:[#allocation8 + $0x458] sm:$0xff] }
 0x264   : > { %1478 = vmatprep.subr.mxu0 %v8958_v20  ;;  %1620 = vmatpush2.msra.mxu1 %v5760_v32  ;;  %8963 = vst [vmem:[#allocation35_spill] sm:$0xff] %v5768_v42  ;;  %8965 = vst [vmem:[#allocation119_spill] sm:$0xff] %v5772_v0  ;;  %v8966_v20 = vld [vmem:[#allocation126_spill] sm:$0xff]  ;;  %v5776_v32 = vld [vmem:[#allocation8 + $0x450] sm:$0xff] }
 0x265   : > { %1479 = vmatpush2.msra.mxu0 %v8960_v57  ;;  %1621 = vmatprep.subr.mxu1 %v5764_v29  ;;  %8967 = vst [vmem:[#allocation36_spill] sm:$0xff] %v5776_v32  ;;  %v8968_v57 = vld [vmem:[#allocation128_spill] sm:$0xff]  ;;  %v5780_v29 = vld [vmem:[#allocation8 + $0x428] sm:$0xff] }
 0x266   : > { %1480 = vmatprep.subr.mxu0 %v8962_v26  ;;  %1622 = vmatpush2.msra.mxu1 %v5768_v42  ;;  %8969 = vst [vmem:[#allocation121_spill] sm:$0xff] %v5780_v29  ;;  %v8970_v26 = vld [vmem:[#allocation130_spill] sm:$0xff] }
 0x267   : > { %1481 = vmatpush2.msra.mxu0 %v8964_v28  ;;  %1623 = vmatprep.subr.mxu1 %v5772_v0  ;;  %v5784_v42 = vld [vmem:[#allocation8 + $0x420] sm:$0xff]  ;;  %v8972_v28 = vld [vmem:[#allocation132_spill] sm:$0xff]  ;;  %v5788_v0 = vld [vmem:[#allocation8 + $0x3f8] sm:$0xff] }
 0x268   : > { %1482 = vmatprep.subr.mxu0 %v8966_v20  ;;  %1624 = vmatpush2.msra.mxu1 %v5776_v32  ;;  %8971 = vst [vmem:[#allocation37_spill] sm:$0xff] %v5784_v42  ;;  %8973 = vst [vmem:[#allocation123_spill] sm:$0xff] %v5788_v0  ;;  %v8974_v20 = vld [vmem:[#allocation134_spill] sm:$0xff]  ;;  %v5792_v32 = vld [vmem:[#allocation8 + $0x3f0] sm:$0xff] }
 0x269   : > { %1483 = vmatpush2.msra.mxu0 %v8968_v57  ;;  %1625 = vmatprep.subr.mxu1 %v5780_v29  ;;  %8975 = vst [vmem:[#allocation38_spill] sm:$0xff] %v5792_v32  ;;  %v8976_v57 = vld [vmem:[#allocation136_spill] sm:$0xff]  ;;  %v5796_v29 = vld [vmem:[#allocation8 + $0x3c8] sm:$0xff] }
 0x26a   : > { %1484 = vmatprep.subr.mxu0 %v8970_v26  ;;  %1626 = vmatpush2.msra.mxu1 %v5784_v42  ;;  %8977 = vst [vmem:[#allocation125_spill] sm:$0xff] %v5796_v29  ;;  %v8978_v26 = vld [vmem:[#allocation138_spill] sm:$0xff] }
 0x26b   : > { %1485 = vmatpush2.msra.mxu0 %v8972_v28  ;;  %1627 = vmatprep.subr.mxu1 %v5788_v0  ;;  %v5800_v42 = vld [vmem:[#allocation8 + $0x3c0] sm:$0xff]  ;;  %v8980_v28 = vld [vmem:[#allocation140_spill] sm:$0xff]  ;;  %v5804_v0 = vld [vmem:[#allocation8 + $0x398] sm:$0xff] }
 0x26c   : > { %1486 = vmatprep.subr.mxu0 %v8974_v20  ;;  %1628 = vmatpush2.msra.mxu1 %v5792_v32  ;;  %8979 = vst [vmem:[#allocation39_spill] sm:$0xff] %v5800_v42  ;;  %8981 = vst [vmem:[#allocation127_spill] sm:$0xff] %v5804_v0  ;;  %v8982_v20 = vld [vmem:[#allocation141_spill] sm:$0xff]  ;;  %v5808_v32 = vld [vmem:[#allocation8 + $0x390] sm:$0xff] }
 0x26d   : > { %1487 = vmatpush2.msra.mxu0 %v8976_v57  ;;  %1629 = vmatprep.subr.mxu1 %v5796_v29  ;;  %8983 = vst [vmem:[#allocation40_spill] sm:$0xff] %v5808_v32  ;;  %v8984_v57 = vld [vmem:[#allocation142_spill] sm:$0xff]  ;;  %v5812_v29 = vld [vmem:[#allocation8 + $0x368] sm:$0xff] }
 0x26e   : > { %1488 = vmatprep.subr.mxu0 %v8978_v26  ;;  %1630 = vmatpush2.msra.mxu1 %v5800_v42  ;;  %8985 = vst [vmem:[#allocation129_spill] sm:$0xff] %v5812_v29  ;;  %v8986_v26 = vld [vmem:[#allocation143_spill] sm:$0xff]  ;;  %v5816_v42 = vld [vmem:[#allocation8 + $0x360] sm:$0xff] }
 0x26f   : > { %1489 = vmatpush2.msra.mxu0 %v8980_v28  ;;  %1631 = vmatprep.subr.mxu1 %v5804_v0  ;;  %v8987_v28 = vld [vmem:[#allocation144_spill] sm:$0xff]  ;;  %v5820_v0 = vld [vmem:[#allocation8 + $0x338] sm:$0xff] }
 0x270   : > { %1490 = vmatprep.subr.mxu0 %v8982_v20  ;;  %1632 = vmatpush2.msra.mxu1 %v5808_v32  ;;  %v8988_v20 = vld [vmem:[#allocation145_spill] sm:$0xff]  ;;  %v5824_v32 = vld [vmem:[#allocation8 + $0x330] sm:$0xff] }
 0x271   : > { %1491 = vmatpush2.msra.mxu0 %v8984_v57  ;;  %1633 = vmatprep.subr.mxu1 %v5812_v29  ;;  %8989 = vst [vmem:[#allocation41_spill] sm:$0xff] %v5824_v32  ;;  %v8990_v57 = vld [vmem:[#allocation147_spill] sm:$0xff] }
 0x272   : > { %1492 = vmatprep.subr.mxu0 %v8986_v26  ;;  %1634 = vmatpush2.msra.mxu1 %v5816_v42  ;;  %v5828_v29 = vld [vmem:[#allocation8 + $0x308] sm:$0xff] }
 0x273   : > { %1493 = vmatpush2.msra.mxu0 %v8987_v28  ;;  %1635 = vmatprep.subr.mxu1 %v5820_v0  ;;  %8991 = vst [vmem:[#allocation131_spill] sm:$0xff] %v5828_v29  ;;  %v5832_v26 = vld [vmem:[#allocation8 + $0x2e8] sm:$0xff]  ;;  %v5835_v28 = vld [vmem:[#allocation8 + $0x2e0] sm:$0xff] }
 0x274   : > { %1494 = vmatprep.subr.mxu0 %v8988_v20  ;;  %1636 = vmatpush2.msra.mxu1 %v5824_v32  ;;  %8992 = vst [vmem:[#allocation42_spill] sm:$0xff] %v5832_v26  ;;  %8993 = vst [vmem:[#allocation133_spill] sm:$0xff] %v5835_v28  ;;  %v5838_v20 = vld [vmem:[#allocation8 + $0x300] sm:$0xff]  ;;  %v5841_v32 = vld [vmem:[#allocation8 + $0x2b8] sm:$0xff] }
 0x275   : > { %1495 = vmatpush2.msra.mxu0 %v8990_v57  ;;  %1637 = vmatprep.subr.mxu1 %v5828_v29  ;;  %8994 = vst [vmem:[#allocation43_spill] sm:$0xff] %v5838_v20  ;;  %8995 = vst [vmem:[#allocation135_spill] sm:$0xff] %v5841_v32  ;;  %v5844_v57 = vld [vmem:[#allocation8 + $0x2f8] sm:$0xff]  ;;  %v5847_v29 = vld [vmem:[#allocation8 + $0x2b0] sm:$0xff] }
 0x276   : > { %1497 = vmatmul.mubr.f32.vlgmr.msra.gmra.mxu0 %v5593_v37  ;;  %1646 = vmatprep.subr.mxu0 %v5832_v26  ;;  %8996 = vst [vmem:[#allocation45_spill] sm:$0xff] %v5844_v57  ;;  %8997 = vst [vmem:[#allocation137_spill] sm:$0xff] %v5847_v29  ;;  %v5850_v26 = vld [vmem:[#allocation8 + $0x288] sm:$0xff] }
 0x277   : > { %1647 = vmatpush1.msra.mxu0 %v5835_v28  ;;  %1638 = vmatpush2.msra.mxu1 %v5838_v20  ;;  %8998 = vst [vmem:[#allocation46_spill] sm:$0xff] %v5850_v26  ;;  %v5853_v28 = vld [vmem:[#allocation8 + $0x280] sm:$0xff]  ;;  %v5856_v20 = vld [vmem:[#allocation8 + $0x258] sm:$0xff] }
 0x278   : > { %1648 = vmatprep.subr.mxu0 %v5841_v32  ;;  %1717 = vmatprep.subr.mxu1 %v5844_v57  ;;  %8999 = vst [vmem:[#allocation139_spill] sm:$0xff] %v5853_v28  ;;  %9000 = vst [vmem:[#allocation47_spill] sm:$0xff] %v5856_v20  ;;  %v5859_v32 = vld [vmem:[#allocation8 + $0x250] sm:$0xff]  ;;  %v5862_v57 = vld [vmem:[#allocation8 + $0x228] sm:$0xff] }
 0x279   : > { %1649 = vmatpush1.msra.mxu0 %v5847_v29  ;;  %9001 = vst [vmem:[#allocation48_spill] sm:$0xff] %v5859_v32  ;;  %9002 = vst [vmem:[#allocation50_spill] sm:$0xff] %v5862_v57  ;;  %v5865_v29 = vld [vmem:[#allocation8 + $0x220] sm:$0xff] }
 0x27a   : > { %1650 = vmatprep.subr.mxu0 %v5850_v26  ;;  %9003 = vst [vmem:[#allocation52_spill] sm:$0xff] %v5865_v29  ;;  %v5868_v26 = vld [vmem:[#allocation8 + $0x1f8] sm:$0xff] }
 0x27b   : > { %1651 = vmatpush1.msra.mxu0 %v5853_v28  ;;  %9004 = vst [vmem:[#allocation53_spill] sm:$0xff] %v5868_v26  ;;  %v5871_v28 = vld [vmem:[#allocation8 + $0x1f0] sm:$0xff] }
 0x27c   : > { %1652 = vmatprep.subr.mxu0 %v5856_v20  ;;  %9005 = vst [vmem:[#allocation54_spill] sm:$0xff] %v5871_v28  ;;  %v5874_v20 = vld [vmem:[#allocation8 + $0x1c8] sm:$0xff] }
 0x27d   : > { %1653 = vmatpush1.msra.mxu0 %v5859_v32  ;;  %9006 = vst [vmem:[#allocation55_spill] sm:$0xff] %v5874_v20  ;;  %v5877_v32 = vld [vmem:[#allocation8 + $0x1c0] sm:$0xff] }
 0x27e   : > { %1654 = vmatprep.subr.mxu0 %v5862_v57  ;;  %9007 = vst [vmem:[#allocation51_spill] sm:$0xff] %v5877_v32  ;;  %v5880_v57 = vld [vmem:[#allocation8 + $0x198] sm:$0xff] }
 0x27f   : > { %1655 = vmatpush1.msra.mxu0 %v5865_v29  ;;  %9008 = vst [vmem:[#allocation49_spill] sm:$0xff] %v5880_v57  ;;  %v5883_v29 = vld [vmem:[#allocation8 + $0x190] sm:$0xff] }
 0x280   : > { %1656 = vmatprep.subr.mxu0 %v5868_v26  ;;  %9009 = vst [vmem:[#allocation56_spill] sm:$0xff] %v5883_v29  ;;  %v5886_v26 = vld [vmem:[#allocation8 + $0x168] sm:$0xff] }
 0x281   : > { %1657 = vmatpush1.msra.mxu0 %v5871_v28  ;;  %9010 = vst [vmem:[#allocation57_spill] sm:$0xff] %v5886_v26  ;;  %v5889_v28 = vld [vmem:[#allocation8 + $0x160] sm:$0xff] }
 0x282   : > { %1658 = vmatprep.subr.mxu0 %v5874_v20  ;;  %9011 = vst [vmem:[#allocation58_spill] sm:$0xff] %v5889_v28  ;;  %v5892_v20 = vld [vmem:[#allocation8 + $0x138] sm:$0xff] }
 0x283   : > { %1659 = vmatpush1.msra.mxu0 %v5877_v32  ;;  %9012 = vst [vmem:[#allocation59_spill] sm:$0xff] %v5892_v20  ;;  %v5895_v32 = vld [vmem:[#allocation8 + $0x130] sm:$0xff] }
 0x284   : > { %1660 = vmatprep.subr.mxu0 %v5880_v57  ;;  %9013 = vst [vmem:[#allocation60_spill] sm:$0xff] %v5895_v32  ;;  %v5898_v57 = vld [vmem:[#allocation8 + $0x108] sm:$0xff] }
 0x285   : > { %1661 = vmatpush1.msra.mxu0 %v5883_v29  ;;  %9014 = vst [vmem:[#allocation61_spill] sm:$0xff] %v5898_v57  ;;  %v5901_v29 = vld [vmem:[#allocation8 + $0x100] sm:$0xff] }
 0x286   : > { %1662 = vmatprep.subr.mxu0 %v5886_v26  ;;  %9015 = vst [vmem:[#allocation62_spill] sm:$0xff] %v5901_v29  ;;  %v5904_v26 = vld [vmem:[#allocation8 + $0xd8] sm:$0xff] }
 0x287   : > { %1663 = vmatpush1.msra.mxu0 %v5889_v28  ;;  %9016 = vst [vmem:[#allocation63_spill] sm:$0xff] %v5904_v26  ;;  %v5907_v28 = vld [vmem:[#allocation8 + $0xd0] sm:$0xff] }
 0x288   : > { %1664 = vmatprep.subr.mxu0 %v5892_v20  ;;  %9017 = vst [vmem:[#allocation64_spill] sm:$0xff] %v5907_v28  ;;  %v5910_v20 = vld [vmem:[#allocation8 + $0xa8] sm:$0xff] }
 0x289   : > { %1665 = vmatpush1.msra.mxu0 %v5895_v32  ;;  %9018 = vst [vmem:[#allocation65_spill] sm:$0xff] %v5910_v20  ;;  %v5913_v32 = vld [vmem:[#allocation8 + $0xa0] sm:$0xff] }
 0x28a   : > { %1666 = vmatprep.subr.mxu0 %v5898_v57  ;;  %9019 = vst [vmem:[#allocation66_spill] sm:$0xff] %v5913_v32  ;;  %v5916_v57 = vld [vmem:[#allocation8 + $0x78] sm:$0xff] }
 0x28b   : > { %1667 = vmatpush1.msra.mxu0 %v5901_v29  ;;  %9020 = vst [vmem:[#allocation67_spill] sm:$0xff] %v5916_v57  ;;  %v5919_v29 = vld [vmem:[#allocation8 + $0x70] sm:$0xff] }
 0x28c   : > { %1668 = vmatprep.subr.mxu0 %v5904_v26  ;;  %9021 = vst [vmem:[#allocation68_spill] sm:$0xff] %v5919_v29  ;;  %v5922_v26 = vld [vmem:[#allocation8 + $0x48] sm:$0xff] }
 0x28d   : > { %1669 = vmatpush1.msra.mxu0 %v5907_v28  ;;  %v5925_v28 = vld [vmem:[#allocation8 + $0x40] sm:$0xff] }
 0x28e   : > { %1670 = vmatprep.subr.mxu0 %v5910_v20  ;;  %v5928_v20 = vld [vmem:[#allocation8 + $0x18] sm:$0xff] }
 0x28f   : > { %1671 = vmatpush1.msra.mxu0 %v5913_v32  ;;  %v5931_v32 = vld [vmem:[#allocation8 + $0x10] sm:$0xff] }
 0x290   : > { %1672 = vmatprep.subr.mxu0 %v5916_v57  ;;  %v5934_v57 = vld [vmem:[#allocation8 + $0x5e8] sm:$0xff] }
 0x291   : > { %1673 = vmatpush1.msra.mxu0 %v5919_v29  ;;  %v5937_v29 = vld [vmem:[#allocation8 + $0x5e0] sm:$0xff] }
 0x292   : > { %1674 = vmatprep.subr.mxu0 %v5922_v26 }
 0x293   : > { %1675 = vmatpush1.msra.mxu0 %v5925_v28 }
 0x294   : > { %1676 = vmatprep.subr.mxu0 %v5928_v20 }
 0x295   : > { %1677 = vmatpush1.msra.mxu0 %v5931_v32 }
 0x296   : > { %1678 = vmatprep.subr.mxu0 %v5934_v57 }
 0x297   : > { %1679 = vmatpush2.msra.mxu0 %v5937_v29 }
 0x298   : > { %1680 = vmatprep.subr.mxu0 %v8825_v43  ;;  %v9022_v43 = vld [vmem:[#allocation146_spill] sm:$0xff] }
 0x299   : > { %1681 = vmatpush2.msra.mxu0 %v8827_v47  ;;  %v9023_v47 = vld [vmem:[#allocation148_spill] sm:$0xff] }
 0x29a   : > { %1682 = vmatprep.subr.mxu0 %v8829_v51 }
 0x29b   : > { %1683 = vmatpush2.msra.mxu0 %v8831_v55 }
 0x29c   : > { %1684 = vmatprep.subr.mxu0 %v8833_v59  ;;  %v9024_v59 = vld [vmem:[#allocation85_spill] sm:$0xff] }
 0x29d   : > { %1685 = vmatpush2.msra.mxu0 %v8835_v63 }
 0x29e   : > { %1686 = vmatprep.subr.mxu0 %v8837_v5  ;;  %v9025_v5 = vld [vmem:[#allocation19_spill] sm:$0xff] }
 0x29f   : > { %1687 = vmatpush2.msra.mxu0 %v8839_v36 }
 0x2a0   : > { %1688 = vmatprep.subr.mxu0 %v8841_v44 }
 0x2a1   : > { %1689 = vmatpush2.msra.mxu0 %v8843_v52  ;;  %v9026_v52 = vld [vmem:[#allocation87_spill] sm:$0xff] }
 0x2a2   : > { %1690 = vmatprep.subr.mxu0 %v8845_v60 }
 0x2a3   : > { %1691 = vmatpush2.msra.mxu0 %v8847_v6 }
 0x2a4   : > { %1692 = vmatprep.subr.mxu0 %v8849_v16 }
 0x2a5   : > { %1693 = vmatpush2.msra.mxu0 %v8851_v24 }
 0x2a6   : > { %1694 = vmatprep.subr.mxu0 %v8853_v58 }
 0x2a7   : > { %1695 = vmatpush2.msra.mxu0 %v8855_v10  ;;  %v9029_v10 = vld [vmem:[#allocation21_spill] sm:$0xff] }
 0x2a8   : > { %1696 = vmatprep.subr.mxu0 %v8857_v38 }
 0x2a9   : > { %1697 = vmatpush2.msra.mxu0 %v8859_v3 }
 0x2aa   : > { %1698 = vmatprep.subr.mxu0 %v8861_v14 }
 0x2ab   : > { %1699 = vmatpush2.msra.mxu0 %v8863_v27  ;;  %v9030_v27 = vld [vmem:[#allocation91_spill] sm:$0xff] }
 0x2ac   : > { %1700 = vmatprep.subr.mxu0 %v8865_v31 }
 0x2ad   : > { %1701 = vmatpush2.msra.mxu0 %v8867_v35  ;;  %v9031_v35 = vld [vmem:[#allocation22_spill] sm:$0xff] }
 0x2ae   : > { %1702 = vmatprep.subr.mxu0 %v8869_v39 }
 0x2af   : > { %1703 = vmatpush2.msra.mxu0 %v8871_v45 }
 0x2b0   : > { %1704 = vmatprep.subr.mxu0 %v5348_v15 }
 0x2b1   : > { %1705 = vmatpush2.msra.mxu0 %v5354_v13 }
 0x2b2   : > { %1706 = vmatprep.subr.mxu0 %v5360_v11  ;;  %v9027_v11 = vld [vmem:[#allocation20_spill] sm:$0xff] }
 0x2b3   : > { %1707 = vmatpush2.msra.mxu0 %v5366_v9 }
 0x2b4   : > { %1708 = vmatprep.subr.mxu0 %v5372_v7  ;;  %v9028_v7 = vld [vmem:[#allocation89_spill] sm:$0xff] }
 0x2b5   : > { %1709 = vmatpush2.msra.mxu0 %v9022_v43 }
 0x2b6   : > { %1858 = vmatprep.subr.mxu0 %v9023_v47 }
 0x2f6   : > { %v1356_v51 = vpop.f32.mrf.mxu0  ;;  %v1427_v60 = vpop.f32.mrf.mxu1 }
 0x2f7   : > { %v1357_v63 = vadd.f32 %v1356_v51, %v9024_v59  ;;  %v1428_v24 = vadd.f32 %v1427_v60, %v9028_v7 }
 0x2f8   : > { %v1358_v55 = vpop.f32.mrf.mxu0  ;;  %v1429_v16 = vpop.f32.mrf.mxu1 }
 0x2f9   : > { %v1359_v36 = vadd.f32 %v1358_v55, %v9025_v5  ;;  %v1507_v44 = vrot.slane %v1357_v63, 7  ;;  %v1430_v38 = vadd.f32 %v1429_v16, %v9029_v10  ;;  %v1509_v3 = vrot.slane %v1428_v24, 7 }
 0x2fb   : > { %v1508_v15 = vrot.slane %v1359_v36, 7  ;;  %v1515_v13 = vadd.f32 %v1507_v44, %v9026_v52  ;;  %v1510_v14 = vrot.slane %v1430_v38, 7  ;;  %v1517_v31 = vadd.f32 %v1509_v3, %v9030_v27 }
 0x2fd   : > { %v1516_v6 = vadd.f32 %v1508_v15, %v9027_v11  ;;  %v3482_v9 = vmul.f32 -1.442695, %v1515_v13  ;;  %v1518_v39 = vadd.f32 %v1510_v14, %v9031_v35  ;;  %v3484_v45 = vmul.f32 -1.442695, %v1517_v31 }
 0x2ff   : > { %v3483_v58 = vmul.f32 -1.442695, %v1516_v6  ;;  %3636 = vpow2.f32 %v3482_v9  ;;  %v3485_v43 = vmul.f32 -1.442695, %v1518_v39 }
 0x301   : > { %3638 = vpow2.f32 %v3483_v58 }
 0x302   : > { %3640 = vpow2.f32 %v3484_v45 }
 0x303   : > { %3642 = vpow2.f32 %v3485_v43 }
 0x30c   : > { %v3637_v47 = vpop.eup %3636 }
 0x30d   : > { %v1531_v55 = vadd.f32 1.0, %v3637_v47 }
 0x30e   : > { %v3639_v51 = vpop.eup %3638 }
 0x30f   : > { %v1532_v63 = vadd.f32 1.0, %v3639_v51  ;;  %3644 = vrcp.f32 %v1531_v55  ;;  %v3641_v36 = vpop.eup %3640 }
 0x310   : > { %v3643_v44 = vpop.eup %3642  ;;  %v1533_v13 = vadd.f32 1.0, %v3641_v36 }
 0x311   : > { %3646 = vrcp.f32 %v1532_v63  ;;  %v1534_v9 = vadd.f32 1.0, %v3643_v44  ;;  %v1561_v63 = vrot.slane %v5593_v37, 7  ;;  %v1562_v44 = vrot.slane %v5591_v1, 7 }
 0x312   : > { %3648 = vrcp.f32 %v1533_v13 }
 0x313   : > { %3650 = vrcp.f32 %v1534_v9 }
 0x31c   : > { %v3645_v58 = vpop.eup %3644 }
 0x31e   : > { %v3647_v14 = vpop.eup %3646 }
 0x31f   : > { %v3649_v43 = vpop.eup %3648 }
 0x320   : > { %v3651_v47 = vpop.eup %3650  ;;  %v1555_v51 = vsub.f32 1.0, %v3649_v43 }
 0x321   : > { %v1556_v36 = vsub.f32 1.0, %v3651_v47  ;;  %v1566_v9 = vmul.f32 %v3651_v47, %v1562_v44  ;;  %v6086_v47 = vld [vmem:[#allocation8 + $0xb8] sm:$0xff] }
 0x322   : > { %v6102_v44 = vld [vmem:[#allocation8 + $0x58] sm:$0xff] }
 0x336   : > { %v1498_v15 = vpop.f32.mrf.mxu0 }
 0x337   : > { %v1499_v60 = vadd.f32 %v1498_v15, %v5577_v49 }
 0x338   : > { %v1500_v6 = vpop.f32.mrf.mxu0 }
 0x339   : > { %v1545_v16 = vrot.slane %v1499_v60, 7  ;;  %v1501_v24 = vadd.f32 %v1500_v6, %v5579_v56  ;;  %v1565_v60 = vmul.f32 %v3649_v43, %v1561_v63  ;;  %v6014_v43 = vld [vmem:[#allocation8 + $0x268] sm:$0xff]  ;;  %v6098_v63 = vld [vmem:[#allocation8 + $0x80] sm:$0xff] }
 0x33b   : > { %v1549_v38 = vmul.f32 %v3645_v58, %v1545_v16  ;;  %v1546_v3 = vrot.slane %v1501_v24, 7 }
 0x33d   : > { %v1551_v31 = vadd.f32 %v1549_v38, %v5583_v61  ;;  %v1550_v39 = vmul.f32 %v3647_v14, %v1546_v3  ;;  %v5995_v3 = vld [vmem:[#allocation8 + $0x2f0] sm:$0xff]  ;;  %v5998_v14 = vld [vmem:[#allocation8 + $0x2c8] sm:$0xff] }
 0x33f   : > { %3652 = vtanh.f32 %v1551_v31  ;;  %v1552_v45 = vadd.f32 %v1550_v39, %v5585_v62  ;;  %v6002_v31 = vld [vmem:[#allocation8 + $0x2c0] sm:$0xff]  ;;  %v6006_v39 = vld [vmem:[#allocation8 + $0x298] sm:$0xff] }
 0x341   : > { %3654 = vtanh.f32 %v1552_v45  ;;  %v6010_v45 = vld [vmem:[#allocation8 + $0x290] sm:$0xff] }
 0x34c   : > { %v3653_v55 = vpop.eup %3652 }
 0x34d   : > { %v1557_v15 = vmul.f32 %v3653_v55, %v1555_v51  ;;  %v6090_v51 = vld [vmem:[#allocation8 + $0xb0] sm:$0xff]  ;;  %v6094_v55 = vld [vmem:[#allocation8 + $0x88] sm:$0xff] }
 0x34e   : > { %v3655_v13 = vpop.eup %3654 }
 0x34f   : > { %v1558_v6 = vmul.f32 %v3655_v13, %v1556_v36  ;;  %v5985_v16 = vadd.f32 %v1565_v60, %v1557_v15  ;;  %v9036_v36 = vld [vmem:[#allocation97_spill] sm:$0xff]  ;;  %v6106_v13 = vld [vmem:[#allocation8 + $0x50] sm:$0xff]  ;;  %v9038_v60 = vld [vmem:[#allocation99_spill] sm:$0xff] }
 0x350   : > { %v9037_v15 = vld [vmem:[#allocation25_spill] sm:$0xff] }
 0x351   : > { %v5987_v24 = vadd.f32 %v1566_v9, %v1558_v6  ;;  %v5991_v38 = vrot.slane %v5985_v16, 1  ;;  %v6110_v6 = vld [vmem:[#allocation8 + $0x28] sm:$0xff]  ;;  %v9039_v9 = vld [vmem:[#allocation26_spill] sm:$0xff] }
 0x353   : > { %v1572_v58 = vrot.slane %v5987_v24, 1 }
 0x355   : > { %1639 = vmatprep.mubr.f32.mxu1 %v1572_v58  ;;  %1710 = vmatprep.mubr.f32.mxu0 %v1572_v58 }
 0x356   : > { %1640 = vmatmul.mubr.f32.vlgmr.msra.gmra.mxu1 %v5991_v38  ;;  %1711 = vmatmul.mubr.f32.vlgmr.msra.gmra.mxu0 %v5991_v38 }
 0x357   : > { %1718 = vmatpush1.msra.mxu1 %v5995_v3  ;;  %1781 = vmatprep.mubr.f32.mxu1 %v1572_v58  ;;  %v6114_v58 = vld [vmem:[#allocation8 + $0x20] sm:$0xff] }
 0x358   : > { %1719 = vmatprep.subr.mxu1 %v5998_v14  ;;  %1859 = vmatpush1.msra.mxu0 %v5396_v19  ;;  %v6018_v19 = vld [vmem:[#allocation8 + $0x260] sm:$0xff] }
 0x359   : > { %1720 = vmatpush1.msra.mxu1 %v6002_v31  ;;  %1860 = vmatprep.subr.mxu0 %v5400_v17  ;;  %v6022_v17 = vld [vmem:[#allocation8 + $0x238] sm:$0xff] }
 0x35a   : > { %1721 = vmatprep.subr.mxu1 %v6006_v39  ;;  %1861 = vmatpush1.msra.mxu0 %v5404_v25  ;;  %v6026_v25 = vld [vmem:[#allocation8 + $0x230] sm:$0xff] }
 0x35b   : > { %1722 = vmatpush1.msra.mxu1 %v6010_v45  ;;  %1862 = vmatprep.subr.mxu0 %v5408_v23  ;;  %v6030_v23 = vld [vmem:[#allocation8 + $0x208] sm:$0xff] }
 0x35c   : > { %1723 = vmatprep.subr.mxu1 %v6014_v43  ;;  %1863 = vmatpush1.msra.mxu0 %v5412_v54  ;;  %v6034_v54 = vld [vmem:[#allocation8 + $0x200] sm:$0xff] }
 0x35d   : > { %1724 = vmatpush1.msra.mxu1 %v6018_v19  ;;  %1864 = vmatprep.subr.mxu0 %v5416_v22  ;;  %v6038_v22 = vld [vmem:[#allocation8 + $0x1d8] sm:$0xff] }
 0x35e   : > { %1725 = vmatprep.subr.mxu1 %v6022_v17  ;;  %1865 = vmatpush1.msra.mxu0 %v5420_v8  ;;  %v6042_v8 = vld [vmem:[#allocation8 + $0x1d0] sm:$0xff] }
 0x35f   : > { %1726 = vmatpush1.msra.mxu1 %v6026_v25  ;;  %1866 = vmatprep.subr.mxu0 %v5424_v2  ;;  %v6046_v2 = vld [vmem:[#allocation8 + $0x1a8] sm:$0xff] }
 0x360   : > { %1727 = vmatprep.subr.mxu1 %v6030_v23  ;;  %1867 = vmatpush1.msra.mxu0 %v5428_v18  ;;  %v6050_v18 = vld [vmem:[#allocation8 + $0x1a0] sm:$0xff] }
 0x361   : > { %1728 = vmatpush1.msra.mxu1 %v6034_v54  ;;  %1868 = vmatprep.subr.mxu0 %v5620_v48  ;;  %v6054_v48 = vld [vmem:[#allocation8 + $0x178] sm:$0xff] }
 0x362   : > { %1729 = vmatprep.subr.mxu1 %v6038_v22  ;;  %1869 = vmatpush1.msra.mxu0 %v5624_v33  ;;  %v6058_v33 = vld [vmem:[#allocation8 + $0x170] sm:$0xff] }
 0x363   : > { %1730 = vmatpush1.msra.mxu1 %v6042_v8  ;;  %1870 = vmatprep.subr.mxu0 %v5628_v46  ;;  %v6062_v46 = vld [vmem:[#allocation8 + $0x148] sm:$0xff] }
 0x364   : > { %1731 = vmatprep.subr.mxu1 %v6046_v2  ;;  %1871 = vmatpush1.msra.mxu0 %v5632_v4  ;;  %v6066_v4 = vld [vmem:[#allocation8 + $0x140] sm:$0xff] }
 0x365   : > { %1732 = vmatpush1.msra.mxu1 %v6050_v18  ;;  %1872 = vmatprep.subr.mxu0 %v5636_v53  ;;  %v6070_v53 = vld [vmem:[#allocation8 + $0x118] sm:$0xff] }
 0x366   : > { %1733 = vmatprep.subr.mxu1 %v6054_v48  ;;  %1873 = vmatpush1.msra.mxu0 %v5640_v40  ;;  %v6074_v40 = vld [vmem:[#allocation8 + $0x110] sm:$0xff] }
 0x367   : > { %1734 = vmatpush1.msra.mxu1 %v6058_v33  ;;  %1874 = vmatprep.subr.mxu0 %v5644_v34  ;;  %v6078_v34 = vld [vmem:[#allocation8 + $0xe8] sm:$0xff] }
 0x368   : > { %1735 = vmatprep.subr.mxu1 %v6062_v46  ;;  %1875 = vmatpush1.msra.mxu0 %v5648_v21  ;;  %v6082_v21 = vld [vmem:[#allocation8 + $0xe0] sm:$0xff] }
 0x369   : > { %1736 = vmatpush1.msra.mxu1 %v6066_v4  ;;  %1876 = vmatprep.subr.mxu0 %v5652_v12  ;;  %v9032_v12 = vld [vmem:[#allocation93_spill] sm:$0xff] }
 0x36a   : > { %1737 = vmatprep.subr.mxu1 %v6070_v53  ;;  %1877 = vmatpush1.msra.mxu0 %v5656_v30  ;;  %v9033_v30 = vld [vmem:[#allocation23_spill] sm:$0xff] }
 0x36b   : > { %1738 = vmatpush1.msra.mxu1 %v6074_v40  ;;  %1878 = vmatprep.subr.mxu0 %v5660_v50  ;;  %v9034_v50 = vld [vmem:[#allocation95_spill] sm:$0xff] }
 0x36c   : > { %1739 = vmatprep.subr.mxu1 %v6078_v34  ;;  %1879 = vmatpush1.msra.mxu0 %v5664_v41  ;;  %v9035_v41 = vld [vmem:[#allocation24_spill] sm:$0xff] }
 0x36d   : > { %1740 = vmatpush1.msra.mxu1 %v6082_v21  ;;  %1880 = vmatprep.subr.mxu0 %v9032_v12  ;;  %v9040_v12 = vld [vmem:[#allocation101_spill] sm:$0xff] }
 0x36e   : > { %1741 = vmatprep.subr.mxu1 %v6086_v47  ;;  %1881 = vmatpush1.msra.mxu0 %v9033_v30  ;;  %v6118_v30 = vld [vmem:[#allocation8 + $0x5f8] sm:$0xff] }
 0x36f   : > { %1742 = vmatpush1.msra.mxu1 %v6090_v51  ;;  %1882 = vmatprep.subr.mxu0 %v9034_v50  ;;  %9041 = vst [vmem:[#allocation69_spill] sm:$0xff] %v6118_v30  ;;  %v9042_v50 = vld [vmem:[#allocation27_spill] sm:$0xff] }
 0x370   : > { %1743 = vmatprep.subr.mxu1 %v6094_v55  ;;  %1883 = vmatpush1.msra.mxu0 %v9035_v41  ;;  %v6122_v41 = vld [vmem:[#allocation8 + $0x5f0] sm:$0xff] }
 0x371   : > { %1744 = vmatpush1.msra.mxu1 %v6098_v63  ;;  %1884 = vmatprep.subr.mxu0 %v9036_v36  ;;  %9043 = vst [vmem:[#allocation70_spill] sm:$0xff] %v6122_v41  ;;  %v9044_v36 = vld [vmem:[#allocation103_spill] sm:$0xff] }
 0x372   : > { %1745 = vmatprep.subr.mxu1 %v6102_v44  ;;  %1885 = vmatpush1.msra.mxu0 %v9037_v15  ;;  %v6126_v15 = vld [vmem:[#allocation8 + $0x5c8] sm:$0xff] }
 0x373   : > { %1746 = vmatpush1.msra.mxu1 %v6106_v13  ;;  %1886 = vmatprep.subr.mxu0 %v9038_v60  ;;  %9045 = vst [vmem:[#allocation71_spill] sm:$0xff] %v6126_v15  ;;  %v9046_v60 = vld [vmem:[#allocation28_spill] sm:$0xff] }
 0x374   : > { %1747 = vmatprep.subr.mxu1 %v6110_v6  ;;  %1887 = vmatpush1.msra.mxu0 %v9039_v9  ;;  %v6130_v9 = vld [vmem:[#allocation8 + $0x5c0] sm:$0xff] }
 0x375   : > { %1748 = vmatpush1.msra.mxu1 %v6114_v58  ;;  %1888 = vmatprep.subr.mxu0 %v9040_v12  ;;  %9047 = vst [vmem:[#allocation72_spill] sm:$0xff] %v6130_v9  ;;  %v9048_v12 = vld [vmem:[#allocation105_spill] sm:$0xff] }
 0x376   : > { %1749 = vmatprep.subr.mxu1 %v6118_v30  ;;  %1889 = vmatpush1.msra.mxu0 %v9042_v50  ;;  %v6134_v30 = vld [vmem:[#allocation8 + $0x598] sm:$0xff] }
 0x377   : > { %1750 = vmatpush2.msra.mxu1 %v6122_v41  ;;  %1890 = vmatprep.subr.mxu0 %v9044_v36  ;;  %9049 = vst [vmem:[#allocation73_spill] sm:$0xff] %v6134_v30  ;;  %v9050_v50 = vld [vmem:[#allocation29_spill] sm:$0xff]  ;;  %v6138_v41 = vld [vmem:[#allocation8 + $0x590] sm:$0xff]  ;;  %v9052_v36 = vld [vmem:[#allocation107_spill] sm:$0xff] }
 0x378   : > { %1751 = vmatprep.subr.mxu1 %v6126_v15  ;;  %1891 = vmatpush2.msra.mxu0 %v9046_v60  ;;  %9051 = vst [vmem:[#allocation74_spill] sm:$0xff] %v6138_v41  ;;  %v6142_v15 = vld [vmem:[#allocation8 + $0x568] sm:$0xff]  ;;  %v9054_v60 = vld [vmem:[#allocation30_spill] sm:$0xff] }
 0x379   : > { %1752 = vmatpush2.msra.mxu1 %v6130_v9  ;;  %1892 = vmatprep.subr.mxu0 %v9048_v12  ;;  %9053 = vst [vmem:[#allocation75_spill] sm:$0xff] %v6142_v15  ;;  %v6146_v9 = vld [vmem:[#allocation8 + $0x560] sm:$0xff]  ;;  %v9056_v12 = vld [vmem:[#allocation109_spill] sm:$0xff] }
 0x37a   : > { %1753 = vmatprep.subr.mxu1 %v6134_v30  ;;  %1893 = vmatpush2.msra.mxu0 %v9050_v50  ;;  %9055 = vst [vmem:[#allocation76_spill] sm:$0xff] %v6146_v9  ;;  %v6150_v30 = vld [vmem:[#allocation8 + $0x538] sm:$0xff]  ;;  %v9058_v50 = vld [vmem:[#allocation31_spill] sm:$0xff] }
 0x37b   : > { %1754 = vmatpush2.msra.mxu1 %v6138_v41  ;;  %1894 = vmatprep.subr.mxu0 %v9052_v36  ;;  %9057 = vst [vmem:[#allocation77_spill] sm:$0xff] %v6150_v30  ;;  %v6154_v41 = vld [vmem:[#allocation8 + $0x530] sm:$0xff]  ;;  %v9060_v36 = vld [vmem:[#allocation111_spill] sm:$0xff] }
 0x37c   : > { %1755 = vmatprep.subr.mxu1 %v6142_v15  ;;  %1895 = vmatpush2.msra.mxu0 %v9054_v60  ;;  %9059 = vst [vmem:[#allocation78_spill] sm:$0xff] %v6154_v41  ;;  %v6158_v15 = vld [vmem:[#allocation8 + $0x508] sm:$0xff]  ;;  %v9062_v60 = vld [vmem:[#allocation32_spill] sm:$0xff] }
 0x37d   : > { %1756 = vmatpush2.msra.mxu1 %v6146_v9  ;;  %1896 = vmatprep.subr.mxu0 %v9056_v12  ;;  %9061 = vst [vmem:[#allocation79_spill] sm:$0xff] %v6158_v15  ;;  %v6162_v9 = vld [vmem:[#allocation8 + $0x500] sm:$0xff]  ;;  %v9064_v12 = vld [vmem:[#allocation113_spill] sm:$0xff] }
 0x37e   : > { %1757 = vmatprep.subr.mxu1 %v6150_v30  ;;  %1897 = vmatpush2.msra.mxu0 %v9058_v50  ;;  %9063 = vst [vmem:[#allocation80_spill] sm:$0xff] %v6162_v9  ;;  %v6166_v30 = vld [vmem:[#allocation8 + $0x4d8] sm:$0xff] }
 0x37f   : > { %1758 = vmatpush2.msra.mxu1 %v6154_v41  ;;  %1898 = vmatprep.subr.mxu0 %v9060_v36  ;;  %9065 = vst [vmem:[#allocation81_spill] sm:$0xff] %v6166_v30  ;;  %v9066_v50 = vld [vmem:[#allocation33_spill] sm:$0xff]  ;;  %v6170_v41 = vld [vmem:[#allocation8 + $0x4d0] sm:$0xff]  ;;  %v9068_v36 = vld [vmem:[#allocation115_spill] sm:$0xff] }
 0x380   : > { %1759 = vmatprep.subr.mxu1 %v6158_v15  ;;  %1899 = vmatpush2.msra.mxu0 %v9062_v60  ;;  %9067 = vst [vmem:[#allocation82_spill] sm:$0xff] %v6170_v41  ;;  %v6174_v15 = vld [vmem:[#allocation8 + $0x4a8] sm:$0xff]  ;;  %v9070_v60 = vld [vmem:[#allocation34_spill] sm:$0xff] }
 0x381   : > { %1760 = vmatpush2.msra.mxu1 %v6162_v9  ;;  %1900 = vmatprep.subr.mxu0 %v9064_v12  ;;  %9069 = vst [vmem:[#allocation83_spill] sm:$0xff] %v6174_v15  ;;  %v6178_v9 = vld [vmem:[#allocation8 + $0x4a0] sm:$0xff]  ;;  %v9072_v12 = vld [vmem:[#allocation117_spill] sm:$0xff] }
 0x382   : > { %1761 = vmatprep.subr.mxu1 %v6166_v30  ;;  %1901 = vmatpush2.msra.mxu0 %v9066_v50  ;;  %9071 = vst [vmem:[#allocation84_spill] sm:$0xff] %v6178_v9  ;;  %v6182_v30 = vld [vmem:[#allocation8 + $0x478] sm:$0xff]  ;;  %v9074_v50 = vld [vmem:[#allocation35_spill] sm:$0xff] }
 0x383   : > { %1762 = vmatpush2.msra.mxu1 %v6170_v41  ;;  %1902 = vmatprep.subr.mxu0 %v9068_v36  ;;  %9073 = vst [vmem:[#allocation86_spill] sm:$0xff] %v6182_v30  ;;  %v6186_v41 = vld [vmem:[#allocation8 + $0x470] sm:$0xff]  ;;  %v9076_v36 = vld [vmem:[#allocation119_spill] sm:$0xff] }
 0x384   : > { %1763 = vmatprep.subr.mxu1 %v6174_v15  ;;  %1903 = vmatpush2.msra.mxu0 %v9070_v60  ;;  %9075 = vst [vmem:[#allocation88_spill] sm:$0xff] %v6186_v41  ;;  %v6190_v15 = vld [vmem:[#allocation8 + $0x448] sm:$0xff]  ;;  %v9078_v60 = vld [vmem:[#allocation36_spill] sm:$0xff] }
 0x385   : > { %1764 = vmatpush2.msra.mxu1 %v6178_v9  ;;  %1904 = vmatprep.subr.mxu0 %v9072_v12  ;;  %9077 = vst [vmem:[#allocation90_spill] sm:$0xff] %v6190_v15  ;;  %v6194_v9 = vld [vmem:[#allocation8 + $0x440] sm:$0xff]  ;;  %v9080_v12 = vld [vmem:[#allocation121_spill] sm:$0xff] }
 0x386   : > { %1765 = vmatprep.subr.mxu1 %v6182_v30  ;;  %1905 = vmatpush2.msra.mxu0 %v9074_v50  ;;  %9079 = vst [vmem:[#allocation92_spill] sm:$0xff] %v6194_v9  ;;  %v6198_v30 = vld [vmem:[#allocation8 + $0x418] sm:$0xff] }
 0x387   : > { %1766 = vmatpush2.msra.mxu1 %v6186_v41  ;;  %1906 = vmatprep.subr.mxu0 %v9076_v36  ;;  %9081 = vst [vmem:[#allocation94_spill] sm:$0xff] %v6198_v30  ;;  %v9082_v50 = vld [vmem:[#allocation37_spill] sm:$0xff]  ;;  %v6202_v41 = vld [vmem:[#allocation8 + $0x410] sm:$0xff]  ;;  %v9084_v36 = vld [vmem:[#allocation123_spill] sm:$0xff] }
 0x388   : > { %1767 = vmatprep.subr.mxu1 %v6190_v15  ;;  %1907 = vmatpush2.msra.mxu0 %v9078_v60  ;;  %9083 = vst [vmem:[#allocation96_spill] sm:$0xff] %v6202_v41  ;;  %v6206_v15 = vld [vmem:[#allocation8 + $0x3e8] sm:$0xff]  ;;  %v9086_v60 = vld [vmem:[#allocation38_spill] sm:$0xff] }
 0x389   : > { %1768 = vmatpush2.msra.mxu1 %v6194_v9  ;;  %1908 = vmatprep.subr.mxu0 %v9080_v12  ;;  %9085 = vst [vmem:[#allocation98_spill] sm:$0xff] %v6206_v15  ;;  %v6210_v9 = vld [vmem:[#allocation8 + $0x3e0] sm:$0xff]  ;;  %v9088_v12 = vld [vmem:[#allocation125_spill] sm:$0xff] }
 0x38a   : > { %1769 = vmatprep.subr.mxu1 %v6198_v30  ;;  %1909 = vmatpush2.msra.mxu0 %v9082_v50  ;;  %9087 = vst [vmem:[#allocation100_spill] sm:$0xff] %v6210_v9  ;;  %v6214_v30 = vld [vmem:[#allocation8 + $0x3b8] sm:$0xff]  ;;  %v9090_v50 = vld [vmem:[#allocation39_spill] sm:$0xff] }
 0x38b   : > { %1770 = vmatpush2.msra.mxu1 %v6202_v41  ;;  %1910 = vmatprep.subr.mxu0 %v9084_v36  ;;  %9089 = vst [vmem:[#allocation102_spill] sm:$0xff] %v6214_v30  ;;  %v6218_v41 = vld [vmem:[#allocation8 + $0x3b0] sm:$0xff]  ;;  %v9092_v36 = vld [vmem:[#allocation127_spill] sm:$0xff] }
 0x38c   : > { %1771 = vmatprep.subr.mxu1 %v6206_v15  ;;  %1911 = vmatpush2.msra.mxu0 %v9086_v60  ;;  %9091 = vst [vmem:[#allocation104_spill] sm:$0xff] %v6218_v41  ;;  %v6222_v15 = vld [vmem:[#allocation8 + $0x388] sm:$0xff]  ;;  %v9094_v60 = vld [vmem:[#allocation40_spill] sm:$0xff] }
 0x38d   : > { %1772 = vmatpush2.msra.mxu1 %v6210_v9  ;;  %1912 = vmatprep.subr.mxu0 %v9088_v12  ;;  %9093 = vst [vmem:[#allocation106_spill] sm:$0xff] %v6222_v15  ;;  %v6226_v9 = vld [vmem:[#allocation8 + $0x380] sm:$0xff]  ;;  %v9096_v12 = vld [vmem:[#allocation129_spill] sm:$0xff] }
 0x38e   : > { %1773 = vmatprep.subr.mxu1 %v6214_v30  ;;  %1913 = vmatpush2.msra.mxu0 %v9090_v50  ;;  %9095 = vst [vmem:[#allocation108_spill] sm:$0xff] %v6226_v9  ;;  %v6230_v30 = vld [vmem:[#allocation8 + $0x358] sm:$0xff]  ;;  %v6234_v50 = vld [vmem:[#allocation8 + $0x350] sm:$0xff] }
 0x38f   : > { %1774 = vmatpush2.msra.mxu1 %v6218_v41  ;;  %1914 = vmatprep.subr.mxu0 %v9092_v36  ;;  %9097 = vst [vmem:[#allocation110_spill] sm:$0xff] %v6230_v30  ;;  %9098 = vst [vmem:[#allocation112_spill] sm:$0xff] %v6234_v50  ;;  %v6238_v36 = vld [vmem:[#allocation8 + $0x328] sm:$0xff] }
 0x390   : > { %1775 = vmatprep.subr.mxu1 %v6222_v15  ;;  %1915 = vmatpush2.msra.mxu0 %v9094_v60  ;;  %9099 = vst [vmem:[#allocation114_spill] sm:$0xff] %v6238_v36  ;;  %v9100_v60 = vld [vmem:[#allocation41_spill] sm:$0xff]  ;;  %v9110_v41 = vld [vmem:[#allocation139_spill] sm:$0xff] }
 0x391   : > { %1776 = vmatpush2.msra.mxu1 %v6226_v9  ;;  %1916 = vmatprep.subr.mxu0 %v9096_v12  ;;  %v6242_v9 = vld [vmem:[#allocation8 + $0x320] sm:$0xff]  ;;  %v9102_v12 = vld [vmem:[#allocation131_spill] sm:$0xff]  ;;  %v9107_v15 = vld [vmem:[#allocation45_spill] sm:$0xff] }
 0x392   : > { %1777 = vmatprep.subr.mxu1 %v6230_v30  ;;  %1917 = vmatpush2.msra.mxu0 %v5816_v42  ;;  %9101 = vst [vmem:[#allocation116_spill] sm:$0xff] %v6242_v9  ;;  %v9103_v42 = vld [vmem:[#allocation42_spill] sm:$0xff]  ;;  %v9104_v30 = vld [vmem:[#allocation133_spill] sm:$0xff] }
 0x393   : > { %1778 = vmatpush2.msra.mxu1 %v6234_v50  ;;  %1918 = vmatprep.subr.mxu0 %v5820_v0  ;;  %v9105_v50 = vld [vmem:[#allocation43_spill] sm:$0xff] }
 0x394   : > { %1779 = vmatprep.subr.mxu1 %v6238_v36  ;;  %1919 = vmatpush2.msra.mxu0 %v9100_v60  ;;  %v9106_v0 = vld [vmem:[#allocation135_spill] sm:$0xff]  ;;  %v9108_v36 = vld [vmem:[#allocation137_spill] sm:$0xff]  ;;  %v9109_v60 = vld [vmem:[#allocation46_spill] sm:$0xff] }
 0x395   : > { %1780 = vmatpush2.msra.mxu1 %v6242_v9  ;;  %1920 = vmatprep.subr.mxu0 %v9102_v12  ;;  %v9111_v9 = vld [vmem:[#allocation47_spill] sm:$0xff]  ;;  %v9112_v12 = vld [vmem:[#allocation48_spill] sm:$0xff] }
 0x396   : > { %1782 = vmatmul.mubr.f32.vlgmr.msra.gmra.mxu1 %v5991_v38  ;;  %1929 = vmatprep.subr.mxu1 %v9103_v42  ;;  %v9113_v38 = vld [vmem:[#allocation50_spill] sm:$0xff]  ;;  %v9114_v42 = vld [vmem:[#allocation52_spill] sm:$0xff] }
 0x397   : > { %1930 = vmatpush1.msra.mxu1 %v9104_v30  ;;  %1921 = vmatpush2.msra.mxu0 %v9105_v50  ;;  %v9115_v30 = vld [vmem:[#allocation53_spill] sm:$0xff]  ;;  %v9116_v50 = vld [vmem:[#allocation54_spill] sm:$0xff] }
 0x398   : > { %1931 = vmatprep.subr.mxu1 %v9106_v0  ;;  %2000 = vmatprep.subr.mxu0 %v9107_v15  ;;  %v9117_v0 = vld [vmem:[#allocation55_spill] sm:$0xff] }
 0x399   : > { %1932 = vmatpush1.msra.mxu1 %v9108_v36  ;;  %v9118_v15 = vld [vmem:[#allocation51_spill] sm:$0xff]  ;;  %v9119_v36 = vld [vmem:[#allocation49_spill] sm:$0xff] }
 0x39a   : > { %1933 = vmatprep.subr.mxu1 %v9109_v60  ;;  %v9120_v60 = vld [vmem:[#allocation56_spill] sm:$0xff] }
 0x39b   : > { %1934 = vmatpush1.msra.mxu1 %v9110_v41  ;;  %v9121_v41 = vld [vmem:[#allocation57_spill] sm:$0xff] }
 0x39c   : > { %1935 = vmatprep.subr.mxu1 %v9111_v9  ;;  %v9122_v9 = vld [vmem:[#allocation58_spill] sm:$0xff] }
 0x39d   : > { %1936 = vmatpush1.msra.mxu1 %v9112_v12  ;;  %v9123_v12 = vld [vmem:[#allocation59_spill] sm:$0xff] }
 0x39e   : > { %1937 = vmatprep.subr.mxu1 %v9113_v38  ;;  %v9124_v38 = vld [vmem:[#allocation60_spill] sm:$0xff] }
 0x39f   : > { %1938 = vmatpush1.msra.mxu1 %v9114_v42  ;;  %v9125_v42 = vld [vmem:[#allocation61_spill] sm:$0xff] }
 0x3a0   : > { %1939 = vmatprep.subr.mxu1 %v9115_v30  ;;  %v9126_v30 = vld [vmem:[#allocation62_spill] sm:$0xff] }
 0x3a1   : > { %1940 = vmatpush1.msra.mxu1 %v9116_v50  ;;  %v9127_v50 = vld [vmem:[#allocation63_spill] sm:$0xff] }
 0x3a2   : > { %1941 = vmatprep.subr.mxu1 %v9117_v0  ;;  %v9128_v0 = vld [vmem:[#allocation64_spill] sm:$0xff] }
 0x3a3   : > { %1942 = vmatpush1.msra.mxu1 %v9118_v15  ;;  %v9129_v15 = vld [vmem:[#allocation65_spill] sm:$0xff] }
 0x3a4   : > { %1943 = vmatprep.subr.mxu1 %v9119_v36  ;;  %v9130_v36 = vld [vmem:[#allocation66_spill] sm:$0xff] }
 0x3a5   : > { %1944 = vmatpush1.msra.mxu1 %v9120_v60  ;;  %v9131_v60 = vld [vmem:[#allocation67_spill] sm:$0xff] }
 0x3a6   : > { %1945 = vmatprep.subr.mxu1 %v9121_v41  ;;  %v9132_v41 = vld [vmem:[#allocation68_spill] sm:$0xff] }
 0x3a7   : > { %1946 = vmatpush1.msra.mxu1 %v9122_v9  ;;  %v6283_v9 = vld [vmem:[#allocation8 + $0x5b8] sm:$0xff] }
 0x3a8   : > { %1947 = vmatprep.subr.mxu1 %v9123_v12  ;;  %v6286_v12 = vld [vmem:[#allocation8 + $0x5b0] sm:$0xff] }
 0x3a9   : > { %1948 = vmatpush1.msra.mxu1 %v9124_v38  ;;  %v6289_v38 = vld [vmem:[#allocation8 + $0x588] sm:$0xff] }
 0x3aa   : > { %1949 = vmatprep.subr.mxu1 %v9125_v42  ;;  %9133 = vst [vmem:[#allocation118_spill] sm:$0xff] %v6289_v38  ;;  %v6310_v42 = vld [vmem:[#allocation8 + $0x4f0] sm:$0xff] }
 0x3ab   : > { %1950 = vmatpush1.msra.mxu1 %v9126_v30  ;;  %9140 = vst [vmem:[#allocation132_spill] sm:$0xff] %v6310_v42  ;;  %v6313_v30 = vld [vmem:[#allocation8 + $0x4c8] sm:$0xff] }
 0x3ac   : > { %1951 = vmatprep.subr.mxu1 %v9127_v50  ;;  %9141 = vst [vmem:[#allocation134_spill] sm:$0xff] %v6313_v30  ;;  %v6316_v50 = vld [vmem:[#allocation8 + $0x4c0] sm:$0xff] }
 0x3ad   : > { %1952 = vmatpush1.msra.mxu1 %v9128_v0  ;;  %9142 = vst [vmem:[#allocation136_spill] sm:$0xff] %v6316_v50  ;;  %v6319_v0 = vld [vmem:[#allocation8 + $0x498] sm:$0xff] }
 0x3ae   : > { %1953 = vmatprep.subr.mxu1 %v9129_v15  ;;  %9143 = vst [vmem:[#allocation138_spill] sm:$0xff] %v6319_v0  ;;  %v6322_v15 = vld [vmem:[#allocation8 + $0x490] sm:$0xff] }
 0x3af   : > { %1954 = vmatpush1.msra.mxu1 %v9130_v36  ;;  %9144 = vst [vmem:[#allocation140_spill] sm:$0xff] %v6322_v15  ;;  %v6325_v36 = vld [vmem:[#allocation8 + $0x468] sm:$0xff] }
 0x3b0   : > { %1955 = vmatprep.subr.mxu1 %v9131_v60  ;;  %9145 = vst [vmem:[#allocation141_spill] sm:$0xff] %v6325_v36  ;;  %v6328_v60 = vld [vmem:[#allocation8 + $0x460] sm:$0xff] }
 0x3b1   : > { %1956 = vmatpush1.msra.mxu1 %v9132_v41  ;;  %9146 = vst [vmem:[#allocation142_spill] sm:$0xff] %v6328_v60  ;;  %v6331_v41 = vld [vmem:[#allocation8 + $0x438] sm:$0xff] }
 0x3b2   : > { %1957 = vmatprep.subr.mxu1 %v5922_v26  ;;  %v6292_v26 = vld [vmem:[#allocation8 + $0x580] sm:$0xff]  ;;  %9147 = vst [vmem:[#allocation143_spill] sm:$0xff] %v6331_v41 }
 0x3b3   : > { %1958 = vmatpush1.msra.mxu1 %v5925_v28  ;;  %9134 = vst [vmem:[#allocation120_spill] sm:$0xff] %v6292_v26  ;;  %v6301_v28 = vld [vmem:[#allocation8 + $0x528] sm:$0xff] }
 0x3b4   : > { %1959 = vmatprep.subr.mxu1 %v5928_v20  ;;  %9137 = vst [vmem:[#allocation126_spill] sm:$0xff] %v6301_v28  ;;  %v6304_v20 = vld [vmem:[#allocation8 + $0x520] sm:$0xff] }
 0x3b5   : > { %1960 = vmatpush1.msra.mxu1 %v5931_v32  ;;  %v6295_v32 = vld [vmem:[#allocation8 + $0x558] sm:$0xff]  ;;  %9138 = vst [vmem:[#allocation128_spill] sm:$0xff] %v6304_v20 }
 0x3b6   : > { %1961 = vmatprep.subr.mxu1 %v5934_v57  ;;  %9135 = vst [vmem:[#allocation122_spill] sm:$0xff] %v6295_v32  ;;  %v6307_v57 = vld [vmem:[#allocation8 + $0x4f8] sm:$0xff] }
 0x3b7   : > { %1962 = vmatpush2.msra.mxu1 %v5937_v29  ;;  %v6298_v29 = vld [vmem:[#allocation8 + $0x550] sm:$0xff]  ;;  %9139 = vst [vmem:[#allocation130_spill] sm:$0xff] %v6307_v57 }
 0x3b8   : > { %1963 = vmatprep.subr.mxu1 %v6283_v9  ;;  %9136 = vst [vmem:[#allocation124_spill] sm:$0xff] %v6298_v29 }
 0x3b9   : > { %1964 = vmatpush2.msra.mxu1 %v6286_v12 }
 0x3ba   : > { %1965 = vmatprep.subr.mxu1 %v6289_v38 }
 0x3bb   : > { %1966 = vmatpush2.msra.mxu1 %v6292_v26 }
 0x3bc   : > { %1967 = vmatprep.subr.mxu1 %v6295_v32 }
 0x3bd   : > { %1968 = vmatpush2.msra.mxu1 %v6298_v29 }
 0x3be   : > { %1969 = vmatprep.subr.mxu1 %v6301_v28 }
 0x3bf   : > { %1970 = vmatpush2.msra.mxu1 %v6304_v20 }
 0x3c0   : > { %1971 = vmatprep.subr.mxu1 %v6307_v57 }
 0x3c1   : > { %1972 = vmatpush2.msra.mxu1 %v6310_v42 }
 0x3c2   : > { %1973 = vmatprep.subr.mxu1 %v6313_v30 }
 0x3c3   : > { %1974 = vmatpush2.msra.mxu1 %v6316_v50  ;;  %v6334_v50 = vld [vmem:[#allocation8 + $0x430] sm:$0xff] }
 0x3c4   : > { %1975 = vmatprep.subr.mxu1 %v6319_v0  ;;  %9148 = vst [vmem:[#allocation144_spill] sm:$0xff] %v6334_v50  ;;  %v6337_v0 = vld [vmem:[#allocation8 + $0x408] sm:$0xff] }
 0x3c5   : > { %1976 = vmatpush2.msra.mxu1 %v6322_v15  ;;  %9149 = vst [vmem:[#allocation145_spill] sm:$0xff] %v6337_v0  ;;  %v6340_v15 = vld [vmem:[#allocation8 + $0x400] sm:$0xff] }
 0x3c6   : > { %1977 = vmatprep.subr.mxu1 %v6325_v36  ;;  %9150 = vst [vmem:[#allocation147_spill] sm:$0xff] %v6340_v15  ;;  %v6343_v36 = vld [vmem:[#allocation8 + $0x3d8] sm:$0xff] }
 0x3c7   : > { %1978 = vmatpush2.msra.mxu1 %v6328_v60  ;;  %9151 = vst [vmem:[#allocation146_spill] sm:$0xff] %v6343_v36  ;;  %v6346_v60 = vld [vmem:[#allocation8 + $0x3d0] sm:$0xff] }
 0x3c8   : > { %1979 = vmatprep.subr.mxu1 %v6331_v41  ;;  %9152 = vst [vmem:[#allocation148_spill] sm:$0xff] %v6346_v60  ;;  %v6349_v41 = vld [vmem:[#allocation8 + $0x3a8] sm:$0xff] }
 0x3c9   : > { %1980 = vmatpush2.msra.mxu1 %v6334_v50  ;;  %9153 = vst [vmem:[#allocation85_spill] sm:$0xff] %v6349_v41  ;;  %v6352_v50 = vld [vmem:[#allocation8 + $0x3a0] sm:$0xff] }
 0x3ca   : > { %1981 = vmatprep.subr.mxu1 %v6337_v0  ;;  %9154 = vst [vmem:[#allocation19_spill] sm:$0xff] %v6352_v50  ;;  %v6355_v0 = vld [vmem:[#allocation8 + $0x378] sm:$0xff] }
 0x3cb   : > { %1982 = vmatpush2.msra.mxu1 %v6340_v15  ;;  %9155 = vst [vmem:[#allocation89_spill] sm:$0xff] %v6355_v0  ;;  %v6358_v15 = vld [vmem:[#allocation8 + $0x370] sm:$0xff] }
 0x3cc   : > { %1983 = vmatprep.subr.mxu1 %v6343_v36  ;;  %9156 = vst [vmem:[#allocation21_spill] sm:$0xff] %v6358_v15  ;;  %v6361_v36 = vld [vmem:[#allocation8 + $0x348] sm:$0xff] }
 0x3cd   : > { %1984 = vmatpush2.msra.mxu1 %v6346_v60  ;;  %9157 = vst [vmem:[#allocation91_spill] sm:$0xff] %v6361_v36  ;;  %v6364_v60 = vld [vmem:[#allocation8 + $0x340] sm:$0xff] }
 0x3ce   : > { %1985 = vmatprep.subr.mxu1 %v6349_v41  ;;  %9158 = vst [vmem:[#allocation22_spill] sm:$0xff] %v6364_v60  ;;  %v6367_v41 = vld [vmem:[#allocation8 + $0x318] sm:$0xff] }
 0x3cf   : > { %1986 = vmatpush2.msra.mxu1 %v6352_v50  ;;  %9159 = vst [vmem:[#allocation93_spill] sm:$0xff] %v6367_v41  ;;  %v6370_v50 = vld [vmem:[#allocation8 + $0x310] sm:$0xff] }
 0x3d0   : > { %1987 = vmatprep.subr.mxu1 %v6355_v0  ;;  %9160 = vst [vmem:[#allocation23_spill] sm:$0xff] %v6370_v50  ;;  %v6373_v0 = vld [vmem:[#allocation8 + $0x2d8] sm:$0xff] }
 0x3d1   : > { %1988 = vmatpush2.msra.mxu1 %v6358_v15  ;;  %9161 = vst [vmem:[#allocation95_spill] sm:$0xff] %v6373_v0 }
 0x3d2   : > { %1989 = vmatprep.subr.mxu1 %v6361_v36 }
 0x3d3   : > { %1990 = vmatpush2.msra.mxu1 %v6364_v60 }
 0x3d4   : > { %1991 = vmatprep.subr.mxu1 %v6367_v41 }
 0x3d5   : > { %1992 = vmatpush2.msra.mxu1 %v6370_v50 }
 0x3d6   : > { %2141 = vmatprep.subr.mxu1 %v6373_v0 }
 0x416   : > { %v1641_v15 = vpop.f32.mrf.mxu1  ;;  %v1712_v28 = vpop.f32.mrf.mxu0 }
 0x417   : > { %v1642_v36 = vadd.f32 %v1641_v15, %v9024_v59  ;;  %v1713_v50 = vadd.f32 %v1712_v28, %v9028_v7 }
 0x418   : > { %v1643_v30 = vpop.f32.mrf.mxu1  ;;  %v1714_v32 = vpop.f32.mrf.mxu0 }
 0x419   : > { %v1644_v42 = vadd.f32 %v1643_v30, %v9025_v5  ;;  %v1792_v57 = vrot.slane %v1642_v36, 6  ;;  %v1715_v0 = vadd.f32 %v1714_v32, %v9029_v10  ;;  %v1794_v38 = vrot.slane %v1713_v50, 6 }
 0x41b   : > { %v1793_v60 = vrot.slane %v1644_v42, 6  ;;  %v1800_v20 = vadd.f32 %v1792_v57, %v9026_v52  ;;  %v1795_v15 = vrot.slane %v1715_v0, 6  ;;  %v1802_v30 = vadd.f32 %v1794_v38, %v9030_v27 }
 0x41d   : > { %v1801_v41 = vadd.f32 %v1793_v60, %v9027_v11  ;;  %v3486_v29 = vmul.f32 -1.442695, %v1800_v20  ;;  %v1803_v42 = vadd.f32 %v1795_v15, %v9031_v35  ;;  %v3488_v36 = vmul.f32 -1.442695, %v1802_v30 }
 0x41f   : > { %v3487_v26 = vmul.f32 -1.442695, %v1801_v41  ;;  %3656 = vpow2.f32 %v3486_v29  ;;  %v3489_v57 = vmul.f32 -1.442695, %v1803_v42 }
 0x421   : > { %3658 = vpow2.f32 %v3487_v26 }
 0x422   : > { %3660 = vpow2.f32 %v3488_v36 }
 0x423   : > { %3662 = vpow2.f32 %v3489_v57 }
 0x42c   : > { %v3657_v52 = vpop.eup %3656 }
 0x42d   : > { %v1816_v20 = vadd.f32 1.0, %v3657_v52 }
 0x42e   : > { %v3659_v60 = vpop.eup %3658 }
 0x42f   : > { %v1817_v11 = vadd.f32 1.0, %v3659_v60  ;;  %3664 = vrcp.f32 %v1816_v20  ;;  %v3661_v29 = vpop.eup %3660 }
 0x430   : > { %v3663_v28 = vpop.eup %3662  ;;  %v1818_v50 = vadd.f32 1.0, %v3661_v29 }
 0x431   : > { %3666 = vrcp.f32 %v1817_v11  ;;  %v1819_v38 = vadd.f32 1.0, %v3663_v28  ;;  %v1844_v28 = vrot.slane %v5985_v16, 7 }
 0x432   : > { %3668 = vrcp.f32 %v1818_v50  ;;  %v1845_v50 = vrot.slane %v5987_v24, 7 }
 0x433   : > { %3670 = vrcp.f32 %v1819_v38 }
 0x43c   : > { %v3665_v30 = vpop.eup %3664 }
 0x43e   : > { %v3667_v52 = vpop.eup %3666 }
 0x43f   : > { %v3669_v20 = vpop.eup %3668 }
 0x440   : > { %v3671_v29 = vpop.eup %3670 }
 0x456   : > { %v1783_v32 = vpop.f32.mrf.mxu1 }
 0x457   : > { %v1784_v26 = vadd.f32 %v1783_v32, %v5577_v49  ;;  %v1840_v32 = vsub.f32 1.0, %v3669_v20 }
 0x458   : > { %v1785_v0 = vpop.f32.mrf.mxu1 }
 0x459   : > { %v1830_v41 = vrot.slane %v1784_v26, 6  ;;  %v1786_v15 = vadd.f32 %v1785_v0, %v5579_v56  ;;  %v1841_v0 = vsub.f32 1.0, %v3671_v29 }
 0x45b   : > { %v1834_v42 = vmul.f32 %v3665_v30, %v1830_v41  ;;  %v1831_v36 = vrot.slane %v1786_v15, 6  ;;  %v1848_v15 = vmul.f32 %v3669_v20, %v1844_v28  ;;  %v6536_v28 = vld [vmem:[#allocation8 + $0x5d8] sm:$0xff] }
 0x45d   : > { %v1836_v57 = vadd.f32 %v1834_v42, %v5583_v61  ;;  %v1835_v11 = vmul.f32 %v3667_v52, %v1831_v36  ;;  %v1849_v42 = vmul.f32 %v3671_v29, %v1845_v50  ;;  %v3268_v52 = vsel %vm3267_vm1, %v5593_v37, %v5985_v16  ;;  %v6416_v37 = vld [vmem:[#allocation8 + $0x2a8] sm:$0xff]  ;;  %v6420_v16 = vld [vmem:[#allocation8 + $0x2a0] sm:$0xff]  ;;  %v9167_v50 = vld [vmem:[#allocation73_spill] sm:$0xff] }
 0x45f   : > { %3672 = vtanh.f32 %v1836_v57  ;;  %v1837_v60 = vadd.f32 %v1835_v11, %v5585_v62 }
 0x461   : > { %3674 = vtanh.f32 %v1837_v60  ;;  %v3269_v60 = vsel %vm3267_vm1, %v5591_v1, %v5987_v24  ;;  %v6412_v1 = vld [vmem:[#allocation8 + $0x2d0] sm:$0xff]  ;;  %v6424_v24 = vld [vmem:[#allocation8 + $0x278] sm:$0xff] }
 0x46c   : > { %v3673_v26 = vpop.eup %3672 }
 0x46d   : > { %v1842_v41 = vmul.f32 %v3673_v26, %v1840_v32  ;;  %v6540_v26 = vld [vmem:[#allocation8 + $0x5d0] sm:$0xff] }
 0x46e   : > { %v3675_v38 = vpop.eup %3674 }
 0x46f   : > { %v1843_v30 = vmul.f32 %v3675_v38, %v1841_v0  ;;  %v6390_v36 = vadd.f32 %v1848_v15, %v1842_v41  ;;  %v6544_v0 = vld [vmem:[#allocation8 + $0x5a8] sm:$0xff]  ;;  %v6548_v41 = vld [vmem:[#allocation8 + $0x5a0] sm:$0xff]  ;;  %v6552_v38 = vld [vmem:[#allocation8 + $0x578] sm:$0xff] }
 0x470   : > { %9166 = vst [vmem:[#allocation24_spill] sm:$0xff] %v6544_v0  ;;  %9168 = vst [vmem:[#allocation97_spill] sm:$0xff] %v6548_v41  ;;  %v9169_v15 = vld [vmem:[#allocation74_spill] sm:$0xff] }
 0x471   : > { %v6394_v57 = vadd.f32 %v1849_v42, %v1843_v30  ;;  %v6397_v11 = vsel %vm3270_vm2, %v3268_v52, %v6390_v36  ;;  %v6406_v29 = vrot.slane %v6390_v36, 2  ;;  %9170 = vst [vmem:[#allocation25_spill] sm:$0xff] %v6552_v38  ;;  %v9171_v30 = vld [vmem:[#allocation75_spill] sm:$0xff]  ;;  %v6556_v42 = vld [vmem:[#allocation8 + $0x570] sm:$0xff] }
 0x472   : > { %9172 = vst [vmem:[#allocation99_spill] sm:$0xff] %v6556_v42  ;;  %v9173_v52 = vld [vmem:[#allocation76_spill] sm:$0xff] }
 0x473   : > { %v1855_v32 = vrot.slane %v6394_v57, 2  ;;  %v6403_v20 = vsel %vm3270_vm2, %v3269_v60, %v6394_v57  ;;  %v6560_v60 = vld [vmem:[#allocation8 + $0x548] sm:$0xff] }
 0x474   : > { %9174 = vst [vmem:[#allocation26_spill] sm:$0xff] %v6560_v60 }
 0x475   : > { %1922 = vmatprep.mubr.f32.mxu0 %v1855_v32  ;;  %1993 = vmatprep.mubr.f32.mxu1 %v1855_v32 }
 0x476   : > { %1923 = vmatmul.mubr.f32.vlgmr.msra.gmra.mxu0 %v6406_v29  ;;  %1994 = vmatmul.mubr.f32.vlgmr.msra.gmra.mxu1 %v6406_v29 }
 0x477   : > { %2001 = vmatpush1.msra.mxu0 %v5995_v3  ;;  %2064 = vmatprep.mubr.f32.mxu0 %v1855_v32  ;;  %v6428_v3 = vld [vmem:[#allocation8 + $0x270] sm:$0xff]  ;;  %v9175_v32 = vld [vmem:[#allocation77_spill] sm:$0xff] }
 0x478   : > { %2002 = vmatprep.subr.mxu0 %v5998_v14  ;;  %2142 = vmatpush1.msra.mxu1 %v6412_v1  ;;  %v6432_v14 = vld [vmem:[#allocation8 + $0x248] sm:$0xff] }
 0x479   : > { %2003 = vmatpush1.msra.mxu0 %v6002_v31  ;;  %2143 = vmatprep.subr.mxu1 %v6416_v37  ;;  %v6436_v31 = vld [vmem:[#allocation8 + $0x240] sm:$0xff] }
 0x47a   : > { %2004 = vmatprep.subr.mxu0 %v6006_v39  ;;  %2144 = vmatpush1.msra.mxu1 %v6420_v16  ;;  %v6440_v39 = vld [vmem:[#allocation8 + $0x218] sm:$0xff] }
 0x47b   : > { %2005 = vmatpush1.msra.mxu0 %v6010_v45  ;;  %2145 = vmatprep.subr.mxu1 %v6424_v24  ;;  %v6444_v45 = vld [vmem:[#allocation8 + $0x210] sm:$0xff] }
 0x47c   : > { %2006 = vmatprep.subr.mxu0 %v6014_v43  ;;  %2146 = vmatpush1.msra.mxu1 %v6428_v3  ;;  %v6448_v43 = vld [vmem:[#allocation8 + $0x1e8] sm:$0xff] }
 0x47d   : > { %2007 = vmatpush1.msra.mxu0 %v6018_v19  ;;  %2147 = vmatprep.subr.mxu1 %v6432_v14  ;;  %v6452_v19 = vld [vmem:[#allocation8 + $0x1e0] sm:$0xff] }
 0x47e   : > { %2008 = vmatprep.subr.mxu0 %v6022_v17  ;;  %2148 = vmatpush1.msra.mxu1 %v6436_v31  ;;  %v6456_v17 = vld [vmem:[#allocation8 + $0x1b8] sm:$0xff] }
 0x47f   : > { %2009 = vmatpush1.msra.mxu0 %v6026_v25  ;;  %2149 = vmatprep.subr.mxu1 %v6440_v39  ;;  %v6460_v25 = vld [vmem:[#allocation8 + $0x1b0] sm:$0xff] }
 0x480   : > { %2010 = vmatprep.subr.mxu0 %v6030_v23  ;;  %2150 = vmatpush1.msra.mxu1 %v6444_v45  ;;  %v6464_v23 = vld [vmem:[#allocation8 + $0x188] sm:$0xff] }
 0x481   : > { %2011 = vmatpush1.msra.mxu0 %v6034_v54  ;;  %2151 = vmatprep.subr.mxu1 %v6448_v43  ;;  %v6468_v54 = vld [vmem:[#allocation8 + $0x180] sm:$0xff] }
 0x482   : > { %2012 = vmatprep.subr.mxu0 %v6038_v22  ;;  %2152 = vmatpush1.msra.mxu1 %v6452_v19  ;;  %v6472_v22 = vld [vmem:[#allocation8 + $0x158] sm:$0xff] }
 0x483   : > { %2013 = vmatpush1.msra.mxu0 %v6042_v8  ;;  %2153 = vmatprep.subr.mxu1 %v6456_v17  ;;  %v6476_v8 = vld [vmem:[#allocation8 + $0x150] sm:$0xff] }
 0x484   : > { %2014 = vmatprep.subr.mxu0 %v6046_v2  ;;  %2154 = vmatpush1.msra.mxu1 %v6460_v25  ;;  %v6480_v2 = vld [vmem:[#allocation8 + $0x128] sm:$0xff] }
 0x485   : > { %2015 = vmatpush1.msra.mxu0 %v6050_v18  ;;  %2155 = vmatprep.subr.mxu1 %v6464_v23  ;;  %v6484_v18 = vld [vmem:[#allocation8 + $0x120] sm:$0xff] }
 0x486   : > { %2016 = vmatprep.subr.mxu0 %v6054_v48  ;;  %2156 = vmatpush1.msra.mxu1 %v6468_v54  ;;  %v6488_v48 = vld [vmem:[#allocation8 + $0xf8] sm:$0xff] }
 0x487   : > { %2017 = vmatpush1.msra.mxu0 %v6058_v33  ;;  %2157 = vmatprep.subr.mxu1 %v6472_v22  ;;  %v6492_v33 = vld [vmem:[#allocation8 + $0xf0] sm:$0xff] }
 0x488   : > { %2018 = vmatprep.subr.mxu0 %v6062_v46  ;;  %2158 = vmatpush1.msra.mxu1 %v6476_v8  ;;  %v6496_v46 = vld [vmem:[#allocation8 + $0xc8] sm:$0xff] }
 0x489   : > { %2019 = vmatpush1.msra.mxu0 %v6066_v4  ;;  %2159 = vmatprep.subr.mxu1 %v6480_v2  ;;  %v6500_v4 = vld [vmem:[#allocation8 + $0xc0] sm:$0xff] }
 0x48a   : > { %2020 = vmatprep.subr.mxu0 %v6070_v53  ;;  %2160 = vmatpush1.msra.mxu1 %v6484_v18  ;;  %v6504_v53 = vld [vmem:[#allocation8 + $0x98] sm:$0xff] }
 0x48b   : > { %2021 = vmatpush1.msra.mxu0 %v6074_v40  ;;  %2161 = vmatprep.subr.mxu1 %v6488_v48  ;;  %v6508_v40 = vld [vmem:[#allocation8 + $0x90] sm:$0xff] }
 0x48c   : > { %2022 = vmatprep.subr.mxu0 %v6078_v34  ;;  %2162 = vmatpush1.msra.mxu1 %v6492_v33  ;;  %v6512_v34 = vld [vmem:[#allocation8 + $0x68] sm:$0xff] }
 0x48d   : > { %2023 = vmatpush1.msra.mxu0 %v6082_v21  ;;  %2163 = vmatprep.subr.mxu1 %v6496_v46  ;;  %v6516_v21 = vld [vmem:[#allocation8 + $0x60] sm:$0xff] }
 0x48e   : > { %2024 = vmatprep.subr.mxu0 %v6086_v47  ;;  %2164 = vmatpush1.msra.mxu1 %v6500_v4  ;;  %v6520_v47 = vld [vmem:[#allocation8 + $0x38] sm:$0xff] }
 0x48f   : > { %2025 = vmatpush1.msra.mxu0 %v6090_v51  ;;  %2165 = vmatprep.subr.mxu1 %v6504_v53  ;;  %v6524_v51 = vld [vmem:[#allocation8 + $0x30] sm:$0xff] }
 0x490   : > { %2026 = vmatprep.subr.mxu0 %v6094_v55  ;;  %2166 = vmatpush1.msra.mxu1 %v6508_v40  ;;  %v6528_v55 = vld [vmem:[#allocation8 + $0x8] sm:$0xff] }
 0x491   : > { %2027 = vmatpush1.msra.mxu0 %v6098_v63  ;;  %2167 = vmatprep.subr.mxu1 %v6512_v34  ;;  %v9162_v63 = vld [vmem:[#allocation69_spill] sm:$0xff] }
 0x492   : > { %2028 = vmatprep.subr.mxu0 %v6102_v44  ;;  %2168 = vmatpush1.msra.mxu1 %v6516_v21  ;;  %v6532_v44 = vld [vmem:[#allocation8] sm:$0xff] }
 0x493   : > { %2029 = vmatpush1.msra.mxu0 %v6106_v13  ;;  %2169 = vmatprep.subr.mxu1 %v6520_v47  ;;  %v9163_v13 = vld [vmem:[#allocation70_spill] sm:$0xff] }
 0x494   : > { %2030 = vmatprep.subr.mxu0 %v6110_v6  ;;  %2170 = vmatpush1.msra.mxu1 %v6524_v51  ;;  %v9164_v6 = vld [vmem:[#allocation71_spill] sm:$0xff] }
 0x495   : > { %2031 = vmatpush1.msra.mxu0 %v6114_v58  ;;  %2171 = vmatprep.subr.mxu1 %v6528_v55  ;;  %v9165_v58 = vld [vmem:[#allocation72_spill] sm:$0xff] }
 0x496   : > { %2032 = vmatprep.subr.mxu0 %v9162_v63  ;;  %2172 = vmatpush1.msra.mxu1 %v6532_v44  ;;  %v6564_v63 = vld [vmem:[#allocation8 + $0x540] sm:$0xff] }
 0x497   : > { %2033 = vmatpush2.msra.mxu0 %v9163_v13  ;;  %2173 = vmatprep.subr.mxu1 %v6536_v28  ;;  %9176 = vst [vmem:[#allocation101_spill] sm:$0xff] %v6564_v63  ;;  %v9177_v13 = vld [vmem:[#allocation78_spill] sm:$0xff] }
 0x498   : > { %2034 = vmatprep.subr.mxu0 %v9164_v6  ;;  %2174 = vmatpush2.msra.mxu1 %v6540_v26  ;;  %v6568_v6 = vld [vmem:[#allocation8 + $0x518] sm:$0xff] }
 0x499   : > { %2035 = vmatpush2.msra.mxu0 %v9165_v58  ;;  %2175 = vmatprep.subr.mxu1 %v6544_v0  ;;  %9178 = vst [vmem:[#allocation27_spill] sm:$0xff] %v6568_v6  ;;  %v9179_v58 = vld [vmem:[#allocation79_spill] sm:$0xff] }
 0x49a   : > { %2036 = vmatprep.subr.mxu0 %v9167_v50  ;;  %2176 = vmatpush2.msra.mxu1 %v6548_v41  ;;  %v6572_v50 = vld [vmem:[#allocation8 + $0x510] sm:$0xff] }
 0x49b   : > { %2037 = vmatpush2.msra.mxu0 %v9169_v15  ;;  %2177 = vmatprep.subr.mxu1 %v6552_v38  ;;  %9180 = vst [vmem:[#allocation103_spill] sm:$0xff] %v6572_v50  ;;  %v9181_v15 = vld [vmem:[#allocation80_spill] sm:$0xff] }
 0x49c   : > { %2038 = vmatprep.subr.mxu0 %v9171_v30  ;;  %2178 = vmatpush2.msra.mxu1 %v6556_v42  ;;  %v6576_v30 = vld [vmem:[#allocation8 + $0x4e8] sm:$0xff] }
 0x49d   : > { %2039 = vmatpush2.msra.mxu0 %v9173_v52  ;;  %2179 = vmatprep.subr.mxu1 %v6560_v60  ;;  %9182 = vst [vmem:[#allocation28_spill] sm:$0xff] %v6576_v30  ;;  %v9183_v52 = vld [vmem:[#allocation81_spill] sm:$0xff]  ;;  %v9288_v60 = vld [vmem:[#allocation87_spill] sm:$0xff] }
 0x49e   : > { %2040 = vmatprep.subr.mxu0 %v9175_v32  ;;  %2180 = vmatpush2.msra.mxu1 %v6564_v63  ;;  %v6580_v32 = vld [vmem:[#allocation8 + $0x4e0] sm:$0xff] }
 0x49f   : > { %2041 = vmatpush2.msra.mxu0 %v9177_v13  ;;  %2181 = vmatprep.subr.mxu1 %v6568_v6  ;;  %9184 = vst [vmem:[#allocation105_spill] sm:$0xff] %v6580_v32  ;;  %v9185_v13 = vld [vmem:[#allocation82_spill] sm:$0xff]  ;;  %v6584_v6 = vld [vmem:[#allocation8 + $0x4b8] sm:$0xff] }
 0x4a0   : > { %2042 = vmatprep.subr.mxu0 %v9179_v58  ;;  %2182 = vmatpush2.msra.mxu1 %v6572_v50  ;;  %9186 = vst [vmem:[#allocation29_spill] sm:$0xff] %v6584_v6  ;;  %v9187_v58 = vld [vmem:[#allocation83_spill] sm:$0xff]  ;;  %v6588_v50 = vld [vmem:[#allocation8 + $0x4b0] sm:$0xff] }
 0x4a1   : > { %2043 = vmatpush2.msra.mxu0 %v9181_v15  ;;  %2183 = vmatprep.subr.mxu1 %v6576_v30  ;;  %9188 = vst [vmem:[#allocation107_spill] sm:$0xff] %v6588_v50  ;;  %v9189_v15 = vld [vmem:[#allocation84_spill] sm:$0xff]  ;;  %v6592_v30 = vld [vmem:[#allocation8 + $0x488] sm:$0xff] }
 0x4a2   : > { %2044 = vmatprep.subr.mxu0 %v9183_v52  ;;  %2184 = vmatpush2.msra.mxu1 %v6580_v32  ;;  %9190 = vst [vmem:[#allocation30_spill] sm:$0xff] %v6592_v30  ;;  %v9191_v52 = vld [vmem:[#allocation86_spill] sm:$0xff] }
 0x4a3   : > { %2045 = vmatpush2.msra.mxu0 %v9185_v13  ;;  %2185 = vmatprep.subr.mxu1 %v6584_v6  ;;  %v6596_v32 = vld [vmem:[#allocation8 + $0x480] sm:$0xff]  ;;  %v9193_v13 = vld [vmem:[#allocation88_spill] sm:$0xff]  ;;  %v6600_v6 = vld [vmem:[#allocation8 + $0x458] sm:$0xff] }
 0x4a4   : > { %2046 = vmatprep.subr.mxu0 %v9187_v58  ;;  %2186 = vmatpush2.msra.mxu1 %v6588_v50  ;;  %9192 = vst [vmem:[#allocation109_spill] sm:$0xff] %v6596_v32  ;;  %9194 = vst [vmem:[#allocation31_spill] sm:$0xff] %v6600_v6  ;;  %v9195_v58 = vld [vmem:[#allocation90_spill] sm:$0xff]  ;;  %v6604_v50 = vld [vmem:[#allocation8 + $0x450] sm:$0xff] }
 0x4a5   : > { %2047 = vmatpush2.msra.mxu0 %v9189_v15  ;;  %2187 = vmatprep.subr.mxu1 %v6592_v30  ;;  %9196 = vst [vmem:[#allocation111_spill] sm:$0xff] %v6604_v50  ;;  %v9197_v15 = vld [vmem:[#allocation92_spill] sm:$0xff]  ;;  %v6608_v30 = vld [vmem:[#allocation8 + $0x428] sm:$0xff] }
 0x4a6   : > { %2048 = vmatprep.subr.mxu0 %v9191_v52  ;;  %2188 = vmatpush2.msra.mxu1 %v6596_v32  ;;  %9198 = vst [vmem:[#allocation32_spill] sm:$0xff] %v6608_v30  ;;  %v9199_v52 = vld [vmem:[#allocation94_spill] sm:$0xff] }
 0x4a7   : > { %2049 = vmatpush2.msra.mxu0 %v9193_v13  ;;  %2189 = vmatprep.subr.mxu1 %v6600_v6  ;;  %v6612_v32 = vld [vmem:[#allocation8 + $0x420] sm:$0xff]  ;;  %v9201_v13 = vld [vmem:[#allocation96_spill] sm:$0xff]  ;;  %v6616_v6 = vld [vmem:[#allocation8 + $0x3f8] sm:$0xff] }
 0x4a8   : > { %2050 = vmatprep.subr.mxu0 %v9195_v58  ;;  %2190 = vmatpush2.msra.mxu1 %v6604_v50  ;;  %9200 = vst [vmem:[#allocation113_spill] sm:$0xff] %v6612_v32  ;;  %9202 = vst [vmem:[#allocation33_spill] sm:$0xff] %v6616_v6  ;;  %v9203_v58 = vld [vmem:[#allocation98_spill] sm:$0xff]  ;;  %v6620_v50 = vld [vmem:[#allocation8 + $0x3f0] sm:$0xff] }
 0x4a9   : > { %2051 = vmatpush2.msra.mxu0 %v9197_v15  ;;  %2191 = vmatprep.subr.mxu1 %v6608_v30  ;;  %9204 = vst [vmem:[#allocation115_spill] sm:$0xff] %v6620_v50  ;;  %v9205_v15 = vld [vmem:[#allocation100_spill] sm:$0xff]  ;;  %v6624_v30 = vld [vmem:[#allocation8 + $0x3c8] sm:$0xff] }
 0x4aa   : > { %2052 = vmatprep.subr.mxu0 %v9199_v52  ;;  %2192 = vmatpush2.msra.mxu1 %v6612_v32  ;;  %9206 = vst [vmem:[#allocation34_spill] sm:$0xff] %v6624_v30  ;;  %v9207_v52 = vld [vmem:[#allocation102_spill] sm:$0xff] }
 0x4ab   : > { %2053 = vmatpush2.msra.mxu0 %v9201_v13  ;;  %2193 = vmatprep.subr.mxu1 %v6616_v6  ;;  %v6628_v32 = vld [vmem:[#allocation8 + $0x3c0] sm:$0xff]  ;;  %v9209_v13 = vld [vmem:[#allocation104_spill] sm:$0xff]  ;;  %v6632_v6 = vld [vmem:[#allocation8 + $0x398] sm:$0xff] }
 0x4ac   : > { %2054 = vmatprep.subr.mxu0 %v9203_v58  ;;  %2194 = vmatpush2.msra.mxu1 %v6620_v50  ;;  %9208 = vst [vmem:[#allocation117_spill] sm:$0xff] %v6628_v32  ;;  %9210 = vst [vmem:[#allocation35_spill] sm:$0xff] %v6632_v6  ;;  %v9211_v58 = vld [vmem:[#allocation106_spill] sm:$0xff]  ;;  %v6636_v50 = vld [vmem:[#allocation8 + $0x390] sm:$0xff] }
 0x4ad   : > { %2055 = vmatpush2.msra.mxu0 %v9205_v15  ;;  %2195 = vmatprep.subr.mxu1 %v6624_v30  ;;  %9212 = vst [vmem:[#allocation119_spill] sm:$0xff] %v6636_v50  ;;  %v9213_v15 = vld [vmem:[#allocation108_spill] sm:$0xff]  ;;  %v6640_v30 = vld [vmem:[#allocation8 + $0x368] sm:$0xff] }
 0x4ae   : > { %2056 = vmatprep.subr.mxu0 %v9207_v52  ;;  %2196 = vmatpush2.msra.mxu1 %v6628_v32  ;;  %9214 = vst [vmem:[#allocation36_spill] sm:$0xff] %v6640_v30  ;;  %v9215_v52 = vld [vmem:[#allocation110_spill] sm:$0xff] }
 0x4af   : > { %2057 = vmatpush2.msra.mxu0 %v9209_v13  ;;  %2197 = vmatprep.subr.mxu1 %v6632_v6  ;;  %v6644_v32 = vld [vmem:[#allocation8 + $0x360] sm:$0xff]  ;;  %v9217_v13 = vld [vmem:[#allocation112_spill] sm:$0xff]  ;;  %v6648_v6 = vld [vmem:[#allocation8 + $0x338] sm:$0xff] }
 0x4b0   : > { %2058 = vmatprep.subr.mxu0 %v9211_v58  ;;  %2198 = vmatpush2.msra.mxu1 %v6636_v50  ;;  %9216 = vst [vmem:[#allocation121_spill] sm:$0xff] %v6644_v32  ;;  %9218 = vst [vmem:[#allocation37_spill] sm:$0xff] %v6648_v6  ;;  %v9219_v58 = vld [vmem:[#allocation114_spill] sm:$0xff]  ;;  %v6652_v50 = vld [vmem:[#allocation8 + $0x330] sm:$0xff] }
 0x4b1   : > { %2059 = vmatpush2.msra.mxu0 %v9213_v15  ;;  %2199 = vmatprep.subr.mxu1 %v6640_v30  ;;  %9220 = vst [vmem:[#allocation123_spill] sm:$0xff] %v6652_v50  ;;  %v9221_v15 = vld [vmem:[#allocation116_spill] sm:$0xff]  ;;  %v6656_v30 = vld [vmem:[#allocation8 + $0x308] sm:$0xff] }
 0x4b2   : > { %2060 = vmatprep.subr.mxu0 %v9215_v52  ;;  %2200 = vmatpush2.msra.mxu1 %v6644_v32  ;;  %9222 = vst [vmem:[#allocation38_spill] sm:$0xff] %v6656_v30  ;;  %v6660_v52 = vld [vmem:[#allocation8 + $0x2e8] sm:$0xff]  ;;  %v9266_v32 = vld [vmem:[#allocation132_spill] sm:$0xff] }
 0x4b3   : > { %2061 = vmatpush2.msra.mxu0 %v9217_v13  ;;  %2201 = vmatprep.subr.mxu1 %v6648_v6  ;;  %9223 = vst [vmem:[#allocation125_spill] sm:$0xff] %v6660_v52  ;;  %v6663_v13 = vld [vmem:[#allocation8 + $0x2e0] sm:$0xff]  ;;  %v9264_v6 = vld [vmem:[#allocation128_spill] sm:$0xff] }
 0x4b4   : > { %2062 = vmatprep.subr.mxu0 %v9219_v58  ;;  %2202 = vmatpush2.msra.mxu1 %v6652_v50  ;;  %9224 = vst [vmem:[#allocation39_spill] sm:$0xff] %v6663_v13  ;;  %v6666_v58 = vld [vmem:[#allocation8 + $0x300] sm:$0xff]  ;;  %v6669_v50 = vld [vmem:[#allocation8 + $0x2b8] sm:$0xff] }
 0x4b5   : > { %2063 = vmatpush2.msra.mxu0 %v9221_v15  ;;  %2203 = vmatprep.subr.mxu1 %v6656_v30  ;;  %9225 = vst [vmem:[#allocation127_spill] sm:$0xff] %v6666_v58  ;;  %9226 = vst [vmem:[#allocation40_spill] sm:$0xff] %v6669_v50  ;;  %v6672_v15 = vld [vmem:[#allocation8 + $0x2f8] sm:$0xff]  ;;  %v9262_v30 = vld [vmem:[#allocation124_spill] sm:$0xff] }
 0x4b6   : > { %2065 = vmatmul.mubr.f32.vlgmr.msra.gmra.mxu0 %v6406_v29  ;;  %2212 = vmatprep.subr.mxu0 %v6660_v52  ;;  %9227 = vst [vmem:[#allocation129_spill] sm:$0xff] %v6672_v15  ;;  %v6675_v29 = vld [vmem:[#allocation8 + $0x2b0] sm:$0xff]  ;;  %v6678_v52 = vld [vmem:[#allocation8 + $0x288] sm:$0xff] }
 0x4b7   : > { %2213 = vmatpush1.msra.mxu0 %v6663_v13  ;;  %2204 = vmatpush2.msra.mxu1 %v6666_v58  ;;  %9228 = vst [vmem:[#allocation41_spill] sm:$0xff] %v6675_v29  ;;  %9229 = vst [vmem:[#allocation131_spill] sm:$0xff] %v6678_v52  ;;  %v6681_v13 = vld [vmem:[#allocation8 + $0x280] sm:$0xff]  ;;  %v6684_v58 = vld [vmem:[#allocation8 + $0x258] sm:$0xff] }
 0x4b8   : > { %2214 = vmatprep.subr.mxu0 %v6669_v50  ;;  %2283 = vmatprep.subr.mxu1 %v6672_v15  ;;  %9230 = vst [vmem:[#allocation42_spill] sm:$0xff] %v6681_v13  ;;  %9231 = vst [vmem:[#allocation133_spill] sm:$0xff] %v6684_v58  ;;  %v6687_v50 = vld [vmem:[#allocation8 + $0x250] sm:$0xff]  ;;  %v6690_v15 = vld [vmem:[#allocation8 + $0x228] sm:$0xff] }
 0x4b9   : > { %2215 = vmatpush1.msra.mxu0 %v6675_v29  ;;  %9232 = vst [vmem:[#allocation43_spill] sm:$0xff] %v6687_v50  ;;  %9233 = vst [vmem:[#allocation135_spill] sm:$0xff] %v6690_v15  ;;  %v6693_v29 = vld [vmem:[#allocation8 + $0x220] sm:$0xff] }
 0x4ba   : > { %2216 = vmatprep.subr.mxu0 %v6678_v52  ;;  %9234 = vst [vmem:[#allocation45_spill] sm:$0xff] %v6693_v29  ;;  %v6696_v52 = vld [vmem:[#allocation8 + $0x1f8] sm:$0xff] }
 0x4bb   : > { %2217 = vmatpush1.msra.mxu0 %v6681_v13  ;;  %9235 = vst [vmem:[#allocation137_spill] sm:$0xff] %v6696_v52  ;;  %v6699_v13 = vld [vmem:[#allocation8 + $0x1f0] sm:$0xff] }
 0x4bc   : > { %2218 = vmatprep.subr.mxu0 %v6684_v58  ;;  %9236 = vst [vmem:[#allocation46_spill] sm:$0xff] %v6699_v13  ;;  %v6702_v58 = vld [vmem:[#allocation8 + $0x1c8] sm:$0xff] }
 0x4bd   : > { %2219 = vmatpush1.msra.mxu0 %v6687_v50  ;;  %9237 = vst [vmem:[#allocation139_spill] sm:$0xff] %v6702_v58  ;;  %v6705_v50 = vld [vmem:[#allocation8 + $0x1c0] sm:$0xff] }
 0x4be   : > { %2220 = vmatprep.subr.mxu0 %v6690_v15  ;;  %9238 = vst [vmem:[#allocation47_spill] sm:$0xff] %v6705_v50  ;;  %v6708_v15 = vld [vmem:[#allocation8 + $0x198] sm:$0xff] }
 0x4bf   : > { %2221 = vmatpush1.msra.mxu0 %v6693_v29  ;;  %9239 = vst [vmem:[#allocation48_spill] sm:$0xff] %v6708_v15  ;;  %v6711_v29 = vld [vmem:[#allocation8 + $0x190] sm:$0xff] }
 0x4c0   : > { %2222 = vmatprep.subr.mxu0 %v6696_v52  ;;  %9240 = vst [vmem:[#allocation50_spill] sm:$0xff] %v6711_v29  ;;  %v6714_v52 = vld [vmem:[#allocation8 + $0x168] sm:$0xff] }
 0x4c1   : > { %2223 = vmatpush1.msra.mxu0 %v6699_v13  ;;  %9241 = vst [vmem:[#allocation52_spill] sm:$0xff] %v6714_v52  ;;  %v6717_v13 = vld [vmem:[#allocation8 + $0x160] sm:$0xff] }
 0x4c2   : > { %2224 = vmatprep.subr.mxu0 %v6702_v58  ;;  %9242 = vst [vmem:[#allocation53_spill] sm:$0xff] %v6717_v13  ;;  %v6720_v58 = vld [vmem:[#allocation8 + $0x138] sm:$0xff] }
 0x4c3   : > { %2225 = vmatpush1.msra.mxu0 %v6705_v50  ;;  %9243 = vst [vmem:[#allocation54_spill] sm:$0xff] %v6720_v58  ;;  %v6723_v50 = vld [vmem:[#allocation8 + $0x130] sm:$0xff] }
 0x4c4   : > { %2226 = vmatprep.subr.mxu0 %v6708_v15  ;;  %9244 = vst [vmem:[#allocation55_spill] sm:$0xff] %v6723_v50  ;;  %v6726_v15 = vld [vmem:[#allocation8 + $0x108] sm:$0xff] }
 0x4c5   : > { %2227 = vmatpush1.msra.mxu0 %v6711_v29  ;;  %9245 = vst [vmem:[#allocation51_spill] sm:$0xff] %v6726_v15  ;;  %v6729_v29 = vld [vmem:[#allocation8 + $0x100] sm:$0xff] }
 0x4c6   : > { %2228 = vmatprep.subr.mxu0 %v6714_v52  ;;  %9246 = vst [vmem:[#allocation49_spill] sm:$0xff] %v6729_v29  ;;  %v6732_v52 = vld [vmem:[#allocation8 + $0xd8] sm:$0xff] }
 0x4c7   : > { %2229 = vmatpush1.msra.mxu0 %v6717_v13  ;;  %9247 = vst [vmem:[#allocation56_spill] sm:$0xff] %v6732_v52  ;;  %v6735_v13 = vld [vmem:[#allocation8 + $0xd0] sm:$0xff] }
 0x4c8   : > { %2230 = vmatprep.subr.mxu0 %v6720_v58  ;;  %9248 = vst [vmem:[#allocation57_spill] sm:$0xff] %v6735_v13  ;;  %v6738_v58 = vld [vmem:[#allocation8 + $0xa8] sm:$0xff] }
 0x4c9   : > { %2231 = vmatpush1.msra.mxu0 %v6723_v50  ;;  %9249 = vst [vmem:[#allocation58_spill] sm:$0xff] %v6738_v58  ;;  %v6741_v50 = vld [vmem:[#allocation8 + $0xa0] sm:$0xff] }
 0x4ca   : > { %2232 = vmatprep.subr.mxu0 %v6726_v15  ;;  %9250 = vst [vmem:[#allocation59_spill] sm:$0xff] %v6741_v50  ;;  %v6744_v15 = vld [vmem:[#allocation8 + $0x78] sm:$0xff] }
 0x4cb   : > { %2233 = vmatpush1.msra.mxu0 %v6729_v29  ;;  %9251 = vst [vmem:[#allocation60_spill] sm:$0xff] %v6744_v15  ;;  %v6747_v29 = vld [vmem:[#allocation8 + $0x70] sm:$0xff] }
 0x4cc   : > { %2234 = vmatprep.subr.mxu0 %v6732_v52  ;;  %9252 = vst [vmem:[#allocation61_spill] sm:$0xff] %v6747_v29  ;;  %v6750_v52 = vld [vmem:[#allocation8 + $0x48] sm:$0xff] }
 0x4cd   : > { %2235 = vmatpush1.msra.mxu0 %v6735_v13  ;;  %9253 = vst [vmem:[#allocation62_spill] sm:$0xff] %v6750_v52  ;;  %v6753_v13 = vld [vmem:[#allocation8 + $0x40] sm:$0xff] }
 0x4ce   : > { %2236 = vmatprep.subr.mxu0 %v6738_v58  ;;  %9254 = vst [vmem:[#allocation63_spill] sm:$0xff] %v6753_v13  ;;  %v6756_v58 = vld [vmem:[#allocation8 + $0x18] sm:$0xff] }
 0x4cf   : > { %2237 = vmatpush1.msra.mxu0 %v6741_v50  ;;  %9255 = vst [vmem:[#allocation64_spill] sm:$0xff] %v6756_v58  ;;  %v6759_v50 = vld [vmem:[#allocation8 + $0x10] sm:$0xff] }
 0x4d0   : > { %2238 = vmatprep.subr.mxu0 %v6744_v15  ;;  %9256 = vst [vmem:[#allocation65_spill] sm:$0xff] %v6759_v50  ;;  %v6762_v15 = vld [vmem:[#allocation8 + $0x5e8] sm:$0xff] }
 0x4d1   : > { %2239 = vmatpush1.msra.mxu0 %v6747_v29  ;;  %9257 = vst [vmem:[#allocation66_spill] sm:$0xff] %v6762_v15  ;;  %v6765_v29 = vld [vmem:[#allocation8 + $0x5e0] sm:$0xff] }
 0x4d2   : > { %2240 = vmatprep.subr.mxu0 %v6750_v52  ;;  %9258 = vst [vmem:[#allocation67_spill] sm:$0xff] %v6765_v29  ;;  %v9260_v52 = vld [vmem:[#allocation120_spill] sm:$0xff] }
 0x4d3   : > { %2241 = vmatpush1.msra.mxu0 %v6753_v13  ;;  %v9259_v13 = vld [vmem:[#allocation118_spill] sm:$0xff] }
 0x4d4   : > { %2242 = vmatprep.subr.mxu0 %v6756_v58  ;;  %v9261_v58 = vld [vmem:[#allocation122_spill] sm:$0xff] }
 0x4d5   : > { %2243 = vmatpush1.msra.mxu0 %v6759_v50  ;;  %v9263_v50 = vld [vmem:[#allocation126_spill] sm:$0xff] }
 0x4d6   : > { %2244 = vmatprep.subr.mxu0 %v6762_v15  ;;  %v9265_v15 = vld [vmem:[#allocation130_spill] sm:$0xff] }
 0x4d7   : > { %2245 = vmatpush2.msra.mxu0 %v6765_v29  ;;  %v9267_v29 = vld [vmem:[#allocation134_spill] sm:$0xff] }
 0x4d8   : > { %2246 = vmatprep.subr.mxu0 %v6283_v9  ;;  %v9268_v9 = vld [vmem:[#allocation136_spill] sm:$0xff] }
 0x4d9   : > { %2247 = vmatpush2.msra.mxu0 %v6286_v12  ;;  %v9269_v12 = vld [vmem:[#allocation138_spill] sm:$0xff] }
 0x4da   : > { %2248 = vmatprep.subr.mxu0 %v9259_v13  ;;  %v9270_v13 = vld [vmem:[#allocation140_spill] sm:$0xff] }
 0x4db   : > { %2249 = vmatpush2.msra.mxu0 %v9260_v52  ;;  %v9271_v52 = vld [vmem:[#allocation141_spill] sm:$0xff] }
 0x4dc   : > { %2250 = vmatprep.subr.mxu0 %v9261_v58  ;;  %v9272_v58 = vld [vmem:[#allocation142_spill] sm:$0xff] }
 0x4dd   : > { %2251 = vmatpush2.msra.mxu0 %v9262_v30  ;;  %v9273_v30 = vld [vmem:[#allocation143_spill] sm:$0xff] }
 0x4de   : > { %2252 = vmatprep.subr.mxu0 %v9263_v50  ;;  %v9274_v50 = vld [vmem:[#allocation144_spill] sm:$0xff] }
 0x4df   : > { %2253 = vmatpush2.msra.mxu0 %v9264_v6  ;;  %v9275_v6 = vld [vmem:[#allocation145_spill] sm:$0xff] }
 0x4e0   : > { %2254 = vmatprep.subr.mxu0 %v9265_v15  ;;  %v9276_v15 = vld [vmem:[#allocation147_spill] sm:$0xff] }
 0x4e1   : > { %2255 = vmatpush2.msra.mxu0 %v9266_v32  ;;  %v9277_v32 = vld [vmem:[#allocation146_spill] sm:$0xff] }
 0x4e2   : > { %2256 = vmatprep.subr.mxu0 %v9267_v29  ;;  %v9278_v29 = vld [vmem:[#allocation148_spill] sm:$0xff] }
 0x4e3   : > { %2257 = vmatpush2.msra.mxu0 %v9268_v9  ;;  %v9279_v9 = vld [vmem:[#allocation85_spill] sm:$0xff] }
 0x4e4   : > { %2258 = vmatprep.subr.mxu0 %v9269_v12  ;;  %v9280_v12 = vld [vmem:[#allocation19_spill] sm:$0xff] }
 0x4e5   : > { %2259 = vmatpush2.msra.mxu0 %v9270_v13  ;;  %v9281_v13 = vld [vmem:[#allocation89_spill] sm:$0xff] }
 0x4e6   : > { %2260 = vmatprep.subr.mxu0 %v9271_v52  ;;  %v9282_v52 = vld [vmem:[#allocation21_spill] sm:$0xff] }
 0x4e7   : > { %2261 = vmatpush2.msra.mxu0 %v9272_v58  ;;  %v9283_v58 = vld [vmem:[#allocation91_spill] sm:$0xff] }
 0x4e8   : > { %2262 = vmatprep.subr.mxu0 %v9273_v30  ;;  %v9284_v30 = vld [vmem:[#allocation22_spill] sm:$0xff] }
 0x4e9   : > { %2263 = vmatpush2.msra.mxu0 %v9274_v50  ;;  %v9285_v50 = vld [vmem:[#allocation93_spill] sm:$0xff] }
 0x4ea   : > { %2264 = vmatprep.subr.mxu0 %v9275_v6  ;;  %v9286_v6 = vld [vmem:[#allocation23_spill] sm:$0xff] }
 0x4eb   : > { %2265 = vmatpush2.msra.mxu0 %v9276_v15  ;;  %v9287_v15 = vld [vmem:[#allocation95_spill] sm:$0xff] }
 0x4ec   : > { %2266 = vmatprep.subr.mxu0 %v9277_v32 }
 0x4ed   : > { %2267 = vmatpush2.msra.mxu0 %v9278_v29 }
 0x4ee   : > { %2268 = vmatprep.subr.mxu0 %v9279_v9 }
 0x4ef   : > { %2269 = vmatpush2.msra.mxu0 %v9280_v12 }
 0x4f0   : > { %2270 = vmatprep.subr.mxu0 %v9281_v13 }
 0x4f1   : > { %2271 = vmatpush2.msra.mxu0 %v9282_v52 }
 0x4f2   : > { %2272 = vmatprep.subr.mxu0 %v9283_v58  ;;  %v9289_v58 = vld [vmem:[#allocation20_spill] sm:$0xff] }
 0x4f3   : > { %2273 = vmatpush2.msra.mxu0 %v9284_v30 }
 0x4f4   : > { %2274 = vmatprep.subr.mxu0 %v9285_v50 }
 0x4f5   : > { %2275 = vmatpush2.msra.mxu0 %v9286_v6 }
 0x4f6   : > { %2424 = vmatprep.subr.mxu0 %v9287_v15 }
 0x536   : > { %v1924_v32 = vpop.f32.mrf.mxu0  ;;  %v1995_v42 = vpop.f32.mrf.mxu1 }
 0x537   : > { %v1925_v9 = vadd.f32 %v1924_v32, %v9024_v59  ;;  %v1996_v50 = vadd.f32 %v1995_v42, %v9028_v7 }
 0x538   : > { %v1926_v29 = vpop.f32.mrf.mxu0  ;;  %v1997_v41 = vpop.f32.mrf.mxu1 }
 0x539   : > { %v1927_v12 = vadd.f32 %v1926_v29, %v9025_v5  ;;  %v2075_v63 = vrot.slane %v1925_v9, 5  ;;  %v1998_v15 = vadd.f32 %v1997_v41, %v9029_v10  ;;  %v2077_v0 = vrot.slane %v1996_v50, 5 }
 0x53b   : > { %v2076_v13 = vrot.slane %v1927_v12, 5  ;;  %v2083_v52 = vadd.f32 %v2075_v63, %v9288_v60  ;;  %v2078_v32 = vrot.slane %v1998_v15, 5  ;;  %v2085_v29 = vadd.f32 %v2077_v0, %v9030_v27 }
 0x53d   : > { %v2084_v38 = vadd.f32 %v2076_v13, %v9289_v58  ;;  %v3490_v30 = vmul.f32 -1.442695, %v2083_v52  ;;  %v2086_v9 = vadd.f32 %v2078_v32, %v9031_v35  ;;  %v3492_v12 = vmul.f32 -1.442695, %v2085_v29 }
 0x53f   : > { %v3491_v6 = vmul.f32 -1.442695, %v2084_v38  ;;  %3676 = vpow2.f32 %v3490_v30  ;;  %v3493_v63 = vmul.f32 -1.442695, %v2086_v9 }
 0x541   : > { %3678 = vpow2.f32 %v3491_v6 }
 0x542   : > { %3680 = vpow2.f32 %v3492_v12 }
 0x543   : > { %3682 = vpow2.f32 %v3493_v63 }
 0x54c   : > { %v3677_v60 = vpop.eup %3676 }
 0x54d   : > { %v2099_v52 = vadd.f32 1.0, %v3677_v60 }
 0x54e   : > { %v3679_v13 = vpop.eup %3678 }
 0x54f   : > { %v2100_v58 = vadd.f32 1.0, %v3679_v13  ;;  %3684 = vrcp.f32 %v2099_v52  ;;  %v3681_v38 = vpop.eup %3680 }
 0x550   : > { %v3683_v42 = vpop.eup %3682  ;;  %v2101_v30 = vadd.f32 1.0, %v3681_v38 }
 0x551   : > { %3686 = vrcp.f32 %v2100_v58  ;;  %v2102_v0 = vadd.f32 1.0, %v3683_v42  ;;  %v2127_v42 = vrot.slane %v6390_v36, 7 }
 0x552   : > { %3688 = vrcp.f32 %v2101_v30  ;;  %v2128_v30 = vrot.slane %v6394_v57, 7 }
 0x553   : > { %3690 = vrcp.f32 %v2102_v0 }
 0x55c   : > { %v3685_v29 = vpop.eup %3684 }
 0x55e   : > { %v3687_v60 = vpop.eup %3686 }
 0x55f   : > { %v3689_v52 = vpop.eup %3688 }
 0x560   : > { %v3691_v38 = vpop.eup %3690 }
 0x576   : > { %v2066_v41 = vpop.f32.mrf.mxu0 }
 0x577   : > { %v2067_v50 = vadd.f32 %v2066_v41, %v5577_v49  ;;  %v2123_v41 = vsub.f32 1.0, %v3689_v52 }
 0x578   : > { %v2068_v6 = vpop.f32.mrf.mxu0 }
 0x579   : > { %v2113_v15 = vrot.slane %v2067_v50, 5  ;;  %v2069_v32 = vadd.f32 %v2068_v6, %v5579_v56  ;;  %v2124_v6 = vsub.f32 1.0, %v3691_v38 }
 0x57b   : > { %v2117_v9 = vmul.f32 %v3685_v29, %v2113_v15  ;;  %v2114_v12 = vrot.slane %v2069_v32, 5  ;;  %v2131_v32 = vmul.f32 %v3689_v52, %v2127_v42  ;;  %v6842_v52 = vld [vmem:[#allocation8 + $0x298] sm:$0xff] }
 0x57c   : > { %v6970_v42 = vld [vmem:[#allocation8 + $0x598] sm:$0xff] }
 0x57d   : > { %v2119_v63 = vadd.f32 %v2117_v9, %v5583_v61  ;;  %v2118_v58 = vmul.f32 %v3687_v60, %v2114_v12  ;;  %v2132_v9 = vmul.f32 %v3691_v38, %v2128_v30  ;;  %v6846_v38 = vld [vmem:[#allocation8 + $0x290] sm:$0xff]  ;;  %9293 = vst [vmem:[#allocation70_spill] sm:$0xff] %v6970_v42  ;;  %v6982_v30 = vld [vmem:[#allocation8 + $0x560] sm:$0xff] }
 0x57e   : > { %9299 = vst [vmem:[#allocation73_spill] sm:$0xff] %v6982_v30 }
 0x57f   : > { %3692 = vtanh.f32 %v2119_v63  ;;  %v2120_v13 = vadd.f32 %v2118_v58, %v5585_v62 }
 0x581   : > { %3694 = vtanh.f32 %v2120_v13  ;;  %v6831_v13 = vld [vmem:[#allocation8 + $0x2f0] sm:$0xff] }
 0x58c   : > { %v3693_v50 = vpop.eup %3692 }
 0x58d   : > { %v2125_v15 = vmul.f32 %v3693_v50, %v2123_v41  ;;  %v6850_v41 = vld [vmem:[#allocation8 + $0x268] sm:$0xff]  ;;  %v6974_v50 = vld [vmem:[#allocation8 + $0x590] sm:$0xff] }
 0x58e   : > { %v3695_v29 = vpop.eup %3694  ;;  %9295 = vst [vmem:[#allocation71_spill] sm:$0xff] %v6974_v50 }
 0x58f   : > { %v2126_v0 = vmul.f32 %v3695_v29, %v2124_v6  ;;  %v6813_v12 = vadd.f32 %v2131_v32, %v2125_v15  ;;  %v6978_v6 = vld [vmem:[#allocation8 + $0x568] sm:$0xff]  ;;  %v9300_v15 = vld [vmem:[#allocation26_spill] sm:$0xff]  ;;  %v6986_v32 = vld [vmem:[#allocation8 + $0x538] sm:$0xff] }
 0x590   : > { %9297 = vst [vmem:[#allocation72_spill] sm:$0xff] %v6978_v6  ;;  %9301 = vst [vmem:[#allocation74_spill] sm:$0xff] %v6986_v32  ;;  %v9302_v29 = vld [vmem:[#allocation101_spill] sm:$0xff] }
 0x591   : > { %v6815_v60 = vadd.f32 %v2132_v9, %v2126_v0  ;;  %v6819_v63 = vsel %vm3273_vm3, %v6397_v11, %v6813_v12  ;;  %v6827_v57 = vrot.slane %v6813_v12, 3  ;;  %v6834_v11 = vld [vmem:[#allocation8 + $0x2c8] sm:$0xff]  ;;  %v6990_v0 = vld [vmem:[#allocation8 + $0x530] sm:$0xff] }
 0x592   : > { %9303 = vst [vmem:[#allocation75_spill] sm:$0xff] %v6990_v0  ;;  %v9304_v9 = vld [vmem:[#allocation27_spill] sm:$0xff] }
 0x593   : > { %v2138_v36 = vrot.slane %v6815_v60, 3  ;;  %v6824_v58 = vsel %vm3273_vm3, %v6403_v20, %v6815_v60  ;;  %v6838_v20 = vld [vmem:[#allocation8 + $0x2c0] sm:$0xff] }
 0x595   : > { %2205 = vmatprep.mubr.f32.mxu1 %v2138_v36  ;;  %2276 = vmatprep.mubr.f32.mxu0 %v2138_v36 }
 0x596   : > { %2206 = vmatmul.mubr.f32.vlgmr.msra.gmra.mxu1 %v6827_v57  ;;  %2277 = vmatmul.mubr.f32.vlgmr.msra.gmra.mxu0 %v6827_v57 }
 0x597   : > { %2284 = vmatpush1.msra.mxu1 %v6831_v13  ;;  %2347 = vmatprep.mubr.f32.mxu1 %v2138_v36  ;;  %v6994_v36 = vld [vmem:[#allocation8 + $0x508] sm:$0xff] }
 0x598   : > { %2285 = vmatprep.subr.mxu1 %v6834_v11  ;;  %2425 = vmatpush1.msra.mxu0 %v6412_v1  ;;  %v6854_v1 = vld [vmem:[#allocation8 + $0x260] sm:$0xff]  ;;  %9305 = vst [vmem:[#allocation76_spill] sm:$0xff] %v6994_v36 }
 0x599   : > { %2286 = vmatpush1.msra.mxu1 %v6838_v20  ;;  %2426 = vmatprep.subr.mxu0 %v6416_v37  ;;  %v6858_v37 = vld [vmem:[#allocation8 + $0x238] sm:$0xff] }
 0x59a   : > { %2287 = vmatprep.subr.mxu1 %v6842_v52  ;;  %2427 = vmatpush1.msra.mxu0 %v6420_v16  ;;  %v6862_v16 = vld [vmem:[#allocation8 + $0x230] sm:$0xff] }
 0x59b   : > { %2288 = vmatpush1.msra.mxu1 %v6846_v38  ;;  %2428 = vmatprep.subr.mxu0 %v6424_v24  ;;  %v6866_v24 = vld [vmem:[#allocation8 + $0x208] sm:$0xff] }
 0x59c   : > { %2289 = vmatprep.subr.mxu1 %v6850_v41  ;;  %2429 = vmatpush1.msra.mxu0 %v6428_v3  ;;  %v6870_v3 = vld [vmem:[#allocation8 + $0x200] sm:$0xff] }
 0x59d   : > { %2290 = vmatpush1.msra.mxu1 %v6854_v1  ;;  %2430 = vmatprep.subr.mxu0 %v6432_v14  ;;  %v6874_v14 = vld [vmem:[#allocation8 + $0x1d8] sm:$0xff] }
 0x59e   : > { %2291 = vmatprep.subr.mxu1 %v6858_v37  ;;  %2431 = vmatpush1.msra.mxu0 %v6436_v31  ;;  %v6878_v31 = vld [vmem:[#allocation8 + $0x1d0] sm:$0xff] }
 0x59f   : > { %2292 = vmatpush1.msra.mxu1 %v6862_v16  ;;  %2432 = vmatprep.subr.mxu0 %v6440_v39  ;;  %v6882_v39 = vld [vmem:[#allocation8 + $0x1a8] sm:$0xff] }
 0x5a0   : > { %2293 = vmatprep.subr.mxu1 %v6866_v24  ;;  %2433 = vmatpush1.msra.mxu0 %v6444_v45  ;;  %v6886_v45 = vld [vmem:[#allocation8 + $0x1a0] sm:$0xff] }
 0x5a1   : > { %2294 = vmatpush1.msra.mxu1 %v6870_v3  ;;  %2434 = vmatprep.subr.mxu0 %v6448_v43  ;;  %v6890_v43 = vld [vmem:[#allocation8 + $0x178] sm:$0xff] }
 0x5a2   : > { %2295 = vmatprep.subr.mxu1 %v6874_v14  ;;  %2435 = vmatpush1.msra.mxu0 %v6452_v19  ;;  %v6894_v19 = vld [vmem:[#allocation8 + $0x170] sm:$0xff] }
 0x5a3   : > { %2296 = vmatpush1.msra.mxu1 %v6878_v31  ;;  %2436 = vmatprep.subr.mxu0 %v6456_v17  ;;  %v6898_v17 = vld [vmem:[#allocation8 + $0x148] sm:$0xff] }
 0x5a4   : > { %2297 = vmatprep.subr.mxu1 %v6882_v39  ;;  %2437 = vmatpush1.msra.mxu0 %v6460_v25  ;;  %v6902_v25 = vld [vmem:[#allocation8 + $0x140] sm:$0xff] }
 0x5a5   : > { %2298 = vmatpush1.msra.mxu1 %v6886_v45  ;;  %2438 = vmatprep.subr.mxu0 %v6464_v23  ;;  %v6906_v23 = vld [vmem:[#allocation8 + $0x118] sm:$0xff] }
 0x5a6   : > { %2299 = vmatprep.subr.mxu1 %v6890_v43  ;;  %2439 = vmatpush1.msra.mxu0 %v6468_v54  ;;  %v6910_v54 = vld [vmem:[#allocation8 + $0x110] sm:$0xff] }
 0x5a7   : > { %2300 = vmatpush1.msra.mxu1 %v6894_v19  ;;  %2440 = vmatprep.subr.mxu0 %v6472_v22  ;;  %v6914_v22 = vld [vmem:[#allocation8 + $0xe8] sm:$0xff] }
 0x5a8   : > { %2301 = vmatprep.subr.mxu1 %v6898_v17  ;;  %2441 = vmatpush1.msra.mxu0 %v6476_v8  ;;  %v6918_v8 = vld [vmem:[#allocation8 + $0xe0] sm:$0xff] }
 0x5a9   : > { %2302 = vmatpush1.msra.mxu1 %v6902_v25  ;;  %2442 = vmatprep.subr.mxu0 %v6480_v2  ;;  %v6922_v2 = vld [vmem:[#allocation8 + $0xb8] sm:$0xff] }
 0x5aa   : > { %2303 = vmatprep.subr.mxu1 %v6906_v23  ;;  %2443 = vmatpush1.msra.mxu0 %v6484_v18  ;;  %v6926_v18 = vld [vmem:[#allocation8 + $0xb0] sm:$0xff] }
 0x5ab   : > { %2304 = vmatpush1.msra.mxu1 %v6910_v54  ;;  %2444 = vmatprep.subr.mxu0 %v6488_v48  ;;  %v6930_v48 = vld [vmem:[#allocation8 + $0x88] sm:$0xff] }
 0x5ac   : > { %2305 = vmatprep.subr.mxu1 %v6914_v22  ;;  %2445 = vmatpush1.msra.mxu0 %v6492_v33  ;;  %v6934_v33 = vld [vmem:[#allocation8 + $0x80] sm:$0xff] }
 0x5ad   : > { %2306 = vmatpush1.msra.mxu1 %v6918_v8  ;;  %2446 = vmatprep.subr.mxu0 %v6496_v46  ;;  %v6938_v46 = vld [vmem:[#allocation8 + $0x58] sm:$0xff] }
 0x5ae   : > { %2307 = vmatprep.subr.mxu1 %v6922_v2  ;;  %2447 = vmatpush1.msra.mxu0 %v6500_v4  ;;  %v6942_v4 = vld [vmem:[#allocation8 + $0x50] sm:$0xff] }
 0x5af   : > { %2308 = vmatpush1.msra.mxu1 %v6926_v18  ;;  %2448 = vmatprep.subr.mxu0 %v6504_v53  ;;  %v6946_v53 = vld [vmem:[#allocation8 + $0x28] sm:$0xff] }
 0x5b0   : > { %2309 = vmatprep.subr.mxu1 %v6930_v48  ;;  %2449 = vmatpush1.msra.mxu0 %v6508_v40  ;;  %v6950_v40 = vld [vmem:[#allocation8 + $0x20] sm:$0xff] }
 0x5b1   : > { %2310 = vmatpush1.msra.mxu1 %v6934_v33  ;;  %2450 = vmatprep.subr.mxu0 %v6512_v34  ;;  %v6954_v34 = vld [vmem:[#allocation8 + $0x5f8] sm:$0xff] }
 0x5b2   : > { %2311 = vmatprep.subr.mxu1 %v6938_v46  ;;  %2451 = vmatpush1.msra.mxu0 %v6516_v21  ;;  %v6958_v21 = vld [vmem:[#allocation8 + $0x5f0] sm:$0xff] }
 0x5b3   : > { %2312 = vmatpush1.msra.mxu1 %v6942_v4  ;;  %2452 = vmatprep.subr.mxu0 %v6520_v47  ;;  %v6962_v47 = vld [vmem:[#allocation8 + $0x5c8] sm:$0xff] }
 0x5b4   : > { %2313 = vmatprep.subr.mxu1 %v6946_v53  ;;  %2453 = vmatpush1.msra.mxu0 %v6524_v51  ;;  %9290 = vst [vmem:[#allocation68_spill] sm:$0xff] %v6962_v47  ;;  %v6966_v51 = vld [vmem:[#allocation8 + $0x5c0] sm:$0xff] }
 0x5b5   : > { %2314 = vmatpush1.msra.mxu1 %v6950_v40  ;;  %2454 = vmatprep.subr.mxu0 %v6528_v55  ;;  %9291 = vst [vmem:[#allocation69_spill] sm:$0xff] %v6966_v51  ;;  %v9292_v55 = vld [vmem:[#allocation24_spill] sm:$0xff] }
 0x5b6   : > { %2315 = vmatprep.subr.mxu1 %v6954_v34  ;;  %2455 = vmatpush1.msra.mxu0 %v6532_v44  ;;  %v9294_v44 = vld [vmem:[#allocation97_spill] sm:$0xff] }
 0x5b7   : > { %2316 = vmatpush2.msra.mxu1 %v6958_v21  ;;  %2456 = vmatprep.subr.mxu0 %v6536_v28  ;;  %v9296_v28 = vld [vmem:[#allocation25_spill] sm:$0xff] }
 0x5b8   : > { %2317 = vmatprep.subr.mxu1 %v6962_v47  ;;  %2457 = vmatpush2.msra.mxu0 %v6540_v26  ;;  %v9298_v26 = vld [vmem:[#allocation99_spill] sm:$0xff] }
 0x5b9   : > { %2318 = vmatpush2.msra.mxu1 %v6966_v51  ;;  %2458 = vmatprep.subr.mxu0 %v9292_v55  ;;  %v9306_v55 = vld [vmem:[#allocation103_spill] sm:$0xff] }
 0x5ba   : > { %2319 = vmatprep.subr.mxu1 %v6970_v42  ;;  %2459 = vmatpush2.msra.mxu0 %v9294_v44  ;;  %v6998_v44 = vld [vmem:[#allocation8 + $0x500] sm:$0xff] }
 0x5bb   : > { %2320 = vmatpush2.msra.mxu1 %v6974_v50  ;;  %2460 = vmatprep.subr.mxu0 %v9296_v28  ;;  %9307 = vst [vmem:[#allocation77_spill] sm:$0xff] %v6998_v44  ;;  %v9308_v28 = vld [vmem:[#allocation28_spill] sm:$0xff] }
 0x5bc   : > { %2321 = vmatprep.subr.mxu1 %v6978_v6  ;;  %2461 = vmatpush2.msra.mxu0 %v9298_v26  ;;  %v7002_v26 = vld [vmem:[#allocation8 + $0x4d8] sm:$0xff] }
 0x5bd   : > { %2322 = vmatpush2.msra.mxu1 %v6982_v30  ;;  %2462 = vmatprep.subr.mxu0 %v9300_v15  ;;  %9309 = vst [vmem:[#allocation78_spill] sm:$0xff] %v7002_v26  ;;  %v9310_v15 = vld [vmem:[#allocation105_spill] sm:$0xff] }
 0x5be   : > { %2323 = vmatprep.subr.mxu1 %v6986_v32  ;;  %2463 = vmatpush2.msra.mxu0 %v9302_v29  ;;  %v7006_v29 = vld [vmem:[#allocation8 + $0x4d0] sm:$0xff]  ;;  %v9356_v32 = vld [vmem:[#allocation42_spill] sm:$0xff] }
 0x5bf   : > { %2324 = vmatpush2.msra.mxu1 %v6990_v0  ;;  %2464 = vmatprep.subr.mxu0 %v9304_v9  ;;  %9311 = vst [vmem:[#allocation79_spill] sm:$0xff] %v7006_v29  ;;  %v9312_v9 = vld [vmem:[#allocation29_spill] sm:$0xff] }
 0x5c0   : > { %2325 = vmatprep.subr.mxu1 %v6994_v36  ;;  %2465 = vmatpush2.msra.mxu0 %v9306_v55  ;;  %v7010_v36 = vld [vmem:[#allocation8 + $0x4a8] sm:$0xff]  ;;  %v9353_v0 = vld [vmem:[#allocation129_spill] sm:$0xff] }
 0x5c1   : > { %2326 = vmatpush2.msra.mxu1 %v6998_v44  ;;  %2466 = vmatprep.subr.mxu0 %v9308_v28  ;;  %9313 = vst [vmem:[#allocation80_spill] sm:$0xff] %v7010_v36  ;;  %v9314_v55 = vld [vmem:[#allocation107_spill] sm:$0xff]  ;;  %v7014_v44 = vld [vmem:[#allocation8 + $0x4a0] sm:$0xff] }
 0x5c2   : > { %2327 = vmatprep.subr.mxu1 %v7002_v26  ;;  %2467 = vmatpush2.msra.mxu0 %v9310_v15  ;;  %9315 = vst [vmem:[#allocation81_spill] sm:$0xff] %v7014_v44  ;;  %v9316_v28 = vld [vmem:[#allocation30_spill] sm:$0xff]  ;;  %v7018_v26 = vld [vmem:[#allocation8 + $0x478] sm:$0xff] }
 0x5c3   : > { %2328 = vmatpush2.msra.mxu1 %v7006_v29  ;;  %2468 = vmatprep.subr.mxu0 %v9312_v9  ;;  %9317 = vst [vmem:[#allocation82_spill] sm:$0xff] %v7018_v26  ;;  %v9318_v15 = vld [vmem:[#allocation109_spill] sm:$0xff]  ;;  %v7022_v29 = vld [vmem:[#allocation8 + $0x470] sm:$0xff]  ;;  %v9320_v9 = vld [vmem:[#allocation31_spill] sm:$0xff] }
 0x5c4   : > { %2329 = vmatprep.subr.mxu1 %v7010_v36  ;;  %2469 = vmatpush2.msra.mxu0 %v9314_v55  ;;  %9319 = vst [vmem:[#allocation83_spill] sm:$0xff] %v7022_v29  ;;  %v7026_v36 = vld [vmem:[#allocation8 + $0x448] sm:$0xff] }
 0x5c5   : > { %2330 = vmatpush2.msra.mxu1 %v7014_v44  ;;  %2470 = vmatprep.subr.mxu0 %v9316_v28  ;;  %9321 = vst [vmem:[#allocation84_spill] sm:$0xff] %v7026_v36  ;;  %v9322_v55 = vld [vmem:[#allocation111_spill] sm:$0xff]  ;;  %v7030_v44 = vld [vmem:[#allocation8 + $0x440] sm:$0xff]  ;;  %v9324_v28 = vld [vmem:[#allocation32_spill] sm:$0xff] }
 0x5c6   : > { %2331 = vmatprep.subr.mxu1 %v7018_v26  ;;  %2471 = vmatpush2.msra.mxu0 %v9318_v15  ;;  %9323 = vst [vmem:[#allocation86_spill] sm:$0xff] %v7030_v44  ;;  %v7034_v26 = vld [vmem:[#allocation8 + $0x418] sm:$0xff] }
 0x5c7   : > { %2332 = vmatpush2.msra.mxu1 %v7022_v29  ;;  %2472 = vmatprep.subr.mxu0 %v9320_v9  ;;  %9325 = vst [vmem:[#allocation88_spill] sm:$0xff] %v7034_v26  ;;  %v9326_v15 = vld [vmem:[#allocation113_spill] sm:$0xff]  ;;  %v7038_v29 = vld [vmem:[#allocation8 + $0x410] sm:$0xff] }
 0x5c8   : > { %2333 = vmatprep.subr.mxu1 %v7026_v36  ;;  %2473 = vmatpush2.msra.mxu0 %v9322_v55  ;;  %9327 = vst [vmem:[#allocation90_spill] sm:$0xff] %v7038_v29  ;;  %v9328_v9 = vld [vmem:[#allocation33_spill] sm:$0xff]  ;;  %v7042_v36 = vld [vmem:[#allocation8 + $0x3e8] sm:$0xff] }
 0x5c9   : > { %2334 = vmatpush2.msra.mxu1 %v7030_v44  ;;  %2474 = vmatprep.subr.mxu0 %v9324_v28  ;;  %9329 = vst [vmem:[#allocation92_spill] sm:$0xff] %v7042_v36  ;;  %v9330_v55 = vld [vmem:[#allocation115_spill] sm:$0xff]  ;;  %v7046_v44 = vld [vmem:[#allocation8 + $0x3e0] sm:$0xff] }
 0x5ca   : > { %2335 = vmatprep.subr.mxu1 %v7034_v26  ;;  %2475 = vmatpush2.msra.mxu0 %v9326_v15  ;;  %9331 = vst [vmem:[#allocation94_spill] sm:$0xff] %v7046_v44  ;;  %v9332_v28 = vld [vmem:[#allocation34_spill] sm:$0xff]  ;;  %v7050_v26 = vld [vmem:[#allocation8 + $0x3b8] sm:$0xff] }
 0x5cb   : > { %2336 = vmatpush2.msra.mxu1 %v7038_v29  ;;  %2476 = vmatprep.subr.mxu0 %v9328_v9  ;;  %9333 = vst [vmem:[#allocation96_spill] sm:$0xff] %v7050_v26  ;;  %v9334_v15 = vld [vmem:[#allocation117_spill] sm:$0xff]  ;;  %v7054_v29 = vld [vmem:[#allocation8 + $0x3b0] sm:$0xff]  ;;  %v9336_v9 = vld [vmem:[#allocation35_spill] sm:$0xff] }
 0x5cc   : > { %2337 = vmatprep.subr.mxu1 %v7042_v36  ;;  %2477 = vmatpush2.msra.mxu0 %v9330_v55  ;;  %9335 = vst [vmem:[#allocation98_spill] sm:$0xff] %v7054_v29  ;;  %v7058_v36 = vld [vmem:[#allocation8 + $0x388] sm:$0xff] }
 0x5cd   : > { %2338 = vmatpush2.msra.mxu1 %v7046_v44  ;;  %2478 = vmatprep.subr.mxu0 %v9332_v28  ;;  %9337 = vst [vmem:[#allocation100_spill] sm:$0xff] %v7058_v36  ;;  %v9338_v55 = vld [vmem:[#allocation119_spill] sm:$0xff]  ;;  %v7062_v44 = vld [vmem:[#allocation8 + $0x380] sm:$0xff]  ;;  %v9340_v28 = vld [vmem:[#allocation36_spill] sm:$0xff] }
 0x5ce   : > { %2339 = vmatprep.subr.mxu1 %v7050_v26  ;;  %2479 = vmatpush2.msra.mxu0 %v9334_v15  ;;  %9339 = vst [vmem:[#allocation102_spill] sm:$0xff] %v7062_v44  ;;  %v7066_v26 = vld [vmem:[#allocation8 + $0x358] sm:$0xff] }
 0x5cf   : > { %2340 = vmatpush2.msra.mxu1 %v7054_v29  ;;  %2480 = vmatprep.subr.mxu0 %v9336_v9  ;;  %9341 = vst [vmem:[#allocation104_spill] sm:$0xff] %v7066_v26  ;;  %v9342_v15 = vld [vmem:[#allocation121_spill] sm:$0xff]  ;;  %v7070_v29 = vld [vmem:[#allocation8 + $0x350] sm:$0xff] }
 0x5d0   : > { %2341 = vmatprep.subr.mxu1 %v7058_v36  ;;  %2481 = vmatpush2.msra.mxu0 %v9338_v55  ;;  %9343 = vst [vmem:[#allocation106_spill] sm:$0xff] %v7070_v29  ;;  %v9344_v9 = vld [vmem:[#allocation37_spill] sm:$0xff]  ;;  %v7074_v36 = vld [vmem:[#allocation8 + $0x328] sm:$0xff] }
 0x5d1   : > { %2342 = vmatpush2.msra.mxu1 %v7062_v44  ;;  %2482 = vmatprep.subr.mxu0 %v9340_v28  ;;  %9345 = vst [vmem:[#allocation108_spill] sm:$0xff] %v7074_v36  ;;  %v9346_v55 = vld [vmem:[#allocation123_spill] sm:$0xff]  ;;  %v7078_v44 = vld [vmem:[#allocation8 + $0x320] sm:$0xff] }
 0x5d2   : > { %2343 = vmatprep.subr.mxu1 %v7066_v26  ;;  %2483 = vmatpush2.msra.mxu0 %v9342_v15  ;;  %9347 = vst [vmem:[#allocation110_spill] sm:$0xff] %v7078_v44  ;;  %v9348_v28 = vld [vmem:[#allocation38_spill] sm:$0xff]  ;;  %v9349_v15 = vld [vmem:[#allocation125_spill] sm:$0xff]  ;;  %v9350_v26 = vld [vmem:[#allocation39_spill] sm:$0xff] }
 0x5d3   : > { %2344 = vmatpush2.msra.mxu1 %v7070_v29  ;;  %2484 = vmatprep.subr.mxu0 %v9344_v9  ;;  %v9351_v29 = vld [vmem:[#allocation127_spill] sm:$0xff]  ;;  %v9352_v9 = vld [vmem:[#allocation40_spill] sm:$0xff] }
 0x5d4   : > { %2345 = vmatprep.subr.mxu1 %v7074_v36  ;;  %2485 = vmatpush2.msra.mxu0 %v9346_v55  ;;  %v9354_v36 = vld [vmem:[#allocation41_spill] sm:$0xff]  ;;  %v9355_v55 = vld [vmem:[#allocation131_spill] sm:$0xff] }
 0x5d5   : > { %2346 = vmatpush2.msra.mxu1 %v7078_v44  ;;  %2486 = vmatprep.subr.mxu0 %v9348_v28  ;;  %v9357_v44 = vld [vmem:[#allocation133_spill] sm:$0xff]  ;;  %v9358_v28 = vld [vmem:[#allocation43_spill] sm:$0xff] }
 0x5d6   : > { %2348 = vmatmul.mubr.f32.vlgmr.msra.gmra.mxu1 %v6827_v57  ;;  %2495 = vmatprep.subr.mxu1 %v9349_v15  ;;  %v9359_v57 = vld [vmem:[#allocation135_spill] sm:$0xff]  ;;  %v9360_v15 = vld [vmem:[#allocation45_spill] sm:$0xff] }
 0x5d7   : > { %2496 = vmatpush1.msra.mxu1 %v9350_v26  ;;  %2487 = vmatpush2.msra.mxu0 %v9351_v29  ;;  %v9361_v26 = vld [vmem:[#allocation137_spill] sm:$0xff]  ;;  %v9362_v29 = vld [vmem:[#allocation46_spill] sm:$0xff] }
 0x5d8   : > { %2497 = vmatprep.subr.mxu1 %v9352_v9  ;;  %2566 = vmatprep.subr.mxu0 %v9353_v0  ;;  %v9363_v9 = vld [vmem:[#allocation139_spill] sm:$0xff] }
 0x5d9   : > { %2498 = vmatpush1.msra.mxu1 %v9354_v36  ;;  %v9364_v0 = vld [vmem:[#allocation47_spill] sm:$0xff]  ;;  %v9365_v36 = vld [vmem:[#allocation48_spill] sm:$0xff] }
 0x5da   : > { %2499 = vmatprep.subr.mxu1 %v9355_v55  ;;  %v9366_v55 = vld [vmem:[#allocation50_spill] sm:$0xff] }
 0x5db   : > { %2500 = vmatpush1.msra.mxu1 %v9356_v32  ;;  %v9367_v32 = vld [vmem:[#allocation52_spill] sm:$0xff] }
 0x5dc   : > { %2501 = vmatprep.subr.mxu1 %v9357_v44  ;;  %v9368_v44 = vld [vmem:[#allocation53_spill] sm:$0xff] }
 0x5dd   : > { %2502 = vmatpush1.msra.mxu1 %v9358_v28  ;;  %v9369_v28 = vld [vmem:[#allocation54_spill] sm:$0xff] }
 0x5de   : > { %2503 = vmatprep.subr.mxu1 %v9359_v57  ;;  %v9370_v57 = vld [vmem:[#allocation55_spill] sm:$0xff] }
 0x5df   : > { %2504 = vmatpush1.msra.mxu1 %v9360_v15  ;;  %v9371_v15 = vld [vmem:[#allocation51_spill] sm:$0xff] }
 0x5e0   : > { %2505 = vmatprep.subr.mxu1 %v9361_v26  ;;  %v9372_v26 = vld [vmem:[#allocation49_spill] sm:$0xff] }
 0x5e1   : > { %2506 = vmatpush1.msra.mxu1 %v9362_v29  ;;  %v9373_v29 = vld [vmem:[#allocation56_spill] sm:$0xff] }
 0x5e2   : > { %2507 = vmatprep.subr.mxu1 %v9363_v9  ;;  %v9374_v9 = vld [vmem:[#allocation57_spill] sm:$0xff] }
 0x5e3   : > { %2508 = vmatpush1.msra.mxu1 %v9364_v0  ;;  %v9375_v0 = vld [vmem:[#allocation58_spill] sm:$0xff] }
 0x5e4   : > { %2509 = vmatprep.subr.mxu1 %v9365_v36  ;;  %v9376_v36 = vld [vmem:[#allocation59_spill] sm:$0xff] }
 0x5e5   : > { %2510 = vmatpush1.msra.mxu1 %v9366_v55  ;;  %v9377_v55 = vld [vmem:[#allocation60_spill] sm:$0xff] }
 0x5e6   : > { %2511 = vmatprep.subr.mxu1 %v9367_v32  ;;  %v9378_v32 = vld [vmem:[#allocation61_spill] sm:$0xff] }
 0x5e7   : > { %2512 = vmatpush1.msra.mxu1 %v9368_v44  ;;  %v9379_v44 = vld [vmem:[#allocation62_spill] sm:$0xff] }
 0x5e8   : > { %2513 = vmatprep.subr.mxu1 %v9369_v28  ;;  %v9380_v28 = vld [vmem:[#allocation63_spill] sm:$0xff] }
 0x5e9   : > { %2514 = vmatpush1.msra.mxu1 %v9370_v57  ;;  %v9381_v57 = vld [vmem:[#allocation64_spill] sm:$0xff] }
 0x5ea   : > { %2515 = vmatprep.subr.mxu1 %v9371_v15  ;;  %v9382_v15 = vld [vmem:[#allocation65_spill] sm:$0xff] }
 0x5eb   : > { %2516 = vmatpush1.msra.mxu1 %v9372_v26  ;;  %v9383_v26 = vld [vmem:[#allocation66_spill] sm:$0xff] }
 0x5ec   : > { %2517 = vmatprep.subr.mxu1 %v9373_v29  ;;  %v9384_v29 = vld [vmem:[#allocation67_spill] sm:$0xff] }
 0x5ed   : > { %2518 = vmatpush1.msra.mxu1 %v9374_v9  ;;  %v7119_v9 = vld [vmem:[#allocation8 + $0x5b8] sm:$0xff] }
 0x5ee   : > { %2519 = vmatprep.subr.mxu1 %v9375_v0  ;;  %9385 = vst [vmem:[#allocation112_spill] sm:$0xff] %v7119_v9  ;;  %v7122_v0 = vld [vmem:[#allocation8 + $0x5b0] sm:$0xff] }
 0x5ef   : > { %2520 = vmatpush1.msra.mxu1 %v9376_v36  ;;  %9386 = vst [vmem:[#allocation114_spill] sm:$0xff] %v7122_v0  ;;  %v7125_v36 = vld [vmem:[#allocation8 + $0x588] sm:$0xff] }
 0x5f0   : > { %2521 = vmatprep.subr.mxu1 %v9377_v55  ;;  %9387 = vst [vmem:[#allocation116_spill] sm:$0xff] %v7125_v36  ;;  %v7128_v55 = vld [vmem:[#allocation8 + $0x580] sm:$0xff] }
 0x5f1   : > { %2522 = vmatpush1.msra.mxu1 %v9378_v32  ;;  %9388 = vst [vmem:[#allocation118_spill] sm:$0xff] %v7128_v55  ;;  %v7131_v32 = vld [vmem:[#allocation8 + $0x558] sm:$0xff] }
 0x5f2   : > { %2523 = vmatprep.subr.mxu1 %v9379_v44  ;;  %9389 = vst [vmem:[#allocation120_spill] sm:$0xff] %v7131_v32  ;;  %v7134_v44 = vld [vmem:[#allocation8 + $0x550] sm:$0xff] }
 0x5f3   : > { %2524 = vmatpush1.msra.mxu1 %v9380_v28  ;;  %9390 = vst [vmem:[#allocation122_spill] sm:$0xff] %v7134_v44  ;;  %v7137_v28 = vld [vmem:[#allocation8 + $0x528] sm:$0xff] }
 0x5f4   : > { %2525 = vmatprep.subr.mxu1 %v9381_v57  ;;  %9391 = vst [vmem:[#allocation124_spill] sm:$0xff] %v7137_v28  ;;  %v7140_v57 = vld [vmem:[#allocation8 + $0x520] sm:$0xff] }
 0x5f5   : > { %2526 = vmatpush1.msra.mxu1 %v9382_v15  ;;  %9392 = vst [vmem:[#allocation126_spill] sm:$0xff] %v7140_v57  ;;  %v7143_v15 = vld [vmem:[#allocation8 + $0x4f8] sm:$0xff] }
 0x5f6   : > { %2527 = vmatprep.subr.mxu1 %v9383_v26  ;;  %9393 = vst [vmem:[#allocation128_spill] sm:$0xff] %v7143_v15  ;;  %v7146_v26 = vld [vmem:[#allocation8 + $0x4f0] sm:$0xff] }
 0x5f7   : > { %2528 = vmatpush2.msra.mxu1 %v9384_v29  ;;  %9394 = vst [vmem:[#allocation130_spill] sm:$0xff] %v7146_v26  ;;  %v7149_v29 = vld [vmem:[#allocation8 + $0x4c8] sm:$0xff] }
 0x5f8   : > { %2529 = vmatprep.subr.mxu1 %v7119_v9  ;;  %9395 = vst [vmem:[#allocation132_spill] sm:$0xff] %v7149_v29 }
 0x5f9   : > { %2530 = vmatpush2.msra.mxu1 %v7122_v0  ;;  %v9416_v0 = vld [vmem:[#allocation87_spill] sm:$0xff] }
 0x5fa   : > { %2531 = vmatprep.subr.mxu1 %v7125_v36 }
 0x5fb   : > { %2532 = vmatpush2.msra.mxu1 %v7128_v55 }
 0x5fc   : > { %2533 = vmatprep.subr.mxu1 %v7131_v32 }
 0x5fd   : > { %2534 = vmatpush2.msra.mxu1 %v7134_v44  ;;  %v7152_v44 = vld [vmem:[#allocation8 + $0x4c0] sm:$0xff] }
 0x5fe   : > { %2535 = vmatprep.subr.mxu1 %v7137_v28  ;;  %9396 = vst [vmem:[#allocation134_spill] sm:$0xff] %v7152_v44  ;;  %v7155_v28 = vld [vmem:[#allocation8 + $0x498] sm:$0xff] }
 0x5ff   : > { %2536 = vmatpush2.msra.mxu1 %v7140_v57  ;;  %9397 = vst [vmem:[#allocation136_spill] sm:$0xff] %v7155_v28  ;;  %v7158_v57 = vld [vmem:[#allocation8 + $0x490] sm:$0xff] }
 0x600   : > { %2537 = vmatprep.subr.mxu1 %v7143_v15  ;;  %9398 = vst [vmem:[#allocation138_spill] sm:$0xff] %v7158_v57  ;;  %v7161_v15 = vld [vmem:[#allocation8 + $0x468] sm:$0xff] }
 0x601   : > { %2538 = vmatpush2.msra.mxu1 %v7146_v26  ;;  %9399 = vst [vmem:[#allocation140_spill] sm:$0xff] %v7161_v15  ;;  %v7164_v26 = vld [vmem:[#allocation8 + $0x460] sm:$0xff] }
 0x602   : > { %2539 = vmatprep.subr.mxu1 %v7149_v29  ;;  %9400 = vst [vmem:[#allocation141_spill] sm:$0xff] %v7164_v26  ;;  %v7167_v29 = vld [vmem:[#allocation8 + $0x438] sm:$0xff] }
 0x603   : > { %2540 = vmatpush2.msra.mxu1 %v7152_v44  ;;  %9401 = vst [vmem:[#allocation142_spill] sm:$0xff] %v7167_v29  ;;  %v7170_v44 = vld [vmem:[#allocation8 + $0x430] sm:$0xff] }
 0x604   : > { %2541 = vmatprep.subr.mxu1 %v7155_v28  ;;  %9402 = vst [vmem:[#allocation143_spill] sm:$0xff] %v7170_v44  ;;  %v7173_v28 = vld [vmem:[#allocation8 + $0x408] sm:$0xff] }
 0x605   : > { %2542 = vmatpush2.msra.mxu1 %v7158_v57  ;;  %9403 = vst [vmem:[#allocation144_spill] sm:$0xff] %v7173_v28  ;;  %v7176_v57 = vld [vmem:[#allocation8 + $0x400] sm:$0xff] }
 0x606   : > { %2543 = vmatprep.subr.mxu1 %v7161_v15  ;;  %9404 = vst [vmem:[#allocation145_spill] sm:$0xff] %v7176_v57  ;;  %v7179_v15 = vld [vmem:[#allocation8 + $0x3d8] sm:$0xff] }
 0x607   : > { %2544 = vmatpush2.msra.mxu1 %v7164_v26  ;;  %9405 = vst [vmem:[#allocation147_spill] sm:$0xff] %v7179_v15  ;;  %v7182_v26 = vld [vmem:[#allocation8 + $0x3d0] sm:$0xff] }
 0x608   : > { %2545 = vmatprep.subr.mxu1 %v7167_v29  ;;  %9406 = vst [vmem:[#allocation146_spill] sm:$0xff] %v7182_v26  ;;  %v7185_v29 = vld [vmem:[#allocation8 + $0x3a8] sm:$0xff] }
 0x609   : > { %2546 = vmatpush2.msra.mxu1 %v7170_v44  ;;  %9407 = vst [vmem:[#allocation148_spill] sm:$0xff] %v7185_v29  ;;  %v7188_v44 = vld [vmem:[#allocation8 + $0x3a0] sm:$0xff] }
 0x60a   : > { %2547 = vmatprep.subr.mxu1 %v7173_v28  ;;  %9408 = vst [vmem:[#allocation85_spill] sm:$0xff] %v7188_v44  ;;  %v7191_v28 = vld [vmem:[#allocation8 + $0x378] sm:$0xff] }
 0x60b   : > { %2548 = vmatpush2.msra.mxu1 %v7176_v57  ;;  %9409 = vst [vmem:[#allocation19_spill] sm:$0xff] %v7191_v28  ;;  %v7194_v57 = vld [vmem:[#allocation8 + $0x370] sm:$0xff] }
 0x60c   : > { %2549 = vmatprep.subr.mxu1 %v7179_v15  ;;  %9410 = vst [vmem:[#allocation89_spill] sm:$0xff] %v7194_v57  ;;  %v7197_v15 = vld [vmem:[#allocation8 + $0x348] sm:$0xff] }
 0x60d   : > { %2550 = vmatpush2.msra.mxu1 %v7182_v26  ;;  %9411 = vst [vmem:[#allocation21_spill] sm:$0xff] %v7197_v15  ;;  %v7200_v26 = vld [vmem:[#allocation8 + $0x340] sm:$0xff] }
 0x60e   : > { %2551 = vmatprep.subr.mxu1 %v7185_v29  ;;  %9412 = vst [vmem:[#allocation91_spill] sm:$0xff] %v7200_v26  ;;  %v7203_v29 = vld [vmem:[#allocation8 + $0x318] sm:$0xff] }
 0x60f   : > { %2552 = vmatpush2.msra.mxu1 %v7188_v44  ;;  %9413 = vst [vmem:[#allocation22_spill] sm:$0xff] %v7203_v29  ;;  %v7206_v44 = vld [vmem:[#allocation8 + $0x310] sm:$0xff] }
 0x610   : > { %2553 = vmatprep.subr.mxu1 %v7191_v28  ;;  %9414 = vst [vmem:[#allocation93_spill] sm:$0xff] %v7206_v44  ;;  %v7209_v28 = vld [vmem:[#allocation8 + $0x2d8] sm:$0xff] }
 0x611   : > { %2554 = vmatpush2.msra.mxu1 %v7194_v57  ;;  %9415 = vst [vmem:[#allocation23_spill] sm:$0xff] %v7209_v28 }
 0x612   : > { %2555 = vmatprep.subr.mxu1 %v7197_v15 }
 0x613   : > { %2556 = vmatpush2.msra.mxu1 %v7200_v26 }
 0x614   : > { %2557 = vmatprep.subr.mxu1 %v7203_v29  ;;  %v9417_v29 = vld [vmem:[#allocation20_spill] sm:$0xff] }
 0x615   : > { %2558 = vmatpush2.msra.mxu1 %v7206_v44 }
 0x616   : > { %2707 = vmatprep.subr.mxu1 %v7209_v28 }
 0x656   : > { %v2207_v57 = vpop.f32.mrf.mxu1  ;;  %v2278_v30 = vpop.f32.mrf.mxu0 }
 0x657   : > { %v2208_v15 = vadd.f32 %v2207_v57, %v9024_v59  ;;  %v2279_v44 = vadd.f32 %v2278_v30, %v9028_v7 }
 0x658   : > { %v2209_v32 = vpop.f32.mrf.mxu1  ;;  %v2280_v42 = vpop.f32.mrf.mxu0 }
 0x659   : > { %v2210_v55 = vadd.f32 %v2209_v32, %v9025_v5  ;;  %v2358_v36 = vrot.slane %v2208_v15, 4  ;;  %v2281_v28 = vadd.f32 %v2280_v42, %v9029_v10  ;;  %v2360_v47 = vrot.slane %v2279_v44, 4 }
 0x65b   : > { %v2359_v26 = vrot.slane %v2210_v55, 4  ;;  %v2366_v9 = vadd.f32 %v2358_v36, %v9416_v0  ;;  %v2361_v57 = vrot.slane %v2281_v28, 4  ;;  %v2368_v32 = vadd.f32 %v2360_v47, %v9030_v27 }
 0x65d   : > { %v2367_v6 = vadd.f32 %v2359_v26, %v9417_v29  ;;  %v3494_v50 = vmul.f32 -1.442695, %v2366_v9  ;;  %v2369_v55 = vadd.f32 %v2361_v57, %v9031_v35  ;;  %v3496_v15 = vmul.f32 -1.442695, %v2368_v32 }
 0x65f   : > { %v3495_v51 = vmul.f32 -1.442695, %v2367_v6  ;;  %3696 = vpow2.f32 %v3494_v50  ;;  %v3497_v36 = vmul.f32 -1.442695, %v2369_v55 }
 0x661   : > { %3698 = vpow2.f32 %v3495_v51 }
 0x662   : > { %3700 = vpow2.f32 %v3496_v15 }
 0x663   : > { %3702 = vpow2.f32 %v3497_v36 }
 0x66c   : > { %v3697_v0 = vpop.eup %3696 }
 0x66d   : > { %v2382_v9 = vadd.f32 1.0, %v3697_v0 }
 0x66e   : > { %v3699_v26 = vpop.eup %3698 }
 0x66f   : > { %v2383_v29 = vadd.f32 1.0, %v3699_v26  ;;  %3704 = vrcp.f32 %v2382_v9  ;;  %v3701_v50 = vpop.eup %3700 }
 0x670   : > { %v3703_v6 = vpop.eup %3702  ;;  %v2384_v30 = vadd.f32 1.0, %v3701_v50 }
 0x671   : > { %3706 = vrcp.f32 %v2383_v29  ;;  %v2385_v47 = vadd.f32 1.0, %v3703_v6  ;;  %v2410_v6 = vrot.slane %v6813_v12, 7 }
 0x672   : > { %3708 = vrcp.f32 %v2384_v30  ;;  %v2411_v30 = vrot.slane %v6815_v60, 7 }
 0x673   : > { %3710 = vrcp.f32 %v2385_v47 }
 0x67c   : > { %v3705_v32 = vpop.eup %3704 }
 0x67e   : > { %v3707_v0 = vpop.eup %3706 }
 0x67f   : > { %v3709_v9 = vpop.eup %3708 }
 0x680   : > { %v3711_v50 = vpop.eup %3710 }
 0x696   : > { %v2349_v42 = vpop.f32.mrf.mxu1 }
 0x697   : > { %v2350_v51 = vadd.f32 %v2349_v42, %v5577_v49  ;;  %v2406_v42 = vsub.f32 1.0, %v3709_v9 }
 0x698   : > { %v2351_v44 = vpop.f32.mrf.mxu1 }
 0x699   : > { %v2396_v28 = vrot.slane %v2350_v51, 4  ;;  %v2352_v57 = vadd.f32 %v2351_v44, %v5579_v56  ;;  %v2407_v44 = vsub.f32 1.0, %v3711_v50 }
 0x69b   : > { %v2400_v55 = vmul.f32 %v3705_v32, %v2396_v28  ;;  %v2397_v15 = vrot.slane %v2352_v57, 4  ;;  %v2414_v57 = vmul.f32 %v3709_v9, %v2410_v6  ;;  %v7374_v9 = vld [vmem:[#allocation8 + $0x5d0] sm:$0xff]  ;;  %v7386_v6 = vld [vmem:[#allocation8 + $0x578] sm:$0xff] }
 0x69c   : > { %9424 = vst [vmem:[#allocation97_spill] sm:$0xff] %v7386_v6 }
 0x69d   : > { %v2402_v36 = vadd.f32 %v2400_v55, %v5583_v61  ;;  %v2401_v29 = vmul.f32 %v3707_v0, %v2397_v15  ;;  %v2415_v55 = vmul.f32 %v3711_v50, %v2411_v30  ;;  %v7378_v50 = vld [vmem:[#allocation8 + $0x5a8] sm:$0xff]  ;;  %v9427_v30 = vld [vmem:[#allocation73_spill] sm:$0xff] }
 0x69e   : > { %9420 = vst [vmem:[#allocation95_spill] sm:$0xff] %v7378_v50 }
 0x69f   : > { %3712 = vtanh.f32 %v2402_v36  ;;  %v2403_v26 = vadd.f32 %v2401_v29, %v5585_v62 }
 0x6a1   : > { %3714 = vtanh.f32 %v2403_v26  ;;  %v7254_v26 = vld [vmem:[#allocation8 + $0x2a0] sm:$0xff] }
 0x6ac   : > { %v3713_v51 = vpop.eup %3712 }
 0x6ad   : > { %v2408_v28 = vmul.f32 %v3713_v51, %v2406_v42  ;;  %v7382_v42 = vld [vmem:[#allocation8 + $0x5a0] sm:$0xff]  ;;  %v9425_v51 = vld [vmem:[#allocation72_spill] sm:$0xff] }
 0x6ae   : > { %v3715_v32 = vpop.eup %3714  ;;  %9422 = vst [vmem:[#allocation24_spill] sm:$0xff] %v7382_v42 }
 0x6af   : > { %v2409_v47 = vmul.f32 %v3715_v32, %v2407_v44  ;;  %v7226_v15 = vadd.f32 %v2414_v57, %v2408_v28  ;;  %v7390_v44 = vld [vmem:[#allocation8 + $0x570] sm:$0xff]  ;;  %v7394_v28 = vld [vmem:[#allocation8 + $0x548] sm:$0xff]  ;;  %v9429_v57 = vld [vmem:[#allocation74_spill] sm:$0xff] }
 0x6b0   : > { %9426 = vst [vmem:[#allocation25_spill] sm:$0xff] %v7390_v44  ;;  %9428 = vst [vmem:[#allocation99_spill] sm:$0xff] %v7394_v28  ;;  %v7398_v32 = vld [vmem:[#allocation8 + $0x540] sm:$0xff] }
 0x6b1   : > { %v7228_v0 = vadd.f32 %v2415_v55, %v2409_v47  ;;  %v7232_v36 = vsel %vm3276_vm4, %v6819_v63, %v7226_v15  ;;  %v7240_v60 = vrot.slane %v7226_v15, 4  ;;  %v7246_v63 = vld [vmem:[#allocation8 + $0x2d0] sm:$0xff]  ;;  %9430 = vst [vmem:[#allocation26_spill] sm:$0xff] %v7398_v32  ;;  %v9431_v47 = vld [vmem:[#allocation75_spill] sm:$0xff]  ;;  %v7402_v55 = vld [vmem:[#allocation8 + $0x518] sm:$0xff] }
 0x6b2   : > { %9432 = vst [vmem:[#allocation101_spill] sm:$0xff] %v7402_v55 }
 0x6b3   : > { %v2421_v12 = vrot.slane %v7228_v0, 4  ;;  %v7237_v29 = vsel %vm3276_vm4, %v6824_v58, %v7228_v0  ;;  %v7250_v58 = vld [vmem:[#allocation8 + $0x2a8] sm:$0xff] }
 0x6b5   : > { %2488 = vmatprep.mubr.f32.mxu0 %v2421_v12  ;;  %2559 = vmatprep.mubr.f32.mxu1 %v2421_v12 }
 0x6b6   : > { %2489 = vmatmul.mubr.f32.vlgmr.msra.gmra.mxu0 %v7240_v60  ;;  %2560 = vmatmul.mubr.f32.vlgmr.msra.gmra.mxu1 %v7240_v60 }
 0x6b7   : > { %2567 = vmatpush1.msra.mxu0 %v6831_v13  ;;  %2630 = vmatprep.mubr.f32.mxu0 %v2421_v12  ;;  %v7258_v13 = vld [vmem:[#allocation8 + $0x278] sm:$0xff]  ;;  %v9433_v12 = vld [vmem:[#allocation76_spill] sm:$0xff] }
 0x6b8   : > { %2568 = vmatprep.subr.mxu0 %v6834_v11  ;;  %2708 = vmatpush1.msra.mxu1 %v7246_v63  ;;  %v7262_v11 = vld [vmem:[#allocation8 + $0x270] sm:$0xff] }
 0x6b9   : > { %2569 = vmatpush1.msra.mxu0 %v6838_v20  ;;  %2709 = vmatprep.subr.mxu1 %v7250_v58  ;;  %v7266_v20 = vld [vmem:[#allocation8 + $0x248] sm:$0xff] }
 0x6ba   : > { %2570 = vmatprep.subr.mxu0 %v6842_v52  ;;  %2710 = vmatpush1.msra.mxu1 %v7254_v26  ;;  %v7270_v52 = vld [vmem:[#allocation8 + $0x240] sm:$0xff] }
 0x6bb   : > { %2571 = vmatpush1.msra.mxu0 %v6846_v38  ;;  %2711 = vmatprep.subr.mxu1 %v7258_v13  ;;  %v7274_v38 = vld [vmem:[#allocation8 + $0x218] sm:$0xff] }
 0x6bc   : > { %2572 = vmatprep.subr.mxu0 %v6850_v41  ;;  %2712 = vmatpush1.msra.mxu1 %v7262_v11  ;;  %v7278_v41 = vld [vmem:[#allocation8 + $0x210] sm:$0xff] }
 0x6bd   : > { %2573 = vmatpush1.msra.mxu0 %v6854_v1  ;;  %2713 = vmatprep.subr.mxu1 %v7266_v20  ;;  %v7282_v1 = vld [vmem:[#allocation8 + $0x1e8] sm:$0xff] }
 0x6be   : > { %2574 = vmatprep.subr.mxu0 %v6858_v37  ;;  %2714 = vmatpush1.msra.mxu1 %v7270_v52  ;;  %v7286_v37 = vld [vmem:[#allocation8 + $0x1e0] sm:$0xff] }
 0x6bf   : > { %2575 = vmatpush1.msra.mxu0 %v6862_v16  ;;  %2715 = vmatprep.subr.mxu1 %v7274_v38  ;;  %v7290_v16 = vld [vmem:[#allocation8 + $0x1b8] sm:$0xff] }
 0x6c0   : > { %2576 = vmatprep.subr.mxu0 %v6866_v24  ;;  %2716 = vmatpush1.msra.mxu1 %v7278_v41  ;;  %v7294_v24 = vld [vmem:[#allocation8 + $0x1b0] sm:$0xff] }
 0x6c1   : > { %2577 = vmatpush1.msra.mxu0 %v6870_v3  ;;  %2717 = vmatprep.subr.mxu1 %v7282_v1  ;;  %v7298_v3 = vld [vmem:[#allocation8 + $0x188] sm:$0xff] }
 0x6c2   : > { %2578 = vmatprep.subr.mxu0 %v6874_v14  ;;  %2718 = vmatpush1.msra.mxu1 %v7286_v37  ;;  %v7302_v14 = vld [vmem:[#allocation8 + $0x180] sm:$0xff] }
 0x6c3   : > { %2579 = vmatpush1.msra.mxu0 %v6878_v31  ;;  %2719 = vmatprep.subr.mxu1 %v7290_v16  ;;  %v7306_v31 = vld [vmem:[#allocation8 + $0x158] sm:$0xff] }
 0x6c4   : > { %2580 = vmatprep.subr.mxu0 %v6882_v39  ;;  %2720 = vmatpush1.msra.mxu1 %v7294_v24  ;;  %v7310_v39 = vld [vmem:[#allocation8 + $0x150] sm:$0xff] }
 0x6c5   : > { %2581 = vmatpush1.msra.mxu0 %v6886_v45  ;;  %2721 = vmatprep.subr.mxu1 %v7298_v3  ;;  %v7314_v45 = vld [vmem:[#allocation8 + $0x128] sm:$0xff] }
 0x6c6   : > { %2582 = vmatprep.subr.mxu0 %v6890_v43  ;;  %2722 = vmatpush1.msra.mxu1 %v7302_v14  ;;  %v7318_v43 = vld [vmem:[#allocation8 + $0x120] sm:$0xff] }
 0x6c7   : > { %2583 = vmatpush1.msra.mxu0 %v6894_v19  ;;  %2723 = vmatprep.subr.mxu1 %v7306_v31  ;;  %v7322_v19 = vld [vmem:[#allocation8 + $0xf8] sm:$0xff] }
 0x6c8   : > { %2584 = vmatprep.subr.mxu0 %v6898_v17  ;;  %2724 = vmatpush1.msra.mxu1 %v7310_v39  ;;  %v7326_v17 = vld [vmem:[#allocation8 + $0xf0] sm:$0xff] }
 0x6c9   : > { %2585 = vmatpush1.msra.mxu0 %v6902_v25  ;;  %2725 = vmatprep.subr.mxu1 %v7314_v45  ;;  %v7330_v25 = vld [vmem:[#allocation8 + $0xc8] sm:$0xff] }
 0x6ca   : > { %2586 = vmatprep.subr.mxu0 %v6906_v23  ;;  %2726 = vmatpush1.msra.mxu1 %v7318_v43  ;;  %v7334_v23 = vld [vmem:[#allocation8 + $0xc0] sm:$0xff] }
 0x6cb   : > { %2587 = vmatpush1.msra.mxu0 %v6910_v54  ;;  %2727 = vmatprep.subr.mxu1 %v7322_v19  ;;  %v7338_v54 = vld [vmem:[#allocation8 + $0x98] sm:$0xff] }
 0x6cc   : > { %2588 = vmatprep.subr.mxu0 %v6914_v22  ;;  %2728 = vmatpush1.msra.mxu1 %v7326_v17  ;;  %v7342_v22 = vld [vmem:[#allocation8 + $0x90] sm:$0xff] }
 0x6cd   : > { %2589 = vmatpush1.msra.mxu0 %v6918_v8  ;;  %2729 = vmatprep.subr.mxu1 %v7330_v25  ;;  %v7346_v8 = vld [vmem:[#allocation8 + $0x68] sm:$0xff] }
 0x6ce   : > { %2590 = vmatprep.subr.mxu0 %v6922_v2  ;;  %2730 = vmatpush1.msra.mxu1 %v7334_v23  ;;  %v7350_v2 = vld [vmem:[#allocation8 + $0x60] sm:$0xff] }
 0x6cf   : > { %2591 = vmatpush1.msra.mxu0 %v6926_v18  ;;  %2731 = vmatprep.subr.mxu1 %v7338_v54  ;;  %v7354_v18 = vld [vmem:[#allocation8 + $0x38] sm:$0xff] }
 0x6d0   : > { %2592 = vmatprep.subr.mxu0 %v6930_v48  ;;  %2732 = vmatpush1.msra.mxu1 %v7342_v22  ;;  %v7358_v48 = vld [vmem:[#allocation8 + $0x30] sm:$0xff] }
 0x6d1   : > { %2593 = vmatpush1.msra.mxu0 %v6934_v33  ;;  %2733 = vmatprep.subr.mxu1 %v7346_v8  ;;  %v7362_v33 = vld [vmem:[#allocation8 + $0x8] sm:$0xff] }
 0x6d2   : > { %2594 = vmatprep.subr.mxu0 %v6938_v46  ;;  %2734 = vmatpush1.msra.mxu1 %v7350_v2  ;;  %v7366_v46 = vld [vmem:[#allocation8] sm:$0xff] }
 0x6d3   : > { %2595 = vmatpush1.msra.mxu0 %v6942_v4  ;;  %2735 = vmatprep.subr.mxu1 %v7354_v18  ;;  %v7370_v4 = vld [vmem:[#allocation8 + $0x5d8] sm:$0xff] }
 0x6d4   : > { %2596 = vmatprep.subr.mxu0 %v6946_v53  ;;  %2736 = vmatpush1.msra.mxu1 %v7358_v48  ;;  %v9418_v53 = vld [vmem:[#allocation68_spill] sm:$0xff] }
 0x6d5   : > { %2597 = vmatpush1.msra.mxu0 %v6950_v40  ;;  %2737 = vmatprep.subr.mxu1 %v7362_v33  ;;  %v9419_v40 = vld [vmem:[#allocation69_spill] sm:$0xff] }
 0x6d6   : > { %2598 = vmatprep.subr.mxu0 %v6954_v34  ;;  %2738 = vmatpush1.msra.mxu1 %v7366_v46  ;;  %v9421_v34 = vld [vmem:[#allocation70_spill] sm:$0xff] }
 0x6d7   : > { %2599 = vmatpush2.msra.mxu0 %v6958_v21  ;;  %2739 = vmatprep.subr.mxu1 %v7370_v4  ;;  %v9423_v21 = vld [vmem:[#allocation71_spill] sm:$0xff] }
 0x6d8   : > { %2600 = vmatprep.subr.mxu0 %v9418_v53  ;;  %2740 = vmatpush2.msra.mxu1 %v7374_v9  ;;  %v7406_v53 = vld [vmem:[#allocation8 + $0x510] sm:$0xff] }
 0x6d9   : > { %2601 = vmatpush2.msra.mxu0 %v9419_v40  ;;  %2741 = vmatprep.subr.mxu1 %v7378_v50  ;;  %9434 = vst [vmem:[#allocation27_spill] sm:$0xff] %v7406_v53  ;;  %v9435_v40 = vld [vmem:[#allocation77_spill] sm:$0xff] }
 0x6da   : > { %2602 = vmatprep.subr.mxu0 %v9421_v34  ;;  %2742 = vmatpush2.msra.mxu1 %v7382_v42  ;;  %v7410_v34 = vld [vmem:[#allocation8 + $0x4e8] sm:$0xff] }
 0x6db   : > { %2603 = vmatpush2.msra.mxu0 %v9423_v21  ;;  %2743 = vmatprep.subr.mxu1 %v7386_v6  ;;  %9436 = vst [vmem:[#allocation103_spill] sm:$0xff] %v7410_v34  ;;  %v9437_v21 = vld [vmem:[#allocation78_spill] sm:$0xff] }
 0x6dc   : > { %2604 = vmatprep.subr.mxu0 %v9425_v51  ;;  %2744 = vmatpush2.msra.mxu1 %v7390_v44  ;;  %v7414_v51 = vld [vmem:[#allocation8 + $0x4e0] sm:$0xff] }
 0x6dd   : > { %2605 = vmatpush2.msra.mxu0 %v9427_v30  ;;  %2745 = vmatprep.subr.mxu1 %v7394_v28  ;;  %9438 = vst [vmem:[#allocation28_spill] sm:$0xff] %v7414_v51  ;;  %v9439_v30 = vld [vmem:[#allocation79_spill] sm:$0xff] }
 0x6de   : > { %2606 = vmatprep.subr.mxu0 %v9429_v57  ;;  %2746 = vmatpush2.msra.mxu1 %v7398_v32  ;;  %v7418_v57 = vld [vmem:[#allocation8 + $0x4b8] sm:$0xff]  ;;  %v9544_v28 = vld [vmem:[#allocation87_spill] sm:$0xff] }
 0x6df   : > { %2607 = vmatpush2.msra.mxu0 %v9431_v47  ;;  %2747 = vmatprep.subr.mxu1 %v7402_v55  ;;  %9440 = vst [vmem:[#allocation105_spill] sm:$0xff] %v7418_v57  ;;  %v9441_v47 = vld [vmem:[#allocation80_spill] sm:$0xff]  ;;  %v9522_v55 = vld [vmem:[#allocation130_spill] sm:$0xff] }
 0x6e0   : > { %2608 = vmatprep.subr.mxu0 %v9433_v12  ;;  %2748 = vmatpush2.msra.mxu1 %v7406_v53  ;;  %v7422_v12 = vld [vmem:[#allocation8 + $0x4b0] sm:$0xff]  ;;  %v9520_v53 = vld [vmem:[#allocation126_spill] sm:$0xff] }
 0x6e1   : > { %2609 = vmatpush2.msra.mxu0 %v9435_v40  ;;  %2749 = vmatprep.subr.mxu1 %v7410_v34  ;;  %9442 = vst [vmem:[#allocation29_spill] sm:$0xff] %v7422_v12  ;;  %v9443_v40 = vld [vmem:[#allocation81_spill] sm:$0xff]  ;;  %v7426_v34 = vld [vmem:[#allocation8 + $0x488] sm:$0xff] }
 0x6e2   : > { %2610 = vmatprep.subr.mxu0 %v9437_v21  ;;  %2750 = vmatpush2.msra.mxu1 %v7414_v51  ;;  %9444 = vst [vmem:[#allocation107_spill] sm:$0xff] %v7426_v34  ;;  %v9445_v21 = vld [vmem:[#allocation82_spill] sm:$0xff] }
 0x6e3   : > { %2611 = vmatpush2.msra.mxu0 %v9439_v30  ;;  %2751 = vmatprep.subr.mxu1 %v7418_v57  ;;  %v7430_v51 = vld [vmem:[#allocation8 + $0x480] sm:$0xff]  ;;  %v9447_v30 = vld [vmem:[#allocation83_spill] sm:$0xff]  ;;  %v7434_v57 = vld [vmem:[#allocation8 + $0x458] sm:$0xff] }
 0x6e4   : > { %2612 = vmatprep.subr.mxu0 %v9441_v47  ;;  %2752 = vmatpush2.msra.mxu1 %v7422_v12  ;;  %9446 = vst [vmem:[#allocation30_spill] sm:$0xff] %v7430_v51  ;;  %9448 = vst [vmem:[#allocation109_spill] sm:$0xff] %v7434_v57  ;;  %v9449_v47 = vld [vmem:[#allocation84_spill] sm:$0xff] }
 0x6e5   : > { %2613 = vmatpush2.msra.mxu0 %v9443_v40  ;;  %2753 = vmatprep.subr.mxu1 %v7426_v34  ;;  %v7438_v12 = vld [vmem:[#allocation8 + $0x450] sm:$0xff]  ;;  %v9451_v40 = vld [vmem:[#allocation86_spill] sm:$0xff]  ;;  %v7442_v34 = vld [vmem:[#allocation8 + $0x428] sm:$0xff] }
 0x6e6   : > { %2614 = vmatprep.subr.mxu0 %v9445_v21  ;;  %2754 = vmatpush2.msra.mxu1 %v7430_v51  ;;  %9450 = vst [vmem:[#allocation31_spill] sm:$0xff] %v7438_v12  ;;  %9452 = vst [vmem:[#allocation111_spill] sm:$0xff] %v7442_v34  ;;  %v9453_v21 = vld [vmem:[#allocation88_spill] sm:$0xff]  ;;  %v7446_v51 = vld [vmem:[#allocation8 + $0x420] sm:$0xff] }
 0x6e7   : > { %2615 = vmatpush2.msra.mxu0 %v9447_v30  ;;  %2755 = vmatprep.subr.mxu1 %v7434_v57  ;;  %9454 = vst [vmem:[#allocation32_spill] sm:$0xff] %v7446_v51  ;;  %v9455_v30 = vld [vmem:[#allocation90_spill] sm:$0xff]  ;;  %v7450_v57 = vld [vmem:[#allocation8 + $0x3f8] sm:$0xff] }
 0x6e8   : > { %2616 = vmatprep.subr.mxu0 %v9449_v47  ;;  %2756 = vmatpush2.msra.mxu1 %v7438_v12  ;;  %9456 = vst [vmem:[#allocation113_spill] sm:$0xff] %v7450_v57  ;;  %v9457_v47 = vld [vmem:[#allocation92_spill] sm:$0xff] }
 0x6e9   : > { %2617 = vmatpush2.msra.mxu0 %v9451_v40  ;;  %2757 = vmatprep.subr.mxu1 %v7442_v34  ;;  %v7454_v12 = vld [vmem:[#allocation8 + $0x3f0] sm:$0xff]  ;;  %v9459_v40 = vld [vmem:[#allocation94_spill] sm:$0xff]  ;;  %v7458_v34 = vld [vmem:[#allocation8 + $0x3c8] sm:$0xff] }
 0x6ea   : > { %2618 = vmatprep.subr.mxu0 %v9453_v21  ;;  %2758 = vmatpush2.msra.mxu1 %v7446_v51  ;;  %9458 = vst [vmem:[#allocation33_spill] sm:$0xff] %v7454_v12  ;;  %9460 = vst [vmem:[#allocation115_spill] sm:$0xff] %v7458_v34  ;;  %v9461_v21 = vld [vmem:[#allocation96_spill] sm:$0xff]  ;;  %v7462_v51 = vld [vmem:[#allocation8 + $0x3c0] sm:$0xff] }
 0x6eb   : > { %2619 = vmatpush2.msra.mxu0 %v9455_v30  ;;  %2759 = vmatprep.subr.mxu1 %v7450_v57  ;;  %9462 = vst [vmem:[#allocation34_spill] sm:$0xff] %v7462_v51  ;;  %v9463_v30 = vld [vmem:[#allocation98_spill] sm:$0xff]  ;;  %v7466_v57 = vld [vmem:[#allocation8 + $0x398] sm:$0xff] }
 0x6ec   : > { %2620 = vmatprep.subr.mxu0 %v9457_v47  ;;  %2760 = vmatpush2.msra.mxu1 %v7454_v12  ;;  %9464 = vst [vmem:[#allocation117_spill] sm:$0xff] %v7466_v57  ;;  %v9465_v47 = vld [vmem:[#allocation100_spill] sm:$0xff] }
 0x6ed   : > { %2621 = vmatpush2.msra.mxu0 %v9459_v40  ;;  %2761 = vmatprep.subr.mxu1 %v7458_v34  ;;  %v7470_v12 = vld [vmem:[#allocation8 + $0x390] sm:$0xff]  ;;  %v9467_v40 = vld [vmem:[#allocation102_spill] sm:$0xff]  ;;  %v7474_v34 = vld [vmem:[#allocation8 + $0x368] sm:$0xff] }
 0x6ee   : > { %2622 = vmatprep.subr.mxu0 %v9461_v21  ;;  %2762 = vmatpush2.msra.mxu1 %v7462_v51  ;;  %9466 = vst [vmem:[#allocation35_spill] sm:$0xff] %v7470_v12  ;;  %9468 = vst [vmem:[#allocation119_spill] sm:$0xff] %v7474_v34  ;;  %v9469_v21 = vld [vmem:[#allocation104_spill] sm:$0xff]  ;;  %v7478_v51 = vld [vmem:[#allocation8 + $0x360] sm:$0xff] }
 0x6ef   : > { %2623 = vmatpush2.msra.mxu0 %v9463_v30  ;;  %2763 = vmatprep.subr.mxu1 %v7466_v57  ;;  %9470 = vst [vmem:[#allocation36_spill] sm:$0xff] %v7478_v51  ;;  %v9471_v30 = vld [vmem:[#allocation106_spill] sm:$0xff]  ;;  %v7482_v57 = vld [vmem:[#allocation8 + $0x338] sm:$0xff] }
 0x6f0   : > { %2624 = vmatprep.subr.mxu0 %v9465_v47  ;;  %2764 = vmatpush2.msra.mxu1 %v7470_v12  ;;  %9472 = vst [vmem:[#allocation121_spill] sm:$0xff] %v7482_v57  ;;  %v9473_v47 = vld [vmem:[#allocation108_spill] sm:$0xff] }
 0x6f1   : > { %2625 = vmatpush2.msra.mxu0 %v9467_v40  ;;  %2765 = vmatprep.subr.mxu1 %v7474_v34  ;;  %v7486_v12 = vld [vmem:[#allocation8 + $0x330] sm:$0xff]  ;;  %v9475_v40 = vld [vmem:[#allocation110_spill] sm:$0xff]  ;;  %v7490_v34 = vld [vmem:[#allocation8 + $0x308] sm:$0xff] }
 0x6f2   : > { %2626 = vmatprep.subr.mxu0 %v9469_v21  ;;  %2766 = vmatpush2.msra.mxu1 %v7478_v51  ;;  %9474 = vst [vmem:[#allocation37_spill] sm:$0xff] %v7486_v12  ;;  %9476 = vst [vmem:[#allocation123_spill] sm:$0xff] %v7490_v34  ;;  %v7494_v21 = vld [vmem:[#allocation8 + $0x2e8] sm:$0xff]  ;;  %v9518_v51 = vld [vmem:[#allocation122_spill] sm:$0xff] }
 0x6f3   : > { %2627 = vmatpush2.msra.mxu0 %v9471_v30  ;;  %2767 = vmatprep.subr.mxu1 %v7482_v57  ;;  %9477 = vst [vmem:[#allocation38_spill] sm:$0xff] %v7494_v21  ;;  %v7497_v30 = vld [vmem:[#allocation8 + $0x2e0] sm:$0xff] }
 0x6f4   : > { %2628 = vmatprep.subr.mxu0 %v9473_v47  ;;  %2768 = vmatpush2.msra.mxu1 %v7486_v12  ;;  %9478 = vst [vmem:[#allocation125_spill] sm:$0xff] %v7497_v30  ;;  %v7500_v47 = vld [vmem:[#allocation8 + $0x300] sm:$0xff]  ;;  %v7503_v12 = vld [vmem:[#allocation8 + $0x2b8] sm:$0xff] }
 0x6f5   : > { %2629 = vmatpush2.msra.mxu0 %v9475_v40  ;;  %2769 = vmatprep.subr.mxu1 %v7490_v34  ;;  %9479 = vst [vmem:[#allocation39_spill] sm:$0xff] %v7500_v47  ;;  %9480 = vst [vmem:[#allocation127_spill] sm:$0xff] %v7503_v12  ;;  %v7506_v40 = vld [vmem:[#allocation8 + $0x2f8] sm:$0xff]  ;;  %v9514_v34 = vld [vmem:[#allocation114_spill] sm:$0xff] }
 0x6f6   : > { %2631 = vmatmul.mubr.f32.vlgmr.msra.gmra.mxu0 %v7240_v60  ;;  %2778 = vmatprep.subr.mxu0 %v7494_v21  ;;  %9481 = vst [vmem:[#allocation40_spill] sm:$0xff] %v7506_v40  ;;  %v7509_v60 = vld [vmem:[#allocation8 + $0x2b0] sm:$0xff]  ;;  %v7512_v21 = vld [vmem:[#allocation8 + $0x288] sm:$0xff]  ;;  %v9516_v57 = vld [vmem:[#allocation118_spill] sm:$0xff] }
 0x6f7   : > { %2779 = vmatpush1.msra.mxu0 %v7497_v30  ;;  %2770 = vmatpush2.msra.mxu1 %v7500_v47  ;;  %9482 = vst [vmem:[#allocation129_spill] sm:$0xff] %v7509_v60  ;;  %9483 = vst [vmem:[#allocation41_spill] sm:$0xff] %v7512_v21  ;;  %v7515_v30 = vld [vmem:[#allocation8 + $0x280] sm:$0xff]  ;;  %v7518_v47 = vld [vmem:[#allocation8 + $0x258] sm:$0xff] }
 0x6f8   : > { %2780 = vmatprep.subr.mxu0 %v7503_v12  ;;  %2849 = vmatprep.subr.mxu1 %v7506_v40  ;;  %9484 = vst [vmem:[#allocation131_spill] sm:$0xff] %v7515_v30  ;;  %9485 = vst [vmem:[#allocation42_spill] sm:$0xff] %v7518_v47  ;;  %v7521_v12 = vld [vmem:[#allocation8 + $0x250] sm:$0xff]  ;;  %v7524_v40 = vld [vmem:[#allocation8 + $0x228] sm:$0xff] }
 0x6f9   : > { %2781 = vmatpush1.msra.mxu0 %v7509_v60  ;;  %9486 = vst [vmem:[#allocation133_spill] sm:$0xff] %v7521_v12  ;;  %9487 = vst [vmem:[#allocation43_spill] sm:$0xff] %v7524_v40  ;;  %v7527_v60 = vld [vmem:[#allocation8 + $0x220] sm:$0xff] }
 0x6fa   : > { %2782 = vmatprep.subr.mxu0 %v7512_v21  ;;  %9488 = vst [vmem:[#allocation135_spill] sm:$0xff] %v7527_v60  ;;  %v7530_v21 = vld [vmem:[#allocation8 + $0x1f8] sm:$0xff] }
 0x6fb   : > { %2783 = vmatpush1.msra.mxu0 %v7515_v30  ;;  %9489 = vst [vmem:[#allocation45_spill] sm:$0xff] %v7530_v21  ;;  %v7533_v30 = vld [vmem:[#allocation8 + $0x1f0] sm:$0xff] }
 0x6fc   : > { %2784 = vmatprep.subr.mxu0 %v7518_v47  ;;  %9490 = vst [vmem:[#allocation137_spill] sm:$0xff] %v7533_v30  ;;  %v7536_v47 = vld [vmem:[#allocation8 + $0x1c8] sm:$0xff] }
 0x6fd   : > { %2785 = vmatpush1.msra.mxu0 %v7521_v12  ;;  %9491 = vst [vmem:[#allocation46_spill] sm:$0xff] %v7536_v47  ;;  %v7539_v12 = vld [vmem:[#allocation8 + $0x1c0] sm:$0xff] }
 0x6fe   : > { %2786 = vmatprep.subr.mxu0 %v7524_v40  ;;  %9492 = vst [vmem:[#allocation139_spill] sm:$0xff] %v7539_v12  ;;  %v7542_v40 = vld [vmem:[#allocation8 + $0x198] sm:$0xff] }
 0x6ff   : > { %2787 = vmatpush1.msra.mxu0 %v7527_v60  ;;  %9493 = vst [vmem:[#allocation47_spill] sm:$0xff] %v7542_v40  ;;  %v7545_v60 = vld [vmem:[#allocation8 + $0x190] sm:$0xff] }
 0x700   : > { %2788 = vmatprep.subr.mxu0 %v7530_v21  ;;  %9494 = vst [vmem:[#allocation48_spill] sm:$0xff] %v7545_v60  ;;  %v7548_v21 = vld [vmem:[#allocation8 + $0x168] sm:$0xff] }
 0x701   : > { %2789 = vmatpush1.msra.mxu0 %v7533_v30  ;;  %9495 = vst [vmem:[#allocation50_spill] sm:$0xff] %v7548_v21  ;;  %v7551_v30 = vld [vmem:[#allocation8 + $0x160] sm:$0xff] }
 0x702   : > { %2790 = vmatprep.subr.mxu0 %v7536_v47  ;;  %9496 = vst [vmem:[#allocation52_spill] sm:$0xff] %v7551_v30  ;;  %v7554_v47 = vld [vmem:[#allocation8 + $0x138] sm:$0xff] }
 0x703   : > { %2791 = vmatpush1.msra.mxu0 %v7539_v12  ;;  %9497 = vst [vmem:[#allocation53_spill] sm:$0xff] %v7554_v47  ;;  %v7557_v12 = vld [vmem:[#allocation8 + $0x130] sm:$0xff] }
 0x704   : > { %2792 = vmatprep.subr.mxu0 %v7542_v40  ;;  %9498 = vst [vmem:[#allocation54_spill] sm:$0xff] %v7557_v12  ;;  %v7560_v40 = vld [vmem:[#allocation8 + $0x108] sm:$0xff] }
 0x705   : > { %2793 = vmatpush1.msra.mxu0 %v7545_v60  ;;  %9499 = vst [vmem:[#allocation55_spill] sm:$0xff] %v7560_v40  ;;  %v7563_v60 = vld [vmem:[#allocation8 + $0x100] sm:$0xff] }
 0x706   : > { %2794 = vmatprep.subr.mxu0 %v7548_v21  ;;  %9500 = vst [vmem:[#allocation51_spill] sm:$0xff] %v7563_v60  ;;  %v7566_v21 = vld [vmem:[#allocation8 + $0xd8] sm:$0xff] }
 0x707   : > { %2795 = vmatpush1.msra.mxu0 %v7551_v30  ;;  %9501 = vst [vmem:[#allocation49_spill] sm:$0xff] %v7566_v21  ;;  %v7569_v30 = vld [vmem:[#allocation8 + $0xd0] sm:$0xff] }
 0x708   : > { %2796 = vmatprep.subr.mxu0 %v7554_v47  ;;  %9502 = vst [vmem:[#allocation56_spill] sm:$0xff] %v7569_v30  ;;  %v7572_v47 = vld [vmem:[#allocation8 + $0xa8] sm:$0xff] }
 0x709   : > { %2797 = vmatpush1.msra.mxu0 %v7557_v12  ;;  %9503 = vst [vmem:[#allocation57_spill] sm:$0xff] %v7572_v47  ;;  %v7575_v12 = vld [vmem:[#allocation8 + $0xa0] sm:$0xff] }
 0x70a   : > { %2798 = vmatprep.subr.mxu0 %v7560_v40  ;;  %9504 = vst [vmem:[#allocation58_spill] sm:$0xff] %v7575_v12  ;;  %v7578_v40 = vld [vmem:[#allocation8 + $0x78] sm:$0xff] }
 0x70b   : > { %2799 = vmatpush1.msra.mxu0 %v7563_v60  ;;  %9505 = vst [vmem:[#allocation59_spill] sm:$0xff] %v7578_v40  ;;  %v7581_v60 = vld [vmem:[#allocation8 + $0x70] sm:$0xff] }
 0x70c   : > { %2800 = vmatprep.subr.mxu0 %v7566_v21  ;;  %9506 = vst [vmem:[#allocation60_spill] sm:$0xff] %v7581_v60  ;;  %v7584_v21 = vld [vmem:[#allocation8 + $0x48] sm:$0xff] }
 0x70d   : > { %2801 = vmatpush1.msra.mxu0 %v7569_v30  ;;  %9507 = vst [vmem:[#allocation61_spill] sm:$0xff] %v7584_v21  ;;  %v7587_v30 = vld [vmem:[#allocation8 + $0x40] sm:$0xff] }
 0x70e   : > { %2802 = vmatprep.subr.mxu0 %v7572_v47  ;;  %9508 = vst [vmem:[#allocation62_spill] sm:$0xff] %v7587_v30  ;;  %v7590_v47 = vld [vmem:[#allocation8 + $0x18] sm:$0xff] }
 0x70f   : > { %2803 = vmatpush1.msra.mxu0 %v7575_v12  ;;  %9509 = vst [vmem:[#allocation63_spill] sm:$0xff] %v7590_v47  ;;  %v7593_v12 = vld [vmem:[#allocation8 + $0x10] sm:$0xff] }
 0x710   : > { %2804 = vmatprep.subr.mxu0 %v7578_v40  ;;  %9510 = vst [vmem:[#allocation64_spill] sm:$0xff] %v7593_v12  ;;  %v7596_v40 = vld [vmem:[#allocation8 + $0x5e8] sm:$0xff] }
 0x711   : > { %2805 = vmatpush1.msra.mxu0 %v7581_v60  ;;  %9511 = vst [vmem:[#allocation65_spill] sm:$0xff] %v7596_v40  ;;  %v7599_v60 = vld [vmem:[#allocation8 + $0x5e0] sm:$0xff] }
 0x712   : > { %2806 = vmatprep.subr.mxu0 %v7584_v21  ;;  %9512 = vst [vmem:[#allocation66_spill] sm:$0xff] %v7599_v60  ;;  %v9513_v21 = vld [vmem:[#allocation112_spill] sm:$0xff] }
 0x713   : > { %2807 = vmatpush1.msra.mxu0 %v7587_v30  ;;  %v9515_v30 = vld [vmem:[#allocation116_spill] sm:$0xff] }
 0x714   : > { %2808 = vmatprep.subr.mxu0 %v7590_v47  ;;  %v9517_v47 = vld [vmem:[#allocation120_spill] sm:$0xff] }
 0x715   : > { %2809 = vmatpush1.msra.mxu0 %v7593_v12  ;;  %v9519_v12 = vld [vmem:[#allocation124_spill] sm:$0xff] }
 0x716   : > { %2810 = vmatprep.subr.mxu0 %v7596_v40  ;;  %v9521_v40 = vld [vmem:[#allocation128_spill] sm:$0xff] }
 0x717   : > { %2811 = vmatpush2.msra.mxu0 %v7599_v60  ;;  %v9523_v60 = vld [vmem:[#allocation132_spill] sm:$0xff] }
 0x718   : > { %2812 = vmatprep.subr.mxu0 %v9513_v21  ;;  %v9524_v21 = vld [vmem:[#allocation134_spill] sm:$0xff] }
 0x719   : > { %2813 = vmatpush2.msra.mxu0 %v9514_v34  ;;  %v9525_v34 = vld [vmem:[#allocation136_spill] sm:$0xff] }
 0x71a   : > { %2814 = vmatprep.subr.mxu0 %v9515_v30  ;;  %v9526_v30 = vld [vmem:[#allocation138_spill] sm:$0xff] }
 0x71b   : > { %2815 = vmatpush2.msra.mxu0 %v9516_v57  ;;  %v9527_v57 = vld [vmem:[#allocation140_spill] sm:$0xff] }
 0x71c   : > { %2816 = vmatprep.subr.mxu0 %v9517_v47  ;;  %v9528_v47 = vld [vmem:[#allocation141_spill] sm:$0xff] }
 0x71d   : > { %2817 = vmatpush2.msra.mxu0 %v9518_v51  ;;  %v9529_v51 = vld [vmem:[#allocation142_spill] sm:$0xff] }
 0x71e   : > { %2818 = vmatprep.subr.mxu0 %v9519_v12  ;;  %v9530_v12 = vld [vmem:[#allocation143_spill] sm:$0xff] }
 0x71f   : > { %2819 = vmatpush2.msra.mxu0 %v9520_v53  ;;  %v9531_v53 = vld [vmem:[#allocation144_spill] sm:$0xff] }
 0x720   : > { %2820 = vmatprep.subr.mxu0 %v9521_v40  ;;  %v9532_v40 = vld [vmem:[#allocation145_spill] sm:$0xff] }
 0x721   : > { %2821 = vmatpush2.msra.mxu0 %v9522_v55  ;;  %v9533_v55 = vld [vmem:[#allocation147_spill] sm:$0xff] }
 0x722   : > { %2822 = vmatprep.subr.mxu0 %v9523_v60  ;;  %v9534_v60 = vld [vmem:[#allocation146_spill] sm:$0xff] }
 0x723   : > { %2823 = vmatpush2.msra.mxu0 %v9524_v21  ;;  %v9535_v21 = vld [vmem:[#allocation148_spill] sm:$0xff] }
 0x724   : > { %2824 = vmatprep.subr.mxu0 %v9525_v34  ;;  %v9536_v34 = vld [vmem:[#allocation85_spill] sm:$0xff] }
 0x725   : > { %2825 = vmatpush2.msra.mxu0 %v9526_v30  ;;  %v9537_v30 = vld [vmem:[#allocation19_spill] sm:$0xff] }
 0x726   : > { %2826 = vmatprep.subr.mxu0 %v9527_v57  ;;  %v9538_v57 = vld [vmem:[#allocation89_spill] sm:$0xff] }
 0x727   : > { %2827 = vmatpush2.msra.mxu0 %v9528_v47  ;;  %v9539_v47 = vld [vmem:[#allocation21_spill] sm:$0xff] }
 0x728   : > { %2828 = vmatprep.subr.mxu0 %v9529_v51  ;;  %v9540_v51 = vld [vmem:[#allocation91_spill] sm:$0xff] }
 0x729   : > { %2829 = vmatpush2.msra.mxu0 %v9530_v12  ;;  %v9541_v12 = vld [vmem:[#allocation22_spill] sm:$0xff] }
 0x72a   : > { %2830 = vmatprep.subr.mxu0 %v9531_v53  ;;  %v9542_v53 = vld [vmem:[#allocation93_spill] sm:$0xff] }
 0x72b   : > { %2831 = vmatpush2.msra.mxu0 %v9532_v40  ;;  %v9543_v40 = vld [vmem:[#allocation23_spill] sm:$0xff] }
 0x72c   : > { %2832 = vmatprep.subr.mxu0 %v9533_v55 }
 0x72d   : > { %2833 = vmatpush2.msra.mxu0 %v9534_v60 }
 0x72e   : > { %2834 = vmatprep.subr.mxu0 %v9535_v21 }
 0x72f   : > { %2835 = vmatpush2.msra.mxu0 %v9536_v34 }
 0x730   : > { %2836 = vmatprep.subr.mxu0 %v9537_v30 }
 0x731   : > { %2837 = vmatpush2.msra.mxu0 %v9538_v57 }
 0x732   : > { %2838 = vmatprep.subr.mxu0 %v9539_v47  ;;  %v9545_v47 = vld [vmem:[#allocation20_spill] sm:$0xff] }
 0x733   : > { %2839 = vmatpush2.msra.mxu0 %v9540_v51 }
 0x734   : > { %2840 = vmatprep.subr.mxu0 %v9541_v12 }
 0x735   : > { %2841 = vmatpush2.msra.mxu0 %v9542_v53 }
 0x736   : > { %2990 = vmatprep.subr.mxu0 %v9543_v40 }
 0x776   : > { %v2490_v55 = vpop.f32.mrf.mxu0  ;;  %v2561_v44 = vpop.f32.mrf.mxu1 }
 0x777   : > { %v2491_v21 = vadd.f32 %v2490_v55, %v9024_v59  ;;  %v2562_v12 = vadd.f32 %v2561_v44, %v9028_v7 }
 0x778   : > { %v2492_v60 = vpop.f32.mrf.mxu0  ;;  %v2563_v42 = vpop.f32.mrf.mxu1 }
 0x779   : > { %v2493_v34 = vadd.f32 %v2492_v60, %v9025_v5  ;;  %v2641_v32 = vrot.slane %v2491_v21, 3  ;;  %v2564_v40 = vadd.f32 %v2563_v42, %v9029_v10  ;;  %v2643_v50 = vrot.slane %v2562_v12, 3 }
 0x77b   : > { %v2642_v30 = vrot.slane %v2493_v34, 3  ;;  %v2649_v57 = vadd.f32 %v2641_v32, %v9544_v28  ;;  %v2644_v55 = vrot.slane %v2564_v40, 3  ;;  %v2651_v60 = vadd.f32 %v2643_v50, %v9030_v27 }
 0x77d   : > { %v2650_v6 = vadd.f32 %v2642_v30, %v9545_v47  ;;  %v3498_v51 = vmul.f32 -1.442695, %v2649_v57  ;;  %v2652_v21 = vadd.f32 %v2644_v55, %v9031_v35  ;;  %v3500_v34 = vmul.f32 -1.442695, %v2651_v60 }
 0x77f   : > { %v3499_v53 = vmul.f32 -1.442695, %v2650_v6  ;;  %3716 = vpow2.f32 %v3498_v51  ;;  %v3501_v32 = vmul.f32 -1.442695, %v2652_v21 }
 0x781   : > { %3718 = vpow2.f32 %v3499_v53 }
 0x782   : > { %3720 = vpow2.f32 %v3500_v34 }
 0x783   : > { %3722 = vpow2.f32 %v3501_v32 }
 0x78c   : > { %v3717_v28 = vpop.eup %3716 }
 0x78d   : > { %v2665_v57 = vadd.f32 1.0, %v3717_v28 }
 0x78e   : > { %v3719_v30 = vpop.eup %3718 }
 0x78f   : > { %v2666_v47 = vadd.f32 1.0, %v3719_v30  ;;  %3724 = vrcp.f32 %v2665_v57  ;;  %v3721_v6 = vpop.eup %3720 }
 0x790   : > { %v3723_v44 = vpop.eup %3722  ;;  %v2667_v51 = vadd.f32 1.0, %v3721_v6 }
 0x791   : > { %3726 = vrcp.f32 %v2666_v47  ;;  %v2668_v50 = vadd.f32 1.0, %v3723_v44  ;;  %v2693_v44 = vrot.slane %v7226_v15, 7 }
 0x792   : > { %3728 = vrcp.f32 %v2667_v51  ;;  %v2694_v51 = vrot.slane %v7228_v0, 7 }
 0x793   : > { %3730 = vrcp.f32 %v2668_v50 }
 0x79c   : > { %v3725_v60 = vpop.eup %3724 }
 0x79e   : > { %v3727_v28 = vpop.eup %3726 }
 0x79f   : > { %v3729_v57 = vpop.eup %3728 }
 0x7a0   : > { %v3731_v6 = vpop.eup %3730 }
 0x7b6   : > { %v2632_v42 = vpop.f32.mrf.mxu0 }
 0x7b7   : > { %v2633_v12 = vadd.f32 %v2632_v42, %v5577_v49  ;;  %v2689_v42 = vsub.f32 1.0, %v3729_v57 }
 0x7b8   : > { %v2634_v53 = vpop.f32.mrf.mxu0 }
 0x7b9   : > { %v2679_v40 = vrot.slane %v2633_v12, 3  ;;  %v2635_v55 = vadd.f32 %v2634_v53, %v5579_v56  ;;  %v2690_v53 = vsub.f32 1.0, %v3731_v6 }
 0x7bb   : > { %v2683_v21 = vmul.f32 %v3725_v60, %v2679_v40  ;;  %v2680_v34 = vrot.slane %v2635_v55, 3  ;;  %v2697_v55 = vmul.f32 %v3729_v57, %v2693_v44  ;;  %v7676_v57 = vld [vmem:[#allocation8 + $0x298] sm:$0xff] }
 0x7bc   : > { %v7804_v44 = vld [vmem:[#allocation8 + $0x598] sm:$0xff] }
 0x7bd   : > { %v2685_v32 = vadd.f32 %v2683_v21, %v5583_v61  ;;  %v2684_v47 = vmul.f32 %v3727_v28, %v2680_v34  ;;  %v2698_v21 = vmul.f32 %v3731_v6, %v2694_v51  ;;  %v7680_v6 = vld [vmem:[#allocation8 + $0x290] sm:$0xff]  ;;  %9549 = vst [vmem:[#allocation69_spill] sm:$0xff] %v7804_v44  ;;  %v7816_v51 = vld [vmem:[#allocation8 + $0x560] sm:$0xff] }
 0x7be   : > { %9555 = vst [vmem:[#allocation72_spill] sm:$0xff] %v7816_v51 }
 0x7bf   : > { %3732 = vtanh.f32 %v2685_v32  ;;  %v2686_v30 = vadd.f32 %v2684_v47, %v5585_v62 }
 0x7c1   : > { %3734 = vtanh.f32 %v2686_v30  ;;  %v7665_v30 = vld [vmem:[#allocation8 + $0x2f0] sm:$0xff] }
 0x7cc   : > { %v3733_v12 = vpop.eup %3732 }
 0x7cd   : > { %v2691_v40 = vmul.f32 %v3733_v12, %v2689_v42  ;;  %v7684_v42 = vld [vmem:[#allocation8 + $0x268] sm:$0xff]  ;;  %v7808_v12 = vld [vmem:[#allocation8 + $0x590] sm:$0xff] }
 0x7ce   : > { %v3735_v60 = vpop.eup %3734  ;;  %9551 = vst [vmem:[#allocation70_spill] sm:$0xff] %v7808_v12 }
 0x7cf   : > { %v2692_v50 = vmul.f32 %v3735_v60, %v2690_v53  ;;  %v7647_v34 = vadd.f32 %v2697_v55, %v2691_v40  ;;  %v7812_v53 = vld [vmem:[#allocation8 + $0x568] sm:$0xff]  ;;  %v7820_v55 = vld [vmem:[#allocation8 + $0x538] sm:$0xff]  ;;  %v9558_v60 = vld [vmem:[#allocation26_spill] sm:$0xff] }
 0x7d0   : > { %9553 = vst [vmem:[#allocation71_spill] sm:$0xff] %v7812_v53  ;;  %v9556_v40 = vld [vmem:[#allocation99_spill] sm:$0xff]  ;;  %9557 = vst [vmem:[#allocation73_spill] sm:$0xff] %v7820_v55 }
 0x7d1   : > { %v7649_v28 = vadd.f32 %v2698_v21, %v2692_v50  ;;  %v7653_v32 = vsel %vm3279_vm5, %v7232_v36, %v7647_v34  ;;  %v7661_v0 = vrot.slane %v7647_v34, 5  ;;  %v7668_v36 = vld [vmem:[#allocation8 + $0x2c8] sm:$0xff]  ;;  %v7824_v50 = vld [vmem:[#allocation8 + $0x530] sm:$0xff]  ;;  %v9560_v21 = vld [vmem:[#allocation101_spill] sm:$0xff] }
 0x7d2   : > { %9559 = vst [vmem:[#allocation74_spill] sm:$0xff] %v7824_v50 }
 0x7d3   : > { %v2704_v15 = vrot.slane %v7649_v28, 5  ;;  %v7658_v47 = vsel %vm3279_vm5, %v7237_v29, %v7649_v28  ;;  %v7672_v29 = vld [vmem:[#allocation8 + $0x2c0] sm:$0xff] }
 0x7d5   : > { %2771 = vmatprep.mubr.f32.mxu1 %v2704_v15  ;;  %2842 = vmatprep.mubr.f32.mxu0 %v2704_v15 }
 0x7d6   : > { %2772 = vmatmul.mubr.f32.vlgmr.msra.gmra.mxu1 %v7661_v0  ;;  %2843 = vmatmul.mubr.f32.vlgmr.msra.gmra.mxu0 %v7661_v0 }
 0x7d7   : > { %2850 = vmatpush1.msra.mxu1 %v7665_v30  ;;  %2913 = vmatprep.mubr.f32.mxu1 %v2704_v15  ;;  %v7828_v15 = vld [vmem:[#allocation8 + $0x508] sm:$0xff] }
 0x7d8   : > { %2851 = vmatprep.subr.mxu1 %v7668_v36  ;;  %2991 = vmatpush1.msra.mxu0 %v7246_v63  ;;  %v7688_v63 = vld [vmem:[#allocation8 + $0x260] sm:$0xff]  ;;  %9561 = vst [vmem:[#allocation75_spill] sm:$0xff] %v7828_v15 }
 0x7d9   : > { %2852 = vmatpush1.msra.mxu1 %v7672_v29  ;;  %2992 = vmatprep.subr.mxu0 %v7250_v58  ;;  %v7692_v58 = vld [vmem:[#allocation8 + $0x238] sm:$0xff] }
 0x7da   : > { %2853 = vmatprep.subr.mxu1 %v7676_v57  ;;  %2993 = vmatpush1.msra.mxu0 %v7254_v26  ;;  %v7696_v26 = vld [vmem:[#allocation8 + $0x230] sm:$0xff] }
 0x7db   : > { %2854 = vmatpush1.msra.mxu1 %v7680_v6  ;;  %2994 = vmatprep.subr.mxu0 %v7258_v13  ;;  %v7700_v13 = vld [vmem:[#allocation8 + $0x208] sm:$0xff] }
 0x7dc   : > { %2855 = vmatprep.subr.mxu1 %v7684_v42  ;;  %2995 = vmatpush1.msra.mxu0 %v7262_v11  ;;  %v7704_v11 = vld [vmem:[#allocation8 + $0x200] sm:$0xff] }
 0x7dd   : > { %2856 = vmatpush1.msra.mxu1 %v7688_v63  ;;  %2996 = vmatprep.subr.mxu0 %v7266_v20  ;;  %v7708_v20 = vld [vmem:[#allocation8 + $0x1d8] sm:$0xff] }
 0x7de   : > { %2857 = vmatprep.subr.mxu1 %v7692_v58  ;;  %2997 = vmatpush1.msra.mxu0 %v7270_v52  ;;  %v7712_v52 = vld [vmem:[#allocation8 + $0x1d0] sm:$0xff] }
 0x7df   : > { %2858 = vmatpush1.msra.mxu1 %v7696_v26  ;;  %2998 = vmatprep.subr.mxu0 %v7274_v38  ;;  %v7716_v38 = vld [vmem:[#allocation8 + $0x1a8] sm:$0xff] }
 0x7e0   : > { %2859 = vmatprep.subr.mxu1 %v7700_v13  ;;  %2999 = vmatpush1.msra.mxu0 %v7278_v41  ;;  %v7720_v41 = vld [vmem:[#allocation8 + $0x1a0] sm:$0xff] }
 0x7e1   : > { %2860 = vmatpush1.msra.mxu1 %v7704_v11  ;;  %3000 = vmatprep.subr.mxu0 %v7282_v1  ;;  %v7724_v1 = vld [vmem:[#allocation8 + $0x178] sm:$0xff] }
 0x7e2   : > { %2861 = vmatprep.subr.mxu1 %v7708_v20  ;;  %3001 = vmatpush1.msra.mxu0 %v7286_v37  ;;  %v7728_v37 = vld [vmem:[#allocation8 + $0x170] sm:$0xff] }
 0x7e3   : > { %2862 = vmatpush1.msra.mxu1 %v7712_v52  ;;  %3002 = vmatprep.subr.mxu0 %v7290_v16  ;;  %v7732_v16 = vld [vmem:[#allocation8 + $0x148] sm:$0xff] }
 0x7e4   : > { %2863 = vmatprep.subr.mxu1 %v7716_v38  ;;  %3003 = vmatpush1.msra.mxu0 %v7294_v24  ;;  %v7736_v24 = vld [vmem:[#allocation8 + $0x140] sm:$0xff] }
 0x7e5   : > { %2864 = vmatpush1.msra.mxu1 %v7720_v41  ;;  %3004 = vmatprep.subr.mxu0 %v7298_v3  ;;  %v7740_v3 = vld [vmem:[#allocation8 + $0x118] sm:$0xff] }
 0x7e6   : > { %2865 = vmatprep.subr.mxu1 %v7724_v1  ;;  %3005 = vmatpush1.msra.mxu0 %v7302_v14  ;;  %v7744_v14 = vld [vmem:[#allocation8 + $0x110] sm:$0xff] }
 0x7e7   : > { %2866 = vmatpush1.msra.mxu1 %v7728_v37  ;;  %3006 = vmatprep.subr.mxu0 %v7306_v31  ;;  %v7748_v31 = vld [vmem:[#allocation8 + $0xe8] sm:$0xff] }
 0x7e8   : > { %2867 = vmatprep.subr.mxu1 %v7732_v16  ;;  %3007 = vmatpush1.msra.mxu0 %v7310_v39  ;;  %v7752_v39 = vld [vmem:[#allocation8 + $0xe0] sm:$0xff] }
 0x7e9   : > { %2868 = vmatpush1.msra.mxu1 %v7736_v24  ;;  %3008 = vmatprep.subr.mxu0 %v7314_v45  ;;  %v7756_v45 = vld [vmem:[#allocation8 + $0xb8] sm:$0xff] }
 0x7ea   : > { %2869 = vmatprep.subr.mxu1 %v7740_v3  ;;  %3009 = vmatpush1.msra.mxu0 %v7318_v43  ;;  %v7760_v43 = vld [vmem:[#allocation8 + $0xb0] sm:$0xff] }
 0x7eb   : > { %2870 = vmatpush1.msra.mxu1 %v7744_v14  ;;  %3010 = vmatprep.subr.mxu0 %v7322_v19  ;;  %v7764_v19 = vld [vmem:[#allocation8 + $0x88] sm:$0xff] }
 0x7ec   : > { %2871 = vmatprep.subr.mxu1 %v7748_v31  ;;  %3011 = vmatpush1.msra.mxu0 %v7326_v17  ;;  %v7768_v17 = vld [vmem:[#allocation8 + $0x80] sm:$0xff] }
 0x7ed   : > { %2872 = vmatpush1.msra.mxu1 %v7752_v39  ;;  %3012 = vmatprep.subr.mxu0 %v7330_v25  ;;  %v7772_v25 = vld [vmem:[#allocation8 + $0x58] sm:$0xff] }
 0x7ee   : > { %2873 = vmatprep.subr.mxu1 %v7756_v45  ;;  %3013 = vmatpush1.msra.mxu0 %v7334_v23  ;;  %v7776_v23 = vld [vmem:[#allocation8 + $0x50] sm:$0xff] }
 0x7ef   : > { %2874 = vmatpush1.msra.mxu1 %v7760_v43  ;;  %3014 = vmatprep.subr.mxu0 %v7338_v54  ;;  %v7780_v54 = vld [vmem:[#allocation8 + $0x28] sm:$0xff] }
 0x7f0   : > { %2875 = vmatprep.subr.mxu1 %v7764_v19  ;;  %3015 = vmatpush1.msra.mxu0 %v7342_v22  ;;  %v7784_v22 = vld [vmem:[#allocation8 + $0x20] sm:$0xff] }
 0x7f1   : > { %2876 = vmatpush1.msra.mxu1 %v7768_v17  ;;  %3016 = vmatprep.subr.mxu0 %v7346_v8  ;;  %v7788_v8 = vld [vmem:[#allocation8 + $0x5f8] sm:$0xff] }
 0x7f2   : > { %2877 = vmatprep.subr.mxu1 %v7772_v25  ;;  %3017 = vmatpush1.msra.mxu0 %v7350_v2  ;;  %v7792_v2 = vld [vmem:[#allocation8 + $0x5f0] sm:$0xff] }
 0x7f3   : > { %2878 = vmatpush1.msra.mxu1 %v7776_v23  ;;  %3018 = vmatprep.subr.mxu0 %v7354_v18  ;;  %v7796_v18 = vld [vmem:[#allocation8 + $0x5c8] sm:$0xff] }
 0x7f4   : > { %2879 = vmatprep.subr.mxu1 %v7780_v54  ;;  %3019 = vmatpush1.msra.mxu0 %v7358_v48  ;;  %9546 = vst [vmem:[#allocation67_spill] sm:$0xff] %v7796_v18  ;;  %v7800_v48 = vld [vmem:[#allocation8 + $0x5c0] sm:$0xff] }
 0x7f5   : > { %2880 = vmatpush1.msra.mxu1 %v7784_v22  ;;  %3020 = vmatprep.subr.mxu0 %v7362_v33  ;;  %9547 = vst [vmem:[#allocation68_spill] sm:$0xff] %v7800_v48  ;;  %v9548_v33 = vld [vmem:[#allocation95_spill] sm:$0xff] }
 0x7f6   : > { %2881 = vmatprep.subr.mxu1 %v7788_v8  ;;  %3021 = vmatpush1.msra.mxu0 %v7366_v46  ;;  %v9550_v46 = vld [vmem:[#allocation24_spill] sm:$0xff] }
 0x7f7   : > { %2882 = vmatpush2.msra.mxu1 %v7792_v2  ;;  %3022 = vmatprep.subr.mxu0 %v7370_v4  ;;  %v9552_v4 = vld [vmem:[#allocation97_spill] sm:$0xff] }
 0x7f8   : > { %2883 = vmatprep.subr.mxu1 %v7796_v18  ;;  %3023 = vmatpush2.msra.mxu0 %v7374_v9  ;;  %v9554_v9 = vld [vmem:[#allocation25_spill] sm:$0xff] }
 0x7f9   : > { %2884 = vmatpush2.msra.mxu1 %v7800_v48  ;;  %3024 = vmatprep.subr.mxu0 %v9548_v33  ;;  %v9562_v33 = vld [vmem:[#allocation27_spill] sm:$0xff] }
 0x7fa   : > { %2885 = vmatprep.subr.mxu1 %v7804_v44  ;;  %3025 = vmatpush2.msra.mxu0 %v9550_v46  ;;  %v7832_v46 = vld [vmem:[#allocation8 + $0x500] sm:$0xff] }
 0x7fb   : > { %2886 = vmatpush2.msra.mxu1 %v7808_v12  ;;  %3026 = vmatprep.subr.mxu0 %v9552_v4  ;;  %9563 = vst [vmem:[#allocation76_spill] sm:$0xff] %v7832_v46  ;;  %v9564_v4 = vld [vmem:[#allocation103_spill] sm:$0xff] }
 0x7fc   : > { %2887 = vmatprep.subr.mxu1 %v7812_v53  ;;  %3027 = vmatpush2.msra.mxu0 %v9554_v9  ;;  %v7836_v9 = vld [vmem:[#allocation8 + $0x4d8] sm:$0xff]  ;;  %v9641_v53 = vld [vmem:[#allocation87_spill] sm:$0xff] }
 0x7fd   : > { %2888 = vmatpush2.msra.mxu1 %v7816_v51  ;;  %3028 = vmatprep.subr.mxu0 %v9556_v40  ;;  %9565 = vst [vmem:[#allocation77_spill] sm:$0xff] %v7836_v9  ;;  %v9566_v40 = vld [vmem:[#allocation28_spill] sm:$0xff] }
 0x7fe   : > { %2889 = vmatprep.subr.mxu1 %v7820_v55  ;;  %3029 = vmatpush2.msra.mxu0 %v9558_v60  ;;  %v7840_v60 = vld [vmem:[#allocation8 + $0x4d0] sm:$0xff]  ;;  %v9612_v55 = vld [vmem:[#allocation131_spill] sm:$0xff] }
 0x7ff   : > { %2890 = vmatpush2.msra.mxu1 %v7824_v50  ;;  %3030 = vmatprep.subr.mxu0 %v9560_v21  ;;  %9567 = vst [vmem:[#allocation78_spill] sm:$0xff] %v7840_v60  ;;  %v9568_v21 = vld [vmem:[#allocation105_spill] sm:$0xff]  ;;  %v9609_v50 = vld [vmem:[#allocation40_spill] sm:$0xff] }
 0x800   : > { %2891 = vmatprep.subr.mxu1 %v7828_v15  ;;  %3031 = vmatpush2.msra.mxu0 %v9562_v33  ;;  %v7844_v15 = vld [vmem:[#allocation8 + $0x4a8] sm:$0xff]  ;;  %v9570_v33 = vld [vmem:[#allocation29_spill] sm:$0xff] }
 0x801   : > { %2892 = vmatpush2.msra.mxu1 %v7832_v46  ;;  %3032 = vmatprep.subr.mxu0 %v9564_v4  ;;  %9569 = vst [vmem:[#allocation79_spill] sm:$0xff] %v7844_v15  ;;  %v7848_v46 = vld [vmem:[#allocation8 + $0x4a0] sm:$0xff]  ;;  %v9572_v4 = vld [vmem:[#allocation107_spill] sm:$0xff] }
 0x802   : > { %2893 = vmatprep.subr.mxu1 %v7836_v9  ;;  %3033 = vmatpush2.msra.mxu0 %v9566_v40  ;;  %9571 = vst [vmem:[#allocation80_spill] sm:$0xff] %v7848_v46  ;;  %v7852_v9 = vld [vmem:[#allocation8 + $0x478] sm:$0xff]  ;;  %v9574_v40 = vld [vmem:[#allocation30_spill] sm:$0xff] }
 0x803   : > { %2894 = vmatpush2.msra.mxu1 %v7840_v60  ;;  %3034 = vmatprep.subr.mxu0 %v9568_v21  ;;  %9573 = vst [vmem:[#allocation81_spill] sm:$0xff] %v7852_v9  ;;  %v7856_v60 = vld [vmem:[#allocation8 + $0x470] sm:$0xff]  ;;  %v9576_v21 = vld [vmem:[#allocation109_spill] sm:$0xff] }
 0x804   : > { %2895 = vmatprep.subr.mxu1 %v7844_v15  ;;  %3035 = vmatpush2.msra.mxu0 %v9570_v33  ;;  %9575 = vst [vmem:[#allocation82_spill] sm:$0xff] %v7856_v60  ;;  %v7860_v15 = vld [vmem:[#allocation8 + $0x448] sm:$0xff] }
 0x805   : > { %2896 = vmatpush2.msra.mxu1 %v7848_v46  ;;  %3036 = vmatprep.subr.mxu0 %v9572_v4  ;;  %9577 = vst [vmem:[#allocation83_spill] sm:$0xff] %v7860_v15  ;;  %v9578_v33 = vld [vmem:[#allocation31_spill] sm:$0xff]  ;;  %v7864_v46 = vld [vmem:[#allocation8 + $0x440] sm:$0xff] }
 0x806   : > { %2897 = vmatprep.subr.mxu1 %v7852_v9  ;;  %3037 = vmatpush2.msra.mxu0 %v9574_v40  ;;  %9579 = vst [vmem:[#allocation84_spill] sm:$0xff] %v7864_v46  ;;  %v9580_v4 = vld [vmem:[#allocation111_spill] sm:$0xff]  ;;  %v7868_v9 = vld [vmem:[#allocation8 + $0x418] sm:$0xff]  ;;  %v9582_v40 = vld [vmem:[#allocation32_spill] sm:$0xff] }
 0x807   : > { %2898 = vmatpush2.msra.mxu1 %v7856_v60  ;;  %3038 = vmatprep.subr.mxu0 %v9576_v21  ;;  %9581 = vst [vmem:[#allocation86_spill] sm:$0xff] %v7868_v9  ;;  %v7872_v60 = vld [vmem:[#allocation8 + $0x410] sm:$0xff]  ;;  %v9584_v21 = vld [vmem:[#allocation113_spill] sm:$0xff] }
 0x808   : > { %2899 = vmatprep.subr.mxu1 %v7860_v15  ;;  %3039 = vmatpush2.msra.mxu0 %v9578_v33  ;;  %9583 = vst [vmem:[#allocation88_spill] sm:$0xff] %v7872_v60  ;;  %v7876_v15 = vld [vmem:[#allocation8 + $0x3e8] sm:$0xff]  ;;  %v9586_v33 = vld [vmem:[#allocation33_spill] sm:$0xff] }
 0x809   : > { %2900 = vmatpush2.msra.mxu1 %v7864_v46  ;;  %3040 = vmatprep.subr.mxu0 %v9580_v4  ;;  %9585 = vst [vmem:[#allocation90_spill] sm:$0xff] %v7876_v15  ;;  %v7880_v46 = vld [vmem:[#allocation8 + $0x3e0] sm:$0xff]  ;;  %v9588_v4 = vld [vmem:[#allocation115_spill] sm:$0xff] }
 0x80a   : > { %2901 = vmatprep.subr.mxu1 %v7868_v9  ;;  %3041 = vmatpush2.msra.mxu0 %v9582_v40  ;;  %9587 = vst [vmem:[#allocation92_spill] sm:$0xff] %v7880_v46  ;;  %v7884_v9 = vld [vmem:[#allocation8 + $0x3b8] sm:$0xff]  ;;  %v9590_v40 = vld [vmem:[#allocation34_spill] sm:$0xff] }
 0x80b   : > { %2902 = vmatpush2.msra.mxu1 %v7872_v60  ;;  %3042 = vmatprep.subr.mxu0 %v9584_v21  ;;  %9589 = vst [vmem:[#allocation94_spill] sm:$0xff] %v7884_v9  ;;  %v7888_v60 = vld [vmem:[#allocation8 + $0x3b0] sm:$0xff]  ;;  %v9592_v21 = vld [vmem:[#allocation117_spill] sm:$0xff] }
 0x80c   : > { %2903 = vmatprep.subr.mxu1 %v7876_v15  ;;  %3043 = vmatpush2.msra.mxu0 %v9586_v33  ;;  %9591 = vst [vmem:[#allocation96_spill] sm:$0xff] %v7888_v60  ;;  %v7892_v15 = vld [vmem:[#allocation8 + $0x388] sm:$0xff] }
 0x80d   : > { %2904 = vmatpush2.msra.mxu1 %v7880_v46  ;;  %3044 = vmatprep.subr.mxu0 %v9588_v4  ;;  %9593 = vst [vmem:[#allocation98_spill] sm:$0xff] %v7892_v15  ;;  %v9594_v33 = vld [vmem:[#allocation35_spill] sm:$0xff]  ;;  %v7896_v46 = vld [vmem:[#allocation8 + $0x380] sm:$0xff] }
 0x80e   : > { %2905 = vmatprep.subr.mxu1 %v7884_v9  ;;  %3045 = vmatpush2.msra.mxu0 %v9590_v40  ;;  %9595 = vst [vmem:[#allocation100_spill] sm:$0xff] %v7896_v46  ;;  %v9596_v4 = vld [vmem:[#allocation119_spill] sm:$0xff]  ;;  %v7900_v9 = vld [vmem:[#allocation8 + $0x358] sm:$0xff]  ;;  %v9598_v40 = vld [vmem:[#allocation36_spill] sm:$0xff] }
 0x80f   : > { %2906 = vmatpush2.msra.mxu1 %v7888_v60  ;;  %3046 = vmatprep.subr.mxu0 %v9592_v21  ;;  %9597 = vst [vmem:[#allocation102_spill] sm:$0xff] %v7900_v9  ;;  %v7904_v60 = vld [vmem:[#allocation8 + $0x350] sm:$0xff]  ;;  %v9600_v21 = vld [vmem:[#allocation121_spill] sm:$0xff] }
 0x810   : > { %2907 = vmatprep.subr.mxu1 %v7892_v15  ;;  %3047 = vmatpush2.msra.mxu0 %v9594_v33  ;;  %9599 = vst [vmem:[#allocation104_spill] sm:$0xff] %v7904_v60  ;;  %v7908_v15 = vld [vmem:[#allocation8 + $0x328] sm:$0xff]  ;;  %v9602_v33 = vld [vmem:[#allocation37_spill] sm:$0xff] }
 0x811   : > { %2908 = vmatpush2.msra.mxu1 %v7896_v46  ;;  %3048 = vmatprep.subr.mxu0 %v9596_v4  ;;  %9601 = vst [vmem:[#allocation106_spill] sm:$0xff] %v7908_v15  ;;  %v7912_v46 = vld [vmem:[#allocation8 + $0x320] sm:$0xff]  ;;  %v9604_v4 = vld [vmem:[#allocation123_spill] sm:$0xff] }
 0x812   : > { %2909 = vmatprep.subr.mxu1 %v7900_v9  ;;  %3049 = vmatpush2.msra.mxu0 %v9598_v40  ;;  %9603 = vst [vmem:[#allocation108_spill] sm:$0xff] %v7912_v46  ;;  %v9605_v40 = vld [vmem:[#allocation38_spill] sm:$0xff]  ;;  %v9606_v9 = vld [vmem:[#allocation125_spill] sm:$0xff] }
 0x813   : > { %2910 = vmatpush2.msra.mxu1 %v7904_v60  ;;  %3050 = vmatprep.subr.mxu0 %v9600_v21  ;;  %v9607_v60 = vld [vmem:[#allocation39_spill] sm:$0xff] }
 0x814   : > { %2911 = vmatprep.subr.mxu1 %v7908_v15  ;;  %3051 = vmatpush2.msra.mxu0 %v9602_v33  ;;  %v9608_v21 = vld [vmem:[#allocation127_spill] sm:$0xff]  ;;  %v9610_v15 = vld [vmem:[#allocation129_spill] sm:$0xff] }
 0x815   : > { %2912 = vmatpush2.msra.mxu1 %v7912_v46  ;;  %3052 = vmatprep.subr.mxu0 %v9604_v4  ;;  %v9611_v33 = vld [vmem:[#allocation41_spill] sm:$0xff]  ;;  %v9613_v46 = vld [vmem:[#allocation42_spill] sm:$0xff] }
 0x816   : > { %2914 = vmatmul.mubr.f32.vlgmr.msra.gmra.mxu1 %v7661_v0  ;;  %3061 = vmatprep.subr.mxu1 %v9605_v40  ;;  %v9614_v4 = vld [vmem:[#allocation133_spill] sm:$0xff]  ;;  %v9615_v0 = vld [vmem:[#allocation43_spill] sm:$0xff] }
 0x817   : > { %3062 = vmatpush1.msra.mxu1 %v9606_v9  ;;  %3053 = vmatpush2.msra.mxu0 %v9607_v60  ;;  %v9616_v40 = vld [vmem:[#allocation135_spill] sm:$0xff]  ;;  %v9617_v9 = vld [vmem:[#allocation45_spill] sm:$0xff] }
 0x818   : > { %3063 = vmatprep.subr.mxu1 %v9608_v21  ;;  %3132 = vmatprep.subr.mxu0 %v9609_v50  ;;  %v9618_v60 = vld [vmem:[#allocation137_spill] sm:$0xff]  ;;  %v9619_v21 = vld [vmem:[#allocation46_spill] sm:$0xff]  ;;  %v9620_v50 = vld [vmem:[#allocation139_spill] sm:$0xff] }
 0x819   : > { %3064 = vmatpush1.msra.mxu1 %v9610_v15  ;;  %v9621_v15 = vld [vmem:[#allocation47_spill] sm:$0xff] }
 0x81a   : > { %3065 = vmatprep.subr.mxu1 %v9611_v33  ;;  %v9622_v33 = vld [vmem:[#allocation48_spill] sm:$0xff] }
 0x81b   : > { %3066 = vmatpush1.msra.mxu1 %v9612_v55  ;;  %v9623_v55 = vld [vmem:[#allocation50_spill] sm:$0xff] }
 0x81c   : > { %3067 = vmatprep.subr.mxu1 %v9613_v46  ;;  %v9624_v46 = vld [vmem:[#allocation52_spill] sm:$0xff] }
 0x81d   : > { %3068 = vmatpush1.msra.mxu1 %v9614_v4  ;;  %v9625_v4 = vld [vmem:[#allocation53_spill] sm:$0xff] }
 0x81e   : > { %3069 = vmatprep.subr.mxu1 %v9615_v0  ;;  %v9626_v0 = vld [vmem:[#allocation54_spill] sm:$0xff] }
 0x81f   : > { %3070 = vmatpush1.msra.mxu1 %v9616_v40  ;;  %v9627_v40 = vld [vmem:[#allocation55_spill] sm:$0xff] }
 0x820   : > { %3071 = vmatprep.subr.mxu1 %v9617_v9  ;;  %v9628_v9 = vld [vmem:[#allocation51_spill] sm:$0xff] }
 0x821   : > { %3072 = vmatpush1.msra.mxu1 %v9618_v60  ;;  %v9629_v60 = vld [vmem:[#allocation49_spill] sm:$0xff] }
 0x822   : > { %3073 = vmatprep.subr.mxu1 %v9619_v21  ;;  %v9630_v21 = vld [vmem:[#allocation56_spill] sm:$0xff] }
 0x823   : > { %3074 = vmatpush1.msra.mxu1 %v9620_v50  ;;  %v9631_v50 = vld [vmem:[#allocation57_spill] sm:$0xff] }
 0x824   : > { %3075 = vmatprep.subr.mxu1 %v9621_v15  ;;  %v9632_v15 = vld [vmem:[#allocation58_spill] sm:$0xff] }
 0x825   : > { %3076 = vmatpush1.msra.mxu1 %v9622_v33  ;;  %v9633_v33 = vld [vmem:[#allocation59_spill] sm:$0xff] }
 0x826   : > { %3077 = vmatprep.subr.mxu1 %v9623_v55  ;;  %v9634_v55 = vld [vmem:[#allocation60_spill] sm:$0xff] }
 0x827   : > { %3078 = vmatpush1.msra.mxu1 %v9624_v46  ;;  %v9635_v46 = vld [vmem:[#allocation61_spill] sm:$0xff] }
 0x828   : > { %3079 = vmatprep.subr.mxu1 %v9625_v4  ;;  %v9636_v4 = vld [vmem:[#allocation62_spill] sm:$0xff] }
 0x829   : > { %3080 = vmatpush1.msra.mxu1 %v9626_v0  ;;  %v9637_v0 = vld [vmem:[#allocation63_spill] sm:$0xff] }
 0x82a   : > { %3081 = vmatprep.subr.mxu1 %v9627_v40  ;;  %v9638_v40 = vld [vmem:[#allocation64_spill] sm:$0xff] }
 0x82b   : > { %3082 = vmatpush1.msra.mxu1 %v9628_v9  ;;  %v9639_v9 = vld [vmem:[#allocation65_spill] sm:$0xff] }
 0x82c   : > { %3083 = vmatprep.subr.mxu1 %v9629_v60  ;;  %v9640_v60 = vld [vmem:[#allocation66_spill] sm:$0xff] }
 0x82d   : > { %3084 = vmatpush1.msra.mxu1 %v9630_v21  ;;  %v4322_v21 = vld [vmem:[#allocation8 + $0x5b8] sm:$0xff] }
 0x82e   : > { %3085 = vmatprep.subr.mxu1 %v9631_v50  ;;  %v4323_v50 = vld [vmem:[#allocation8 + $0x5b0] sm:$0xff] }
 0x82f   : > { %3086 = vmatpush1.msra.mxu1 %v9632_v15  ;;  %v4324_v15 = vld [vmem:[#allocation8 + $0x588] sm:$0xff] }
 0x830   : > { %3087 = vmatprep.subr.mxu1 %v9633_v33  ;;  %v4325_v33 = vld [vmem:[#allocation8 + $0x580] sm:$0xff] }
 0x831   : > { %3088 = vmatpush1.msra.mxu1 %v9634_v55  ;;  %v4326_v55 = vld [vmem:[#allocation8 + $0x558] sm:$0xff] }
 0x832   : > { %3089 = vmatprep.subr.mxu1 %v9635_v46  ;;  %v4327_v46 = vld [vmem:[#allocation8 + $0x550] sm:$0xff] }
 0x833   : > { %3090 = vmatpush1.msra.mxu1 %v9636_v4  ;;  %v4328_v4 = vld [vmem:[#allocation8 + $0x528] sm:$0xff] }
 0x834   : > { %3091 = vmatprep.subr.mxu1 %v9637_v0  ;;  %v4329_v0 = vld [vmem:[#allocation8 + $0x520] sm:$0xff] }
 0x835   : > { %3092 = vmatpush1.msra.mxu1 %v9638_v40  ;;  %v4330_v40 = vld [vmem:[#allocation8 + $0x4f8] sm:$0xff] }
 0x836   : > { %3093 = vmatprep.subr.mxu1 %v9639_v9  ;;  %v4331_v9 = vld [vmem:[#allocation8 + $0x4f0] sm:$0xff] }
 0x837   : > { %3094 = vmatpush2.msra.mxu1 %v9640_v60  ;;  %v4332_v60 = vld [vmem:[#allocation8 + $0x4c8] sm:$0xff] }
 0x838   : > { %3095 = vmatprep.subr.mxu1 %v4322_v21  ;;  %v4333_v21 = vld [vmem:[#allocation8 + $0x4c0] sm:$0xff] }
 0x839   : > { %3096 = vmatpush2.msra.mxu1 %v4323_v50  ;;  %v4334_v50 = vld [vmem:[#allocation8 + $0x498] sm:$0xff] }
 0x83a   : > { %3097 = vmatprep.subr.mxu1 %v4324_v15  ;;  %v4335_v15 = vld [vmem:[#allocation8 + $0x490] sm:$0xff] }
 0x83b   : > { %3098 = vmatpush2.msra.mxu1 %v4325_v33  ;;  %v4336_v33 = vld [vmem:[#allocation8 + $0x468] sm:$0xff] }
 0x83c   : > { %3099 = vmatprep.subr.mxu1 %v4326_v55  ;;  %v4337_v55 = vld [vmem:[#allocation8 + $0x460] sm:$0xff] }
 0x83d   : > { %3100 = vmatpush2.msra.mxu1 %v4327_v46  ;;  %v4338_v46 = vld [vmem:[#allocation8 + $0x438] sm:$0xff] }
 0x83e   : > { %3101 = vmatprep.subr.mxu1 %v4328_v4  ;;  %v4339_v4 = vld [vmem:[#allocation8 + $0x430] sm:$0xff] }
 0x83f   : > { %3102 = vmatpush2.msra.mxu1 %v4329_v0  ;;  %v4340_v0 = vld [vmem:[#allocation8 + $0x408] sm:$0xff] }
 0x840   : > { %3103 = vmatprep.subr.mxu1 %v4330_v40  ;;  %v4341_v40 = vld [vmem:[#allocation8 + $0x400] sm:$0xff] }
 0x841   : > { %3104 = vmatpush2.msra.mxu1 %v4331_v9  ;;  %v4342_v9 = vld [vmem:[#allocation8 + $0x3d8] sm:$0xff] }
 0x842   : > { %3105 = vmatprep.subr.mxu1 %v4332_v60  ;;  %v4343_v60 = vld [vmem:[#allocation8 + $0x3d0] sm:$0xff] }
 0x843   : > { %3106 = vmatpush2.msra.mxu1 %v4333_v21  ;;  %v4344_v21 = vld [vmem:[#allocation8 + $0x3a8] sm:$0xff] }
 0x844   : > { %3107 = vmatprep.subr.mxu1 %v4334_v50  ;;  %v4345_v50 = vld [vmem:[#allocation8 + $0x3a0] sm:$0xff] }
 0x845   : > { %3108 = vmatpush2.msra.mxu1 %v4335_v15  ;;  %v4346_v15 = vld [vmem:[#allocation8 + $0x378] sm:$0xff] }
 0x846   : > { %3109 = vmatprep.subr.mxu1 %v4336_v33  ;;  %v4347_v33 = vld [vmem:[#allocation8 + $0x370] sm:$0xff] }
 0x847   : > { %3110 = vmatpush2.msra.mxu1 %v4337_v55  ;;  %v4348_v55 = vld [vmem:[#allocation8 + $0x348] sm:$0xff] }
 0x848   : > { %3111 = vmatprep.subr.mxu1 %v4338_v46  ;;  %v4349_v46 = vld [vmem:[#allocation8 + $0x340] sm:$0xff] }
 0x849   : > { %3112 = vmatpush2.msra.mxu1 %v4339_v4  ;;  %v4350_v4 = vld [vmem:[#allocation8 + $0x318] sm:$0xff] }
 0x84a   : > { %3113 = vmatprep.subr.mxu1 %v4340_v0  ;;  %v4351_v0 = vld [vmem:[#allocation8 + $0x310] sm:$0xff] }
 0x84b   : > { %3114 = vmatpush2.msra.mxu1 %v4341_v40 }
 0x84c   : > { %3115 = vmatprep.subr.mxu1 %v4342_v9 }
 0x84d   : > { %3116 = vmatpush2.msra.mxu1 %v4343_v60 }
 0x84e   : > { %3117 = vmatprep.subr.mxu1 %v4344_v21 }
 0x84f   : > { %3118 = vmatpush2.msra.mxu1 %v4345_v50 }
 0x850   : > { %3119 = vmatprep.subr.mxu1 %v4346_v15 }
 0x851   : > { %3120 = vmatpush2.msra.mxu1 %v4347_v33  ;;  %v9642_v33 = vld [vmem:[#allocation20_spill] sm:$0xff] }
 0x852   : > { %3121 = vmatprep.subr.mxu1 %v4348_v55 }
 0x853   : > { %3122 = vmatpush2.msra.mxu1 %v4349_v46 }
 0x854   : > { %3123 = vmatprep.subr.mxu1 %v4350_v4 }
 0x855   : > { %3124 = vmatpush2.msra.mxu1 %v4351_v0 }
 0x896   : > { %v2773_v40 = vpop.f32.mrf.mxu1  ;;  %v2844_v12 = vpop.f32.mrf.mxu0 }
 0x897   : > { %v2774_v60 = vadd.f32 %v2773_v40, %v9024_v59  ;;  %v2845_v46 = vadd.f32 %v2844_v12, %v9028_v7 }
 0x898   : > { %v2775_v9 = vpop.f32.mrf.mxu1  ;;  %v2846_v48 = vpop.f32.mrf.mxu0 }
 0x899   : > { %v2776_v21 = vadd.f32 %v2775_v9, %v9025_v5  ;;  %v2924_v51 = vrot.slane %v2774_v60, 2  ;;  %v2847_v0 = vadd.f32 %v2846_v48, %v9029_v10  ;;  %v2926_v18 = vrot.slane %v2845_v46, 2 }
 0x89b   : > { %v2925_v50 = vrot.slane %v2776_v21, 2  ;;  %v2932_v15 = vadd.f32 %v2924_v51, %v9641_v53  ;;  %v2927_v40 = vrot.slane %v2847_v0, 2  ;;  %v2934_v9 = vadd.f32 %v2926_v18, %v9030_v27 }
 0x89d   : > { %v2933_v44 = vadd.f32 %v2925_v50, %v9642_v33  ;;  %v3502_v55 = vmul.f32 -1.442695, %v2932_v15  ;;  %v2935_v60 = vadd.f32 %v2927_v40, %v9031_v35  ;;  %v3504_v21 = vmul.f32 -1.442695, %v2934_v9 }
 0x89f   : > { %v3503_v4 = vmul.f32 -1.442695, %v2933_v44  ;;  %3736 = vpow2.f32 %v3502_v55  ;;  %v3505_v51 = vmul.f32 -1.442695, %v2935_v60 }
 0x8a1   : > { %3738 = vpow2.f32 %v3503_v4 }
 0x8a2   : > { %3740 = vpow2.f32 %v3504_v21 }
 0x8a3   : > { %3742 = vpow2.f32 %v3505_v51 }
 0x8ac   : > { %v3737_v53 = vpop.eup %3736 }
 0x8ad   : > { %v2948_v15 = vadd.f32 1.0, %v3737_v53 }
 0x8ae   : > { %v3739_v50 = vpop.eup %3738 }
 0x8af   : > { %v2949_v33 = vadd.f32 1.0, %v3739_v50  ;;  %3744 = vrcp.f32 %v2948_v15  ;;  %v3741_v44 = vpop.eup %3740 }
 0x8b0   : > { %v3743_v12 = vpop.eup %3742  ;;  %v2950_v55 = vadd.f32 1.0, %v3741_v44 }
 0x8b1   : > { %3746 = vrcp.f32 %v2949_v33  ;;  %v2951_v18 = vadd.f32 1.0, %v3743_v12  ;;  %v2976_v12 = vrot.slane %v7647_v34, 7 }
 0x8b2   : > { %3748 = vrcp.f32 %v2950_v55  ;;  %v2977_v55 = vrot.slane %v7649_v28, 7 }
 0x8b3   : > { %3750 = vrcp.f32 %v2951_v18 }
 0x8bc   : > { %v3745_v9 = vpop.eup %3744 }
 0x8be   : > { %v3747_v53 = vpop.eup %3746 }
 0x8bf   : > { %v3749_v15 = vpop.eup %3748 }
 0x8c0   : > { %v3751_v44 = vpop.eup %3750 }
 0x8d6   : > { %v2915_v48 = vpop.f32.mrf.mxu1 }
 0x8d7   : > { %v2916_v46 = vadd.f32 %v2915_v48, %v5577_v49  ;;  %v2972_v48 = vsub.f32 1.0, %v3749_v15 }
 0x8d8   : > { %v2917_v4 = vpop.f32.mrf.mxu1 }
 0x8d9   : > { %v2962_v0 = vrot.slane %v2916_v46, 2  ;;  %v2918_v40 = vadd.f32 %v2917_v4, %v5579_v56  ;;  %v2973_v4 = vsub.f32 1.0, %v3751_v44 }
 0x8db   : > { %v2966_v60 = vmul.f32 %v3745_v9, %v2962_v0  ;;  %v2963_v21 = vrot.slane %v2918_v40, 2  ;;  %v2980_v40 = vmul.f32 %v3749_v15, %v2976_v12  ;;  %v9673_v15 = vld [vmem:[#allocation87_spill] sm:$0xff]  ;;  %v9674_v12 = vld [vmem:[#allocation20_spill] sm:$0xff] }
 0x8dd   : > { %v2968_v51 = vadd.f32 %v2966_v60, %v5583_v61  ;;  %v2967_v33 = vmul.f32 %v3747_v53, %v2963_v21  ;;  %v2981_v60 = vmul.f32 %v3751_v44, %v2977_v55 }
 0x8df   : > { %3752 = vtanh.f32 %v2968_v51  ;;  %v2969_v50 = vadd.f32 %v2967_v33, %v5585_v62 }
 0x8e1   : > { %3754 = vtanh.f32 %v2969_v50 }
 0x8ec   : > { %v3753_v46 = vpop.eup %3752 }
 0x8ed   : > { %v2974_v0 = vmul.f32 %v3753_v46, %v2972_v48 }
 0x8ee   : > { %v3755_v9 = vpop.eup %3754 }
 0x8ef   : > { %v2975_v18 = vmul.f32 %v3755_v9, %v2973_v4  ;;  %v7967_v21 = vadd.f32 %v2980_v40, %v2974_v0 }
 0x8f1   : > { %v7969_v53 = vadd.f32 %v2981_v60, %v2975_v18  ;;  %v7973_v51 = vsel %vm3282_vm6, %v7653_v32, %v7967_v21  ;;  %v7981_v28 = vrot.slane %v7967_v21, 6  ;;  %v9643_v32 = vld [vmem:[#allocation67_spill] sm:$0xff] }
 0x8f3   : > { %v2987_v34 = vrot.slane %v7969_v53, 6  ;;  %v7978_v33 = vsel %vm3282_vm6, %v7658_v47, %v7969_v53  ;;  %v9644_v47 = vld [vmem:[#allocation68_spill] sm:$0xff] }
 0x8f5   : > { %3054 = vmatprep.mubr.f32.mxu0 %v2987_v34  ;;  %3125 = vmatprep.mubr.f32.mxu1 %v2987_v34 }
 0x8f6   : > { %3055 = vmatmul.mubr.f32.vlgmr.msra.gmra.mxu0 %v7981_v28  ;;  %3126 = vmatmul.mubr.f32.vlgmr.msra.gmra.mxu1 %v7981_v28 }
 0x8f7   : > { %3133 = vmatpush1.msra.mxu0 %v7665_v30  ;;  %3196 = vmatprep.mubr.f32.mxu0 %v2987_v34  ;;  %v9645_v30 = vld [vmem:[#allocation69_spill] sm:$0xff] }
 0x8f8   : > { %3134 = vmatprep.subr.mxu0 %v7668_v36  ;;  %v9646_v36 = vld [vmem:[#allocation70_spill] sm:$0xff] }
 0x8f9   : > { %3135 = vmatpush1.msra.mxu0 %v7672_v29  ;;  %v9647_v29 = vld [vmem:[#allocation71_spill] sm:$0xff] }
 0x8fa   : > { %3136 = vmatprep.subr.mxu0 %v7676_v57  ;;  %v9648_v57 = vld [vmem:[#allocation72_spill] sm:$0xff] }
 0x8fb   : > { %3137 = vmatpush1.msra.mxu0 %v7680_v6  ;;  %v9649_v6 = vld [vmem:[#allocation73_spill] sm:$0xff] }
 0x8fc   : > { %3138 = vmatprep.subr.mxu0 %v7684_v42  ;;  %v9650_v42 = vld [vmem:[#allocation74_spill] sm:$0xff] }
 0x8fd   : > { %3139 = vmatpush1.msra.mxu0 %v7688_v63  ;;  %v9651_v63 = vld [vmem:[#allocation75_spill] sm:$0xff] }
 0x8fe   : > { %3140 = vmatprep.subr.mxu0 %v7692_v58  ;;  %v9652_v58 = vld [vmem:[#allocation76_spill] sm:$0xff] }
 0x8ff   : > { %3141 = vmatpush1.msra.mxu0 %v7696_v26  ;;  %v9653_v26 = vld [vmem:[#allocation77_spill] sm:$0xff] }
 0x900   : > { %3142 = vmatprep.subr.mxu0 %v7700_v13  ;;  %v9654_v13 = vld [vmem:[#allocation78_spill] sm:$0xff] }
 0x901   : > { %3143 = vmatpush1.msra.mxu0 %v7704_v11  ;;  %v9655_v11 = vld [vmem:[#allocation79_spill] sm:$0xff] }
 0x902   : > { %3144 = vmatprep.subr.mxu0 %v7708_v20  ;;  %v9656_v20 = vld [vmem:[#allocation80_spill] sm:$0xff] }
 0x903   : > { %3145 = vmatpush1.msra.mxu0 %v7712_v52  ;;  %v9657_v52 = vld [vmem:[#allocation81_spill] sm:$0xff] }
 0x904   : > { %3146 = vmatprep.subr.mxu0 %v7716_v38  ;;  %v9658_v38 = vld [vmem:[#allocation82_spill] sm:$0xff] }
 0x905   : > { %3147 = vmatpush1.msra.mxu0 %v7720_v41  ;;  %v9659_v41 = vld [vmem:[#allocation83_spill] sm:$0xff] }
 0x906   : > { %3148 = vmatprep.subr.mxu0 %v7724_v1  ;;  %v9660_v1 = vld [vmem:[#allocation84_spill] sm:$0xff] }
 0x907   : > { %3149 = vmatpush1.msra.mxu0 %v7728_v37  ;;  %v9661_v37 = vld [vmem:[#allocation86_spill] sm:$0xff] }
 0x908   : > { %3150 = vmatprep.subr.mxu0 %v7732_v16  ;;  %v9662_v16 = vld [vmem:[#allocation88_spill] sm:$0xff] }
 0x909   : > { %3151 = vmatpush1.msra.mxu0 %v7736_v24  ;;  %v9663_v24 = vld [vmem:[#allocation90_spill] sm:$0xff] }
 0x90a   : > { %3152 = vmatprep.subr.mxu0 %v7740_v3  ;;  %v9664_v3 = vld [vmem:[#allocation92_spill] sm:$0xff] }
 0x90b   : > { %3153 = vmatpush1.msra.mxu0 %v7744_v14  ;;  %v9665_v14 = vld [vmem:[#allocation94_spill] sm:$0xff] }
 0x90c   : > { %3154 = vmatprep.subr.mxu0 %v7748_v31  ;;  %v9666_v31 = vld [vmem:[#allocation96_spill] sm:$0xff] }
 0x90d   : > { %3155 = vmatpush1.msra.mxu0 %v7752_v39  ;;  %v9667_v39 = vld [vmem:[#allocation98_spill] sm:$0xff] }
 0x90e   : > { %3156 = vmatprep.subr.mxu0 %v7756_v45  ;;  %v9668_v45 = vld [vmem:[#allocation100_spill] sm:$0xff] }
 0x90f   : > { %3157 = vmatpush1.msra.mxu0 %v7760_v43  ;;  %v9669_v43 = vld [vmem:[#allocation102_spill] sm:$0xff] }
 0x910   : > { %3158 = vmatprep.subr.mxu0 %v7764_v19  ;;  %v9670_v19 = vld [vmem:[#allocation104_spill] sm:$0xff] }
 0x911   : > { %3159 = vmatpush1.msra.mxu0 %v7768_v17  ;;  %v9671_v17 = vld [vmem:[#allocation106_spill] sm:$0xff] }
 0x912   : > { %3160 = vmatprep.subr.mxu0 %v7772_v25  ;;  %v9672_v25 = vld [vmem:[#allocation108_spill] sm:$0xff] }
 0x913   : > { %3161 = vmatpush1.msra.mxu0 %v7776_v23 }
 0x914   : > { %3162 = vmatprep.subr.mxu0 %v7780_v54 }
 0x915   : > { %3163 = vmatpush1.msra.mxu0 %v7784_v22 }
 0x916   : > { %3164 = vmatprep.subr.mxu0 %v7788_v8 }
 0x917   : > { %3165 = vmatpush2.msra.mxu0 %v7792_v2 }
 0x918   : > { %3166 = vmatprep.subr.mxu0 %v9643_v32 }
 0x919   : > { %3167 = vmatpush2.msra.mxu0 %v9644_v47 }
 0x91a   : > { %3168 = vmatprep.subr.mxu0 %v9645_v30 }
 0x91b   : > { %3169 = vmatpush2.msra.mxu0 %v9646_v36 }
 0x91c   : > { %3170 = vmatprep.subr.mxu0 %v9647_v29 }
 0x91d   : > { %3171 = vmatpush2.msra.mxu0 %v9648_v57 }
 0x91e   : > { %3172 = vmatprep.subr.mxu0 %v9649_v6 }
 0x91f   : > { %3173 = vmatpush2.msra.mxu0 %v9650_v42 }
 0x920   : > { %3174 = vmatprep.subr.mxu0 %v9651_v63 }
 0x921   : > { %3175 = vmatpush2.msra.mxu0 %v9652_v58 }
 0x922   : > { %3176 = vmatprep.subr.mxu0 %v9653_v26 }
 0x923   : > { %3177 = vmatpush2.msra.mxu0 %v9654_v13 }
 0x924   : > { %3178 = vmatprep.subr.mxu0 %v9655_v11 }
 0x925   : > { %3179 = vmatpush2.msra.mxu0 %v9656_v20 }
 0x926   : > { %3180 = vmatprep.subr.mxu0 %v9657_v52 }
 0x927   : > { %3181 = vmatpush2.msra.mxu0 %v9658_v38 }
 0x928   : > { %3182 = vmatprep.subr.mxu0 %v9659_v41 }
 0x929   : > { %3183 = vmatpush2.msra.mxu0 %v9660_v1 }
 0x92a   : > { %3184 = vmatprep.subr.mxu0 %v9661_v37 }
 0x92b   : > { %3185 = vmatpush2.msra.mxu0 %v9662_v16  ;;  %v3259_v16 = vrot.slane %v7967_v21, 7 }
 0x92c   : > { %3186 = vmatprep.subr.mxu0 %v9663_v24 }
 0x92d   : > { %3187 = vmatpush2.msra.mxu0 %v9664_v3  ;;  %v3260_v3 = vrot.slane %v7969_v53, 7 }
 0x92e   : > { %3188 = vmatprep.subr.mxu0 %v9665_v14 }
 0x92f   : > { %3189 = vmatpush2.msra.mxu0 %v9666_v31 }
 0x930   : > { %3190 = vmatprep.subr.mxu0 %v9667_v39 }
 0x931   : > { %3191 = vmatpush2.msra.mxu0 %v9668_v45 }
 0x932   : > { %3192 = vmatprep.subr.mxu0 %v9669_v43 }
 0x933   : > { %3193 = vmatpush2.msra.mxu0 %v9670_v19 }
 0x934   : > { %3194 = vmatprep.subr.mxu0 %v9671_v17 }
 0x935   : > { %3195 = vmatpush2.msra.mxu0 %v9672_v25  ;;  %v9675_v25 = vld [vmem:[#allocation44_spill] sm:$0xff] }
 0x936   : > { %3197 = vmatmul.mubr.f32.vlgmr.msra.gmra.mxu0 %v7981_v28 }
 0x9b6   : > { %v3056_v23 = vpop.f32.mrf.mxu0  ;;  %v3127_v48 = vpop.f32.mrf.mxu1 }
 0x9b7   : > { %v3057_v22 = vadd.f32 %v3056_v23, %v9024_v59  ;;  %v3128_v0 = vadd.f32 %v3127_v48, %v9028_v7 }
 0x9b8   : > { %v3058_v54 = vpop.f32.mrf.mxu0  ;;  %v3129_v55 = vpop.f32.mrf.mxu1 }
 0x9b9   : > { %v3059_v8 = vadd.f32 %v3058_v54, %v9025_v5  ;;  %v3207_v2 = vrot.slane %v3057_v22, 1  ;;  %v3130_v9 = vadd.f32 %v3129_v55, %v9029_v10  ;;  %v3209_v18 = vrot.slane %v3128_v0, 1 }
 0x9bb   : > { %v3208_v50 = vrot.slane %v3059_v8, 1  ;;  %v3215_v44 = vadd.f32 %v3207_v2, %v9673_v15  ;;  %v3210_v59 = vrot.slane %v3130_v9, 1  ;;  %v3217_v5 = vadd.f32 %v3209_v18, %v9030_v27 }
 0x9bd   : > { %v3216_v46 = vadd.f32 %v3208_v50, %v9674_v12  ;;  %v3506_v4 = vmul.f32 -1.442695, %v3215_v44  ;;  %v3218_v60 = vadd.f32 %v3210_v59, %v9031_v35  ;;  %v3508_v34 = vmul.f32 -1.442695, %v3217_v5 }
 0x9bf   : > { %v3507_v40 = vmul.f32 -1.442695, %v3216_v46  ;;  %3756 = vpow2.f32 %v3506_v4  ;;  %v3509_v28 = vmul.f32 -1.442695, %v3218_v60 }
 0x9c1   : > { %3758 = vpow2.f32 %v3507_v40 }
 0x9c2   : > { %3760 = vpow2.f32 %v3508_v34 }
 0x9c3   : > { %3762 = vpow2.f32 %v3509_v28 }
 0x9cc   : > { %v3757_v32 = vpop.eup %3756 }
 0x9cd   : > { %v3231_v30 = vadd.f32 1.0, %v3757_v32 }
 0x9ce   : > { %v3759_v47 = vpop.eup %3758 }
 0x9cf   : > { %v3232_v36 = vadd.f32 1.0, %v3759_v47  ;;  %3764 = vrcp.f32 %v3231_v30  ;;  %v3761_v7 = vpop.eup %3760 }
 0x9d0   : > { %v3763_v29 = vpop.eup %3762  ;;  %v3233_v57 = vadd.f32 1.0, %v3761_v7 }
 0x9d1   : > { %3766 = vrcp.f32 %v3232_v36  ;;  %v3234_v27 = vadd.f32 1.0, %v3763_v29 }
 0x9d2   : > { %3768 = vrcp.f32 %v3233_v57 }
 0x9d3   : > { %3770 = vrcp.f32 %v3234_v27 }
 0x9dc   : > { %v3765_v58 = vpop.eup %3764 }
 0x9de   : > { %v3767_v11 = vpop.eup %3766 }
 0x9df   : > { %v3769_v41 = vpop.eup %3768 }
 0x9e0   : > { %v3771_v37 = vpop.eup %3770  ;;  %v3263_v31 = vmul.f32 %v3769_v41, %v3259_v16 }
 0x9e1   : > { %v3256_v14 = vsub.f32 1.0, %v3771_v37  ;;  %v3264_v43 = vmul.f32 %v3771_v37, %v3260_v3 }
 0x9f6   : > { %v3198_v10 = vpop.f32.mrf.mxu0 }
 0x9f7   : > { %v3199_v6 = vadd.f32 %v3198_v10, %v5577_v49  ;;  %v4593_v49 = vmov 1966171168  }
 0x9f8   : > { %v3200_v42 = vpop.f32.mrf.mxu0  ;;  %v3294_v1 = vunpack.c.l.s4 %v4593_v49 }
 0x9f9   : > { %v3245_v63 = vrot.slane %v3199_v6, 1  ;;  %v3201_v35 = vadd.f32 %v3200_v42, %v5579_v56  ;;  %v3255_v56 = vsub.f32 1.0, %v3769_v41 }
 0x9fa   : > { %v3295_v39 = vunpack.c.0.s8 %v3294_v1 }
 0x9fb   : > { %v3249_v26 = vmul.f32 %v3765_v58, %v3245_v63  ;;  %v3246_v13 = vrot.slane %v3201_v35, 1 }
 0x9fc   : > { %v3298_v23 = vsub.s32 %v3295_v39, %v9675_v25 }
 0x9fd   : > { %v3251_v20 = vadd.f32 %v3249_v26, %v5583_v61  ;;  %v3250_v52 = vmul.f32 %v3767_v11, %v3246_v13 }
 0x9ff   : > { %3772 = vtanh.f32 %v3251_v20  ;;  %v3252_v38 = vadd.f32 %v3250_v52, %v5585_v62 }
 0xa01   : > { %3774 = vtanh.f32 %v3252_v38 }
 0xa0c   : > { %v3773_v24 = vpop.eup %3772 }
 0xa0d   : > { %v3257_v61 = vmul.f32 %v3773_v24, %v3255_v56 }
 0xa0e   : > { %v3775_v62 = vpop.eup %3774 }
 0xa0f   : > { %v3258_v45 = vmul.f32 %v3775_v62, %v3256_v14  ;;  %v3265_v19 = vadd.f32 %v3263_v31, %v3257_v61 }
 0xa11   : > { %v3266_v17 = vadd.f32 %v3264_v43, %v3258_v45  ;;  %v3286_v21 = vsel %vm3285_vm7, %v7973_v51, %v3265_v19 }
 0xa12   : > { %3288 = vst [vmem:[%s4809_s2] sm:$0xff] %v3286_v21 }
 0xa13   : > { %v3287_v53 = vsel %vm3285_vm7, %v7978_v33, %v3266_v17  ;;  %v3292_v54 = vcombine.high %v3265_v19, %v3266_v17 }
 0xa14   : > { %3289 = vst [vmem:[%s4809_s2 + $0x8] sm:$0xff] %v3287_v53 }
 0xa15   : > { %4497 = shalt.err (!%p4494_p5)
}
 0xa16   : > { %s4498_s29 = scalar_lea.hbm %s8071_s9, 256  ;;  %s4502_s2 = scalar_lea.hbm %s8134_s6, 512 }
 0xa17   : > { %p4499_p1 = scmp.ne.s32.totalorder %s8071_s9, %s4498_s29  ;;  %p4503_p7 = scmp.lt.s32.totalorder %s8071_s9, %s8134_s6 }
 0xa18   : > { %p4504_p10 = scmp.lt.s32.totalorder %s4502_s2, %s4498_s29 }
 0xa19   : > { %p4500_p3 = pnand %p4499_p1, %p9676_p13 }
 0xa1a   : > { %p4505_p11 = por %p4504_p10, %p4503_p7 }
 0xa1b   : > { %p4501_p4 = pneg %p4500_p3 }
 0xa1d   : > { %p4506_p8 = pnand %p4505_p11, %p4501_p4 }
 0xa1f   : > { %4509 = shalt.err (!%p4506_p8)
}
 0xa20   : > { %3537 = dma.vmem_to_hbm [thread:$0]  (%p9676_p13), %s8073_s14, 256, %s8071_s9, %s3316_s23   ;;  %v3299_v51 = vrot.slane %v3292_v54, %v3298_v23  ;;  %v9677_v8 = vlaneseq }
 0xa21   : > { %s4595_s10 = smov [#allocation12]   ;;  %p9678_p6 = scmp.eq.s32.totalorder %s4657_s30, 1 }
 0xa22   : > { %v3300_v33 = vcombine.high %v3299_v51, %v3299_v51  ;;  %s3341_s11 = sshll.u32 %s4595_s10, 4  ;;  %vm3312_vm8 = vcmp.lt.s32.totalorder %v9677_v8, 256  ;;  %s3342_s11 = int_to_ptr.vmem [resolvable:$true] %s3341_s11 }
 0xa23   : > { %s4510_s15 = scalar_lea.vmem %s3342_s11, 32  ;;  %p4517_p9 = scmp.lt.s32.totalorder %s3342_s11, %s3342_s11 }
 0xa24   : > { %v3307_v22 = vrot.slane %v3300_v33, %v3298_v23  ;;  %p4511_p2 = scmp.ne.s32.totalorder %s3342_s11, %s4510_s15  ;;  %p4518_p5 = scmp.lt.s32.totalorder %s4510_s15, %s4510_s15 }
 0xa26   : > { %v3308_v2 = vcombine.high %v3307_v22, %v3307_v22  ;;  %p4512_p12 = pnand %p4511_p2, %p9678_p6  ;;  %p4519_p1 = por %p4518_p5, %p4517_p9 }
 0xa28   : > { %3314 = vst.msk [vmem:[#allocation12] sm:$0x3] %vm3312_vm8, %v3308_v2  ;;  %p4513_p0 = pneg %p4512_p12 }
 0xa2a   : > { %p4520_p3 = pnand %p4519_p1, %p4513_p0 }
 0xa2c   : > { %4523 = shalt.err (!%p4520_p3)
}
 0xa2d   : > { %p9679_p13 = pmov %p9678_p6  ;;  %p9680_p4 = pmov %p9678_p6 }
 0xa2f   : > { %3539 = dma.vmem_to_hbm [thread:$0]  (%p9679_p13), %s3342_s11, 32, %s8135_s7, [#allocation13]  }
 0xa30   : > { %4563 = dma.done.wait (%p9680_p4), [#allocation13], 32   ;;  %p9681_p7 = pmov %p9680_p4 }
 0xa32   : > { %4565 = vsyncadd (%p9681_p7), [#allocation13], 4294967264 }
 0xa33 PF: > { %s3357_s9 = sand.u32 1, %s4572_s24   ;;  %p9682_p10 = scmp.ne.s32.totalorder %s8678_s22, 0 }
 0xa34   : > { %p9683_p11 = scmp.ge.s32.totalorder %s4584_s27, 2  ;;  %s3358_s23 = scalar_lea.sflag [#allocation4], %s3357_s9 }
 0xa36   : > { %p3561_p8 = pnand %p9683_p11, %p9682_p10 }
 0xa38   : > { %p3562_p2 = pneg %p3561_p8 }
 0xa3a   : > { %4567 = dma.done.wait (%p3562_p2), %s3358_s23, 256  }
 0xa3b   : > { %4569 = vsyncadd (%p3562_p2), %s3358_s23, 4294967040  ;;  %p24_p6 = scmp.ge.s32.totalorder %s4726_s13, 4   ;;  %s9684_s24 = smov %s4576_s25 }
 0xa3c   : > { %s9685_s25 = smov %s4580_s26  ;;  %s9686_s26 = smov %s4737_s17 }
 0xa3d   : > { %s9687_s27 = smov %s4726_s13  ;;  %26 = sbr.rel (!%p24_p6) target bundleno = 11 (0xb), region = 117 }
 0xa42   :  { %3363 = vsyncpa [#allocation3], 1 }
 0xa43   :  { %3365 = vsyncpa [#allocation3 + $0x1], 1 }
 0xa44   :  { %3366 = vsyncpa [#allocation6], 1 }
 0xa45   :  { %3367 = vsyncpa [#allocation9], 1 }
 0xa46   :  { %3368 = vsyncpa [#allocation4], 1 }
 0xa47   :  { %3370 = vsyncpa [#allocation4 + $0x1], 1 }
 0xa48   :  { %3371 = vsyncpa [#allocation13], 1 }

</bundles_post_ra>
